<compile_context>
chip_gen: v5e
topology: v5e:2x2
jax: 0.10.0
libtpu: 0.0.40
codegen_flags: <defaults>
</compile_context>

<pallas_src>
import functools

import jax
import jax.numpy as jnp
from jax import lax
from jax.experimental import pallas as pl
from jax.experimental.pallas import tpu as pltpu

# Model hyper-parameters (from the PyTorch module definition).
INPUT_SIZE = 4          # X_train.shape[2] (small synthetic choice)
HIDDEN = 256            # lstm hidden_size
NUM_HEADS = 8
HEAD_DIM = HIDDEN // NUM_HEADS
OUTPUT_SIZE = 1
SEQ = 8
BATCH = 2

_VMEM = pl.BlockSpec(memory_space=pltpu.MemorySpace.VMEM)


# ----------------------------------------------------------------------------
# Fused forward kernel.
#   x_ref      : (T*B, I)  time-major flattened input  (row = t*B + b)
#   wih_ref    : (I, 4H), whh_ref: (H, 4H), blstm_ref: (1, 4H)   [i, f, g, o]
#   win_ref    : (H, 3H), bin_ref: (1, 3H)      MultiheadAttention in_proj
#   wout_ref   : (H, H),  bout_ref: (1, H)      MultiheadAttention out_proj
#   w{1..5}/b{1..5}: MLP head 256->128->64->32->16->1
#   out_ref    : (B, 1)
#   lstm_buf   : VMEM scratch (T*B, H)
# ----------------------------------------------------------------------------
def _fused_kernel(x_ref, wih_ref, whh_ref, blstm_ref,
                  win_ref, bin_ref, wout_ref, bout_ref,
                  w1_ref, b1_ref, w2_ref, b2_ref, w3_ref, b3_ref,
                  w4_ref, b4_ref, w5_ref, b5_ref,
                  out_ref, lstm_buf, *, seq, batch):
    T, B, H = seq, batch, HIDDEN
    R = T * B

    # ---------------- LSTM ----------------------------------------------
    # Hoist the tiny-K input projection out of the serial recurrence.
    gates_x = (jnp.dot(x_ref[...], wih_ref[...],
                       preferred_element_type=jnp.float32)
               + blstm_ref[...])                                  # (R, 4H)

    h = jnp.zeros((B, H), jnp.float32)    # h0 / c0 zeros, as in the module
    c = jnp.zeros((B, H), jnp.float32)
    for t in range(T):                    # static trip count -> fully unrolled
        g = gates_x[t * B:(t + 1) * B, :] + jnp.dot(
            h, whh_ref[...], preferred_element_type=jnp.float32)  # (B, 4H)
        i_g = jax.nn.sigmoid(g[:, 0 * H:1 * H])
        f_g = jax.nn.sigmoid(g[:, 1 * H:2 * H])
        g_g = jnp.tanh(g[:, 2 * H:3 * H])
        o_g = jax.nn.sigmoid(g[:, 3 * H:4 * H])
        c = f_g * c + i_g * g_g
        h = o_g * jnp.tanh(c)
        lstm_buf[t * B:(t + 1) * B, :] = h        # lane-dense (R, H) slab

    lstm_out = lstm_buf[...]                      # (R, H)

    # ---------------- Multi-head self-attention --------------------------
    # in_proj for q, k, v in one matmul.
    qkv = (jnp.dot(lstm_out, win_ref[...],
                   preferred_element_type=jnp.float32)
           + bin_ref[...])                        # (R, 3H)
    k_all = qkv[:, H:2 * H]                       # (R, H)
    v_all = qkv[:, 2 * H:3 * H]                   # (R, H)

    # Only attn_out[:, -1, :] feeds the MLP head, so only the last-timestep
    # query rows (rows (T-1)*B .. R-1, i.e. batch 0..B-1) are needed.
    scale = 1.0 / float(HEAD_DIM) ** 0.5
    q_last = qkv[(T - 1) * B:R, 0:H] * scale      # (B, H)

    # key/value row j belongs to batch (j % B); query row m is batch m.
    col_b = lax.broadcasted_iota(jnp.int32, (B, R), 1) % B
    row_b = lax.broadcasted_iota(jnp.int32, (B, R), 0)
    same_batch = col_b == row_b                   # (B, R)

    # Per-head attention folded into the out-projection accumulation.
    ctx = jnp.zeros((B, H), jnp.float32)
    for hd in range(NUM_HEADS):
        lo, hi = hd * HEAD_DIM, (hd + 1) * HEAD_DIM
        q_h = q_last[:, lo:hi]                    # (B, D)
        k_h = k_all[:, lo:hi]                     # (R, D)
        v_h = v_all[:, lo:hi]                     # (R, D)
        s = jnp.dot(q_h, k_h.T,
                    preferred_element_type=jnp.float32)           # (B, R)
        s = jnp.where(same_batch, s, -1e30)
        s = s - jnp.max(s, axis=-1, keepdims=True)
        p = jnp.exp(s)
        p = p * pl.reciprocal(jnp.sum(p, axis=-1, keepdims=True),
                              approx=True)
        o_h = jnp.dot(p, v_h,
                      preferred_element_type=jnp.float32)         # (B, D)
        ctx = ctx + jnp.dot(o_h, wout_ref[lo:hi, :],
                            preferred_element_type=jnp.float32)   # (B, H)
    ctx = ctx + bout_ref[...]
    # TODO(synk): nn.Dropout(p=0.1) treated as identity (eval-mode semantics).

    # ---------------- MLP head -------------------------------------------
    z = jnp.maximum(ctx, 0.0)                     # relu(attn_out[:, -1, :])
    z = jnp.maximum(jnp.dot(z, w1_ref[...],
                            preferred_element_type=jnp.float32) + b1_ref[...], 0.0)
    z = jnp.maximum(jnp.dot(z, w2_ref[...],
                            preferred_element_type=jnp.float32) + b2_ref[...], 0.0)
    z = jnp.maximum(jnp.dot(z, w3_ref[...],
                            preferred_element_type=jnp.float32) + b3_ref[...], 0.0)
    z = jnp.maximum(jnp.dot(z, w4_ref[...],
                            preferred_element_type=jnp.float32) + b4_ref[...], 0.0)
    out_ref[...] = (jnp.dot(z, w5_ref[...],
                            preferred_element_type=jnp.float32) + b5_ref[...])


# ----------------------------------------------------------------------------
# Parameter construction (deterministic, PyTorch-shaped, pre-transposed).
# ----------------------------------------------------------------------------
def init_params(key):
    def uni(k, shape, scale):
        return jax.random.uniform(k, shape, jnp.float32, -scale, scale)

    keys = jax.random.split(key, 20)
    kH = 1.0 / jnp.sqrt(jnp.float32(HIDDEN))
    p = {}
    # LSTM: weight_ih (4H, I), weight_hh (4H, H), b_ih + b_hh -> pre-transposed
    p["w_ih_t"] = uni(keys[0], (INPUT_SIZE, 4 * HIDDEN), kH)
    p["w_hh_t"] = uni(keys[1], (HIDDEN, 4 * HIDDEN), kH)
    p["b_lstm"] = (uni(keys[2], (1, 4 * HIDDEN), kH)
                   + uni(keys[3], (1, 4 * HIDDEN), kH))      # b_ih + b_hh
    # MultiheadAttention: in_proj (xavier_uniform), biases zero (as in torch).
    xav = jnp.sqrt(jnp.float32(6.0 / (3 * HIDDEN + HIDDEN)))
    p["w_in_t"] = uni(keys[4], (HIDDEN, 3 * HIDDEN), xav)
    p["b_in"] = jnp.zeros((1, 3 * HIDDEN), jnp.float32)
    p["w_out_t"] = uni(keys[5], (HIDDEN, HIDDEN), kH)
    p["b_out"] = jnp.zeros((1, HIDDEN), jnp.float32)
    # MLP head: 256 -> 128 -> 64 -> 32 -> 16 -> 1
    dims = [HIDDEN, 128, 64, 32, 16, OUTPUT_SIZE]
    for li in range(5):
        fan_in, fan_out = dims[li], dims[li + 1]
        s = 1.0 / jnp.sqrt(jnp.float32(fan_in))
        p[f"w{li + 1}_t"] = uni(keys[6 + 2 * li], (fan_in, fan_out), s)
        p[f"b{li + 1}"] = uni(keys[7 + 2 * li], (1, fan_out), s)
    return p


# ----------------------------------------------------------------------------
# Full forward pass (mirrors Attention_LSTM.forward) — one pallas_call.
# ----------------------------------------------------------------------------
@jax.jit
def attention_lstm_forward(x, params):
    B, T, _ = x.shape
    # batch_first (B, T, I) -> time-major rows (T*B, I), row = t*B + b
    x_flat = jnp.transpose(x, (1, 0, 2)).reshape(T * B, INPUT_SIZE)

    kernel = functools.partial(_fused_kernel, seq=T, batch=B)
    out = pl.pallas_call(
        kernel,
        out_shape=jax.ShapeDtypeStruct((B, OUTPUT_SIZE), jnp.float32),
        in_specs=[_VMEM] * 18,
        out_specs=_VMEM,
        scratch_shapes=[pltpu.VMEM((T * B, HIDDEN), jnp.float32)],
    )(x_flat,
      params["w_ih_t"], params["w_hh_t"], params["b_lstm"],
      params["w_in_t"], params["b_in"], params["w_out_t"], params["b_out"],
      params["w1_t"], params["b1"], params["w2_t"], params["b2"],
      params["w3_t"], params["b3"], params["w4_t"], params["b4"],
      params["w5_t"], params["b5"])
    return out                                                # (B, 1)


if __name__ == "__main__":
    key = jax.random.PRNGKey(0)
    k_x, k_p = jax.random.split(key)
    x = jax.random.normal(k_x, (BATCH, SEQ, INPUT_SIZE), jnp.float32)
    params = init_params(k_p)

    out = attention_lstm_forward(x, params)
    out = jax.block_until_ready(out)
    assert out.shape == (BATCH, OUTPUT_SIZE) and out.dtype == jnp.float32
    assert bool(jnp.all(jnp.isfinite(out)))
    print("KERNEL_OK")
</pallas_src>

<mosaic_0001>
module attributes {stable_mosaic.version = 11 : i64} {
  func.func @_fused_kernel(%arg0: memref<16x4xf32, #tpu.memory_space<vmem>>, %arg1: memref<4x1024xf32, #tpu.memory_space<vmem>>, %arg2: memref<256x1024xf32, #tpu.memory_space<vmem>>, %arg3: memref<1x1024xf32, #tpu.memory_space<vmem>>, %arg4: memref<256x768xf32, #tpu.memory_space<vmem>>, %arg5: memref<1x768xf32, #tpu.memory_space<vmem>>, %arg6: memref<256x256xf32, #tpu.memory_space<vmem>>, %arg7: memref<1x256xf32, #tpu.memory_space<vmem>>, %arg8: memref<256x128xf32, #tpu.memory_space<vmem>>, %arg9: memref<1x128xf32, #tpu.memory_space<vmem>>, %arg10: memref<128x64xf32, #tpu.memory_space<vmem>>, %arg11: memref<1x64xf32, #tpu.memory_space<vmem>>, %arg12: memref<64x32xf32, #tpu.memory_space<vmem>>, %arg13: memref<1x32xf32, #tpu.memory_space<vmem>>, %arg14: memref<32x16xf32, #tpu.memory_space<vmem>>, %arg15: memref<1x16xf32, #tpu.memory_space<vmem>>, %arg16: memref<16x1xf32, #tpu.memory_space<vmem>>, %arg17: memref<1x1xf32, #tpu.memory_space<vmem>>, %arg18: memref<2x1xf32, #tpu.memory_space<vmem>>, %arg19: memref<16x256xf32, #tpu.memory_space<vmem>>) attributes {dimension_semantics = [], scalar_prefetch = 0 : i64, scratch_operands = 1 : i64, tpu.core_type = #tpu.core_type<tc>} {
    %c0 = arith.constant 0 : index
    %c0_0 = arith.constant 0 : index
    %0 = vector.load %arg0[%c0, %c0_0] : memref<16x4xf32, #tpu.memory_space<vmem>>, vector<16x4xf32>
    %c0_1 = arith.constant 0 : index
    %c0_2 = arith.constant 0 : index
    %1 = vector.load %arg1[%c0_1, %c0_2] : memref<4x1024xf32, #tpu.memory_space<vmem>>, vector<4x1024xf32>
    %cst = arith.constant dense<0.000000e+00> : vector<16x1024xf32>
    %2 = tpu.matmul %0, %1, %cst {dimension_numbers = #tpu.dot_dimension_numbers<[1], [0], [0], [1], [0, 0, 1, 1], [], []>} : vector<16x4xf32>, vector<4x1024xf32>, vector<16x1024xf32> -> vector<16x1024xf32>
    %c0_3 = arith.constant 0 : index
    %c0_4 = arith.constant 0 : index
    %3 = vector.load %arg3[%c0_3, %c0_4] : memref<1x1024xf32, #tpu.memory_space<vmem>>, vector<1x1024xf32>
    %4 = vector.broadcast %3 : vector<1x1024xf32> to vector<16x1024xf32>
    %5 = arith.addf %2, %4 : vector<16x1024xf32>
    %cst_5 = arith.constant 0.000000e+00 : f32
    %6 = vector.broadcast %cst_5 : f32 to vector<2x256xf32>
    %cst_6 = arith.constant 0.000000e+00 : f32
    %7 = vector.broadcast %cst_6 : f32 to vector<2x256xf32>
    %8 = vector.extract_strided_slice %5 {offsets = [0, 0], sizes = [2, 1024], strides = [1, 1]} : vector<16x1024xf32> to vector<2x1024xf32>
    %c0_7 = arith.constant 0 : index
    %c0_8 = arith.constant 0 : index
    %9 = vector.load %arg2[%c0_7, %c0_8] : memref<256x1024xf32, #tpu.memory_space<vmem>>, vector<256x1024xf32>
    %cst_9 = arith.constant dense<0.000000e+00> : vector<2x1024xf32>
    %10 = tpu.matmul %6, %9, %cst_9 {dimension_numbers = #tpu.dot_dimension_numbers<[1], [0], [0], [1], [0, 0, 1, 1], [], []>} : vector<2x256xf32>, vector<256x1024xf32>, vector<2x1024xf32> -> vector<2x1024xf32>
    %11 = arith.addf %8, %10 : vector<2x1024xf32>
    %12 = vector.extract_strided_slice %11 {offsets = [0, 0], sizes = [2, 256], strides = [1, 1]} : vector<2x1024xf32> to vector<2x256xf32>
    %13 = arith.negf %12 : vector<2x256xf32>
    %14 = math.exp %13 : vector<2x256xf32>
    %cst_10 = arith.constant 1.000000e+00 : f32
    %15 = vector.broadcast %cst_10 : f32 to vector<2x256xf32>
    %16 = arith.addf %15, %14 : vector<2x256xf32>
    %17 = arith.divf %15, %16 : vector<2x256xf32>
    %18 = vector.extract_strided_slice %11 {offsets = [0, 256], sizes = [2, 256], strides = [1, 1]} : vector<2x1024xf32> to vector<2x256xf32>
    %19 = arith.negf %18 : vector<2x256xf32>
    %20 = math.exp %19 : vector<2x256xf32>
    %cst_11 = arith.constant 1.000000e+00 : f32
    %21 = vector.broadcast %cst_11 : f32 to vector<2x256xf32>
    %22 = arith.addf %21, %20 : vector<2x256xf32>
    %23 = arith.divf %21, %22 : vector<2x256xf32>
    %24 = vector.extract_strided_slice %11 {offsets = [0, 512], sizes = [2, 256], strides = [1, 1]} : vector<2x1024xf32> to vector<2x256xf32>
    %25 = math.tanh %24 : vector<2x256xf32>
    %26 = vector.extract_strided_slice %11 {offsets = [0, 768], sizes = [2, 256], strides = [1, 1]} : vector<2x1024xf32> to vector<2x256xf32>
    %27 = arith.negf %26 : vector<2x256xf32>
    %28 = math.exp %27 : vector<2x256xf32>
    %cst_12 = arith.constant 1.000000e+00 : f32
    %29 = vector.broadcast %cst_12 : f32 to vector<2x256xf32>
    %30 = arith.addf %29, %28 : vector<2x256xf32>
    %31 = arith.divf %29, %30 : vector<2x256xf32>
    %32 = arith.mulf %23, %7 : vector<2x256xf32>
    %33 = arith.mulf %17, %25 : vector<2x256xf32>
    %34 = arith.addf %32, %33 : vector<2x256xf32>
    %35 = math.tanh %34 : vector<2x256xf32>
    %36 = arith.mulf %31, %35 : vector<2x256xf32>
    %c0_13 = arith.constant 0 : index
    %c0_14 = arith.constant 0 : index
    %37 = vector.load %arg19[%c0_13, %c0_14] : memref<16x256xf32, #tpu.memory_space<vmem>>, vector<2x256xf32>
    tpu.vector_store %arg19[%c0_13, %c0_14], %36 {strides = array<i32>} : memref<16x256xf32, #tpu.memory_space<vmem>>, vector<2x256xf32>,
    %38 = vector.extract_strided_slice %5 {offsets = [2, 0], sizes = [2, 1024], strides = [1, 1]} : vector<16x1024xf32> to vector<2x1024xf32>
    %c0_15 = arith.constant 0 : index
    %c0_16 = arith.constant 0 : index
    %39 = vector.load %arg2[%c0_15, %c0_16] : memref<256x1024xf32, #tpu.memory_space<vmem>>, vector<256x1024xf32>
    %cst_17 = arith.constant dense<0.000000e+00> : vector<2x1024xf32>
    %40 = tpu.matmul %36, %39, %cst_17 {dimension_numbers = #tpu.dot_dimension_numbers<[1], [0], [0], [1], [0, 0, 1, 1], [], []>} : vector<2x256xf32>, vector<256x1024xf32>, vector<2x1024xf32> -> vector<2x1024xf32>
    %41 = arith.addf %38, %40 : vector<2x1024xf32>
    %42 = vector.extract_strided_slice %41 {offsets = [0, 0], sizes = [2, 256], strides = [1, 1]} : vector<2x1024xf32> to vector<2x256xf32>
    %43 = arith.negf %42 : vector<2x256xf32>
    %44 = math.exp %43 : vector<2x256xf32>
    %cst_18 = arith.constant 1.000000e+00 : f32
    %45 = vector.broadcast %cst_18 : f32 to vector<2x256xf32>
    %46 = arith.addf %45, %44 : vector<2x256xf32>
    %47 = arith.divf %45, %46 : vector<2x256xf32>
    %48 = vector.extract_strided_slice %41 {offsets = [0, 256], sizes = [2, 256], strides = [1, 1]} : vector<2x1024xf32> to vector<2x256xf32>
    %49 = arith.negf %48 : vector<2x256xf32>
    %50 = math.exp %49 : vector<2x256xf32>
    %cst_19 = arith.constant 1.000000e+00 : f32
    %51 = vector.broadcast %cst_19 : f32 to vector<2x256xf32>
    %52 = arith.addf %51, %50 : vector<2x256xf32>
    %53 = arith.divf %51, %52 : vector<2x256xf32>
    %54 = vector.extract_strided_slice %41 {offsets = [0, 512], sizes = [2, 256], strides = [1, 1]} : vector<2x1024xf32> to vector<2x256xf32>
    %55 = math.tanh %54 : vector<2x256xf32>
    %56 = vector.extract_strided_slice %41 {offsets = [0, 768], sizes = [2, 256], strides = [1, 1]} : vector<2x1024xf32> to vector<2x256xf32>
    %57 = arith.negf %56 : vector<2x256xf32>
    %58 = math.exp %57 : vector<2x256xf32>
    %cst_20 = arith.constant 1.000000e+00 : f32
    %59 = vector.broadcast %cst_20 : f32 to vector<2x256xf32>
    %60 = arith.addf %59, %58 : vector<2x256xf32>
    %61 = arith.divf %59, %60 : vector<2x256xf32>
    %62 = arith.mulf %53, %34 : vector<2x256xf32>
    %63 = arith.mulf %47, %55 : vector<2x256xf32>
    %64 = arith.addf %62, %63 : vector<2x256xf32>
    %65 = math.tanh %64 : vector<2x256xf32>
    %66 = arith.mulf %61, %65 : vector<2x256xf32>
    %c2 = arith.constant 2 : index
    %c0_21 = arith.constant 0 : index
    %67 = vector.load %arg19[%c2, %c0_21] : memref<16x256xf32, #tpu.memory_space<vmem>>, vector<2x256xf32>
    tpu.vector_store %arg19[%c2, %c0_21], %66 {strides = array<i32>} : memref<16x256xf32, #tpu.memory_space<vmem>>, vector<2x256xf32>,
    %68 = vector.extract_strided_slice %5 {offsets = [4, 0], sizes = [2, 1024], strides = [1, 1]} : vector<16x1024xf32> to vector<2x1024xf32>
    %c0_22 = arith.constant 0 : index
    %c0_23 = arith.constant 0 : index
    %69 = vector.load %arg2[%c0_22, %c0_23] : memref<256x1024xf32, #tpu.memory_space<vmem>>, vector<256x1024xf32>
    %cst_24 = arith.constant dense<0.000000e+00> : vector<2x1024xf32>
    %70 = tpu.matmul %66, %69, %cst_24 {dimension_numbers = #tpu.dot_dimension_numbers<[1], [0], [0], [1], [0, 0, 1, 1], [], []>} : vector<2x256xf32>, vector<256x1024xf32>, vector<2x1024xf32> -> vector<2x1024xf32>
    %71 = arith.addf %68, %70 : vector<2x1024xf32>
    %72 = vector.extract_strided_slice %71 {offsets = [0, 0], sizes = [2, 256], strides = [1, 1]} : vector<2x1024xf32> to vector<2x256xf32>
    %73 = arith.negf %72 : vector<2x256xf32>
    %74 = math.exp %73 : vector<2x256xf32>
    %cst_25 = arith.constant 1.000000e+00 : f32
    %75 = vector.broadcast %cst_25 : f32 to vector<2x256xf32>
    %76 = arith.addf %75, %74 : vector<2x256xf32>
    %77 = arith.divf %75, %76 : vector<2x256xf32>
    %78 = vector.extract_strided_slice %71 {offsets = [0, 256], sizes = [2, 256], strides = [1, 1]} : vector<2x1024xf32> to vector<2x256xf32>
    %79 = arith.negf %78 : vector<2x256xf32>
    %80 = math.exp %79 : vector<2x256xf32>
    %cst_26 = arith.constant 1.000000e+00 : f32
    %81 = vector.broadcast %cst_26 : f32 to vector<2x256xf32>
    %82 = arith.addf %81, %80 : vector<2x256xf32>
    %83 = arith.divf %81, %82 : vector<2x256xf32>
    %84 = vector.extract_strided_slice %71 {offsets = [0, 512], sizes = [2, 256], strides = [1, 1]} : vector<2x1024xf32> to vector<2x256xf32>
    %85 = math.tanh %84 : vector<2x256xf32>
    %86 = vector.extract_strided_slice %71 {offsets = [0, 768], sizes = [2, 256], strides = [1, 1]} : vector<2x1024xf32> to vector<2x256xf32>
    %87 = arith.negf %86 : vector<2x256xf32>
    %88 = math.exp %87 : vector<2x256xf32>
    %cst_27 = arith.constant 1.000000e+00 : f32
    %89 = vector.broadcast %cst_27 : f32 to vector<2x256xf32>
    %90 = arith.addf %89, %88 : vector<2x256xf32>
    %91 = arith.divf %89, %90 : vector<2x256xf32>
    %92 = arith.mulf %83, %64 : vector<2x256xf32>
    %93 = arith.mulf %77, %85 : vector<2x256xf32>
    %94 = arith.addf %92, %93 : vector<2x256xf32>
    %95 = math.tanh %94 : vector<2x256xf32>
    %96 = arith.mulf %91, %95 : vector<2x256xf32>
    %c4 = arith.constant 4 : index
    %c0_28 = arith.constant 0 : index
    %97 = vector.load %arg19[%c4, %c0_28] : memref<16x256xf32, #tpu.memory_space<vmem>>, vector<2x256xf32>
    tpu.vector_store %arg19[%c4, %c0_28], %96 {strides = array<i32>} : memref<16x256xf32, #tpu.memory_space<vmem>>, vector<2x256xf32>,
    %98 = vector.extract_strided_slice %5 {offsets = [6, 0], sizes = [2, 1024], strides = [1, 1]} : vector<16x1024xf32> to vector<2x1024xf32>
    %c0_29 = arith.constant 0 : index
    %c0_30 = arith.constant 0 : index
    %99 = vector.load %arg2[%c0_29, %c0_30] : memref<256x1024xf32, #tpu.memory_space<vmem>>, vector<256x1024xf32>
    %cst_31 = arith.constant dense<0.000000e+00> : vector<2x1024xf32>
    %100 = tpu.matmul %96, %99, %cst_31 {dimension_numbers = #tpu.dot_dimension_numbers<[1], [0], [0], [1], [0, 0, 1, 1], [], []>} : vector<2x256xf32>, vector<256x1024xf32>, vector<2x1024xf32> -> vector<2x1024xf32>
    %101 = arith.addf %98, %100 : vector<2x1024xf32>
    %102 = vector.extract_strided_slice %101 {offsets = [0, 0], sizes = [2, 256], strides = [1, 1]} : vector<2x1024xf32> to vector<2x256xf32>
    %103 = arith.negf %102 : vector<2x256xf32>
    %104 = math.exp %103 : vector<2x256xf32>
    %cst_32 = arith.constant 1.000000e+00 : f32
    %105 = vector.broadcast %cst_32 : f32 to vector<2x256xf32>
    %106 = arith.addf %105, %104 : vector<2x256xf32>
    %107 = arith.divf %105, %106 : vector<2x256xf32>
    %108 = vector.extract_strided_slice %101 {offsets = [0, 256], sizes = [2, 256], strides = [1, 1]} : vector<2x1024xf32> to vector<2x256xf32>
    %109 = arith.negf %108 : vector<2x256xf32>
    %110 = math.exp %109 : vector<2x256xf32>
    %cst_33 = arith.constant 1.000000e+00 : f32
    %111 = vector.broadcast %cst_33 : f32 to vector<2x256xf32>
    %112 = arith.addf %111, %110 : vector<2x256xf32>
    %113 = arith.divf %111, %112 : vector<2x256xf32>
    %114 = vector.extract_strided_slice %101 {offsets = [0, 512], sizes = [2, 256], strides = [1, 1]} : vector<2x1024xf32> to vector<2x256xf32>
    %115 = math.tanh %114 : vector<2x256xf32>
    %116 = vector.extract_strided_slice %101 {offsets = [0, 768], sizes = [2, 256], strides = [1, 1]} : vector<2x1024xf32> to vector<2x256xf32>
    %117 = arith.negf %116 : vector<2x256xf32>
    %118 = math.exp %117 : vector<2x256xf32>
    %cst_34 = arith.constant 1.000000e+00 : f32
    %119 = vector.broadcast %cst_34 : f32 to vector<2x256xf32>
    %120 = arith.addf %119, %118 : vector<2x256xf32>
    %121 = arith.divf %119, %120 : vector<2x256xf32>
    %122 = arith.mulf %113, %94 : vector<2x256xf32>
    %123 = arith.mulf %107, %115 : vector<2x256xf32>
    %124 = arith.addf %122, %123 : vector<2x256xf32>
    %125 = math.tanh %124 : vector<2x256xf32>
    %126 = arith.mulf %121, %125 : vector<2x256xf32>
    %c6 = arith.constant 6 : index
    %c0_35 = arith.constant 0 : index
    %127 = vector.load %arg19[%c6, %c0_35] : memref<16x256xf32, #tpu.memory_space<vmem>>, vector<2x256xf32>
    tpu.vector_store %arg19[%c6, %c0_35], %126 {strides = array<i32>} : memref<16x256xf32, #tpu.memory_space<vmem>>, vector<2x256xf32>,
    %128 = vector.extract_strided_slice %5 {offsets = [8, 0], sizes = [2, 1024], strides = [1, 1]} : vector<16x1024xf32> to vector<2x1024xf32>
    %c0_36 = arith.constant 0 : index
    %c0_37 = arith.constant 0 : index
    %129 = vector.load %arg2[%c0_36, %c0_37] : memref<256x1024xf32, #tpu.memory_space<vmem>>, vector<256x1024xf32>
    %cst_38 = arith.constant dense<0.000000e+00> : vector<2x1024xf32>
    %130 = tpu.matmul %126, %129, %cst_38 {dimension_numbers = #tpu.dot_dimension_numbers<[1], [0], [0], [1], [0, 0, 1, 1], [], []>} : vector<2x256xf32>, vector<256x1024xf32>, vector<2x1024xf32> -> vector<2x1024xf32>
    %131 = arith.addf %128, %130 : vector<2x1024xf32>
    %132 = vector.extract_strided_slice %131 {offsets = [0, 0], sizes = [2, 256], strides = [1, 1]} : vector<2x1024xf32> to vector<2x256xf32>
    %133 = arith.negf %132 : vector<2x256xf32>
    %134 = math.exp %133 : vector<2x256xf32>
    %cst_39 = arith.constant 1.000000e+00 : f32
    %135 = vector.broadcast %cst_39 : f32 to vector<2x256xf32>
    %136 = arith.addf %135, %134 : vector<2x256xf32>
    %137 = arith.divf %135, %136 : vector<2x256xf32>
    %138 = vector.extract_strided_slice %131 {offsets = [0, 256], sizes = [2, 256], strides = [1, 1]} : vector<2x1024xf32> to vector<2x256xf32>
    %139 = arith.negf %138 : vector<2x256xf32>
    %140 = math.exp %139 : vector<2x256xf32>
    %cst_40 = arith.constant 1.000000e+00 : f32
    %141 = vector.broadcast %cst_40 : f32 to vector<2x256xf32>
    %142 = arith.addf %141, %140 : vector<2x256xf32>
    %143 = arith.divf %141, %142 : vector<2x256xf32>
    %144 = vector.extract_strided_slice %131 {offsets = [0, 512], sizes = [2, 256], strides = [1, 1]} : vector<2x1024xf32> to vector<2x256xf32>
    %145 = math.tanh %144 : vector<2x256xf32>
    %146 = vector.extract_strided_slice %131 {offsets = [0, 768], sizes = [2, 256], strides = [1, 1]} : vector<2x1024xf32> to vector<2x256xf32>
    %147 = arith.negf %146 : vector<2x256xf32>
    %148 = math.exp %147 : vector<2x256xf32>
    %cst_41 = arith.constant 1.000000e+00 : f32
    %149 = vector.broadcast %cst_41 : f32 to vector<2x256xf32>
    %150 = arith.addf %149, %148 : vector<2x256xf32>
    %151 = arith.divf %149, %150 : vector<2x256xf32>
    %152 = arith.mulf %143, %124 : vector<2x256xf32>
    %153 = arith.mulf %137, %145 : vector<2x256xf32>
    %154 = arith.addf %152, %153 : vector<2x256xf32>
    %155 = math.tanh %154 : vector<2x256xf32>
    %156 = arith.mulf %151, %155 : vector<2x256xf32>
    %c8 = arith.constant 8 : index
    %c0_42 = arith.constant 0 : index
    %157 = vector.load %arg19[%c8, %c0_42] : memref<16x256xf32, #tpu.memory_space<vmem>>, vector<2x256xf32>
    tpu.vector_store %arg19[%c8, %c0_42], %156 {strides = array<i32>} : memref<16x256xf32, #tpu.memory_space<vmem>>, vector<2x256xf32>,
    %158 = vector.extract_strided_slice %5 {offsets = [10, 0], sizes = [2, 1024], strides = [1, 1]} : vector<16x1024xf32> to vector<2x1024xf32>
    %c0_43 = arith.constant 0 : index
    %c0_44 = arith.constant 0 : index
    %159 = vector.load %arg2[%c0_43, %c0_44] : memref<256x1024xf32, #tpu.memory_space<vmem>>, vector<256x1024xf32>
    %cst_45 = arith.constant dense<0.000000e+00> : vector<2x1024xf32>
    %160 = tpu.matmul %156, %159, %cst_45 {dimension_numbers = #tpu.dot_dimension_numbers<[1], [0], [0], [1], [0, 0, 1, 1], [], []>} : vector<2x256xf32>, vector<256x1024xf32>, vector<2x1024xf32> -> vector<2x1024xf32>
    %161 = arith.addf %158, %160 : vector<2x1024xf32>
    %162 = vector.extract_strided_slice %161 {offsets = [0, 0], sizes = [2, 256], strides = [1, 1]} : vector<2x1024xf32> to vector<2x256xf32>
    %163 = arith.negf %162 : vector<2x256xf32>
    %164 = math.exp %163 : vector<2x256xf32>
    %cst_46 = arith.constant 1.000000e+00 : f32
    %165 = vector.broadcast %cst_46 : f32 to vector<2x256xf32>
    %166 = arith.addf %165, %164 : vector<2x256xf32>
    %167 = arith.divf %165, %166 : vector<2x256xf32>
    %168 = vector.extract_strided_slice %161 {offsets = [0, 256], sizes = [2, 256], strides = [1, 1]} : vector<2x1024xf32> to vector<2x256xf32>
    %169 = arith.negf %168 : vector<2x256xf32>
    %170 = math.exp %169 : vector<2x256xf32>
    %cst_47 = arith.constant 1.000000e+00 : f32
    %171 = vector.broadcast %cst_47 : f32 to vector<2x256xf32>
    %172 = arith.addf %171, %170 : vector<2x256xf32>
    %173 = arith.divf %171, %172 : vector<2x256xf32>
    %174 = vector.extract_strided_slice %161 {offsets = [0, 512], sizes = [2, 256], strides = [1, 1]} : vector<2x1024xf32> to vector<2x256xf32>
    %175 = math.tanh %174 : vector<2x256xf32>
    %176 = vector.extract_strided_slice %161 {offsets = [0, 768], sizes = [2, 256], strides = [1, 1]} : vector<2x1024xf32> to vector<2x256xf32>
    %177 = arith.negf %176 : vector<2x256xf32>
    %178 = math.exp %177 : vector<2x256xf32>
    %cst_48 = arith.constant 1.000000e+00 : f32
    %179 = vector.broadcast %cst_48 : f32 to vector<2x256xf32>
    %180 = arith.addf %179, %178 : vector<2x256xf32>
    %181 = arith.divf %179, %180 : vector<2x256xf32>
    %182 = arith.mulf %173, %154 : vector<2x256xf32>
    %183 = arith.mulf %167, %175 : vector<2x256xf32>
    %184 = arith.addf %182, %183 : vector<2x256xf32>
    %185 = math.tanh %184 : vector<2x256xf32>
    %186 = arith.mulf %181, %185 : vector<2x256xf32>
    %c10 = arith.constant 10 : index
    %c0_49 = arith.constant 0 : index
    %187 = vector.load %arg19[%c10, %c0_49] : memref<16x256xf32, #tpu.memory_space<vmem>>, vector<2x256xf32>
    tpu.vector_store %arg19[%c10, %c0_49], %186 {strides = array<i32>} : memref<16x256xf32, #tpu.memory_space<vmem>>, vector<2x256xf32>,
    %188 = vector.extract_strided_slice %5 {offsets = [12, 0], sizes = [2, 1024], strides = [1, 1]} : vector<16x1024xf32> to vector<2x1024xf32>
    %c0_50 = arith.constant 0 : index
    %c0_51 = arith.constant 0 : index
    %189 = vector.load %arg2[%c0_50, %c0_51] : memref<256x1024xf32, #tpu.memory_space<vmem>>, vector<256x1024xf32>
    %cst_52 = arith.constant dense<0.000000e+00> : vector<2x1024xf32>
    %190 = tpu.matmul %186, %189, %cst_52 {dimension_numbers = #tpu.dot_dimension_numbers<[1], [0], [0], [1], [0, 0, 1, 1], [], []>} : vector<2x256xf32>, vector<256x1024xf32>, vector<2x1024xf32> -> vector<2x1024xf32>
    %191 = arith.addf %188, %190 : vector<2x1024xf32>
    %192 = vector.extract_strided_slice %191 {offsets = [0, 0], sizes = [2, 256], strides = [1, 1]} : vector<2x1024xf32> to vector<2x256xf32>
    %193 = arith.negf %192 : vector<2x256xf32>
    %194 = math.exp %193 : vector<2x256xf32>
    %cst_53 = arith.constant 1.000000e+00 : f32
    %195 = vector.broadcast %cst_53 : f32 to vector<2x256xf32>
    %196 = arith.addf %195, %194 : vector<2x256xf32>
    %197 = arith.divf %195, %196 : vector<2x256xf32>
    %198 = vector.extract_strided_slice %191 {offsets = [0, 256], sizes = [2, 256], strides = [1, 1]} : vector<2x1024xf32> to vector<2x256xf32>
    %199 = arith.negf %198 : vector<2x256xf32>
    %200 = math.exp %199 : vector<2x256xf32>
    %cst_54 = arith.constant 1.000000e+00 : f32
    %201 = vector.broadcast %cst_54 : f32 to vector<2x256xf32>
    %202 = arith.addf %201, %200 : vector<2x256xf32>
    %203 = arith.divf %201, %202 : vector<2x256xf32>
    %204 = vector.extract_strided_slice %191 {offsets = [0, 512], sizes = [2, 256], strides = [1, 1]} : vector<2x1024xf32> to vector<2x256xf32>
    %205 = math.tanh %204 : vector<2x256xf32>
    %206 = vector.extract_strided_slice %191 {offsets = [0, 768], sizes = [2, 256], strides = [1, 1]} : vector<2x1024xf32> to vector<2x256xf32>
    %207 = arith.negf %206 : vector<2x256xf32>
    %208 = math.exp %207 : vector<2x256xf32>
    %cst_55 = arith.constant 1.000000e+00 : f32
    %209 = vector.broadcast %cst_55 : f32 to vector<2x256xf32>
    %210 = arith.addf %209, %208 : vector<2x256xf32>
    %211 = arith.divf %209, %210 : vector<2x256xf32>
    %212 = arith.mulf %203, %184 : vector<2x256xf32>
    %213 = arith.mulf %197, %205 : vector<2x256xf32>
    %214 = arith.addf %212, %213 : vector<2x256xf32>
    %215 = math.tanh %214 : vector<2x256xf32>
    %216 = arith.mulf %211, %215 : vector<2x256xf32>
    %c12 = arith.constant 12 : index
    %c0_56 = arith.constant 0 : index
    %217 = vector.load %arg19[%c12, %c0_56] : memref<16x256xf32, #tpu.memory_space<vmem>>, vector<2x256xf32>
    tpu.vector_store %arg19[%c12, %c0_56], %216 {strides = array<i32>} : memref<16x256xf32, #tpu.memory_space<vmem>>, vector<2x256xf32>,
    %218 = vector.extract_strided_slice %5 {offsets = [14, 0], sizes = [2, 1024], strides = [1, 1]} : vector<16x1024xf32> to vector<2x1024xf32>
    %c0_57 = arith.constant 0 : index
    %c0_58 = arith.constant 0 : index
    %219 = vector.load %arg2[%c0_57, %c0_58] : memref<256x1024xf32, #tpu.memory_space<vmem>>, vector<256x1024xf32>
    %cst_59 = arith.constant dense<0.000000e+00> : vector<2x1024xf32>
    %220 = tpu.matmul %216, %219, %cst_59 {dimension_numbers = #tpu.dot_dimension_numbers<[1], [0], [0], [1], [0, 0, 1, 1], [], []>} : vector<2x256xf32>, vector<256x1024xf32>, vector<2x1024xf32> -> vector<2x1024xf32>
    %221 = arith.addf %218, %220 : vector<2x1024xf32>
    %222 = vector.extract_strided_slice %221 {offsets = [0, 0], sizes = [2, 256], strides = [1, 1]} : vector<2x1024xf32> to vector<2x256xf32>
    %223 = arith.negf %222 : vector<2x256xf32>
    %224 = math.exp %223 : vector<2x256xf32>
    %cst_60 = arith.constant 1.000000e+00 : f32
    %225 = vector.broadcast %cst_60 : f32 to vector<2x256xf32>
    %226 = arith.addf %225, %224 : vector<2x256xf32>
    %227 = arith.divf %225, %226 : vector<2x256xf32>
    %228 = vector.extract_strided_slice %221 {offsets = [0, 256], sizes = [2, 256], strides = [1, 1]} : vector<2x1024xf32> to vector<2x256xf32>
    %229 = arith.negf %228 : vector<2x256xf32>
    %230 = math.exp %229 : vector<2x256xf32>
    %cst_61 = arith.constant 1.000000e+00 : f32
    %231 = vector.broadcast %cst_61 : f32 to vector<2x256xf32>
    %232 = arith.addf %231, %230 : vector<2x256xf32>
    %233 = arith.divf %231, %232 : vector<2x256xf32>
    %234 = vector.extract_strided_slice %221 {offsets = [0, 512], sizes = [2, 256], strides = [1, 1]} : vector<2x1024xf32> to vector<2x256xf32>
    %235 = math.tanh %234 : vector<2x256xf32>
    %236 = vector.extract_strided_slice %221 {offsets = [0, 768], sizes = [2, 256], strides = [1, 1]} : vector<2x1024xf32> to vector<2x256xf32>
    %237 = arith.negf %236 : vector<2x256xf32>
    %238 = math.exp %237 : vector<2x256xf32>
    %cst_62 = arith.constant 1.000000e+00 : f32
    %239 = vector.broadcast %cst_62 : f32 to vector<2x256xf32>
    %240 = arith.addf %239, %238 : vector<2x256xf32>
    %241 = arith.divf %239, %240 : vector<2x256xf32>
    %242 = arith.mulf %233, %214 : vector<2x256xf32>
    %243 = arith.mulf %227, %235 : vector<2x256xf32>
    %244 = arith.addf %242, %243 : vector<2x256xf32>
    %245 = math.tanh %244 : vector<2x256xf32>
    %246 = arith.mulf %241, %245 : vector<2x256xf32>
    %c14 = arith.constant 14 : index
    %c0_63 = arith.constant 0 : index
    %247 = vector.load %arg19[%c14, %c0_63] : memref<16x256xf32, #tpu.memory_space<vmem>>, vector<2x256xf32>
    tpu.vector_store %arg19[%c14, %c0_63], %246 {strides = array<i32>} : memref<16x256xf32, #tpu.memory_space<vmem>>, vector<2x256xf32>,
    %c0_64 = arith.constant 0 : index
    %c0_65 = arith.constant 0 : index
    %248 = vector.load %arg19[%c0_64, %c0_65] : memref<16x256xf32, #tpu.memory_space<vmem>>, vector<16x256xf32>
    %c0_66 = arith.constant 0 : index
    %c0_67 = arith.constant 0 : index
    %249 = vector.load %arg4[%c0_66, %c0_67] : memref<256x768xf32, #tpu.memory_space<vmem>>, vector<256x768xf32>
    %cst_68 = arith.constant dense<0.000000e+00> : vector<16x768xf32>
    %250 = tpu.matmul %248, %249, %cst_68 {dimension_numbers = #tpu.dot_dimension_numbers<[1], [0], [0], [1], [0, 0, 1, 1], [], []>} : vector<16x256xf32>, vector<256x768xf32>, vector<16x768xf32> -> vector<16x768xf32>
    %c0_69 = arith.constant 0 : index
    %c0_70 = arith.constant 0 : index
    %251 = vector.load %arg5[%c0_69, %c0_70] : memref<1x768xf32, #tpu.memory_space<vmem>>, vector<1x768xf32>
    %252 = vector.broadcast %251 : vector<1x768xf32> to vector<16x768xf32>
    %253 = arith.addf %250, %252 : vector<16x768xf32>
    %254 = vector.extract_strided_slice %253 {offsets = [0, 256], sizes = [16, 256], strides = [1, 1]} : vector<16x768xf32> to vector<16x256xf32>
    %255 = vector.extract_strided_slice %253 {offsets = [0, 512], sizes = [16, 256], strides = [1, 1]} : vector<16x768xf32> to vector<16x256xf32>
    %256 = vector.extract_strided_slice %253 {offsets = [14, 0], sizes = [2, 256], strides = [1, 1]} : vector<16x768xf32> to vector<2x256xf32>
    %cst_71 = arith.constant 0.176776692 : f32
    %257 = vector.broadcast %cst_71 : f32 to vector<2x256xf32>
    %258 = arith.mulf %256, %257 : vector<2x256xf32>
    %259 = tpu.iota {dimensions = array<i32: 1>} : vector<2x16xi32>
    %c2_i32 = arith.constant 2 : i32
    %c0_i32 = arith.constant 0 : i32
    %260 = arith.cmpi eq, %c2_i32, %c0_i32 : i32
    %c1_i32 = arith.constant 1 : i32
    %261 = arith.select %260, %c1_i32, %c2_i32 : i32
    %262 = vector.broadcast %261 : i32 to vector<2x16xi32>
    %263 = arith.remsi %259, %262 : vector<2x16xi32>
    %c0_i32_72 = arith.constant 0 : i32
    %264 = vector.broadcast %c0_i32_72 : i32 to vector<2x16xi32>
    %265 = arith.cmpi ne, %263, %264 : vector<2x16xi32>
    %c0_i32_73 = arith.constant 0 : i32
    %266 = vector.broadcast %c0_i32_73 : i32 to vector<2x16xi32>
    %267 = arith.cmpi slt, %263, %266 : vector<2x16xi32>
    %c0_i32_74 = arith.constant 0 : i32
    %268 = arith.cmpi slt, %261, %c0_i32_74 : i32
    %269 = vector.broadcast %268 : i1 to vector<2x16xi1>
    %270 = vector.broadcast %269 : vector<2x16xi1> to vector<2x16xi1>
    %271 = arith.xori %267, %270 : vector<2x16xi1>
    %272 = arith.andi %271, %265 : vector<2x16xi1>
    %273 = vector.broadcast %261 : i32 to vector<2x16xi32>
    %274 = arith.addi %263, %273 : vector<2x16xi32>
    %275 = arith.select %272, %274, %263 : vector<2x16xi1>, vector<2x16xi32>
    %276 = tpu.iota {dimensions = array<i32: 0>} : vector<2x16xi32>
    %277 = arith.cmpi eq, %275, %276 : vector<2x16xi32>
    %cst_75 = arith.constant 0.000000e+00 : f32
    %278 = vector.broadcast %cst_75 : f32 to vector<2x256xf32>
    %279 = vector.extract_strided_slice %258 {offsets = [0, 0], sizes = [2, 32], strides = [1, 1]} : vector<2x256xf32> to vector<2x32xf32>
    %280 = vector.extract_strided_slice %254 {offsets = [0, 0], sizes = [16, 32], strides = [1, 1]} : vector<16x256xf32> to vector<16x32xf32>
    %281 = vector.extract_strided_slice %255 {offsets = [0, 0], sizes = [16, 32], strides = [1, 1]} : vector<16x256xf32> to vector<16x32xf32>
    %282 = tpu.transpose %280, [1, 0] : vector<16x32xf32> -> vector<32x16xf32>
    %cst_76 = arith.constant dense<0.000000e+00> : vector<2x16xf32>
    %283 = tpu.matmul %279, %282, %cst_76 {dimension_numbers = #tpu.dot_dimension_numbers<[1], [0], [0], [1], [0, 0, 1, 1], [], []>} : vector<2x32xf32>, vector<32x16xf32>, vector<2x16xf32> -> vector<2x16xf32>
    %cst_77 = arith.constant -1.000000e+30 : f32
    %284 = vector.broadcast %cst_77 : f32 to vector<2x16xf32>
    %285 = arith.select %277, %283, %284 : vector<2x16xi1>, vector<2x16xf32>
    %cst_78 = arith.constant dense<0xFF800000> : vector<2xf32>
    %286 = vector.multi_reduction <maximumf>, %285, %cst_78 [1] : vector<2x16xf32> to vector<2xf32>
    %287 = vector.shape_cast %286 : vector<2xf32> to vector<2x1xf32>
    %288 = vector.broadcast %287 : vector<2x1xf32> to vector<2x16xf32>
    %289 = arith.subf %285, %288 : vector<2x16xf32>
    %290 = math.exp %289 : vector<2x16xf32>
    %cst_79 = arith.constant dense<0.000000e+00> : vector<2xf32>
    %291 = vector.multi_reduction <add>, %290, %cst_79 [1] : vector<2x16xf32> to vector<2xf32>
    %292 = vector.shape_cast %291 : vector<2xf32> to vector<2x1xf32>
    %293 = tpu.reciprocal %292 {approx = true} : vector<2x1xf32> -> vector<2x1xf32>
    %294 = vector.broadcast %293 : vector<2x1xf32> to vector<2x16xf32>
    %295 = arith.mulf %290, %294 : vector<2x16xf32>
    %cst_80 = arith.constant dense<0.000000e+00> : vector<2x32xf32>
    %296 = tpu.matmul %295, %281, %cst_80 {dimension_numbers = #tpu.dot_dimension_numbers<[1], [0], [0], [1], [0, 0, 1, 1], [], []>} : vector<2x16xf32>, vector<16x32xf32>, vector<2x32xf32> -> vector<2x32xf32>
    %c0_81 = arith.constant 0 : index
    %c0_82 = arith.constant 0 : index
    %297 = vector.load %arg6[%c0_81, %c0_82] : memref<256x256xf32, #tpu.memory_space<vmem>>, vector<32x256xf32>
    %cst_83 = arith.constant dense<0.000000e+00> : vector<2x256xf32>
    %298 = tpu.matmul %296, %297, %cst_83 {dimension_numbers = #tpu.dot_dimension_numbers<[1], [0], [0], [1], [0, 0, 1, 1], [], []>} : vector<2x32xf32>, vector<32x256xf32>, vector<2x256xf32> -> vector<2x256xf32>
    %299 = arith.addf %278, %298 : vector<2x256xf32>
    %300 = vector.extract_strided_slice %258 {offsets = [0, 32], sizes = [2, 32], strides = [1, 1]} : vector<2x256xf32> to vector<2x32xf32>
    %301 = vector.extract_strided_slice %254 {offsets = [0, 32], sizes = [16, 32], strides = [1, 1]} : vector<16x256xf32> to vector<16x32xf32>
    %302 = vector.extract_strided_slice %255 {offsets = [0, 32], sizes = [16, 32], strides = [1, 1]} : vector<16x256xf32> to vector<16x32xf32>
    %303 = tpu.transpose %301, [1, 0] : vector<16x32xf32> -> vector<32x16xf32>
    %cst_84 = arith.constant dense<0.000000e+00> : vector<2x16xf32>
    %304 = tpu.matmul %300, %303, %cst_84 {dimension_numbers = #tpu.dot_dimension_numbers<[1], [0], [0], [1], [0, 0, 1, 1], [], []>} : vector<2x32xf32>, vector<32x16xf32>, vector<2x16xf32> -> vector<2x16xf32>
    %cst_85 = arith.constant -1.000000e+30 : f32
    %305 = vector.broadcast %cst_85 : f32 to vector<2x16xf32>
    %306 = arith.select %277, %304, %305 : vector<2x16xi1>, vector<2x16xf32>
    %cst_86 = arith.constant dense<0xFF800000> : vector<2xf32>
    %307 = vector.multi_reduction <maximumf>, %306, %cst_86 [1] : vector<2x16xf32> to vector<2xf32>
    %308 = vector.shape_cast %307 : vector<2xf32> to vector<2x1xf32>
    %309 = vector.broadcast %308 : vector<2x1xf32> to vector<2x16xf32>
    %310 = arith.subf %306, %309 : vector<2x16xf32>
    %311 = math.exp %310 : vector<2x16xf32>
    %cst_87 = arith.constant dense<0.000000e+00> : vector<2xf32>
    %312 = vector.multi_reduction <add>, %311, %cst_87 [1] : vector<2x16xf32> to vector<2xf32>
    %313 = vector.shape_cast %312 : vector<2xf32> to vector<2x1xf32>
    %314 = tpu.reciprocal %313 {approx = true} : vector<2x1xf32> -> vector<2x1xf32>
    %315 = vector.broadcast %314 : vector<2x1xf32> to vector<2x16xf32>
    %316 = arith.mulf %311, %315 : vector<2x16xf32>
    %cst_88 = arith.constant dense<0.000000e+00> : vector<2x32xf32>
    %317 = tpu.matmul %316, %302, %cst_88 {dimension_numbers = #tpu.dot_dimension_numbers<[1], [0], [0], [1], [0, 0, 1, 1], [], []>} : vector<2x16xf32>, vector<16x32xf32>, vector<2x32xf32> -> vector<2x32xf32>
    %c32 = arith.constant 32 : index
    %c0_89 = arith.constant 0 : index
    %318 = vector.load %arg6[%c32, %c0_89] : memref<256x256xf32, #tpu.memory_space<vmem>>, vector<32x256xf32>
    %cst_90 = arith.constant dense<0.000000e+00> : vector<2x256xf32>
    %319 = tpu.matmul %317, %318, %cst_90 {dimension_numbers = #tpu.dot_dimension_numbers<[1], [0], [0], [1], [0, 0, 1, 1], [], []>} : vector<2x32xf32>, vector<32x256xf32>, vector<2x256xf32> -> vector<2x256xf32>
    %320 = arith.addf %299, %319 : vector<2x256xf32>
    %321 = vector.extract_strided_slice %258 {offsets = [0, 64], sizes = [2, 32], strides = [1, 1]} : vector<2x256xf32> to vector<2x32xf32>
    %322 = vector.extract_strided_slice %254 {offsets = [0, 64], sizes = [16, 32], strides = [1, 1]} : vector<16x256xf32> to vector<16x32xf32>
    %323 = vector.extract_strided_slice %255 {offsets = [0, 64], sizes = [16, 32], strides = [1, 1]} : vector<16x256xf32> to vector<16x32xf32>
    %324 = tpu.transpose %322, [1, 0] : vector<16x32xf32> -> vector<32x16xf32>
    %cst_91 = arith.constant dense<0.000000e+00> : vector<2x16xf32>
    %325 = tpu.matmul %321, %324, %cst_91 {dimension_numbers = #tpu.dot_dimension_numbers<[1], [0], [0], [1], [0, 0, 1, 1], [], []>} : vector<2x32xf32>, vector<32x16xf32>, vector<2x16xf32> -> vector<2x16xf32>
    %cst_92 = arith.constant -1.000000e+30 : f32
    %326 = vector.broadcast %cst_92 : f32 to vector<2x16xf32>
    %327 = arith.select %277, %325, %326 : vector<2x16xi1>, vector<2x16xf32>
    %cst_93 = arith.constant dense<0xFF800000> : vector<2xf32>
    %328 = vector.multi_reduction <maximumf>, %327, %cst_93 [1] : vector<2x16xf32> to vector<2xf32>
    %329 = vector.shape_cast %328 : vector<2xf32> to vector<2x1xf32>
    %330 = vector.broadcast %329 : vector<2x1xf32> to vector<2x16xf32>
    %331 = arith.subf %327, %330 : vector<2x16xf32>
    %332 = math.exp %331 : vector<2x16xf32>
    %cst_94 = arith.constant dense<0.000000e+00> : vector<2xf32>
    %333 = vector.multi_reduction <add>, %332, %cst_94 [1] : vector<2x16xf32> to vector<2xf32>
    %334 = vector.shape_cast %333 : vector<2xf32> to vector<2x1xf32>
    %335 = tpu.reciprocal %334 {approx = true} : vector<2x1xf32> -> vector<2x1xf32>
    %336 = vector.broadcast %335 : vector<2x1xf32> to vector<2x16xf32>
    %337 = arith.mulf %332, %336 : vector<2x16xf32>
    %cst_95 = arith.constant dense<0.000000e+00> : vector<2x32xf32>
    %338 = tpu.matmul %337, %323, %cst_95 {dimension_numbers = #tpu.dot_dimension_numbers<[1], [0], [0], [1], [0, 0, 1, 1], [], []>} : vector<2x16xf32>, vector<16x32xf32>, vector<2x32xf32> -> vector<2x32xf32>
    %c64 = arith.constant 64 : index
    %c0_96 = arith.constant 0 : index
    %339 = vector.load %arg6[%c64, %c0_96] : memref<256x256xf32, #tpu.memory_space<vmem>>, vector<32x256xf32>
    %cst_97 = arith.constant dense<0.000000e+00> : vector<2x256xf32>
    %340 = tpu.matmul %338, %339, %cst_97 {dimension_numbers = #tpu.dot_dimension_numbers<[1], [0], [0], [1], [0, 0, 1, 1], [], []>} : vector<2x32xf32>, vector<32x256xf32>, vector<2x256xf32> -> vector<2x256xf32>
    %341 = arith.addf %320, %340 : vector<2x256xf32>
    %342 = vector.extract_strided_slice %258 {offsets = [0, 96], sizes = [2, 32], strides = [1, 1]} : vector<2x256xf32> to vector<2x32xf32>
    %343 = vector.extract_strided_slice %254 {offsets = [0, 96], sizes = [16, 32], strides = [1, 1]} : vector<16x256xf32> to vector<16x32xf32>
    %344 = vector.extract_strided_slice %255 {offsets = [0, 96], sizes = [16, 32], strides = [1, 1]} : vector<16x256xf32> to vector<16x32xf32>
    %345 = tpu.transpose %343, [1, 0] : vector<16x32xf32> -> vector<32x16xf32>
    %cst_98 = arith.constant dense<0.000000e+00> : vector<2x16xf32>
    %346 = tpu.matmul %342, %345, %cst_98 {dimension_numbers = #tpu.dot_dimension_numbers<[1], [0], [0], [1], [0, 0, 1, 1], [], []>} : vector<2x32xf32>, vector<32x16xf32>, vector<2x16xf32> -> vector<2x16xf32>
    %cst_99 = arith.constant -1.000000e+30 : f32
    %347 = vector.broadcast %cst_99 : f32 to vector<2x16xf32>
    %348 = arith.select %277, %346, %347 : vector<2x16xi1>, vector<2x16xf32>
    %cst_100 = arith.constant dense<0xFF800000> : vector<2xf32>
    %349 = vector.multi_reduction <maximumf>, %348, %cst_100 [1] : vector<2x16xf32> to vector<2xf32>
    %350 = vector.shape_cast %349 : vector<2xf32> to vector<2x1xf32>
    %351 = vector.broadcast %350 : vector<2x1xf32> to vector<2x16xf32>
    %352 = arith.subf %348, %351 : vector<2x16xf32>
    %353 = math.exp %352 : vector<2x16xf32>
    %cst_101 = arith.constant dense<0.000000e+00> : vector<2xf32>
    %354 = vector.multi_reduction <add>, %353, %cst_101 [1] : vector<2x16xf32> to vector<2xf32>
    %355 = vector.shape_cast %354 : vector<2xf32> to vector<2x1xf32>
    %356 = tpu.reciprocal %355 {approx = true} : vector<2x1xf32> -> vector<2x1xf32>
    %357 = vector.broadcast %356 : vector<2x1xf32> to vector<2x16xf32>
    %358 = arith.mulf %353, %357 : vector<2x16xf32>
    %cst_102 = arith.constant dense<0.000000e+00> : vector<2x32xf32>
    %359 = tpu.matmul %358, %344, %cst_102 {dimension_numbers = #tpu.dot_dimension_numbers<[1], [0], [0], [1], [0, 0, 1, 1], [], []>} : vector<2x16xf32>, vector<16x32xf32>, vector<2x32xf32> -> vector<2x32xf32>
    %c96 = arith.constant 96 : index
    %c0_103 = arith.constant 0 : index
    %360 = vector.load %arg6[%c96, %c0_103] : memref<256x256xf32, #tpu.memory_space<vmem>>, vector<32x256xf32>
    %cst_104 = arith.constant dense<0.000000e+00> : vector<2x256xf32>
    %361 = tpu.matmul %359, %360, %cst_104 {dimension_numbers = #tpu.dot_dimension_numbers<[1], [0], [0], [1], [0, 0, 1, 1], [], []>} : vector<2x32xf32>, vector<32x256xf32>, vector<2x256xf32> -> vector<2x256xf32>
    %362 = arith.addf %341, %361 : vector<2x256xf32>
    %363 = vector.extract_strided_slice %258 {offsets = [0, 128], sizes = [2, 32], strides = [1, 1]} : vector<2x256xf32> to vector<2x32xf32>
    %364 = vector.extract_strided_slice %254 {offsets = [0, 128], sizes = [16, 32], strides = [1, 1]} : vector<16x256xf32> to vector<16x32xf32>
    %365 = vector.extract_strided_slice %255 {offsets = [0, 128], sizes = [16, 32], strides = [1, 1]} : vector<16x256xf32> to vector<16x32xf32>
    %366 = tpu.transpose %364, [1, 0] : vector<16x32xf32> -> vector<32x16xf32>
    %cst_105 = arith.constant dense<0.000000e+00> : vector<2x16xf32>
    %367 = tpu.matmul %363, %366, %cst_105 {dimension_numbers = #tpu.dot_dimension_numbers<[1], [0], [0], [1], [0, 0, 1, 1], [], []>} : vector<2x32xf32>, vector<32x16xf32>, vector<2x16xf32> -> vector<2x16xf32>
    %cst_106 = arith.constant -1.000000e+30 : f32
    %368 = vector.broadcast %cst_106 : f32 to vector<2x16xf32>
    %369 = arith.select %277, %367, %368 : vector<2x16xi1>, vector<2x16xf32>
    %cst_107 = arith.constant dense<0xFF800000> : vector<2xf32>
    %370 = vector.multi_reduction <maximumf>, %369, %cst_107 [1] : vector<2x16xf32> to vector<2xf32>
    %371 = vector.shape_cast %370 : vector<2xf32> to vector<2x1xf32>
    %372 = vector.broadcast %371 : vector<2x1xf32> to vector<2x16xf32>
    %373 = arith.subf %369, %372 : vector<2x16xf32>
    %374 = math.exp %373 : vector<2x16xf32>
    %cst_108 = arith.constant dense<0.000000e+00> : vector<2xf32>
    %375 = vector.multi_reduction <add>, %374, %cst_108 [1] : vector<2x16xf32> to vector<2xf32>
    %376 = vector.shape_cast %375 : vector<2xf32> to vector<2x1xf32>
    %377 = tpu.reciprocal %376 {approx = true} : vector<2x1xf32> -> vector<2x1xf32>
    %378 = vector.broadcast %377 : vector<2x1xf32> to vector<2x16xf32>
    %379 = arith.mulf %374, %378 : vector<2x16xf32>
    %cst_109 = arith.constant dense<0.000000e+00> : vector<2x32xf32>
    %380 = tpu.matmul %379, %365, %cst_109 {dimension_numbers = #tpu.dot_dimension_numbers<[1], [0], [0], [1], [0, 0, 1, 1], [], []>} : vector<2x16xf32>, vector<16x32xf32>, vector<2x32xf32> -> vector<2x32xf32>
    %c128 = arith.constant 128 : index
    %c0_110 = arith.constant 0 : index
    %381 = vector.load %arg6[%c128, %c0_110] : memref<256x256xf32, #tpu.memory_space<vmem>>, vector<32x256xf32>
    %cst_111 = arith.constant dense<0.000000e+00> : vector<2x256xf32>
    %382 = tpu.matmul %380, %381, %cst_111 {dimension_numbers = #tpu.dot_dimension_numbers<[1], [0], [0], [1], [0, 0, 1, 1], [], []>} : vector<2x32xf32>, vector<32x256xf32>, vector<2x256xf32> -> vector<2x256xf32>
    %383 = arith.addf %362, %382 : vector<2x256xf32>
    %384 = vector.extract_strided_slice %258 {offsets = [0, 160], sizes = [2, 32], strides = [1, 1]} : vector<2x256xf32> to vector<2x32xf32>
    %385 = vector.extract_strided_slice %254 {offsets = [0, 160], sizes = [16, 32], strides = [1, 1]} : vector<16x256xf32> to vector<16x32xf32>
    %386 = vector.extract_strided_slice %255 {offsets = [0, 160], sizes = [16, 32], strides = [1, 1]} : vector<16x256xf32> to vector<16x32xf32>
    %387 = tpu.transpose %385, [1, 0] : vector<16x32xf32> -> vector<32x16xf32>
    %cst_112 = arith.constant dense<0.000000e+00> : vector<2x16xf32>
    %388 = tpu.matmul %384, %387, %cst_112 {dimension_numbers = #tpu.dot_dimension_numbers<[1], [0], [0], [1], [0, 0, 1, 1], [], []>} : vector<2x32xf32>, vector<32x16xf32>, vector<2x16xf32> -> vector<2x16xf32>
    %cst_113 = arith.constant -1.000000e+30 : f32
    %389 = vector.broadcast %cst_113 : f32 to vector<2x16xf32>
    %390 = arith.select %277, %388, %389 : vector<2x16xi1>, vector<2x16xf32>
    %cst_114 = arith.constant dense<0xFF800000> : vector<2xf32>
    %391 = vector.multi_reduction <maximumf>, %390, %cst_114 [1] : vector<2x16xf32> to vector<2xf32>
    %392 = vector.shape_cast %391 : vector<2xf32> to vector<2x1xf32>
    %393 = vector.broadcast %392 : vector<2x1xf32> to vector<2x16xf32>
    %394 = arith.subf %390, %393 : vector<2x16xf32>
    %395 = math.exp %394 : vector<2x16xf32>
    %cst_115 = arith.constant dense<0.000000e+00> : vector<2xf32>
    %396 = vector.multi_reduction <add>, %395, %cst_115 [1] : vector<2x16xf32> to vector<2xf32>
    %397 = vector.shape_cast %396 : vector<2xf32> to vector<2x1xf32>
    %398 = tpu.reciprocal %397 {approx = true} : vector<2x1xf32> -> vector<2x1xf32>
    %399 = vector.broadcast %398 : vector<2x1xf32> to vector<2x16xf32>
    %400 = arith.mulf %395, %399 : vector<2x16xf32>
    %cst_116 = arith.constant dense<0.000000e+00> : vector<2x32xf32>
    %401 = tpu.matmul %400, %386, %cst_116 {dimension_numbers = #tpu.dot_dimension_numbers<[1], [0], [0], [1], [0, 0, 1, 1], [], []>} : vector<2x16xf32>, vector<16x32xf32>, vector<2x32xf32> -> vector<2x32xf32>
    %c160 = arith.constant 160 : index
    %c0_117 = arith.constant 0 : index
    %402 = vector.load %arg6[%c160, %c0_117] : memref<256x256xf32, #tpu.memory_space<vmem>>, vector<32x256xf32>
    %cst_118 = arith.constant dense<0.000000e+00> : vector<2x256xf32>
    %403 = tpu.matmul %401, %402, %cst_118 {dimension_numbers = #tpu.dot_dimension_numbers<[1], [0], [0], [1], [0, 0, 1, 1], [], []>} : vector<2x32xf32>, vector<32x256xf32>, vector<2x256xf32> -> vector<2x256xf32>
    %404 = arith.addf %383, %403 : vector<2x256xf32>
    %405 = vector.extract_strided_slice %258 {offsets = [0, 192], sizes = [2, 32], strides = [1, 1]} : vector<2x256xf32> to vector<2x32xf32>
    %406 = vector.extract_strided_slice %254 {offsets = [0, 192], sizes = [16, 32], strides = [1, 1]} : vector<16x256xf32> to vector<16x32xf32>
    %407 = vector.extract_strided_slice %255 {offsets = [0, 192], sizes = [16, 32], strides = [1, 1]} : vector<16x256xf32> to vector<16x32xf32>
    %408 = tpu.transpose %406, [1, 0] : vector<16x32xf32> -> vector<32x16xf32>
    %cst_119 = arith.constant dense<0.000000e+00> : vector<2x16xf32>
    %409 = tpu.matmul %405, %408, %cst_119 {dimension_numbers = #tpu.dot_dimension_numbers<[1], [0], [0], [1], [0, 0, 1, 1], [], []>} : vector<2x32xf32>, vector<32x16xf32>, vector<2x16xf32> -> vector<2x16xf32>
    %cst_120 = arith.constant -1.000000e+30 : f32
    %410 = vector.broadcast %cst_120 : f32 to vector<2x16xf32>
    %411 = arith.select %277, %409, %410 : vector<2x16xi1>, vector<2x16xf32>
    %cst_121 = arith.constant dense<0xFF800000> : vector<2xf32>
    %412 = vector.multi_reduction <maximumf>, %411, %cst_121 [1] : vector<2x16xf32> to vector<2xf32>
    %413 = vector.shape_cast %412 : vector<2xf32> to vector<2x1xf32>
    %414 = vector.broadcast %413 : vector<2x1xf32> to vector<2x16xf32>
    %415 = arith.subf %411, %414 : vector<2x16xf32>
    %416 = math.exp %415 : vector<2x16xf32>
    %cst_122 = arith.constant dense<0.000000e+00> : vector<2xf32>
    %417 = vector.multi_reduction <add>, %416, %cst_122 [1] : vector<2x16xf32> to vector<2xf32>
    %418 = vector.shape_cast %417 : vector<2xf32> to vector<2x1xf32>
    %419 = tpu.reciprocal %418 {approx = true} : vector<2x1xf32> -> vector<2x1xf32>
    %420 = vector.broadcast %419 : vector<2x1xf32> to vector<2x16xf32>
    %421 = arith.mulf %416, %420 : vector<2x16xf32>
    %cst_123 = arith.constant dense<0.000000e+00> : vector<2x32xf32>
    %422 = tpu.matmul %421, %407, %cst_123 {dimension_numbers = #tpu.dot_dimension_numbers<[1], [0], [0], [1], [0, 0, 1, 1], [], []>} : vector<2x16xf32>, vector<16x32xf32>, vector<2x32xf32> -> vector<2x32xf32>
    %c192 = arith.constant 192 : index
    %c0_124 = arith.constant 0 : index
    %423 = vector.load %arg6[%c192, %c0_124] : memref<256x256xf32, #tpu.memory_space<vmem>>, vector<32x256xf32>
    %cst_125 = arith.constant dense<0.000000e+00> : vector<2x256xf32>
    %424 = tpu.matmul %422, %423, %cst_125 {dimension_numbers = #tpu.dot_dimension_numbers<[1], [0], [0], [1], [0, 0, 1, 1], [], []>} : vector<2x32xf32>, vector<32x256xf32>, vector<2x256xf32> -> vector<2x256xf32>
    %425 = arith.addf %404, %424 : vector<2x256xf32>
    %426 = vector.extract_strided_slice %258 {offsets = [0, 224], sizes = [2, 32], strides = [1, 1]} : vector<2x256xf32> to vector<2x32xf32>
    %427 = vector.extract_strided_slice %254 {offsets = [0, 224], sizes = [16, 32], strides = [1, 1]} : vector<16x256xf32> to vector<16x32xf32>
    %428 = vector.extract_strided_slice %255 {offsets = [0, 224], sizes = [16, 32], strides = [1, 1]} : vector<16x256xf32> to vector<16x32xf32>
    %429 = tpu.transpose %427, [1, 0] : vector<16x32xf32> -> vector<32x16xf32>
    %cst_126 = arith.constant dense<0.000000e+00> : vector<2x16xf32>
    %430 = tpu.matmul %426, %429, %cst_126 {dimension_numbers = #tpu.dot_dimension_numbers<[1], [0], [0], [1], [0, 0, 1, 1], [], []>} : vector<2x32xf32>, vector<32x16xf32>, vector<2x16xf32> -> vector<2x16xf32>
    %cst_127 = arith.constant -1.000000e+30 : f32
    %431 = vector.broadcast %cst_127 : f32 to vector<2x16xf32>
    %432 = arith.select %277, %430, %431 : vector<2x16xi1>, vector<2x16xf32>
    %cst_128 = arith.constant dense<0xFF800000> : vector<2xf32>
    %433 = vector.multi_reduction <maximumf>, %432, %cst_128 [1] : vector<2x16xf32> to vector<2xf32>
    %434 = vector.shape_cast %433 : vector<2xf32> to vector<2x1xf32>
    %435 = vector.broadcast %434 : vector<2x1xf32> to vector<2x16xf32>
    %436 = arith.subf %432, %435 : vector<2x16xf32>
    %437 = math.exp %436 : vector<2x16xf32>
    %cst_129 = arith.constant dense<0.000000e+00> : vector<2xf32>
    %438 = vector.multi_reduction <add>, %437, %cst_129 [1] : vector<2x16xf32> to vector<2xf32>
    %439 = vector.shape_cast %438 : vector<2xf32> to vector<2x1xf32>
    %440 = tpu.reciprocal %439 {approx = true} : vector<2x1xf32> -> vector<2x1xf32>
    %441 = vector.broadcast %440 : vector<2x1xf32> to vector<2x16xf32>
    %442 = arith.mulf %437, %441 : vector<2x16xf32>
    %cst_130 = arith.constant dense<0.000000e+00> : vector<2x32xf32>
    %443 = tpu.matmul %442, %428, %cst_130 {dimension_numbers = #tpu.dot_dimension_numbers<[1], [0], [0], [1], [0, 0, 1, 1], [], []>} : vector<2x16xf32>, vector<16x32xf32>, vector<2x32xf32> -> vector<2x32xf32>
    %c224 = arith.constant 224 : index
    %c0_131 = arith.constant 0 : index
    %444 = vector.load %arg6[%c224, %c0_131] : memref<256x256xf32, #tpu.memory_space<vmem>>, vector<32x256xf32>
    %cst_132 = arith.constant dense<0.000000e+00> : vector<2x256xf32>
    %445 = tpu.matmul %443, %444, %cst_132 {dimension_numbers = #tpu.dot_dimension_numbers<[1], [0], [0], [1], [0, 0, 1, 1], [], []>} : vector<2x32xf32>, vector<32x256xf32>, vector<2x256xf32> -> vector<2x256xf32>
    %446 = arith.addf %425, %445 : vector<2x256xf32>
    %c0_133 = arith.constant 0 : index
    %c0_134 = arith.constant 0 : index
    %447 = vector.load %arg7[%c0_133, %c0_134] : memref<1x256xf32, #tpu.memory_space<vmem>>, vector<1x256xf32>
    %448 = vector.broadcast %447 : vector<1x256xf32> to vector<2x256xf32>
    %449 = arith.addf %446, %448 : vector<2x256xf32>
    %cst_135 = arith.constant 0.000000e+00 : f32
    %450 = vector.broadcast %cst_135 : f32 to vector<2x256xf32>
    %451 = arith.maximumf %449, %450 : vector<2x256xf32>
    %c0_136 = arith.constant 0 : index
    %c0_137 = arith.constant 0 : index
    %452 = vector.load %arg8[%c0_136, %c0_137] : memref<256x128xf32, #tpu.memory_space<vmem>>, vector<256x128xf32>
    %cst_138 = arith.constant dense<0.000000e+00> : vector<2x128xf32>
    %453 = tpu.matmul %451, %452, %cst_138 {dimension_numbers = #tpu.dot_dimension_numbers<[1], [0], [0], [1], [0, 0, 1, 1], [], []>} : vector<2x256xf32>, vector<256x128xf32>, vector<2x128xf32> -> vector<2x128xf32>
    %c0_139 = arith.constant 0 : index
    %c0_140 = arith.constant 0 : index
    %454 = vector.load %arg9[%c0_139, %c0_140] : memref<1x128xf32, #tpu.memory_space<vmem>>, vector<1x128xf32>
    %455 = vector.broadcast %454 : vector<1x128xf32> to vector<2x128xf32>
    %456 = arith.addf %453, %455 : vector<2x128xf32>
    %cst_141 = arith.constant 0.000000e+00 : f32
    %457 = vector.broadcast %cst_141 : f32 to vector<2x128xf32>
    %458 = arith.maximumf %456, %457 : vector<2x128xf32>
    %c0_142 = arith.constant 0 : index
    %c0_143 = arith.constant 0 : index
    %459 = vector.load %arg10[%c0_142, %c0_143] : memref<128x64xf32, #tpu.memory_space<vmem>>, vector<128x64xf32>
    %cst_144 = arith.constant dense<0.000000e+00> : vector<2x64xf32>
    %460 = tpu.matmul %458, %459, %cst_144 {dimension_numbers = #tpu.dot_dimension_numbers<[1], [0], [0], [1], [0, 0, 1, 1], [], []>} : vector<2x128xf32>, vector<128x64xf32>, vector<2x64xf32> -> vector<2x64xf32>
    %c0_145 = arith.constant 0 : index
    %c0_146 = arith.constant 0 : index
    %461 = vector.load %arg11[%c0_145, %c0_146] : memref<1x64xf32, #tpu.memory_space<vmem>>, vector<1x64xf32>
    %462 = vector.broadcast %461 : vector<1x64xf32> to vector<2x64xf32>
    %463 = arith.addf %460, %462 : vector<2x64xf32>
    %cst_147 = arith.constant 0.000000e+00 : f32
    %464 = vector.broadcast %cst_147 : f32 to vector<2x64xf32>
    %465 = arith.maximumf %463, %464 : vector<2x64xf32>
    %c0_148 = arith.constant 0 : index
    %c0_149 = arith.constant 0 : index
    %466 = vector.load %arg12[%c0_148, %c0_149] : memref<64x32xf32, #tpu.memory_space<vmem>>, vector<64x32xf32>
    %cst_150 = arith.constant dense<0.000000e+00> : vector<2x32xf32>
    %467 = tpu.matmul %465, %466, %cst_150 {dimension_numbers = #tpu.dot_dimension_numbers<[1], [0], [0], [1], [0, 0, 1, 1], [], []>} : vector<2x64xf32>, vector<64x32xf32>, vector<2x32xf32> -> vector<2x32xf32>
    %c0_151 = arith.constant 0 : index
    %c0_152 = arith.constant 0 : index
    %468 = vector.load %arg13[%c0_151, %c0_152] : memref<1x32xf32, #tpu.memory_space<vmem>>, vector<1x32xf32>
    %469 = vector.broadcast %468 : vector<1x32xf32> to vector<2x32xf32>
    %470 = arith.addf %467, %469 : vector<2x32xf32>
    %cst_153 = arith.constant 0.000000e+00 : f32
    %471 = vector.broadcast %cst_153 : f32 to vector<2x32xf32>
    %472 = arith.maximumf %470, %471 : vector<2x32xf32>
    %c0_154 = arith.constant 0 : index
    %c0_155 = arith.constant 0 : index
    %473 = vector.load %arg14[%c0_154, %c0_155] : memref<32x16xf32, #tpu.memory_space<vmem>>, vector<32x16xf32>
    %cst_156 = arith.constant dense<0.000000e+00> : vector<2x16xf32>
    %474 = tpu.matmul %472, %473, %cst_156 {dimension_numbers = #tpu.dot_dimension_numbers<[1], [0], [0], [1], [0, 0, 1, 1], [], []>} : vector<2x32xf32>, vector<32x16xf32>, vector<2x16xf32> -> vector<2x16xf32>
    %c0_157 = arith.constant 0 : index
    %c0_158 = arith.constant 0 : index
    %475 = vector.load %arg15[%c0_157, %c0_158] : memref<1x16xf32, #tpu.memory_space<vmem>>, vector<1x16xf32>
    %476 = vector.broadcast %475 : vector<1x16xf32> to vector<2x16xf32>
    %477 = arith.addf %474, %476 : vector<2x16xf32>
    %cst_159 = arith.constant 0.000000e+00 : f32
    %478 = vector.broadcast %cst_159 : f32 to vector<2x16xf32>
    %479 = arith.maximumf %477, %478 : vector<2x16xf32>
    %c0_160 = arith.constant 0 : index
    %c0_161 = arith.constant 0 : index
    %480 = vector.load %arg16[%c0_160, %c0_161] : memref<16x1xf32, #tpu.memory_space<vmem>>, vector<16x1xf32>
    %cst_162 = arith.constant dense<0.000000e+00> : vector<2x1xf32>
    %481 = tpu.matmul %479, %480, %cst_162 {dimension_numbers = #tpu.dot_dimension_numbers<[1], [0], [0], [1], [0, 0, 1, 1], [], []>} : vector<2x16xf32>, vector<16x1xf32>, vector<2x1xf32> -> vector<2x1xf32>
    %c0_163 = arith.constant 0 : index
    %c0_164 = arith.constant 0 : index
    %482 = vector.load %arg17[%c0_163, %c0_164] : memref<1x1xf32, #tpu.memory_space<vmem>>, vector<1x1xf32>
    %483 = vector.broadcast %482 : vector<1x1xf32> to vector<2x1xf32>
    %484 = arith.addf %481, %483 : vector<2x1xf32>
    %c0_165 = arith.constant 0 : index
    %c0_166 = arith.constant 0 : index
    %485 = vector.load %arg18[%c0_165, %c0_166] : memref<2x1xf32, #tpu.memory_space<vmem>>, vector<2x1xf32>
    tpu.vector_store %arg18[%c0_165, %c0_166], %484 {strides = array<i32>} : memref<2x1xf32, #tpu.memory_space<vmem>>, vector<2x1xf32>,
    return
  }
}

</mosaic_0001>

<bundles_post_ra>
// kernel: attention_lstm_forward.1
= control target key start
LH: loop header
LB: loop body
LE: loop exit
PB: predicated region body
PF: predicated region fallthrough
CT: control target
= control target key end

     0   :  { %s10454_s0 = inlined_call_operand.vmem [shape: f32[16,4], index: 0, kind: input, shape index: {}]   ;;  %s10455_s1 = inlined_call_operand.hbm [shape: f32[4,1024], index: 1, kind: input, shape index: {}]   ;;  %s10456_s2 = inlined_call_operand.hbm [shape: f32[256,1024], index: 2, kind: input, shape index: {}]   ;;  %s10457_s3 = inlined_call_operand.vmem [shape: f32[1,1024], index: 3, kind: input, shape index: {}]   ;;  %s10458_s4 = inlined_call_operand.hbm [shape: f32[256,768], index: 4, kind: input, shape index: {}]   ;;  %s10459_s5 = inlined_call_operand.hbm [shape: f32[1,768], index: 5, kind: input, shape index: {}]   ;;  %s10460_s6 = inlined_call_operand.hbm [shape: f32[256,256], index: 6, kind: input, shape index: {}]   ;;  %s10461_s7 = inlined_call_operand.vmem [shape: f32[1,256], index: 7, kind: input, shape index: {}]   ;;  %s10462_s8 = inlined_call_operand.vmem [shape: f32[256,128], index: 8, kind: input, shape index: {}]   ;;  %s10463_s9 = inlined_call_operand.vmem [shape: f32[1,128], index: 9, kind: input, shape index: {}]   ;;  %s10464_s10 = inlined_call_operand.vmem [shape: f32[128,64], index: 10, kind: input, shape index: {}]   ;;  %s10465_s11 = inlined_call_operand.vmem [shape: f32[1,64], index: 11, kind: input, shape index: {}]   ;;  %s10466_s12 = inlined_call_operand.vmem [shape: f32[64,32], index: 12, kind: input, shape index: {}]   ;;  %s10467_s13 = inlined_call_operand.hbm [shape: f32[1,32], index: 13, kind: input, shape index: {}]   ;;  %s10468_s14 = inlined_call_operand.vmem [shape: f32[32,16], index: 14, kind: input, shape index: {}]   ;;  %s10469_s15 = inlined_call_operand.hbm [shape: f32[1,16], index: 15, kind: input, shape index: {}]   ;;  %s10470_s16 = inlined_call_operand.vmem [shape: f32[16,1], index: 16, kind: input, shape index: {}]   ;;  %s10471_s17 = inlined_call_operand.<no memory space> [shape: f32[1,1], index: 17, kind: input, shape index: {}]   ;;  %s10472_s18 = inlined_call_operand.vmem [shape: f32[2,1], index: 18, kind: output, shape index: {}]  }
   0x1   :  { %10474 = sst [smem:[#allocation19_spill]] %s10454_s0  ;;  %v23_v0 = vstv %s10471_s17 }
   0x2   :  { %10475 = sst [smem:[#allocation20_spill]] %s10455_s1  ;;  %24 = vst [vmem:[#allocation3] sm:$0x1] %v23_v0 }
   0x3   :  { %10476 = sst [smem:[#allocation21_spill]] %s10456_s2 }
   0x4   :  { %25 = vsyncpa [#allocation5], 0 }
   0x5   :  { %26 = vsyncpa [#allocation7], 0 }
   0x6   :  { %27 = vsyncpa [#allocation10], 0  ;;  %s10477_s0 = sld [smem:[#allocation21_spill]] }
   0xc   :  { %s46_s19 = sshll.u32 %s10477_s0, 4  ;;  %s47_s19 = int_to_ptr.hbm [resolvable:$true] %s46_s19 }
   0xd   :  { %28 = vsyncpa [#allocation13], 0  ;;  %s8695_s1 = smov [#allocation6]   ;;  %s75_s2 = sshll.u32 %s10459_s5, 4  ;;  %s76_s2 = int_to_ptr.hbm [resolvable:$true] %s75_s2 }
   0xe   :  { %s48_s20 = sshll.u32 %s8695_s1, 4  ;;  %s8696_s23 = smov 1024   ;;  %s49_s20 = int_to_ptr.vmem [resolvable:$true] %s48_s20 }
   0xf   :  { %s8697_s24 = smov 64   ;;  %s8698_s17 = smov [#allocation9]  }
  0x10   :  { %54 = dma.hbm_to_vmem [thread:$0]  %s47_s19, 32768, %s49_s20, [#allocation7], %s8696_s23, %s8696_s23, %s8697_s24  }
  0x11   :  { %s77_s25 = sshll.u32 %s8698_s17, 4  ;;  %s111_s28 = sshll.u32 %s10467_s13, 4  ;;  %s78_s25 = int_to_ptr.vmem [resolvable:$true] %s77_s25  ;;  %s112_s28 = int_to_ptr.hbm [resolvable:$true] %s111_s28 }
  0x12   :  { %80 = dma.hbm_to_vmem [thread:$0]  %s76_s2, 96, %s78_s25, [#allocation10]  }
  0x13   :  { %s10478_s0 = sld [smem:[#allocation20_spill]]  ;;  %s8699_s21 = smov [#allocation12]  }
  0x14   :  { %s113_s5 = sshll.u32 %s8699_s21, 4  ;;  %s8700_s19 = smov [#allocation4]   ;;  %s114_s5 = int_to_ptr.vmem [resolvable:$true] %s113_s5 }
  0x15   :  { %116 = dma.hbm_to_vmem [thread:$0]  %s112_s28, 16, %s114_s5, [#allocation13]  }
  0x16   :  { %s38_s20 = sshll.u32 %s8700_s19, 4  ;;  %s61_s17 = sshll.u32 %s10458_s4, 4  ;;  %s39_s20 = int_to_ptr.vmem [resolvable:$true] %s38_s20  ;;  %s62_s17 = int_to_ptr.hbm [resolvable:$true] %s61_s17 }
  0x17   :  { %s8701_s13 = smov [#allocation8]   ;;  %s85_s27 = sshll.u32 %s10460_s6, 4  ;;  %s86_s27 = int_to_ptr.hbm [resolvable:$true] %s85_s27 }
  0x18   :  { %s63_s2 = sshll.u32 %s8701_s13, 4  ;;  %s8702_s29 = smov 768   ;;  %s64_s2 = int_to_ptr.vmem [resolvable:$true] %s63_s2 }
  0x19   :  { %s36_s1 = sshll.u32 %s10478_s0, 4  ;;  %s8703_s30 = smov 48   ;;  %s37_s1 = int_to_ptr.hbm [resolvable:$true] %s36_s1 }
  0x1a   :  { %41 = dma.hbm_to_vmem [thread:$0]  %s37_s1, 512, %s39_s20, [#allocation5]  }
  0x1b   :  { %69 = dma.hbm_to_vmem [thread:$0]  %s62_s17, 24576, %s64_s2, [#allocation7], %s8702_s29, %s8702_s29, %s8703_s30  }
  0x1c   :  { %s8704_s28 = smov [#allocation11]   ;;  %s8705_s21 = smov 256  }
  0x1d   :  { %s87_s0 = sshll.u32 %s8704_s28, 4  ;;  %s8706_s5 = smov 16   ;;  %s88_s0 = int_to_ptr.vmem [resolvable:$true] %s87_s0 }
  0x1e   :  { %93 = dma.hbm_to_vmem [thread:$0]  %s86_s27, 8192, %s88_s0, [#allocation10], %s8705_s21, %s8705_s21, %s8706_s5  }
  0x1f   :  { %s124_s1 = sshll.u32 %s10469_s15, 4  ;;  %s8707_s20 = smov [#allocation14]   ;;  %s125_s1 = int_to_ptr.hbm [resolvable:$true] %s124_s1 }
  0x20   :  { %s126_s22 = sshll.u32 %s8707_s20, 4  ;;  %s127_s22 = int_to_ptr.vmem [resolvable:$true] %s126_s22 }
  0x21   :  { %129 = dma.hbm_to_vmem [thread:$0]  %s125_s1, 16, %s127_s22, [#allocation13]  }
  0x22   :  { %8687 = dma.done.wait [#allocation5], 512  }
  0x23   :  { %8688 = vsyncadd [#allocation5], 4294966784 }
  0x24   :  { %8689 = dma.done.wait [#allocation7], 57344  }
  0x25   :  { %8690 = vsyncadd [#allocation7], 4294909952 }
  0x26   :  { %8691 = dma.done.wait [#allocation10], 8288  }
  0x27   :  { %8692 = vsyncadd [#allocation10], 4294959008 }
  0x28   :  { %8693 = dma.done.wait [#allocation13], 32  }
  0x29   :  { %8694 = vsyncadd [#allocation13], 4294967264  ;;  %v164_v1 = vld [vmem:[#allocation4] sm:$0xff]  ;;  %v165_v2 = vld [vmem:[#allocation4 + $0x8] sm:$0xff]  ;;  %vm212_vm0 = vcmask 1043456   ;;  %s10479_s23 = sld [smem:[#allocation19_spill]] }
  0x2a   :  { %190 = vst [vmem:[#allocation1] ss:$2 sm:$0xff] %v164_v1  ;;  %v166_v3 = vld [vmem:[#allocation4 + $0x10] sm:$0xff]  ;;  %v167_v4 = vld [vmem:[#allocation4 + $0x18] sm:$0xff]  ;;  %vm205_vm1 = vcmask 31744   ;;  %v533_v14 = vld [vmem:[#allocation6 + $0x3c0] sm:$0xff] }
  0x2b   :  { %192 = vst [vmem:[#allocation1 + $0x10] ss:$2 sm:$0xff] %v165_v2  ;;  %v661_v15 = vld [vmem:[#allocation6 + $0x7c0] sm:$0xff]  ;;  %v534_v16 = vld [vmem:[#allocation6 + $0x3c8] sm:$0xff]  ;;  %s8710_s26 = smov 32  }
  0x2c   :  { %194 = vst [vmem:[#allocation1 + $0x20] ss:$2 sm:$0xff] %v166_v3  ;;  %v662_v17 = vld [vmem:[#allocation6 + $0x7c8] sm:$0xff]  ;;  %v525_v18 = vld [vmem:[#allocation6 + $0x380] sm:$0xff] }
  0x2d   :  { %196 = vst [vmem:[#allocation1 + $0x30] ss:$2 sm:$0xff] %v167_v4  ;;  %v653_v19 = vld [vmem:[#allocation6 + $0x780] sm:$0xff]  ;;  %v526_v20 = vld [vmem:[#allocation6 + $0x388] sm:$0xff] }
  0x2e   :  { %v654_v21 = vld [vmem:[#allocation6 + $0x788] sm:$0xff]  ;;  %v517_v22 = vld [vmem:[#allocation6 + $0x340] sm:$0xff] }
  0x2f   :  { %v8834_v5 = vld [vmem:[%s10479_s23] sm:$0xff]  ;;  %v645_v23 = vld [vmem:[#allocation6 + $0x740] sm:$0xff]  ;;  %v518_v24 = vld [vmem:[#allocation6 + $0x348] sm:$0xff] }
  0x30   :  { %v646_v25 = vld [vmem:[#allocation6 + $0x748] sm:$0xff]  ;;  %v509_v26 = vld [vmem:[#allocation6 + $0x300] sm:$0xff] }
  0x31   :  { %v197_v6 = vld.sshfl [vmem:[#allocation1] sm:$0xff pattern:$0x75316420]  ;;  %v198_v7 = vld.sshfl [vmem:[#allocation1 + $0x8] sm:$0xff pattern:$0x75316420] }
  0x32   :  { %8057 = vmatpush.msk.msra.mxu0 %vm212_vm0, %v197_v6  ;;  %8060 = vmatpush.msk.msra.mxu1 %vm212_vm0, %v198_v7  ;;  %v199_v8 = vld.sshfl [vmem:[#allocation1 + $0x10] sm:$0xff pattern:$0x75316420]  ;;  %v200_v9 = vld.sshfl [vmem:[#allocation1 + $0x18] sm:$0xff pattern:$0x75316420] }
  0x33   :  { %8063 = vmatpush.msk.msra.mxu2 %vm212_vm0, %v199_v8  ;;  %8066 = vmatpush.msk.msra.mxu3 %vm212_vm0, %v200_v9  ;;  %v201_v10 = vld.sshfl [vmem:[#allocation1 + $0x20] sm:$0xff pattern:$0x75316420]  ;;  %v202_v11 = vld.sshfl [vmem:[#allocation1 + $0x28] sm:$0xff pattern:$0x75316420] }
  0x34   :  { %8058 = vmatmul.msk.f32.vlgmr.msra.gmra.mxu0 %vm205_vm1, %v8834_v5  ;;  %8061 = vmatmul.msk.f32.vlgmr.msra.gmra.mxu1 %vm205_vm1, %v8834_v5  ;;  %v203_v12 = vld.sshfl [vmem:[#allocation1 + $0x30] sm:$0xff pattern:$0x75316420]  ;;  %v204_v13 = vld.sshfl [vmem:[#allocation1 + $0x38] sm:$0xff pattern:$0x75316420] }
  0x35   :  { %8064 = vmatmul.msk.f32.vlgmr.msra.gmra.mxu2 %vm205_vm1, %v8834_v5  ;;  %8067 = vmatmul.msk.f32.vlgmr.msra.gmra.mxu3 %vm205_vm1, %v8834_v5  ;;  %v637_v27 = vld [vmem:[#allocation6 + $0x700] sm:$0xff]  ;;  %v510_v28 = vld [vmem:[#allocation6 + $0x308] sm:$0xff] }
  0x36   :  { %8069 = vmatpush.msk.msrb.mxu0 %vm212_vm0, %v201_v10  ;;  %8072 = vmatpush.msk.msrb.mxu1 %vm212_vm0, %v202_v11  ;;  %v638_v29 = vld [vmem:[#allocation6 + $0x708] sm:$0xff]  ;;  %v8855_v30 = vld [vmem:[%s10479_s23 + $0x8] sm:$0xff] }
  0x37   :  { %8075 = vmatpush.msk.msrb.mxu2 %vm212_vm0, %v203_v12  ;;  %8078 = vmatpush.msk.msrb.mxu3 %vm212_vm0, %v204_v13  ;;  %v501_v31 = vld [vmem:[#allocation6 + $0x2c0] sm:$0xff]  ;;  %v502_v33 = vld [vmem:[#allocation6 + $0x2c8] sm:$0xff] }
  0x38   :  { %669 = vmatpush.msra.mxu0 %v533_v14  ;;  %689 = vmatpush.msra.mxu1 %v661_v15  ;;  %v629_v32 = vld [vmem:[#allocation6 + $0x6c0] sm:$0xff]  ;;  %v630_v34 = vld [vmem:[#allocation6 + $0x6c8] sm:$0xff]  ;;  %v535_v15 = vld [vmem:[#allocation6 + $0x3d0] sm:$0xff] }
  0x39   :  { %709 = vmatpush.msra.mxu2 %v534_v16  ;;  %729 = vmatpush.msra.mxu3 %v662_v17  ;;  %v493_v35 = vld [vmem:[#allocation6 + $0x280] sm:$0xff]  ;;  %v494_v37 = vld [vmem:[#allocation6 + $0x288] sm:$0xff]  ;;  %v663_v16 = vld [vmem:[#allocation6 + $0x7d0] sm:$0xff]  ;;  %v8708_v17 = vmov 0.0  }
  0x3a   :  { %670 = vmatpush.msra.mxu0 %v525_v18  ;;  %690 = vmatpush.msra.mxu1 %v653_v19  ;;  %v621_v36 = vld [vmem:[#allocation6 + $0x680] sm:$0xff]  ;;  %v622_v38 = vld [vmem:[#allocation6 + $0x688] sm:$0xff]  ;;  %v536_v18 = vld [vmem:[#allocation6 + $0x3d8] sm:$0xff] }
  0x3b   :  { %710 = vmatpush.msra.mxu2 %v526_v20  ;;  %730 = vmatpush.msra.mxu3 %v654_v21  ;;  %v485_v39 = vld [vmem:[#allocation6 + $0x240] sm:$0xff]  ;;  %v486_v41 = vld [vmem:[#allocation6 + $0x248] sm:$0xff]  ;;  %v664_v19 = vld [vmem:[#allocation6 + $0x7d8] sm:$0xff] }
  0x3c   :  { %671 = vmatpush.msra.mxu0 %v517_v22  ;;  %691 = vmatpush.msra.mxu1 %v645_v23  ;;  %v613_v40 = vld [vmem:[#allocation6 + $0x640] sm:$0xff]  ;;  %v614_v42 = vld [vmem:[#allocation6 + $0x648] sm:$0xff]  ;;  %v527_v20 = vld [vmem:[#allocation6 + $0x390] sm:$0xff] }
  0x3d   :  { %711 = vmatpush.msra.mxu2 %v518_v24  ;;  %731 = vmatpush.msra.mxu3 %v646_v25  ;;  %v477_v43 = vld [vmem:[#allocation6 + $0x200] sm:$0xff]  ;;  %v478_v45 = vld [vmem:[#allocation6 + $0x208] sm:$0xff]  ;;  %v655_v21 = vld [vmem:[#allocation6 + $0x790] sm:$0xff] }
  0x3e   :  { %672 = vmatpush.msra.mxu0 %v509_v26  ;;  %692 = vmatpush.msra.mxu1 %v637_v27  ;;  %v605_v44 = vld [vmem:[#allocation6 + $0x600] sm:$0xff]  ;;  %v606_v46 = vld [vmem:[#allocation6 + $0x608] sm:$0xff]  ;;  %v528_v22 = vld [vmem:[#allocation6 + $0x398] sm:$0xff] }
  0x3f   :  { %712 = vmatpush.msra.mxu2 %v510_v28  ;;  %732 = vmatpush.msra.mxu3 %v638_v29  ;;  %v469_v47 = vld [vmem:[#allocation6 + $0x1c0] sm:$0xff]  ;;  %v470_v49 = vld [vmem:[#allocation6 + $0x1c8] sm:$0xff]  ;;  %v656_v23 = vld [vmem:[#allocation6 + $0x798] sm:$0xff] }
  0x40   :  { %8059 = vmatmul.msk.f32.gmra.mxu0 %vm205_vm1, %v8855_v30  ;;  %8062 = vmatmul.msk.f32.gmra.mxu1 %vm205_vm1, %v8855_v30  ;;  %v597_v48 = vld [vmem:[#allocation6 + $0x5c0] sm:$0xff]  ;;  %v598_v50 = vld [vmem:[#allocation6 + $0x5c8] sm:$0xff]  ;;  %v519_v24 = vld [vmem:[#allocation6 + $0x350] sm:$0xff] }
  0x41   :  { %8065 = vmatmul.msk.f32.gmra.mxu2 %vm205_vm1, %v8855_v30  ;;  %8068 = vmatmul.msk.f32.gmra.mxu3 %vm205_vm1, %v8855_v30  ;;  %v461_v51 = vld [vmem:[#allocation6 + $0x180] sm:$0xff]  ;;  %v462_v53 = vld [vmem:[#allocation6 + $0x188] sm:$0xff]  ;;  %v647_v25 = vld [vmem:[#allocation6 + $0x750] sm:$0xff] }
  0x42   :  { %673 = vmatpush.msra.mxu0 %v501_v31  ;;  %693 = vmatpush.msra.mxu1 %v629_v32  ;;  %v589_v52 = vld [vmem:[#allocation6 + $0x580] sm:$0xff]  ;;  %v590_v54 = vld [vmem:[#allocation6 + $0x588] sm:$0xff]  ;;  %v520_v26 = vld [vmem:[#allocation6 + $0x358] sm:$0xff] }
  0x43   :  { %713 = vmatpush.msra.mxu2 %v502_v33  ;;  %733 = vmatpush.msra.mxu3 %v630_v34  ;;  %v453_v55 = vld [vmem:[#allocation6 + $0x140] sm:$0xff]  ;;  %v454_v57 = vld [vmem:[#allocation6 + $0x148] sm:$0xff]  ;;  %v648_v27 = vld [vmem:[#allocation6 + $0x758] sm:$0xff] }
  0x44   :  { %674 = vmatpush.msra.mxu0 %v493_v35  ;;  %694 = vmatpush.msra.mxu1 %v621_v36  ;;  %v581_v56 = vld [vmem:[#allocation6 + $0x540] sm:$0xff]  ;;  %v582_v58 = vld [vmem:[#allocation6 + $0x548] sm:$0xff]  ;;  %v511_v28 = vld [vmem:[#allocation6 + $0x310] sm:$0xff] }
  0x45   :  { %714 = vmatpush.msra.mxu2 %v494_v37  ;;  %734 = vmatpush.msra.mxu3 %v622_v38  ;;  %v445_v59 = vld [vmem:[#allocation6 + $0x100] sm:$0xff]  ;;  %v446_v61 = vld [vmem:[#allocation6 + $0x108] sm:$0xff]  ;;  %v639_v29 = vld [vmem:[#allocation6 + $0x710] sm:$0xff] }
  0x46   :  { %675 = vmatpush.msra.mxu0 %v485_v39  ;;  %695 = vmatpush.msra.mxu1 %v613_v40  ;;  %v573_v60 = vld [vmem:[#allocation6 + $0x500] sm:$0xff]  ;;  %v574_v62 = vld [vmem:[#allocation6 + $0x508] sm:$0xff]  ;;  %v640_v31 = vld [vmem:[#allocation6 + $0x718] sm:$0xff] }
  0x47   :  { %715 = vmatpush.msra.mxu2 %v486_v41  ;;  %735 = vmatpush.msra.mxu3 %v614_v42  ;;  %v437_v63 = vld [vmem:[#allocation6 + $0xc0] sm:$0xff]  ;;  %v438_v1 = vld [vmem:[#allocation6 + $0xc8] sm:$0xff]  ;;  %v503_v32 = vld [vmem:[#allocation6 + $0x2d0] sm:$0xff] }
  0x48   :  { %676 = vmatpush.msra.mxu0 %v477_v43  ;;  %696 = vmatpush.msra.mxu1 %v605_v44  ;;  %v565_v0 = vld [vmem:[#allocation6 + $0x4c0] sm:$0xff]  ;;  %v566_v2 = vld [vmem:[#allocation6 + $0x4c8] sm:$0xff]  ;;  %v631_v33 = vld [vmem:[#allocation6 + $0x6d0] sm:$0xff] }
  0x49   :  { %716 = vmatpush.msra.mxu2 %v478_v45  ;;  %736 = vmatpush.msra.mxu3 %v606_v46  ;;  %v429_v3 = vld [vmem:[#allocation6 + $0x80] sm:$0xff]  ;;  %v558_v6 = vld [vmem:[#allocation6 + $0x488] sm:$0xff]  ;;  %v504_v34 = vld [vmem:[#allocation6 + $0x2d8] sm:$0xff] }
  0x4a   :  { %8070 = vmatmul.msk.f32.vlgmr.msrb.gmra.mxu0 %vm205_vm1, %v8834_v5  ;;  %8073 = vmatmul.msk.f32.vlgmr.msrb.gmra.mxu1 %vm205_vm1, %v8834_v5  ;;  %v557_v4 = vld [vmem:[#allocation6 + $0x480] sm:$0xff]  ;;  %v422_v9 = vld [vmem:[#allocation6 + $0x48] sm:$0xff]  ;;  %v632_v35 = vld [vmem:[#allocation6 + $0x6d8] sm:$0xff] }
  0x4b   :  { %8076 = vmatmul.msk.f32.vlgmr.msrb.gmra.mxu2 %vm205_vm1, %v8834_v5  ;;  %8079 = vmatmul.msk.f32.vlgmr.msrb.gmra.mxu3 %vm205_vm1, %v8834_v5  ;;  %v430_v5 = vld [vmem:[#allocation6 + $0x88] sm:$0xff]  ;;  %v421_v7 = vld [vmem:[#allocation6 + $0x40] sm:$0xff]  ;;  %v495_v36 = vld [vmem:[#allocation6 + $0x290] sm:$0xff] }
  0x4c   :  { %677 = vmatpush.msra.mxu0 %v469_v47  ;;  %697 = vmatpush.msra.mxu1 %v597_v48  ;;  %v549_v8 = vld [vmem:[#allocation6 + $0x440] sm:$0xff]  ;;  %v550_v10 = vld [vmem:[#allocation6 + $0x448] sm:$0xff]  ;;  %v623_v37 = vld [vmem:[#allocation6 + $0x690] sm:$0xff] }
  0x4d   :  { %717 = vmatpush.msra.mxu2 %v470_v49  ;;  %737 = vmatpush.msra.mxu3 %v598_v50  ;;  %v413_v11 = vld [vmem:[#allocation6] sm:$0xff]  ;;  %v414_v13 = vld [vmem:[#allocation6 + $0x8] sm:$0xff]  ;;  %v496_v38 = vld [vmem:[#allocation6 + $0x298] sm:$0xff] }
  0x4e   :  { %678 = vmatpush.msra.mxu0 %v461_v51  ;;  %698 = vmatpush.msra.mxu1 %v589_v52  ;;  %v541_v12 = vld [vmem:[#allocation6 + $0x400] sm:$0xff]  ;;  %v542_v14 = vld [vmem:[#allocation6 + $0x408] sm:$0xff]  ;;  %v624_v39 = vld [vmem:[#allocation6 + $0x698] sm:$0xff] }
  0x4f   :  { %718 = vmatpush.msra.mxu2 %v462_v53  ;;  %738 = vmatpush.msra.mxu3 %v590_v54  ;;  %v487_v40 = vld [vmem:[#allocation6 + $0x250] sm:$0xff]  ;;  %v488_v42 = vld [vmem:[#allocation6 + $0x258] sm:$0xff] }
  0x50   :  { %679 = vmatpush.msra.mxu0 %v453_v55  ;;  %699 = vmatpush.msra.mxu1 %v581_v56  ;;  %v615_v41 = vld [vmem:[#allocation6 + $0x650] sm:$0xff]  ;;  %v616_v43 = vld [vmem:[#allocation6 + $0x658] sm:$0xff] }
  0x51   :  { %719 = vmatpush.msra.mxu2 %v454_v57  ;;  %739 = vmatpush.msra.mxu3 %v582_v58  ;;  %v479_v44 = vld [vmem:[#allocation6 + $0x210] sm:$0xff]  ;;  %v480_v46 = vld [vmem:[#allocation6 + $0x218] sm:$0xff] }
  0x52   :  { %680 = vmatpush.msra.mxu0 %v445_v59  ;;  %700 = vmatpush.msra.mxu1 %v573_v60  ;;  %v607_v45 = vld [vmem:[#allocation6 + $0x610] sm:$0xff]  ;;  %v608_v47 = vld [vmem:[#allocation6 + $0x618] sm:$0xff] }
  0x53   :  { %720 = vmatpush.msra.mxu2 %v446_v61  ;;  %740 = vmatpush.msra.mxu3 %v574_v62  ;;  %v471_v48 = vld [vmem:[#allocation6 + $0x1d0] sm:$0xff]  ;;  %v472_v50 = vld [vmem:[#allocation6 + $0x1d8] sm:$0xff] }
  0x54   :  { %8071 = vmatmul.msk.f32.gmra.mxu0 %vm205_vm1, %v8855_v30  ;;  %8074 = vmatmul.msk.f32.gmra.mxu1 %vm205_vm1, %v8855_v30  ;;  %v599_v49 = vld [vmem:[#allocation6 + $0x5d0] sm:$0xff]  ;;  %v600_v51 = vld [vmem:[#allocation6 + $0x5d8] sm:$0xff] }
  0x55   :  { %8077 = vmatmul.msk.f32.gmra.mxu2 %vm205_vm1, %v8855_v30  ;;  %8080 = vmatmul.msk.f32.gmra.mxu3 %vm205_vm1, %v8855_v30  ;;  %v512_v30 = vld [vmem:[#allocation6 + $0x318] sm:$0xff]  ;;  %v463_v52 = vld [vmem:[#allocation6 + $0x190] sm:$0xff] }
  0x56   :  { %681 = vmatpush.msra.mxu0 %v437_v63  ;;  %701 = vmatpush.msra.mxu1 %v565_v0  ;;  %v591_v53 = vld [vmem:[#allocation6 + $0x590] sm:$0xff]  ;;  %v464_v54 = vld [vmem:[#allocation6 + $0x198] sm:$0xff] }
  0x57   :  { %721 = vmatpush.msra.mxu2 %v438_v1  ;;  %741 = vmatpush.msra.mxu3 %v566_v2  ;;  %v592_v55 = vld [vmem:[#allocation6 + $0x598] sm:$0xff]  ;;  %v455_v56 = vld [vmem:[#allocation6 + $0x150] sm:$0xff] }
  0x58   :  { %682 = vmatpush.msra.mxu0 %v429_v3  ;;  %702 = vmatpush.msra.mxu1 %v557_v4  ;;  %v583_v57 = vld [vmem:[#allocation6 + $0x550] sm:$0xff]  ;;  %v456_v58 = vld [vmem:[#allocation6 + $0x158] sm:$0xff] }
  0x59   :  { %722 = vmatpush.msra.mxu2 %v430_v5  ;;  %742 = vmatpush.msra.mxu3 %v558_v6  ;;  %v584_v59 = vld [vmem:[#allocation6 + $0x558] sm:$0xff]  ;;  %v447_v60 = vld [vmem:[#allocation6 + $0x110] sm:$0xff] }
  0x5a   :  { %683 = vmatpush.msra.mxu0 %v421_v7  ;;  %703 = vmatpush.msra.mxu1 %v549_v8  ;;  %v575_v61 = vld [vmem:[#allocation6 + $0x510] sm:$0xff]  ;;  %v448_v62 = vld [vmem:[#allocation6 + $0x118] sm:$0xff] }
  0x5b   :  { %723 = vmatpush.msra.mxu2 %v422_v9  ;;  %743 = vmatpush.msra.mxu3 %v550_v10  ;;  %v576_v63 = vld [vmem:[#allocation6 + $0x518] sm:$0xff]  ;;  %v439_v0 = vld [vmem:[#allocation6 + $0xd0] sm:$0xff] }
  0x5c   :  { %684 = vmatpush.msra.mxu0 %v413_v11  ;;  %704 = vmatpush.msra.mxu1 %v541_v12  ;;  %v567_v1 = vld [vmem:[#allocation6 + $0x4d0] sm:$0xff]  ;;  %v440_v2 = vld [vmem:[#allocation6 + $0xd8] sm:$0xff] }
  0x5d   :  { %724 = vmatpush.msra.mxu2 %v414_v13  ;;  %744 = vmatpush.msra.mxu3 %v542_v14  ;;  %v568_v3 = vld [vmem:[#allocation6 + $0x4d8] sm:$0xff]  ;;  %v431_v4 = vld [vmem:[#allocation6 + $0x90] sm:$0xff] }
  0x5e   :  { %685 = vmatmul.f32.vlgmr.msra.gmra.mxu0 %v8708_v17  ;;  %705 = vmatmul.f32.vlgmr.msra.gmra.mxu1 %v8708_v17  ;;  %v559_v5 = vld [vmem:[#allocation6 + $0x490] sm:$0xff]  ;;  %v432_v6 = vld [vmem:[#allocation6 + $0x98] sm:$0xff] }
  0x5f   :  { %725 = vmatmul.f32.vlgmr.msra.gmra.mxu2 %v8708_v17  ;;  %745 = vmatmul.f32.vlgmr.msra.gmra.mxu3 %v8708_v17  ;;  %v560_v7 = vld [vmem:[#allocation6 + $0x498] sm:$0xff]  ;;  %v423_v8 = vld [vmem:[#allocation6 + $0x50] sm:$0xff] }
  0x60   :  { %749 = vmatpush.msrb.mxu0 %v535_v15  ;;  %769 = vmatpush.msrb.mxu1 %v663_v16  ;;  %v551_v9 = vld [vmem:[#allocation6 + $0x450] sm:$0xff]  ;;  %v424_v10 = vld [vmem:[#allocation6 + $0x58] sm:$0xff]  ;;  %v537_v16 = vld [vmem:[#allocation6 + $0x3e0] sm:$0xff] }
  0x61   :  { %789 = vmatpush.msrb.mxu2 %v536_v18  ;;  %809 = vmatpush.msrb.mxu3 %v664_v19  ;;  %v552_v11 = vld [vmem:[#allocation6 + $0x458] sm:$0xff]  ;;  %v415_v12 = vld [vmem:[#allocation6 + $0x10] sm:$0xff]  ;;  %v665_v18 = vld [vmem:[#allocation6 + $0x7e0] sm:$0xff] }
  0x62   :  { %750 = vmatpush.msrb.mxu0 %v527_v20  ;;  %770 = vmatpush.msrb.mxu1 %v655_v21  ;;  %v543_v13 = vld [vmem:[#allocation6 + $0x410] sm:$0xff]  ;;  %v416_v14 = vld [vmem:[#allocation6 + $0x18] sm:$0xff]  ;;  %v538_v19 = vld [vmem:[#allocation6 + $0x3e8] sm:$0xff] }
  0x63   :  { %790 = vmatpush.msrb.mxu2 %v528_v22  ;;  %810 = vmatpush.msrb.mxu3 %v656_v23  ;;  %v544_v15 = vld [vmem:[#allocation6 + $0x418] sm:$0xff]  ;;  %v666_v20 = vld [vmem:[#allocation6 + $0x7e8] sm:$0xff]  ;;  %v529_v21 = vld [vmem:[#allocation6 + $0x3a0] sm:$0xff] }
  0x64   :  { %751 = vmatpush.msrb.mxu0 %v519_v24  ;;  %771 = vmatpush.msrb.mxu1 %v647_v25  ;;  %v657_v22 = vld [vmem:[#allocation6 + $0x7a0] sm:$0xff]  ;;  %v530_v23 = vld [vmem:[#allocation6 + $0x3a8] sm:$0xff] }
  0x65   :  { %791 = vmatpush.msrb.mxu2 %v520_v26  ;;  %811 = vmatpush.msrb.mxu3 %v648_v27  ;;  %v658_v24 = vld [vmem:[#allocation6 + $0x7a8] sm:$0xff]  ;;  %v521_v25 = vld [vmem:[#allocation6 + $0x360] sm:$0xff] }
  0x66   :  { %752 = vmatpush.msrb.mxu0 %v511_v28  ;;  %772 = vmatpush.msrb.mxu1 %v639_v29  ;;  %v649_v26 = vld [vmem:[#allocation6 + $0x760] sm:$0xff]  ;;  %v522_v27 = vld [vmem:[#allocation6 + $0x368] sm:$0xff] }
  0x67   :  { %792 = vmatpush.msrb.mxu2 %v512_v30  ;;  %812 = vmatpush.msrb.mxu3 %v640_v31  ;;  %v650_v28 = vld [vmem:[#allocation6 + $0x768] sm:$0xff]  ;;  %v513_v29 = vld [vmem:[#allocation6 + $0x320] sm:$0xff] }
  0x68   :  { %753 = vmatpush.msrb.mxu0 %v503_v32  ;;  %773 = vmatpush.msrb.mxu1 %v631_v33  ;;  %v641_v30 = vld [vmem:[#allocation6 + $0x720] sm:$0xff]  ;;  %v514_v31 = vld [vmem:[#allocation6 + $0x328] sm:$0xff] }
  0x69   :  { %793 = vmatpush.msrb.mxu2 %v504_v34  ;;  %813 = vmatpush.msrb.mxu3 %v632_v35  ;;  %v642_v32 = vld [vmem:[#allocation6 + $0x728] sm:$0xff]  ;;  %v505_v33 = vld [vmem:[#allocation6 + $0x2e0] sm:$0xff] }
  0x6a   :  { %754 = vmatpush.msrb.mxu0 %v495_v36  ;;  %774 = vmatpush.msrb.mxu1 %v623_v37  ;;  %v633_v34 = vld [vmem:[#allocation6 + $0x6e0] sm:$0xff]  ;;  %v506_v35 = vld [vmem:[#allocation6 + $0x2e8] sm:$0xff] }
  0x6b   :  { %794 = vmatpush.msrb.mxu2 %v496_v38  ;;  %814 = vmatpush.msrb.mxu3 %v624_v39  ;;  %v634_v36 = vld [vmem:[#allocation6 + $0x6e8] sm:$0xff]  ;;  %v497_v37 = vld [vmem:[#allocation6 + $0x2a0] sm:$0xff] }
  0x6c   :  { %755 = vmatpush.msrb.mxu0 %v487_v40  ;;  %775 = vmatpush.msrb.mxu1 %v615_v41  ;;  %v625_v38 = vld [vmem:[#allocation6 + $0x6a0] sm:$0xff]  ;;  %v498_v39 = vld [vmem:[#allocation6 + $0x2a8] sm:$0xff] }
  0x6d   :  { %795 = vmatpush.msrb.mxu2 %v488_v42  ;;  %815 = vmatpush.msrb.mxu3 %v616_v43  ;;  %v626_v40 = vld [vmem:[#allocation6 + $0x6a8] sm:$0xff]  ;;  %v489_v41 = vld [vmem:[#allocation6 + $0x260] sm:$0xff] }
  0x6e   :  { %756 = vmatpush.msrb.mxu0 %v479_v44  ;;  %776 = vmatpush.msrb.mxu1 %v607_v45  ;;  %v617_v42 = vld [vmem:[#allocation6 + $0x660] sm:$0xff]  ;;  %v490_v43 = vld [vmem:[#allocation6 + $0x268] sm:$0xff] }
  0x6f   :  { %796 = vmatpush.msrb.mxu2 %v480_v46  ;;  %816 = vmatpush.msrb.mxu3 %v608_v47  ;;  %v618_v44 = vld [vmem:[#allocation6 + $0x668] sm:$0xff]  ;;  %v481_v45 = vld [vmem:[#allocation6 + $0x220] sm:$0xff] }
  0x70   :  { %757 = vmatpush.msrb.mxu0 %v471_v48  ;;  %777 = vmatpush.msrb.mxu1 %v599_v49  ;;  %v609_v46 = vld [vmem:[#allocation6 + $0x620] sm:$0xff]  ;;  %v482_v47 = vld [vmem:[#allocation6 + $0x228] sm:$0xff] }
  0x71   :  { %797 = vmatpush.msrb.mxu2 %v472_v50  ;;  %817 = vmatpush.msrb.mxu3 %v600_v51  ;;  %v610_v48 = vld [vmem:[#allocation6 + $0x628] sm:$0xff]  ;;  %v473_v49 = vld [vmem:[#allocation6 + $0x1e0] sm:$0xff] }
  0x72   :  { %758 = vmatpush.msrb.mxu0 %v463_v52  ;;  %778 = vmatpush.msrb.mxu1 %v591_v53  ;;  %v601_v50 = vld [vmem:[#allocation6 + $0x5e0] sm:$0xff]  ;;  %v474_v51 = vld [vmem:[#allocation6 + $0x1e8] sm:$0xff] }
  0x73   :  { %798 = vmatpush.msrb.mxu2 %v464_v54  ;;  %818 = vmatpush.msrb.mxu3 %v592_v55  ;;  %v602_v52 = vld [vmem:[#allocation6 + $0x5e8] sm:$0xff]  ;;  %v465_v53 = vld [vmem:[#allocation6 + $0x1a0] sm:$0xff] }
  0x74   :  { %759 = vmatpush.msrb.mxu0 %v455_v56  ;;  %779 = vmatpush.msrb.mxu1 %v583_v57  ;;  %v593_v54 = vld [vmem:[#allocation6 + $0x5a0] sm:$0xff]  ;;  %v466_v55 = vld [vmem:[#allocation6 + $0x1a8] sm:$0xff] }
  0x75   :  { %799 = vmatpush.msrb.mxu2 %v456_v58  ;;  %819 = vmatpush.msrb.mxu3 %v584_v59  ;;  %v594_v56 = vld [vmem:[#allocation6 + $0x5a8] sm:$0xff]  ;;  %v457_v57 = vld [vmem:[#allocation6 + $0x160] sm:$0xff] }
  0x76   :  { %760 = vmatpush.msrb.mxu0 %v447_v60  ;;  %780 = vmatpush.msrb.mxu1 %v575_v61  ;;  %v585_v58 = vld [vmem:[#allocation6 + $0x560] sm:$0xff]  ;;  %v458_v59 = vld [vmem:[#allocation6 + $0x168] sm:$0xff] }
  0x77   :  { %800 = vmatpush.msrb.mxu2 %v448_v62  ;;  %820 = vmatpush.msrb.mxu3 %v576_v63  ;;  %v586_v60 = vld [vmem:[#allocation6 + $0x568] sm:$0xff]  ;;  %v449_v61 = vld [vmem:[#allocation6 + $0x120] sm:$0xff] }
  0x78   :  { %761 = vmatpush.msrb.mxu0 %v439_v0  ;;  %781 = vmatpush.msrb.mxu1 %v567_v1  ;;  %v577_v62 = vld [vmem:[#allocation6 + $0x520] sm:$0xff]  ;;  %v450_v63 = vld [vmem:[#allocation6 + $0x128] sm:$0xff] }
  0x79   :  { %801 = vmatpush.msrb.mxu2 %v440_v2  ;;  %821 = vmatpush.msrb.mxu3 %v568_v3  ;;  %v578_v0 = vld [vmem:[#allocation6 + $0x528] sm:$0xff]  ;;  %v441_v1 = vld [vmem:[#allocation6 + $0xe0] sm:$0xff] }
  0x7a   :  { %762 = vmatpush.msrb.mxu0 %v431_v4  ;;  %782 = vmatpush.msrb.mxu1 %v559_v5  ;;  %v569_v2 = vld [vmem:[#allocation6 + $0x4e0] sm:$0xff]  ;;  %v442_v3 = vld [vmem:[#allocation6 + $0xe8] sm:$0xff] }
  0x7b   :  { %802 = vmatpush.msrb.mxu2 %v432_v6  ;;  %822 = vmatpush.msrb.mxu3 %v560_v7  ;;  %v570_v4 = vld [vmem:[#allocation6 + $0x4e8] sm:$0xff]  ;;  %v433_v5 = vld [vmem:[#allocation6 + $0xa0] sm:$0xff] }
  0x7c   :  { %763 = vmatpush.msrb.mxu0 %v423_v8  ;;  %783 = vmatpush.msrb.mxu1 %v551_v9  ;;  %v561_v6 = vld [vmem:[#allocation6 + $0x4a0] sm:$0xff]  ;;  %v434_v7 = vld [vmem:[#allocation6 + $0xa8] sm:$0xff] }
  0x7d   :  { %803 = vmatpush.msrb.mxu2 %v424_v10  ;;  %823 = vmatpush.msrb.mxu3 %v552_v11  ;;  %v562_v8 = vld [vmem:[#allocation6 + $0x4a8] sm:$0xff]  ;;  %v425_v9 = vld [vmem:[#allocation6 + $0x60] sm:$0xff] }
  0x7e   :  { %764 = vmatpush.msrb.mxu0 %v415_v12  ;;  %784 = vmatpush.msrb.mxu1 %v543_v13  ;;  %v553_v10 = vld [vmem:[#allocation6 + $0x460] sm:$0xff]  ;;  %v426_v11 = vld [vmem:[#allocation6 + $0x68] sm:$0xff] }
  0x7f   :  { %804 = vmatpush.msrb.mxu2 %v416_v14  ;;  %824 = vmatpush.msrb.mxu3 %v544_v15  ;;  %v554_v12 = vld [vmem:[#allocation6 + $0x468] sm:$0xff]  ;;  %v417_v13 = vld [vmem:[#allocation6 + $0x20] sm:$0xff] }
  0x80   :  { %765 = vmatmul.f32.vlgmr.msrb.gmra.mxu0 %v8708_v17  ;;  %785 = vmatmul.f32.vlgmr.msrb.gmra.mxu1 %v8708_v17  ;;  %v545_v14 = vld [vmem:[#allocation6 + $0x420] sm:$0xff]  ;;  %v418_v15 = vld [vmem:[#allocation6 + $0x28] sm:$0xff] }
  0x81   :  { %805 = vmatmul.f32.vlgmr.msrb.gmra.mxu2 %v8708_v17  ;;  %825 = vmatmul.f32.vlgmr.msrb.gmra.mxu3 %v8708_v17 }
  0x82   :  { %829 = vmatpush.msra.mxu0 %v537_v16  ;;  %849 = vmatpush.msra.mxu1 %v665_v18  ;;  %v546_v16 = vld [vmem:[#allocation6 + $0x428] sm:$0xff]  ;;  %v539_v18 = vld [vmem:[#allocation6 + $0x3f0] sm:$0xff] }
  0x83   :  { %869 = vmatpush.msra.mxu2 %v538_v19  ;;  %889 = vmatpush.msra.mxu3 %v666_v20  ;;  %v667_v19 = vld [vmem:[#allocation6 + $0x7f0] sm:$0xff]  ;;  %v540_v20 = vld [vmem:[#allocation6 + $0x3f8] sm:$0xff] }
  0x84   :  { %830 = vmatpush.msra.mxu0 %v529_v21  ;;  %850 = vmatpush.msra.mxu1 %v657_v22  ;;  %v668_v21 = vld [vmem:[#allocation6 + $0x7f8] sm:$0xff]  ;;  %v531_v22 = vld [vmem:[#allocation6 + $0x3b0] sm:$0xff] }
  0x85   :  { %870 = vmatpush.msra.mxu2 %v530_v23  ;;  %890 = vmatpush.msra.mxu3 %v658_v24  ;;  %v659_v23 = vld [vmem:[#allocation6 + $0x7b0] sm:$0xff]  ;;  %v532_v24 = vld [vmem:[#allocation6 + $0x3b8] sm:$0xff] }
  0x86   :  { %831 = vmatpush.msra.mxu0 %v521_v25  ;;  %851 = vmatpush.msra.mxu1 %v649_v26  ;;  %v660_v25 = vld [vmem:[#allocation6 + $0x7b8] sm:$0xff]  ;;  %v523_v26 = vld [vmem:[#allocation6 + $0x370] sm:$0xff] }
  0x87   :  { %871 = vmatpush.msra.mxu2 %v522_v27  ;;  %891 = vmatpush.msra.mxu3 %v650_v28  ;;  %v651_v27 = vld [vmem:[#allocation6 + $0x770] sm:$0xff]  ;;  %v524_v28 = vld [vmem:[#allocation6 + $0x378] sm:$0xff] }
  0x88   :  { %832 = vmatpush.msra.mxu0 %v513_v29  ;;  %852 = vmatpush.msra.mxu1 %v641_v30  ;;  %v652_v29 = vld [vmem:[#allocation6 + $0x778] sm:$0xff]  ;;  %v515_v30 = vld [vmem:[#allocation6 + $0x330] sm:$0xff] }
  0x89   :  { %872 = vmatpush.msra.mxu2 %v514_v31  ;;  %892 = vmatpush.msra.mxu3 %v642_v32  ;;  %v643_v31 = vld [vmem:[#allocation6 + $0x730] sm:$0xff]  ;;  %v516_v32 = vld [vmem:[#allocation6 + $0x338] sm:$0xff] }
  0x8a   :  { %833 = vmatpush.msra.mxu0 %v505_v33  ;;  %853 = vmatpush.msra.mxu1 %v633_v34  ;;  %v644_v33 = vld [vmem:[#allocation6 + $0x738] sm:$0xff]  ;;  %v507_v34 = vld [vmem:[#allocation6 + $0x2f0] sm:$0xff] }
  0x8b   :  { %873 = vmatpush.msra.mxu2 %v506_v35  ;;  %893 = vmatpush.msra.mxu3 %v634_v36  ;;  %v635_v35 = vld [vmem:[#allocation6 + $0x6f0] sm:$0xff]  ;;  %v508_v36 = vld [vmem:[#allocation6 + $0x2f8] sm:$0xff] }
  0x8c   :  { %834 = vmatpush.msra.mxu0 %v497_v37  ;;  %854 = vmatpush.msra.mxu1 %v625_v38  ;;  %v636_v37 = vld [vmem:[#allocation6 + $0x6f8] sm:$0xff]  ;;  %v499_v38 = vld [vmem:[#allocation6 + $0x2b0] sm:$0xff] }
  0x8d   :  { %874 = vmatpush.msra.mxu2 %v498_v39  ;;  %894 = vmatpush.msra.mxu3 %v626_v40  ;;  %v627_v39 = vld [vmem:[#allocation6 + $0x6b0] sm:$0xff]  ;;  %v500_v40 = vld [vmem:[#allocation6 + $0x2b8] sm:$0xff] }
  0x8e   :  { %835 = vmatpush.msra.mxu0 %v489_v41  ;;  %855 = vmatpush.msra.mxu1 %v617_v42  ;;  %v628_v41 = vld [vmem:[#allocation6 + $0x6b8] sm:$0xff]  ;;  %v491_v42 = vld [vmem:[#allocation6 + $0x270] sm:$0xff] }
  0x8f   :  { %875 = vmatpush.msra.mxu2 %v490_v43  ;;  %895 = vmatpush.msra.mxu3 %v618_v44  ;;  %v619_v43 = vld [vmem:[#allocation6 + $0x670] sm:$0xff]  ;;  %v492_v44 = vld [vmem:[#allocation6 + $0x278] sm:$0xff] }
  0x90   :  { %836 = vmatpush.msra.mxu0 %v481_v45  ;;  %856 = vmatpush.msra.mxu1 %v609_v46  ;;  %v620_v45 = vld [vmem:[#allocation6 + $0x678] sm:$0xff]  ;;  %v483_v46 = vld [vmem:[#allocation6 + $0x230] sm:$0xff] }
  0x91   :  { %876 = vmatpush.msra.mxu2 %v482_v47  ;;  %896 = vmatpush.msra.mxu3 %v610_v48  ;;  %v611_v47 = vld [vmem:[#allocation6 + $0x630] sm:$0xff]  ;;  %v484_v48 = vld [vmem:[#allocation6 + $0x238] sm:$0xff] }
  0x92   :  { %837 = vmatpush.msra.mxu0 %v473_v49  ;;  %857 = vmatpush.msra.mxu1 %v601_v50  ;;  %v612_v49 = vld [vmem:[#allocation6 + $0x638] sm:$0xff]  ;;  %v475_v50 = vld [vmem:[#allocation6 + $0x1f0] sm:$0xff] }
  0x93   :  { %877 = vmatpush.msra.mxu2 %v474_v51  ;;  %897 = vmatpush.msra.mxu3 %v602_v52  ;;  %v603_v51 = vld [vmem:[#allocation6 + $0x5f0] sm:$0xff]  ;;  %v476_v52 = vld [vmem:[#allocation6 + $0x1f8] sm:$0xff] }
  0x94   :  { %838 = vmatpush.msra.mxu0 %v465_v53  ;;  %858 = vmatpush.msra.mxu1 %v593_v54  ;;  %v604_v53 = vld [vmem:[#allocation6 + $0x5f8] sm:$0xff]  ;;  %v467_v54 = vld [vmem:[#allocation6 + $0x1b0] sm:$0xff] }
  0x95   :  { %878 = vmatpush.msra.mxu2 %v466_v55  ;;  %898 = vmatpush.msra.mxu3 %v594_v56  ;;  %v595_v55 = vld [vmem:[#allocation6 + $0x5b0] sm:$0xff]  ;;  %v468_v56 = vld [vmem:[#allocation6 + $0x1b8] sm:$0xff] }
  0x96   :  { %839 = vmatpush.msra.mxu0 %v457_v57  ;;  %859 = vmatpush.msra.mxu1 %v585_v58  ;;  %v596_v57 = vld [vmem:[#allocation6 + $0x5b8] sm:$0xff]  ;;  %v459_v58 = vld [vmem:[#allocation6 + $0x170] sm:$0xff] }
  0x97   :  { %879 = vmatpush.msra.mxu2 %v458_v59  ;;  %899 = vmatpush.msra.mxu3 %v586_v60  ;;  %v587_v59 = vld [vmem:[#allocation6 + $0x570] sm:$0xff]  ;;  %v460_v60 = vld [vmem:[#allocation6 + $0x178] sm:$0xff] }
  0x98   :  { %840 = vmatpush.msra.mxu0 %v449_v61  ;;  %860 = vmatpush.msra.mxu1 %v577_v62  ;;  %v588_v61 = vld [vmem:[#allocation6 + $0x578] sm:$0xff]  ;;  %v451_v62 = vld [vmem:[#allocation6 + $0x130] sm:$0xff] }
  0x99   :  { %880 = vmatpush.msra.mxu2 %v450_v63  ;;  %900 = vmatpush.msra.mxu3 %v578_v0  ;;  %v579_v63 = vld [vmem:[#allocation6 + $0x530] sm:$0xff]  ;;  %v452_v0 = vld [vmem:[#allocation6 + $0x138] sm:$0xff] }
  0x9a   :  { %841 = vmatpush.msra.mxu0 %v441_v1  ;;  %861 = vmatpush.msra.mxu1 %v569_v2  ;;  %v580_v1 = vld [vmem:[#allocation6 + $0x538] sm:$0xff]  ;;  %v443_v2 = vld [vmem:[#allocation6 + $0xf0] sm:$0xff] }
  0x9b   :  { %881 = vmatpush.msra.mxu2 %v442_v3  ;;  %901 = vmatpush.msra.mxu3 %v570_v4  ;;  %v571_v3 = vld [vmem:[#allocation6 + $0x4f0] sm:$0xff]  ;;  %v444_v4 = vld [vmem:[#allocation6 + $0xf8] sm:$0xff] }
  0x9c   :  { %842 = vmatpush.msra.mxu0 %v433_v5  ;;  %862 = vmatpush.msra.mxu1 %v561_v6  ;;  %v572_v5 = vld [vmem:[#allocation6 + $0x4f8] sm:$0xff]  ;;  %v435_v6 = vld [vmem:[#allocation6 + $0xb0] sm:$0xff] }
  0x9d   :  { %882 = vmatpush.msra.mxu2 %v434_v7  ;;  %902 = vmatpush.msra.mxu3 %v562_v8  ;;  %v563_v7 = vld [vmem:[#allocation6 + $0x4b0] sm:$0xff]  ;;  %v436_v8 = vld [vmem:[#allocation6 + $0xb8] sm:$0xff] }
  0x9e   :  { %843 = vmatpush.msra.mxu0 %v425_v9  ;;  %863 = vmatpush.msra.mxu1 %v553_v10  ;;  %v564_v9 = vld [vmem:[#allocation6 + $0x4b8] sm:$0xff]  ;;  %v427_v10 = vld [vmem:[#allocation6 + $0x70] sm:$0xff] }
  0x9f   :  { %883 = vmatpush.msra.mxu2 %v426_v11  ;;  %903 = vmatpush.msra.mxu3 %v554_v12  ;;  %v555_v11 = vld [vmem:[#allocation6 + $0x470] sm:$0xff]  ;;  %v428_v12 = vld [vmem:[#allocation6 + $0x78] sm:$0xff] }
  0xa0   :  { %844 = vmatpush.msra.mxu0 %v417_v13  ;;  %864 = vmatpush.msra.mxu1 %v545_v14  ;;  %v556_v13 = vld [vmem:[#allocation6 + $0x478] sm:$0xff]  ;;  %v419_v14 = vld [vmem:[#allocation6 + $0x30] sm:$0xff] }
  0xa1   :  { %884 = vmatpush.msra.mxu2 %v418_v15  ;;  %904 = vmatpush.msra.mxu3 %v546_v16  ;;  %v547_v15 = vld [vmem:[#allocation6 + $0x430] sm:$0xff]  ;;  %v420_v16 = vld [vmem:[#allocation6 + $0x38] sm:$0xff] }
  0xa2   :  { %845 = vmatmul.f32.vlgmr.msra.gmra.mxu0 %v8708_v17  ;;  %865 = vmatmul.f32.vlgmr.msra.gmra.mxu1 %v8708_v17 }
  0xa3   :  { %885 = vmatmul.f32.vlgmr.msra.gmra.mxu2 %v8708_v17  ;;  %905 = vmatmul.f32.vlgmr.msra.gmra.mxu3 %v8708_v17 }
  0xa4   :  { %909 = vmatpush.msrb.mxu0 %v539_v18  ;;  %929 = vmatpush.msrb.mxu1 %v667_v19  ;;  %v548_v18 = vld [vmem:[#allocation6 + $0x438] sm:$0xff] }
  0xa5   :  { %949 = vmatpush.msrb.mxu2 %v540_v20  ;;  %969 = vmatpush.msrb.mxu3 %v668_v21 }
  0xa6   :  { %910 = vmatpush.msrb.mxu0 %v531_v22  ;;  %930 = vmatpush.msrb.mxu1 %v659_v23 }
  0xa7   :  { %950 = vmatpush.msrb.mxu2 %v532_v24  ;;  %970 = vmatpush.msrb.mxu3 %v660_v25 }
  0xa8   :  { %911 = vmatpush.msrb.mxu0 %v523_v26  ;;  %931 = vmatpush.msrb.mxu1 %v651_v27 }
  0xa9   :  { %951 = vmatpush.msrb.mxu2 %v524_v28  ;;  %971 = vmatpush.msrb.mxu3 %v652_v29 }
  0xaa   :  { %912 = vmatpush.msrb.mxu0 %v515_v30  ;;  %932 = vmatpush.msrb.mxu1 %v643_v31  ;;  %v1245_v30 = vld [vmem:[#allocation6 + $0x3c0] sm:$0xff]  ;;  %v1246_v31 = vld [vmem:[#allocation6 + $0x3c8] sm:$0xff] }
  0xab   :  { %952 = vmatpush.msrb.mxu2 %v516_v32  ;;  %972 = vmatpush.msrb.mxu3 %v644_v33 }
  0xac   :  { %913 = vmatpush.msrb.mxu0 %v507_v34  ;;  %933 = vmatpush.msrb.mxu1 %v635_v35  ;;  %v1237_v34 = vld [vmem:[#allocation6 + $0x380] sm:$0xff]  ;;  %v1238_v35 = vld [vmem:[#allocation6 + $0x388] sm:$0xff] }
  0xad   :  { %953 = vmatpush.msrb.mxu2 %v508_v36  ;;  %973 = vmatpush.msrb.mxu3 %v636_v37  ;;  %v1229_v36 = vld [vmem:[#allocation6 + $0x340] sm:$0xff]  ;;  %v1230_v37 = vld [vmem:[#allocation6 + $0x348] sm:$0xff] }
  0xae   :  { %914 = vmatpush.msrb.mxu0 %v499_v38  ;;  %934 = vmatpush.msrb.mxu1 %v627_v39  ;;  %v1221_v38 = vld [vmem:[#allocation6 + $0x300] sm:$0xff] }
  0xaf   :  { %954 = vmatpush.msrb.mxu2 %v500_v40  ;;  %974 = vmatpush.msrb.mxu3 %v628_v41  ;;  %v1373_v39 = vld [vmem:[#allocation6 + $0x7c0] sm:$0xff]  ;;  %v1222_v40 = vld [vmem:[#allocation6 + $0x308] sm:$0xff] }
  0xb0   :  { %915 = vmatpush.msrb.mxu0 %v491_v42  ;;  %935 = vmatpush.msrb.mxu1 %v619_v43  ;;  %v1374_v41 = vld [vmem:[#allocation6 + $0x7c8] sm:$0xff]  ;;  %v1213_v42 = vld [vmem:[#allocation6 + $0x2c0] sm:$0xff] }
  0xb1   :  { %955 = vmatpush.msrb.mxu2 %v492_v44  ;;  %975 = vmatpush.msrb.mxu3 %v620_v45  ;;  %v8897_v19 = vpop.f32.mrf.mxu0  ;;  %v8899_v20 = vpop.f32.mrf.mxu1  ;;  %v1365_v43 = vld [vmem:[#allocation6 + $0x780] sm:$0xff]  ;;  %v1214_v44 = vld [vmem:[#allocation6 + $0x2c8] sm:$0xff] }
  0xb2   :  { %916 = vmatpush.msrb.mxu0 %v483_v46  ;;  %936 = vmatpush.msrb.mxu1 %v611_v47  ;;  %v1366_v47 = vld [vmem:[#allocation6 + $0x788] sm:$0xff] }
  0xb3   :  { %956 = vmatpush.msrb.mxu2 %v484_v48  ;;  %976 = vmatpush.msrb.mxu3 %v612_v49  ;;  %v1205_v48 = vld [vmem:[#allocation6 + $0x280] sm:$0xff] }
  0xb4   :  { %917 = vmatpush.msrb.mxu0 %v475_v50  ;;  %937 = vmatpush.msrb.mxu1 %v603_v51  ;;  %v1357_v49 = vld [vmem:[#allocation6 + $0x740] sm:$0xff]  ;;  %v1206_v50 = vld [vmem:[#allocation6 + $0x288] sm:$0xff] }
  0xb5   :  { %957 = vmatpush.msrb.mxu2 %v476_v52  ;;  %977 = vmatpush.msrb.mxu3 %v604_v53  ;;  %v1358_v51 = vld [vmem:[#allocation6 + $0x748] sm:$0xff] }
  0xb6   :  { %918 = vmatpush.msrb.mxu0 %v467_v54  ;;  %938 = vmatpush.msrb.mxu1 %v595_v55  ;;  %v1197_v54 = vld [vmem:[#allocation6 + $0x240] sm:$0xff] }
  0xb7   :  { %958 = vmatpush.msrb.mxu2 %v468_v56  ;;  %978 = vmatpush.msrb.mxu3 %v596_v57  ;;  %v1349_v55 = vld [vmem:[#allocation6 + $0x700] sm:$0xff]  ;;  %v1198_v56 = vld [vmem:[#allocation6 + $0x248] sm:$0xff] }
  0xb8   :  { %919 = vmatpush.msrb.mxu0 %v459_v58  ;;  %939 = vmatpush.msrb.mxu1 %v587_v59  ;;  %v8901_v21 = vpop.f32.mrf.mxu2  ;;  %v8903_v22 = vpop.f32.mrf.mxu3  ;;  %v1350_v57 = vld [vmem:[#allocation6 + $0x708] sm:$0xff]  ;;  %v1189_v58 = vld [vmem:[#allocation6 + $0x200] sm:$0xff] }
  0xb9   :  { %959 = vmatpush.msrb.mxu2 %v460_v60  ;;  %979 = vmatpush.msrb.mxu3 %v588_v61  ;;  %v1341_v59 = vld [vmem:[#allocation6 + $0x6c0] sm:$0xff]  ;;  %v1190_v60 = vld [vmem:[#allocation6 + $0x208] sm:$0xff] }
  0xba   :  { %920 = vmatpush.msrb.mxu0 %v451_v62  ;;  %940 = vmatpush.msrb.mxu1 %v579_v63  ;;  %v1342_v61 = vld [vmem:[#allocation6 + $0x6c8] sm:$0xff]  ;;  %v8932_v62 = vld [vmem:[%s10457_s3] sm:$0xff]  ;;  %v1181_v63 = vld [vmem:[#allocation6 + $0x1c0] sm:$0xff]  ;;  %s8709_s3 = smov 96  }
  0xbb   :  { %960 = vmatpush.msrb.mxu2 %v452_v0  ;;  %980 = vmatpush.msrb.mxu3 %v580_v1  ;;  %v1333_v0 = vld [vmem:[#allocation6 + $0x680] sm:$0xff]  ;;  %v1182_v1 = vld [vmem:[#allocation6 + $0x1c8] sm:$0xff] }
  0xbc   :  { %921 = vmatpush.msrb.mxu0 %v443_v2  ;;  %941 = vmatpush.msrb.mxu1 %v571_v3  ;;  %v1334_v2 = vld [vmem:[#allocation6 + $0x688] sm:$0xff]  ;;  %v1173_v3 = vld [vmem:[#allocation6 + $0x180] sm:$0xff] }
  0xbd   :  { %961 = vmatpush.msrb.mxu2 %v444_v4  ;;  %981 = vmatpush.msrb.mxu3 %v572_v5  ;;  %v8905_v23 = vpop.f32.mrf.mxu0  ;;  %v8907_v24 = vpop.f32.mrf.mxu1  ;;  %v1325_v4 = vld [vmem:[#allocation6 + $0x640] sm:$0xff]  ;;  %v1174_v5 = vld [vmem:[#allocation6 + $0x188] sm:$0xff] }
  0xbe   :  { %922 = vmatpush.msrb.mxu0 %v435_v6  ;;  %942 = vmatpush.msrb.mxu1 %v563_v7  ;;  %v1326_v6 = vld [vmem:[#allocation6 + $0x648] sm:$0xff]  ;;  %v170_v7 = vperm.slane %v8932_v62, 0 }
  0xbf   :  { %962 = vmatpush.msrb.mxu2 %v436_v8  ;;  %982 = vmatpush.msrb.mxu3 %v564_v9 }
  0xc0   :  { %923 = vmatpush.msrb.mxu0 %v427_v10  ;;  %943 = vmatpush.msrb.mxu1 %v555_v11  ;;  %v1165_v10 = vld [vmem:[#allocation6 + $0x140] sm:$0xff] }
  0xc1   :  { %963 = vmatpush.msrb.mxu2 %v428_v12  ;;  %983 = vmatpush.msrb.mxu3 %v556_v13  ;;  %v1317_v11 = vld [vmem:[#allocation6 + $0x600] sm:$0xff]  ;;  %v1166_v12 = vld [vmem:[#allocation6 + $0x148] sm:$0xff] }
  0xc2   :  { %924 = vmatpush.msrb.mxu0 %v419_v14  ;;  %944 = vmatpush.msrb.mxu1 %v547_v15  ;;  %v1318_v15 = vld [vmem:[#allocation6 + $0x608] sm:$0xff] }
  0xc3   :  { %964 = vmatpush.msrb.mxu2 %v420_v16  ;;  %984 = vmatpush.msrb.mxu3 %v548_v18  ;;  %v1157_v16 = vld [vmem:[#allocation6 + $0x100] sm:$0xff] }
  0xc4   :  { %925 = vmatmul.f32.vlgmr.msrb.gmra.mxu0 %v8708_v17  ;;  %945 = vmatmul.f32.vlgmr.msrb.gmra.mxu1 %v8708_v17  ;;  %v8909_v25 = vpop.f32.mrf.mxu2  ;;  %v8911_v26 = vpop.f32.mrf.mxu3  ;;  %v1309_v18 = vld [vmem:[#allocation6 + $0x5c0] sm:$0xff] }
  0xc5   :  { %965 = vmatmul.f32.vlgmr.msrb.gmra.mxu2 %v8708_v17  ;;  %985 = vmatmul.f32.vlgmr.msrb.gmra.mxu3 %v8708_v17 }
  0xc6   :  { %1381 = vmatpush.msra.mxu0 %v1245_v30  ;;  %1421 = vmatpush.msra.mxu2 %v1246_v31  ;;  %v172_v30 = vperm.slane %v8932_v62, 2 }
  0xc7   :  { %v8913_v27 = vpop.f32.mrf.mxu0  ;;  %v8915_v28 = vpop.f32.mrf.mxu1  ;;  %1401 = vmatpush.msra.mxu1 %v1373_v39  ;;  %1441 = vmatpush.msra.mxu3 %v1374_v41  ;;  %v1302_v41 = vld [vmem:[#allocation6 + $0x588] sm:$0xff] }
  0xc8   :  { %1382 = vmatpush.msra.mxu0 %v1237_v34  ;;  %1422 = vmatpush.msra.mxu2 %v1238_v35  ;;  %v1158_v34 = vld [vmem:[#allocation6 + $0x108] sm:$0xff] }
  0xc9   :  { %1402 = vmatpush.msra.mxu1 %v1365_v43  ;;  %1442 = vmatpush.msra.mxu3 %v1366_v47  ;;  %v1310_v35 = vld [vmem:[#allocation6 + $0x5c8] sm:$0xff]  ;;  %v1293_v43 = vld [vmem:[#allocation6 + $0x540] sm:$0xff] }
  0xca   :  { %1383 = vmatpush.msra.mxu0 %v1229_v36  ;;  %1423 = vmatpush.msra.mxu2 %v1230_v37  ;;  %v1149_v36 = vld [vmem:[#allocation6 + $0xc0] sm:$0xff] }
  0xcb   :  { %1403 = vmatpush.msra.mxu1 %v1357_v49  ;;  %1443 = vmatpush.msra.mxu3 %v1358_v51  ;;  %v1301_v37 = vld [vmem:[#allocation6 + $0x580] sm:$0xff]  ;;  %v171_v49 = vperm.slane %v8932_v62, 1 }
  0xcc   :  { %1384 = vmatpush.msra.mxu0 %v1221_v38  ;;  %1424 = vmatpush.msra.mxu2 %v1222_v40  ;;  %v8939_v38 = vadd.f32 %v8897_v19, %v170_v7  ;;  %v1150_v40 = vld [vmem:[#allocation6 + $0xc8] sm:$0xff] }
  0xcd   :  { %1404 = vmatpush.msra.mxu1 %v1349_v55  ;;  %1444 = vmatpush.msra.mxu3 %v1350_v57  ;;  %v1142_v19 = vld [vmem:[#allocation6 + $0x88] sm:$0xff] }
  0xce   :  { %v8917_v17 = vpop.f32.mrf.mxu2  ;;  %v8919_v29 = vpop.f32.mrf.mxu3  ;;  %1385 = vmatpush.msra.mxu0 %v1213_v42  ;;  %1425 = vmatpush.msra.mxu2 %v1214_v44  ;;  %v1141_v42 = vld [vmem:[#allocation6 + $0x80] sm:$0xff]  ;;  %v8944_v44 = vadd.f32 %v8901_v21, %v172_v30  ;;  %v1134_v55 = vld [vmem:[#allocation6 + $0x48] sm:$0xff] }
  0xcf   :  { %1405 = vmatpush.msra.mxu1 %v1341_v59  ;;  %1445 = vmatpush.msra.mxu3 %v1342_v61  ;;  %v1133_v21 = vld [vmem:[#allocation6 + $0x40] sm:$0xff] }
  0xd0   :  { %1386 = vmatpush.msra.mxu0 %v1205_v48  ;;  %1426 = vmatpush.msra.mxu2 %v1206_v50  ;;  %v1294_v48 = vld [vmem:[#allocation6 + $0x548] sm:$0xff]  ;;  %v1277_v61 = vld [vmem:[#allocation6 + $0x4c0] sm:$0xff] }
  0xd1   :  { %v8921_v32 = vpop.f32.mrf.mxu0  ;;  %v8923_v33 = vpop.f32.mrf.mxu1  ;;  %1406 = vmatpush.msra.mxu1 %v1333_v0  ;;  %1446 = vmatpush.msra.mxu3 %v1334_v2  ;;  %v8953_v0 = vadd.f32 %v8899_v20, %v171_v49  ;;  %v1278_v2 = vld [vmem:[#allocation6 + $0x4c8] sm:$0xff] }
  0xd2   :  { %1387 = vmatpush.msra.mxu0 %v1197_v54  ;;  %1427 = vmatpush.msra.mxu2 %v1198_v56  ;;  %v1285_v54 = vld [vmem:[#allocation6 + $0x500] sm:$0xff] }
  0xd3   :  { %1407 = vmatpush.msra.mxu1 %v1325_v4  ;;  %1447 = vmatpush.msra.mxu3 %v1326_v6  ;;  %v1248_v4 = vld [vmem:[#allocation6 + $0x3d8] sm:$0xff]  ;;  %v1269_v6 = vld [vmem:[#allocation6 + $0x480] sm:$0xff] }
  0xd4   :  { %1388 = vmatpush.msra.mxu0 %v1189_v58  ;;  %1428 = vmatpush.msra.mxu2 %v1190_v60  ;;  %v1286_v58 = vld [vmem:[#allocation6 + $0x508] sm:$0xff]  ;;  %v1125_v60 = vld [vmem:[#allocation6] sm:$0xff] }
  0xd5   :  { %1408 = vmatpush.msra.mxu1 %v1317_v11  ;;  %1448 = vmatpush.msra.mxu3 %v1318_v15  ;;  %v1240_v11 = vld [vmem:[#allocation6 + $0x398] sm:$0xff] }
  0xd6   :  { %1389 = vmatpush.msra.mxu0 %v1181_v63  ;;  %1429 = vmatpush.msra.mxu2 %v1182_v1  ;;  %v1126_v63 = vld [vmem:[#allocation6 + $0x8] sm:$0xff] }
  0xd7   :  { %1409 = vmatpush.msra.mxu1 %v1309_v18  ;;  %1449 = vmatpush.msra.mxu3 %v1310_v35  ;;  %v1254_v18 = vld [vmem:[#allocation6 + $0x408] sm:$0xff]  ;;  %v1375_v35 = vld [vmem:[#allocation6 + $0x7d0] sm:$0xff] }
  0xd8   :  { %v8925_v45 = vpop.f32.mrf.mxu2  ;;  %v8927_v46 = vpop.f32.mrf.mxu3  ;;  %1390 = vmatpush.msra.mxu0 %v1173_v3  ;;  %1430 = vmatpush.msra.mxu2 %v1174_v5  ;;  %v1247_v3 = vld [vmem:[#allocation6 + $0x3d0] sm:$0xff] }
  0xd9   :  { %1410 = vmatpush.msra.mxu1 %v1301_v37  ;;  %1450 = vmatpush.msra.mxu3 %v1302_v41  ;;  %v1367_v41 = vld [vmem:[#allocation6 + $0x790] sm:$0xff] }
  0xda   :  { %1391 = vmatpush.msra.mxu0 %v1165_v10  ;;  %1431 = vmatpush.msra.mxu2 %v1166_v12  ;;  %v1239_v10 = vld [vmem:[#allocation6 + $0x390] sm:$0xff]  ;;  %v1262_v12 = vld [vmem:[#allocation6 + $0x448] sm:$0xff] }
  0xdb   :  { %v686_v52 = vpop.f32.mrf.mxu0  ;;  %v706_v53 = vpop.f32.mrf.mxu1  ;;  %1411 = vmatpush.msra.mxu1 %v1293_v43  ;;  %1451 = vmatpush.msra.mxu3 %v1294_v48  ;;  %v1207_v48 = vld [vmem:[#allocation6 + $0x290] sm:$0xff] }
  0xdc   :  { %v707_v31 = vadd.f32 %v706_v53, %v686_v52  ;;  %1392 = vmatpush.msra.mxu0 %v1157_v16  ;;  %1432 = vmatpush.msra.mxu2 %v1158_v34  ;;  %v173_v53 = vperm.slane %v8932_v62, 3  ;;  %v1253_v16 = vld [vmem:[#allocation6 + $0x400] sm:$0xff]  ;;  %v1223_v34 = vld [vmem:[#allocation6 + $0x310] sm:$0xff] }
  0xdd   :  { %1412 = vmatpush.msra.mxu1 %v1285_v54  ;;  %1452 = vmatpush.msra.mxu3 %v1286_v58  ;;  %v1199_v54 = vld [vmem:[#allocation6 + $0x250] sm:$0xff] }
  0xde   :  { %v989_v47 = vadd.f32 %v707_v31, %v8939_v38  ;;  %1393 = vmatpush.msra.mxu0 %v1149_v36  ;;  %1433 = vmatpush.msra.mxu2 %v1150_v40  ;;  %v8958_v5 = vadd.f32 %v8903_v22, %v173_v53  ;;  %v1261_v22 = vld [vmem:[#allocation6 + $0x440] sm:$0xff]  ;;  %v1224_v36 = vld [vmem:[#allocation6 + $0x318] sm:$0xff]  ;;  %v1215_v40 = vld [vmem:[#allocation6 + $0x2d0] sm:$0xff] }
  0xdf   :  { %1413 = vmatpush.msra.mxu1 %v1277_v61  ;;  %1453 = vmatpush.msra.mxu3 %v1278_v2  ;;  %v1191_v58 = vld [vmem:[#allocation6 + $0x210] sm:$0xff] }
  0xe0   :  { %1394 = vmatpush.msra.mxu0 %v1141_v42  ;;  %1434 = vmatpush.msra.mxu2 %v1142_v19  ;;  %v8081_v56 = vmul.f32 -1.442695, %v989_v47  ;;  %v1216_v42 = vld [vmem:[#allocation6 + $0x2d8] sm:$0xff]  ;;  %v1183_v2 = vld [vmem:[#allocation6 + $0x1d0] sm:$0xff] }
  0xe1   :  { %1414 = vmatpush.msra.mxu1 %v1269_v6  ;;  %v1368_v47 = vld [vmem:[#allocation6 + $0x798] sm:$0xff] }
  0xe2   :  { %v726_v8 = vpop.f32.mrf.mxu2  ;;  %v746_v9 = vpop.f32.mrf.mxu3  ;;  %1395 = vmatpush.msra.mxu0 %v1133_v21  ;;  %1435 = vmatpush.msra.mxu2 %v1134_v55  ;;  %8231 = vpow2.f32 %v8081_v56  ;;  %v1351_v55 = vld [vmem:[#allocation6 + $0x710] sm:$0xff]  ;;  %v1200_v56 = vld [vmem:[#allocation6 + $0x258] sm:$0xff] }
  0xe3   :  { %v747_v57 = vadd.f32 %v746_v9, %v726_v8  ;;  %v1270_v8 = vld [vmem:[#allocation6 + $0x488] sm:$0xff]  ;;  %1415 = vmatpush.msra.mxu1 %v1261_v22  ;;  %v1336_v6 = vld [vmem:[#allocation6 + $0x698] sm:$0xff] }
  0xe4   :  { %1396 = vmatpush.msra.mxu0 %v1125_v60  ;;  %1436 = vmatpush.msra.mxu2 %v1126_v63  ;;  %v1192_v60 = vld [vmem:[#allocation6 + $0x218] sm:$0xff] }
  0xe5   :  { %v990_v9 = vadd.f32 %v747_v57, %v8953_v0  ;;  %1454 = vmatpush.msra.mxu3 %v1270_v8  ;;  %1416 = vmatpush.msra.mxu1 %v1253_v16  ;;  %v1352_v57 = vld [vmem:[#allocation6 + $0x718] sm:$0xff]  ;;  %v1319_v16 = vld [vmem:[#allocation6 + $0x610] sm:$0xff] }
  0xe6   :  { %1461 = vmatpush.msrb.mxu0 %v1247_v3  ;;  %1501 = vmatpush.msrb.mxu2 %v1248_v4  ;;  %v1344_v63 = vld [vmem:[#allocation6 + $0x6d8] sm:$0xff]  ;;  %v1335_v3 = vld [vmem:[#allocation6 + $0x690] sm:$0xff] }
  0xe7   :  { %1455 = vmatpush.msra.mxu3 %v1262_v12  ;;  %v8082_v15 = vmul.f32 -1.442695, %v990_v9  ;;  %1481 = vmatpush.msrb.mxu1 %v1375_v35  ;;  %v1184_v4 = vld [vmem:[#allocation6 + $0x1d8] sm:$0xff]  ;;  %v1175_v9 = vld [vmem:[#allocation6 + $0x190] sm:$0xff] }
  0xe8   :  { %1462 = vmatpush.msrb.mxu0 %v1239_v10  ;;  %1502 = vmatpush.msrb.mxu2 %v1240_v11  ;;  %v8232_v37 = vpop.eup %8231  ;;  %v1176_v10 = vld [vmem:[#allocation6 + $0x198] sm:$0xff]  ;;  %v1159_v35 = vld [vmem:[#allocation6 + $0x110] sm:$0xff] }
  0xe9   :  { %1456 = vmatpush.msra.mxu3 %v1254_v18  ;;  %1482 = vmatpush.msrb.mxu1 %v1367_v41  ;;  %v8962_v19 = vadd.f32 1.0, %v8232_v37  ;;  %v1168_v18 = vld [vmem:[#allocation6 + $0x158] sm:$0xff]  ;;  %v176_v41 = vperm.slane %v8932_v62, 6 }
  0xea   :  { %v1160_v37 = vld [vmem:[#allocation6 + $0x118] sm:$0xff] }
  0xeb   :  { %vm1010_vm4 = vweird.f32 %v8962_v19 }
  0xfd   :  { %v766_v13 = vpop.f32.mrf.mxu0  ;;  %v786_v14 = vpop.f32.mrf.mxu1 }
  0xfe   :  { %v787_v39 = vadd.f32 %v786_v14, %v766_v13  ;;  %v1231_v13 = vld [vmem:[#allocation6 + $0x350] sm:$0xff]  ;;  %v1232_v14 = vld [vmem:[#allocation6 + $0x358] sm:$0xff] }
  0xff   :  { %1463 = vmatpush.msrb.mxu0 %v1231_v13  ;;  %1503 = vmatpush.msrb.mxu2 %v1232_v14  ;;  %v1328_v13 = vld [vmem:[#allocation6 + $0x658] sm:$0xff] }
 0x100   :  { %v991_v50 = vadd.f32 %v787_v39, %v8944_v44  ;;  %v1376_v39 = vld [vmem:[#allocation6 + $0x7d8] sm:$0xff] }
 0x101   :  { %1464 = vmatpush.msrb.mxu0 %v1223_v34  ;;  %1504 = vmatpush.msrb.mxu2 %v1224_v36  ;;  %v1311_v36 = vld [vmem:[#allocation6 + $0x5d0] sm:$0xff] }
 0x102   :  { %v8083_v1 = vmul.f32 -1.442695, %v991_v50  ;;  %1521 = vmatpush.msrb.mxu3 %v1376_v39  ;;  %v1359_v50 = vld [vmem:[#allocation6 + $0x750] sm:$0xff] }
 0x103   :  { %1465 = vmatpush.msrb.mxu0 %v1215_v40  ;;  %1505 = vmatpush.msrb.mxu2 %v1216_v42  ;;  %v1312_v40 = vld [vmem:[#allocation6 + $0x5d8] sm:$0xff]  ;;  %v1151_v42 = vld [vmem:[#allocation6 + $0xd0] sm:$0xff] }
 0x104   :  { %v806_v51 = vpop.f32.mrf.mxu2  ;;  %v826_v52 = vpop.f32.mrf.mxu3  ;;  %8233 = vpow2.f32 %v8083_v1  ;;  %1522 = vmatpush.msrb.mxu3 %v1368_v47  ;;  %1483 = vmatpush.msrb.mxu1 %v1359_v50  ;;  %v1152_v47 = vld [vmem:[#allocation6 + $0xd8] sm:$0xff] }
 0x105   :  { %v827_v59 = vadd.f32 %v826_v52, %v806_v51  ;;  %8235 = vpow2.f32 %v8082_v15  ;;  %v1208_v51 = vld [vmem:[#allocation6 + $0x298] sm:$0xff]  ;;  %1466 = vmatpush.msrb.mxu0 %v1207_v48  ;;  %v1167_v15 = vld [vmem:[#allocation6 + $0x150] sm:$0xff] }
 0x106   :  { %v1360_v52 = vld [vmem:[#allocation6 + $0x758] sm:$0xff]  ;;  %1506 = vmatpush.msrb.mxu2 %v1208_v51  ;;  %1484 = vmatpush.msrb.mxu1 %v1351_v55  ;;  %v174_v51 = vperm.slane %v8932_v62, 4  ;;  %v1143_v55 = vld [vmem:[#allocation6 + $0x90] sm:$0xff] }
 0x107   :  { %v992_v20 = vadd.f32 %v827_v59, %v8958_v5  ;;  %1523 = vmatpush.msrb.mxu3 %v1360_v52  ;;  %1467 = vmatpush.msrb.mxu0 %v1199_v54  ;;  %v1343_v59 = vld [vmem:[#allocation6 + $0x6d0] sm:$0xff]  ;;  %v1304_v50 = vld [vmem:[#allocation6 + $0x598] sm:$0xff] }
 0x108   :  { %1507 = vmatpush.msrb.mxu2 %v1200_v56  ;;  %1485 = vmatpush.msrb.mxu1 %v1343_v59  ;;  %v1295_v56 = vld [vmem:[#allocation6 + $0x550] sm:$0xff] }
 0x109   :  { %v8084_v31 = vmul.f32 -1.442695, %v992_v20  ;;  %1524 = vmatpush.msrb.mxu3 %v1352_v57  ;;  %1468 = vmatpush.msrb.mxu0 %v1191_v58  ;;  %v1327_v20 = vld [vmem:[#allocation6 + $0x650] sm:$0xff]  ;;  %v1144_v57 = vld [vmem:[#allocation6 + $0x98] sm:$0xff] }
 0x10a   :  { %v8234_v43 = vpop.eup %8233  ;;  %1508 = vmatpush.msrb.mxu2 %v1192_v60  ;;  %1486 = vmatpush.msrb.mxu1 %v1335_v3 }
 0x10b   :  { %8237 = vpow2.f32 %v8084_v31  ;;  %v8964_v21 = vadd.f32 1.0, %v8234_v43  ;;  %v8236_v61 = vpop.eup %8235  ;;  %1525 = vmatpush.msrb.mxu3 %v1344_v63  ;;  %1469 = vmatpush.msrb.mxu0 %v1183_v2  ;;  %v1320_v31 = vld [vmem:[#allocation6 + $0x618] sm:$0xff]  ;;  %v1303_v43 = vld [vmem:[#allocation6 + $0x590] sm:$0xff] }
 0x10c   :  { %8239 = vrcp.f32 %v8962_v19  ;;  %v8968_v8 = vadd.f32 1.0, %v8236_v61  ;;  %1509 = vmatpush.msrb.mxu2 %v1184_v4  ;;  %1487 = vmatpush.msrb.mxu1 %v1327_v20  ;;  %v1296_v61 = vld [vmem:[#allocation6 + $0x558] sm:$0xff]  ;;  %v1135_v4 = vld [vmem:[#allocation6 + $0x50] sm:$0xff] }
 0x10d   :  { %8241 = vrcp.f32 %v8964_v21  ;;  %1526 = vmatpush.msrb.mxu3 %v1336_v6  ;;  %1470 = vmatpush.msrb.mxu0 %v1175_v9  ;;  %v1287_v6 = vld [vmem:[#allocation6 + $0x510] sm:$0xff]  ;;  %v1136_v9 = vld [vmem:[#allocation6 + $0x58] sm:$0xff]  ;;  %vm1048_vm5 = vweird.f32 %v8964_v21 }
 0x10e   :  { %1510 = vmatpush.msrb.mxu2 %v1176_v10  ;;  %1488 = vmatpush.msrb.mxu1 %v1319_v16  ;;  %8243 = vrcp.f32 %v8968_v8  ;;  %v1128_v16 = vld [vmem:[#allocation6 + $0x18] sm:$0xff]  ;;  %vm1025_vm12 = vweird.f32 %v8968_v8 }
 0x10f   :  { %1527 = vmatpush.msrb.mxu3 %v1328_v13  ;;  %1471 = vmatpush.msrb.mxu0 %v1167_v15  ;;  %v1288_v13 = vld [vmem:[#allocation6 + $0x518] sm:$0xff]  ;;  %v8996_v15 = vadd.f32 %v8913_v27, %v174_v51 }
 0x110   :  { %1511 = vmatpush.msrb.mxu2 %v1168_v18  ;;  %1489 = vmatpush.msrb.mxu1 %v1311_v36  ;;  %v175_v18 = vperm.slane %v8932_v62, 5  ;;  %v1280_v36 = vld [vmem:[#allocation6 + $0x4d8] sm:$0xff] }
 0x111   :  { %v8238_v1 = vpop.eup %8237  ;;  %1528 = vmatpush.msrb.mxu3 %v1320_v31  ;;  %1472 = vmatpush.msrb.mxu0 %v1159_v35  ;;  %v177_v31 = vperm.slane %v8932_v62, 7 }
 0x112   :  { %v8970_v11 = vadd.f32 1.0, %v8238_v1  ;;  %v8972_v14 = vpop.eup %8239  ;;  %1512 = vmatpush.msrb.mxu2 %v1160_v37  ;;  %1490 = vmatpush.msrb.mxu1 %v1303_v43  ;;  %v8989_v1 = vadd.f32 %v8917_v17, %v176_v41  ;;  %v1272_v43 = vld [vmem:[#allocation6 + $0x498] sm:$0xff] }
 0x113   :  { %v8974_v34 = vpop.eup %8241  ;;  %v1006_v39 = vmul.f32 %v8972_v14, %v8962_v19  ;;  %1529 = vmatpush.msrb.mxu3 %v1312_v40  ;;  %1473 = vmatpush.msrb.mxu0 %v1151_v42  ;;  %v1271_v42 = vld [vmem:[#allocation6 + $0x490] sm:$0xff]  ;;  %vm1011_vm2 = vweird.f32 %v8972_v14 }
 0x114   :  { %8245 = vrcp.f32 %v8970_v11  ;;  %v1044_v48 = vmul.f32 %v8974_v34, %v8964_v21  ;;  %1513 = vmatpush.msrb.mxu2 %v1152_v47  ;;  %1491 = vmatpush.msrb.mxu1 %v1295_v56  ;;  %v8984_v63 = vpop.eup %8243  ;;  %v1263_v56 = vld [vmem:[#allocation6 + $0x450] sm:$0xff]  ;;  %vm1049_vm3 = vweird.f32 %v8974_v34  ;;  %vm9031_vm6 = vmor %vm1010_vm4, %vm1011_vm2  ;;  %vm1063_vm13 = vweird.f32 %v8970_v11 }
 0x115   :  { %1530 = vmatpush.msrb.mxu3 %v1304_v50  ;;  %v1007_v58 = vsub.f32 1.0, %v1006_v39  ;;  %1474 = vmatpush.msrb.mxu0 %v1143_v55  ;;  %v1021_v27 = vmul.f32 %v8984_v63, %v8968_v8  ;;  %vm1050_vm7 = vmor %vm1048_vm5, %vm1049_vm3  ;;  %vm1026_vm10 = vweird.f32 %v8984_v63 }
 0x116   :  { %1514 = vmatpush.msrb.mxu2 %v1144_v57  ;;  %v1045_v10 = vsub.f32 1.0, %v1044_v48  ;;  %1492 = vmatpush.msrb.mxu1 %v1287_v6  ;;  %v1264_v57 = vld [vmem:[#allocation6 + $0x458] sm:$0xff]  ;;  %v1054_v6 = vand.u32 2147483648, %v8964_v21  ;;  %vm9052_vm14 = vmor %vm1025_vm12, %vm1026_vm10 }
 0x117   :  { %1531 = vmatpush.msrb.mxu3 %v1296_v61  ;;  %1475 = vmatpush.msrb.mxu0 %v1135_v4  ;;  %v1008_v35 = vmul.f32 %v8972_v14, %v1007_v58  ;;  %v9011_v58 = vadd.f32 %v8915_v28, %v175_v18  ;;  %v1016_v28 = vand.u32 2147483648, %v8962_v19 }
 0x118   :  { %1515 = vmatpush.msrb.mxu2 %v1136_v9  ;;  %v1046_v47 = vmul.f32 %v8974_v34, %v1045_v10  ;;  %v1014_v9 = vand.u32 2147483647, %v8962_v19 }
 0x119   :  { %1532 = vmatpush.msrb.mxu3 %v1288_v13  ;;  %v1009_v61 = vadd.f32 %v8972_v14, %v1008_v35 }
 0x11a   :  { %v8991_v20 = vpop.eup %8245  ;;  %1516 = vmatpush.msrb.mxu2 %v1128_v16  ;;  %v1047_v4 = vadd.f32 %v8974_v34, %v1046_v47  ;;  %vm1015_vm8 = vcmp.eq.f32.partialorder %v1014_v9, 8.507059e+37 }
 0x11b   :  { %v1059_v37 = vmul.f32 %v8991_v20, %v8970_v11  ;;  %1533 = vmatpush.msrb.mxu3 %v1280_v36  ;;  %v1013_v19 = vsel %vm9031_vm6, %v8972_v14, %v1009_v61  ;;  %v1017_v36 = vor.u32 1.1754944e-38, %v1016_v28  ;;  %vm1064_vm11 = vweird.f32 %v8991_v20 }
 0x11c   :  { %vm1065_vm15 = vmor %vm1063_vm13, %vm1064_vm11 }
 0x11d   :  { %1534 = vmatpush.msrb.mxu3 %v1272_v43 }
 0x11f   :  { %v846_v22 = vpop.f32.mrf.mxu0  ;;  %v866_v12 = vpop.f32.mrf.mxu1  ;;  %1535 = vmatpush.msrb.mxu3 %v1264_v57 }
 0x120   :  { %v867_v2 = vadd.f32 %v866_v12, %v846_v22  ;;  %v1127_v22 = vld [vmem:[#allocation6 + $0x10] sm:$0xff] }
 0x121   :  { %v1279_v12 = vld [vmem:[#allocation6 + $0x4d0] sm:$0xff]  ;;  %1476 = vmatpush.msrb.mxu0 %v1127_v22 }
 0x122   :  { %1493 = vmatpush.msrb.mxu1 %v1279_v12  ;;  %v993_v39 = vadd.f32 %v867_v2, %v8996_v15  ;;  %v1255_v2 = vld [vmem:[#allocation6 + $0x410] sm:$0xff] }
 0x124   :  { %1494 = vmatpush.msrb.mxu1 %v1271_v42 }
 0x126   :  { %v886_v52 = vpop.f32.mrf.mxu2  ;;  %v906_v54 = vpop.f32.mrf.mxu3  ;;  %1495 = vmatpush.msrb.mxu1 %v1263_v56  ;;  %v1067_v56 = vand.u32 2147483647, %v8970_v11 }
 0x127   :  { %v907_v48 = vadd.f32 %v906_v54, %v886_v52  ;;  %v1022_v52 = vsub.f32 1.0, %v1021_v27  ;;  %v1060_v54 = vsub.f32 1.0, %v1059_v37  ;;  %v1051_v27 = vsel %vm1050_vm7, %v8974_v34, %v1047_v4 }
 0x128   :  { %1496 = vmatpush.msrb.mxu1 %v1255_v2  ;;  %v1069_v34 = vand.u32 2147483648, %v8970_v11  ;;  %vm1068_vm1 = vcmp.eq.f32.partialorder %v1067_v56, 8.507059e+37  ;;  %v1233_v56 = vld [vmem:[#allocation6 + $0x360] sm:$0xff] }
 0x129   :  { %v994_v10 = vadd.f32 %v907_v48, %v9011_v58  ;;  %v1061_v16 = vmul.f32 %v8991_v20, %v1060_v54  ;;  %v1023_v35 = vmul.f32 %v8984_v63, %v1022_v52  ;;  %v1031_v48 = vand.u32 2147483648, %v8968_v8 }
 0x12a   :  { %v1070_v28 = vor.u32 1.1754944e-38, %v1069_v34 }
 0x12b   :  { %v1024_v42 = vadd.f32 %v8984_v63, %v1023_v35  ;;  %v1062_v43 = vadd.f32 %v8991_v20, %v1061_v16 }
 0x12d   :  { %v1028_v54 = vsel %vm9052_vm14, %v8984_v63, %v1024_v42  ;;  %v1066_v61 = vsel %vm1065_vm15, %v8991_v20, %v1062_v43  ;;  %v1249_v42 = vld [vmem:[#allocation6 + $0x3e0] sm:$0xff]  ;;  %v1250_v43 = vld [vmem:[#allocation6 + $0x3e8] sm:$0xff] }
 0x141   :  { %v926_v59 = vpop.f32.mrf.mxu0  ;;  %v946_v60 = vpop.f32.mrf.mxu1 }
 0x142   :  { %v947_v3 = vadd.f32 %v946_v60, %v926_v59  ;;  %v9016_v59 = vadd.f32 %v8919_v29, %v177_v31 }
 0x144   :  { %v995_v17 = vadd.f32 %v947_v3, %v8989_v1  ;;  %v1256_v3 = vld [vmem:[#allocation6 + $0x418] sm:$0xff] }
 0x145   :  { %1536 = vmatpush.msrb.mxu3 %v1256_v3 }
 0x146   :  { %v8085_v40 = vmul.f32 -1.442695, %v995_v17  ;;  %v1052_v17 = vand.u32 2147483647, %v8964_v21  ;;  %v1055_v21 = vor.u32 1.1754944e-38, %v1054_v6  ;;  %v1071_v6 = vsel %vm1068_vm1, %v1070_v28, %v1066_v61  ;;  %v1377_v28 = vld [vmem:[#allocation6 + $0x7e0] sm:$0xff] }
 0x147   :  { %v1114_v63 = vmul.f32 0.0, %v1071_v6  ;;  %v1218_v6 = vld [vmem:[#allocation6 + $0x2e8] sm:$0xff] }
 0x148   :  { %8247 = vpow2.f32 %v8085_v40  ;;  %v966_v50 = vpop.f32.mrf.mxu2  ;;  %v986_v55 = vpop.f32.mrf.mxu3  ;;  %v1018_v40 = vsel %vm1015_vm8, %v1017_v36, %v1013_v19  ;;  %vm1053_vm9 = vcmp.eq.f32.partialorder %v1052_v17, 8.507059e+37 }
 0x149   :  { %v987_v60 = vadd.f32 %v986_v55, %v966_v50  ;;  %8249 = vtanh.f32 %v993_v39  ;;  %v1056_v14 = vsel %vm1053_vm9, %v1055_v21, %v1051_v27  ;;  %v1029_v55 = vand.u32 2147483647, %v8968_v8 }
 0x14b   :  { %v996_v29 = vadd.f32 %v987_v60, %v9016_v59  ;;  %v1113_v60 = vmul.f32 0.0, %v1056_v14  ;;  %vm1030_vm0 = vcmp.eq.f32.partialorder %v1029_v55, 8.507059e+37 }
 0x14d   :  { %v8086_v22 = vmul.f32 -1.442695, %v996_v29  ;;  %v1032_v29 = vor.u32 1.1754944e-38, %v1031_v48  ;;  %v1242_v48 = vld [vmem:[#allocation6 + $0x3a8] sm:$0xff] }
 0x14e   :  { %v8248_v12 = vpop.eup %8247 }
 0x14f   :  { %v1081_v37 = vadd.f32 1.0, %v8248_v12  ;;  %8251 = vpow2.f32 %v8086_v22  ;;  %v8250_v39 = vpop.eup %8249  ;;  %v1033_v11 = vsel %vm1030_vm0, %v1032_v29, %v1028_v54  ;;  %v1226_v29 = vld [vmem:[#allocation6 + $0x328] sm:$0xff] }
 0x150   :  { %8253 = vtanh.f32 %v994_v10  ;;  %v1115_v47 = vmul.f32 %v8250_v39, %v1018_v40 }
 0x151   :  { %8255 = vrcp.f32 %v1081_v37  ;;  %v1094_v13 = vand.u32 2147483648, %v1081_v37  ;;  %v1092_v20 = vand.u32 2147483647, %v1081_v37  ;;  %vm1088_vm3 = vweird.f32 %v1081_v37 }
 0x152   :  { %v9062_v4 = vadd.f32 %v1115_v47, %v1113_v60 }
 0x153   :  { %v1095_v19 = vor.u32 1.1754944e-38, %v1094_v13  ;;  %vm1093_vm5 = vcmp.eq.f32.partialorder %v1092_v20, 8.507059e+37  ;;  %v1361_v13 = vld [vmem:[#allocation6 + $0x760] sm:$0xff] }
 0x154   :  { %v1201_v20 = vld [vmem:[#allocation6 + $0x260] sm:$0xff] }
 0x155   :  { %v8252_v57 = vpop.eup %8251 }
 0x156   :  { %v8254_v52 = vpop.eup %8253  ;;  %v1082_v2 = vadd.f32 1.0, %v8252_v57  ;;  %v1234_v57 = vld [vmem:[#allocation6 + $0x368] sm:$0xff] }
 0x157   :  { %v8256_v3 = vpop.eup %8255  ;;  %v1116_v9 = vmul.f32 %v8254_v52, %v1033_v11  ;;  %v1369_v11 = vld [vmem:[#allocation6 + $0x7a0] sm:$0xff] }
 0x158   :  { %v1084_v8 = vmul.f32 %v8256_v3, %v1081_v37  ;;  %8257 = vrcp.f32 %v1082_v2  ;;  %vm1089_vm2 = vweird.f32 %v8256_v3  ;;  %v1109_v14 = vand.u32 2147483648, %v1082_v2  ;;  %v1241_v37 = vld [vmem:[#allocation6 + $0x3a0] sm:$0xff] }
 0x159   :  { %8259 = vtanh.f32 %v9062_v4  ;;  %v9065_v12 = vadd.f32 %v1116_v9, %v1114_v63  ;;  %vm1090_vm4 = vmor %vm1088_vm3, %vm1089_vm2  ;;  %v1107_v47 = vand.u32 2147483647, %v1082_v2  ;;  %vm1103_vm7 = vweird.f32 %v1082_v2  ;;  %v1370_v9 = vld [vmem:[#allocation6 + $0x7a8] sm:$0xff] }
 0x15a   :  { %v1085_v10 = vsub.f32 1.0, %v1084_v8  ;;  %v1110_v55 = vor.u32 1.1754944e-38, %v1109_v14  ;;  %v1217_v8 = vld [vmem:[#allocation6 + $0x2e0] sm:$0xff]  ;;  %v1210_v63 = vld [vmem:[#allocation6 + $0x2a8] sm:$0xff] }
 0x15b   :  { %8261 = vtanh.f32 %v9065_v12  ;;  %vm1108_vm9 = vcmp.eq.f32.partialorder %v1107_v47, 8.507059e+37  ;;  %v1337_v14 = vld [vmem:[#allocation6 + $0x6a0] sm:$0xff] }
 0x15c   :  { %v1086_v17 = vmul.f32 %v8256_v3, %v1085_v10  ;;  %v1209_v10 = vld [vmem:[#allocation6 + $0x2a0] sm:$0xff] }
 0x15d   :  { %v1329_v47 = vld [vmem:[#allocation6 + $0x660] sm:$0xff] }
 0x15e   :  { %v8258_v22 = vpop.eup %8257  ;;  %v1087_v16 = vadd.f32 %v8256_v3, %v1086_v17  ;;  %v1362_v17 = vld [vmem:[#allocation6 + $0x768] sm:$0xff] }
 0x15f   :  { %v1099_v35 = vmul.f32 %v8258_v22, %v1082_v2  ;;  %v8260_v27 = vpop.eup %8259  ;;  %vm1104_vm6 = vweird.f32 %v8258_v22  ;;  %v1378_v2 = vld [vmem:[#allocation6 + $0x7e8] sm:$0xff] }
 0x160   :  { %v1091_v36 = vsel %vm1090_vm4, %v8256_v3, %v1087_v16  ;;  %vm1105_vm8 = vmor %vm1103_vm7, %vm1104_vm6  ;;  %v1225_v3 = vld [vmem:[#allocation6 + $0x320] sm:$0xff]  ;;  %v1202_v16 = vld [vmem:[#allocation6 + $0x268] sm:$0xff] }
 0x161   :  { %v1096_v39 = vsel %vm1093_vm5, %v1095_v19, %v1091_v36  ;;  %v1100_v21 = vsub.f32 1.0, %v1099_v35  ;;  %v8262_v52 = vpop.eup %8261  ;;  %v1354_v19 = vld [vmem:[#allocation6 + $0x728] sm:$0xff]  ;;  %v1193_v35 = vld [vmem:[#allocation6 + $0x220] sm:$0xff] }
 0x162   :  { %v9068_v40 = vmul.f32 %v8260_v27, %v1096_v39  ;;  %v1345_v36 = vld [vmem:[#allocation6 + $0x6e0] sm:$0xff]  ;;  %v1194_v27 = vld [vmem:[#allocation6 + $0x228] sm:$0xff] }
 0x163   :  { %v1101_v34 = vmul.f32 %v8258_v22, %v1100_v21  ;;  %v1346_v39 = vld [vmem:[#allocation6 + $0x6e8] sm:$0xff]  ;;  %v1185_v21 = vld [vmem:[#allocation6 + $0x1e0] sm:$0xff] }
 0x164   :  { %1123 = vst [vmem:[#allocation2 + $0x10] sm:$0x3] %v9068_v40  ;;  %1397 = vmatmul.f32.vlgmr.msra.gmra.mxu0 %v9068_v40  ;;  %1437 = vmatmul.f32.vlgmr.msra.gmra.mxu2 %v9068_v40 }
 0x165   :  { %v1102_v50 = vadd.f32 %v8258_v22, %v1101_v34  ;;  %1541 = vmatpush.msra.mxu0 %v1249_v42  ;;  %1581 = vmatpush.msra.mxu2 %v1250_v43  ;;  %v1186_v42 = vld [vmem:[#allocation6 + $0x1e8] sm:$0xff]  ;;  %v1177_v34 = vld [vmem:[#allocation6 + $0x1a0] sm:$0xff] }
 0x166   :  { %v1338_v43 = vld [vmem:[#allocation6 + $0x6a8] sm:$0xff] }
 0x167   :  { %v1106_v60 = vsel %vm1105_vm8, %v8258_v22, %v1102_v50  ;;  %1542 = vmatpush.msra.mxu0 %v1241_v37  ;;  %1582 = vmatpush.msra.mxu2 %v1242_v48  ;;  %v1353_v22 = vld [vmem:[#allocation6 + $0x720] sm:$0xff]  ;;  %v1178_v37 = vld [vmem:[#allocation6 + $0x1a8] sm:$0xff] }
 0x168   :  { %v1111_v54 = vsel %vm1108_vm9, %v1110_v55, %v1106_v60  ;;  %v1330_v48 = vld [vmem:[#allocation6 + $0x668] sm:$0xff]  ;;  %v1169_v50 = vld [vmem:[#allocation6 + $0x160] sm:$0xff] }
 0x169   :  { %v9073_v61 = vmul.f32 %v8262_v52, %v1111_v54  ;;  %1543 = vmatpush.msra.mxu0 %v1233_v56  ;;  %1583 = vmatpush.msra.mxu2 %v1234_v57  ;;  %v1321_v55 = vld [vmem:[#allocation6 + $0x620] sm:$0xff]  ;;  %v1170_v56 = vld [vmem:[#allocation6 + $0x168] sm:$0xff] }
 0x16a   :  { %v1322_v57 = vld [vmem:[#allocation6 + $0x628] sm:$0xff]  ;;  %v1161_v60 = vld [vmem:[#allocation6 + $0x120] sm:$0xff] }
 0x16b   :  { %1124 = vst [vmem:[#allocation2] sm:$0x3] %v9073_v61  ;;  %1417 = vmatmul.f32.vlgmr.msra.gmra.mxu1 %v9073_v61  ;;  %1457 = vmatmul.f32.vlgmr.msra.gmra.mxu3 %v9073_v61  ;;  %v1313_v52 = vld [vmem:[#allocation6 + $0x5e0] sm:$0xff]  ;;  %v1162_v54 = vld [vmem:[#allocation6 + $0x128] sm:$0xff] }
 0x16c   :  { %1544 = vmatpush.msra.mxu0 %v1225_v3  ;;  %1561 = vmatpush.msra.mxu1 %v1377_v28  ;;  %v1314_v3 = vld [vmem:[#allocation6 + $0x5e8] sm:$0xff]  ;;  %v1153_v28 = vld [vmem:[#allocation6 + $0xe0] sm:$0xff] }
 0x16d   :  { %1584 = vmatpush.msra.mxu2 %v1226_v29  ;;  %1601 = vmatpush.msra.mxu3 %v1378_v2  ;;  %v1305_v29 = vld [vmem:[#allocation6 + $0x5a0] sm:$0xff]  ;;  %v1154_v2 = vld [vmem:[#allocation6 + $0xe8] sm:$0xff] }
 0x16e   :  { %1477 = vmatmul.f32.vlgmr.msrb.gmra.mxu0 %v9068_v40  ;;  %1517 = vmatmul.f32.vlgmr.msrb.gmra.mxu2 %v9068_v40 }
 0x16f   :  { %1545 = vmatpush.msra.mxu0 %v1217_v8  ;;  %1562 = vmatpush.msra.mxu1 %v1369_v11  ;;  %v1306_v8 = vld [vmem:[#allocation6 + $0x5a8] sm:$0xff]  ;;  %v1145_v11 = vld [vmem:[#allocation6 + $0xa0] sm:$0xff] }
 0x170   :  { %1585 = vmatpush.msra.mxu2 %v1218_v6  ;;  %1602 = vmatpush.msra.mxu3 %v1370_v9  ;;  %v1297_v6 = vld [vmem:[#allocation6 + $0x560] sm:$0xff]  ;;  %v1146_v9 = vld [vmem:[#allocation6 + $0xa8] sm:$0xff] }
 0x171   :  { %1546 = vmatpush.msra.mxu0 %v1209_v10  ;;  %1563 = vmatpush.msra.mxu1 %v1361_v13  ;;  %v1298_v10 = vld [vmem:[#allocation6 + $0x568] sm:$0xff]  ;;  %v1137_v13 = vld [vmem:[#allocation6 + $0x60] sm:$0xff] }
 0x172   :  { %1586 = vmatpush.msra.mxu2 %v1210_v63  ;;  %1603 = vmatpush.msra.mxu3 %v1362_v17  ;;  %v1289_v63 = vld [vmem:[#allocation6 + $0x520] sm:$0xff]  ;;  %v1138_v17 = vld [vmem:[#allocation6 + $0x68] sm:$0xff] }
 0x173   :  { %1547 = vmatpush.msra.mxu0 %v1201_v20  ;;  %1564 = vmatpush.msra.mxu1 %v1353_v22  ;;  %v1290_v20 = vld [vmem:[#allocation6 + $0x528] sm:$0xff]  ;;  %v1129_v22 = vld [vmem:[#allocation6 + $0x20] sm:$0xff] }
 0x174   :  { %1587 = vmatpush.msra.mxu2 %v1202_v16  ;;  %1604 = vmatpush.msra.mxu3 %v1354_v19  ;;  %v1281_v16 = vld [vmem:[#allocation6 + $0x4e0] sm:$0xff]  ;;  %v1130_v19 = vld [vmem:[#allocation6 + $0x28] sm:$0xff] }
 0x175   :  { %1497 = vmatmul.f32.vlgmr.msrb.gmra.mxu1 %v9073_v61  ;;  %1537 = vmatmul.f32.vlgmr.msrb.gmra.mxu3 %v9073_v61 }
 0x176   :  { %1548 = vmatpush.msra.mxu0 %v1193_v35  ;;  %1565 = vmatpush.msra.mxu1 %v1345_v36  ;;  %v1282_v35 = vld [vmem:[#allocation6 + $0x4e8] sm:$0xff]  ;;  %v1251_v36 = vld [vmem:[#allocation6 + $0x3f0] sm:$0xff] }
 0x177   :  { %1588 = vmatpush.msra.mxu2 %v1194_v27  ;;  %1605 = vmatpush.msra.mxu3 %v1346_v39  ;;  %v1252_v27 = vld [vmem:[#allocation6 + $0x3f8] sm:$0xff]  ;;  %v1273_v39 = vld [vmem:[#allocation6 + $0x4a0] sm:$0xff] }
 0x178   :  { %1549 = vmatpush.msra.mxu0 %v1185_v21  ;;  %1566 = vmatpush.msra.mxu1 %v1337_v14  ;;  %v1274_v21 = vld [vmem:[#allocation6 + $0x4a8] sm:$0xff]  ;;  %v1243_v14 = vld [vmem:[#allocation6 + $0x3b0] sm:$0xff] }
 0x179   :  { %1589 = vmatpush.msra.mxu2 %v1186_v42  ;;  %1606 = vmatpush.msra.mxu3 %v1338_v43  ;;  %v1244_v42 = vld [vmem:[#allocation6 + $0x3b8] sm:$0xff]  ;;  %v1265_v43 = vld [vmem:[#allocation6 + $0x460] sm:$0xff] }
 0x17a   :  { %1550 = vmatpush.msra.mxu0 %v1177_v34  ;;  %1567 = vmatpush.msra.mxu1 %v1329_v47  ;;  %v1266_v34 = vld [vmem:[#allocation6 + $0x468] sm:$0xff]  ;;  %v1235_v47 = vld [vmem:[#allocation6 + $0x370] sm:$0xff] }
 0x17b   :  { %1590 = vmatpush.msra.mxu2 %v1178_v37  ;;  %1607 = vmatpush.msra.mxu3 %v1330_v48  ;;  %v1236_v37 = vld [vmem:[#allocation6 + $0x378] sm:$0xff]  ;;  %v1257_v48 = vld [vmem:[#allocation6 + $0x420] sm:$0xff] }
 0x17c   :  { %1551 = vmatpush.msra.mxu0 %v1169_v50  ;;  %1568 = vmatpush.msra.mxu1 %v1321_v55  ;;  %v1258_v50 = vld [vmem:[#allocation6 + $0x428] sm:$0xff]  ;;  %v1227_v55 = vld [vmem:[#allocation6 + $0x330] sm:$0xff] }
 0x17d   :  { %1591 = vmatpush.msra.mxu2 %v1170_v56  ;;  %1608 = vmatpush.msra.mxu3 %v1322_v57  ;;  %v1379_v56 = vld [vmem:[#allocation6 + $0x7f0] sm:$0xff]  ;;  %v1228_v57 = vld [vmem:[#allocation6 + $0x338] sm:$0xff] }
 0x17e   :  { %1552 = vmatpush.msra.mxu0 %v1161_v60  ;;  %1569 = vmatpush.msra.mxu1 %v1313_v52  ;;  %v1380_v60 = vld [vmem:[#allocation6 + $0x7f8] sm:$0xff]  ;;  %v1219_v52 = vld [vmem:[#allocation6 + $0x2f0] sm:$0xff] }
 0x17f   :  { %1592 = vmatpush.msra.mxu2 %v1162_v54  ;;  %1609 = vmatpush.msra.mxu3 %v1314_v3  ;;  %v1371_v54 = vld [vmem:[#allocation6 + $0x7b0] sm:$0xff]  ;;  %v1220_v3 = vld [vmem:[#allocation6 + $0x2f8] sm:$0xff] }
 0x180   :  { %1553 = vmatpush.msra.mxu0 %v1153_v28  ;;  %1570 = vmatpush.msra.mxu1 %v1305_v29  ;;  %v1372_v28 = vld [vmem:[#allocation6 + $0x7b8] sm:$0xff]  ;;  %v1211_v29 = vld [vmem:[#allocation6 + $0x2b0] sm:$0xff] }
 0x181   :  { %1593 = vmatpush.msra.mxu2 %v1154_v2  ;;  %1610 = vmatpush.msra.mxu3 %v1306_v8  ;;  %v1363_v2 = vld [vmem:[#allocation6 + $0x770] sm:$0xff]  ;;  %v1212_v8 = vld [vmem:[#allocation6 + $0x2b8] sm:$0xff] }
 0x182   :  { %1554 = vmatpush.msra.mxu0 %v1145_v11  ;;  %1571 = vmatpush.msra.mxu1 %v1297_v6  ;;  %v1364_v11 = vld [vmem:[#allocation6 + $0x778] sm:$0xff]  ;;  %v1203_v6 = vld [vmem:[#allocation6 + $0x270] sm:$0xff] }
 0x183   :  { %1594 = vmatpush.msra.mxu2 %v1146_v9  ;;  %1611 = vmatpush.msra.mxu3 %v1298_v10  ;;  %v1355_v9 = vld [vmem:[#allocation6 + $0x730] sm:$0xff]  ;;  %v1204_v10 = vld [vmem:[#allocation6 + $0x278] sm:$0xff] }
 0x184   :  { %1555 = vmatpush.msra.mxu0 %v1137_v13  ;;  %1572 = vmatpush.msra.mxu1 %v1289_v63  ;;  %v1356_v13 = vld [vmem:[#allocation6 + $0x738] sm:$0xff]  ;;  %v1195_v63 = vld [vmem:[#allocation6 + $0x230] sm:$0xff] }
 0x185   :  { %1595 = vmatpush.msra.mxu2 %v1138_v17  ;;  %1612 = vmatpush.msra.mxu3 %v1290_v20  ;;  %v1347_v17 = vld [vmem:[#allocation6 + $0x6f0] sm:$0xff]  ;;  %v1196_v20 = vld [vmem:[#allocation6 + $0x238] sm:$0xff] }
 0x186   :  { %1556 = vmatpush.msra.mxu0 %v1129_v22  ;;  %1573 = vmatpush.msra.mxu1 %v1281_v16  ;;  %v1348_v22 = vld [vmem:[#allocation6 + $0x6f8] sm:$0xff]  ;;  %v1187_v16 = vld [vmem:[#allocation6 + $0x1f0] sm:$0xff] }
 0x187   :  { %1596 = vmatpush.msra.mxu2 %v1130_v19  ;;  %1613 = vmatpush.msra.mxu3 %v1282_v35  ;;  %v1339_v19 = vld [vmem:[#allocation6 + $0x6b0] sm:$0xff]  ;;  %v1188_v35 = vld [vmem:[#allocation6 + $0x1f8] sm:$0xff] }
 0x188   :  { %1557 = vmatmul.f32.vlgmr.msra.gmra.mxu0 %v9068_v40  ;;  %1597 = vmatmul.f32.vlgmr.msra.gmra.mxu2 %v9068_v40 }
 0x189   :  { %1621 = vmatpush.msrb.mxu0 %v1251_v36  ;;  %1661 = vmatpush.msrb.mxu2 %v1252_v27  ;;  %v1340_v36 = vld [vmem:[#allocation6 + $0x6b8] sm:$0xff]  ;;  %v1179_v27 = vld [vmem:[#allocation6 + $0x1b0] sm:$0xff] }
 0x18a   :  { %1574 = vmatpush.msra.mxu1 %v1273_v39  ;;  %1614 = vmatpush.msra.mxu3 %v1274_v21  ;;  %v1331_v39 = vld [vmem:[#allocation6 + $0x670] sm:$0xff]  ;;  %v1180_v21 = vld [vmem:[#allocation6 + $0x1b8] sm:$0xff] }
 0x18b   :  { %1622 = vmatpush.msrb.mxu0 %v1243_v14  ;;  %1662 = vmatpush.msrb.mxu2 %v1244_v42  ;;  %v1332_v14 = vld [vmem:[#allocation6 + $0x678] sm:$0xff]  ;;  %v1171_v42 = vld [vmem:[#allocation6 + $0x170] sm:$0xff] }
 0x18c   :  { %1575 = vmatpush.msra.mxu1 %v1265_v43  ;;  %1615 = vmatpush.msra.mxu3 %v1266_v34  ;;  %v1323_v43 = vld [vmem:[#allocation6 + $0x630] sm:$0xff]  ;;  %v1172_v34 = vld [vmem:[#allocation6 + $0x178] sm:$0xff] }
 0x18d   :  { %1623 = vmatpush.msrb.mxu0 %v1235_v47  ;;  %1663 = vmatpush.msrb.mxu2 %v1236_v37  ;;  %v1324_v47 = vld [vmem:[#allocation6 + $0x638] sm:$0xff]  ;;  %v1163_v37 = vld [vmem:[#allocation6 + $0x130] sm:$0xff] }
 0x18e   :  { %1576 = vmatpush.msra.mxu1 %v1257_v48  ;;  %1616 = vmatpush.msra.mxu3 %v1258_v50  ;;  %v1315_v48 = vld [vmem:[#allocation6 + $0x5f0] sm:$0xff]  ;;  %v1164_v50 = vld [vmem:[#allocation6 + $0x138] sm:$0xff] }
 0x18f   :  { %1577 = vmatmul.f32.vlgmr.msra.gmra.mxu1 %v9073_v61  ;;  %1617 = vmatmul.f32.vlgmr.msra.gmra.mxu3 %v9073_v61 }
 0x190   :  { %1624 = vmatpush.msrb.mxu0 %v1227_v55  ;;  %1641 = vmatpush.msrb.mxu1 %v1379_v56  ;;  %v1316_v55 = vld [vmem:[#allocation6 + $0x5f8] sm:$0xff]  ;;  %v1155_v56 = vld [vmem:[#allocation6 + $0xf0] sm:$0xff] }
 0x191   :  { %1664 = vmatpush.msrb.mxu2 %v1228_v57  ;;  %1681 = vmatpush.msrb.mxu3 %v1380_v60  ;;  %v1307_v57 = vld [vmem:[#allocation6 + $0x5b0] sm:$0xff]  ;;  %v1156_v60 = vld [vmem:[#allocation6 + $0xf8] sm:$0xff] }
 0x192   :  { %1625 = vmatpush.msrb.mxu0 %v1219_v52  ;;  %1642 = vmatpush.msrb.mxu1 %v1371_v54  ;;  %v1308_v52 = vld [vmem:[#allocation6 + $0x5b8] sm:$0xff]  ;;  %v1147_v54 = vld [vmem:[#allocation6 + $0xb0] sm:$0xff] }
 0x193   :  { %1665 = vmatpush.msrb.mxu2 %v1220_v3  ;;  %1682 = vmatpush.msrb.mxu3 %v1372_v28  ;;  %v1299_v3 = vld [vmem:[#allocation6 + $0x570] sm:$0xff]  ;;  %v1148_v28 = vld [vmem:[#allocation6 + $0xb8] sm:$0xff] }
 0x194   :  { %1626 = vmatpush.msrb.mxu0 %v1211_v29  ;;  %1643 = vmatpush.msrb.mxu1 %v1363_v2  ;;  %v1300_v29 = vld [vmem:[#allocation6 + $0x578] sm:$0xff]  ;;  %v1139_v2 = vld [vmem:[#allocation6 + $0x70] sm:$0xff] }
 0x195   :  { %1666 = vmatpush.msrb.mxu2 %v1212_v8  ;;  %1683 = vmatpush.msrb.mxu3 %v1364_v11  ;;  %v1291_v8 = vld [vmem:[#allocation6 + $0x530] sm:$0xff]  ;;  %v1140_v11 = vld [vmem:[#allocation6 + $0x78] sm:$0xff] }
 0x196   :  { %1627 = vmatpush.msrb.mxu0 %v1203_v6  ;;  %1644 = vmatpush.msrb.mxu1 %v1355_v9  ;;  %v1292_v6 = vld [vmem:[#allocation6 + $0x538] sm:$0xff]  ;;  %v1131_v9 = vld [vmem:[#allocation6 + $0x30] sm:$0xff] }
 0x197   :  { %1667 = vmatpush.msrb.mxu2 %v1204_v10  ;;  %1684 = vmatpush.msrb.mxu3 %v1356_v13  ;;  %v1283_v10 = vld [vmem:[#allocation6 + $0x4f0] sm:$0xff]  ;;  %v1132_v13 = vld [vmem:[#allocation6 + $0x38] sm:$0xff] }
 0x198   :  { %1628 = vmatpush.msrb.mxu0 %v1195_v63  ;;  %1645 = vmatpush.msrb.mxu1 %v1347_v17  ;;  %v1284_v63 = vld [vmem:[#allocation6 + $0x4f8] sm:$0xff]  ;;  %v1275_v17 = vld [vmem:[#allocation6 + $0x4b0] sm:$0xff] }
 0x199   :  { %1668 = vmatpush.msrb.mxu2 %v1196_v20  ;;  %1685 = vmatpush.msrb.mxu3 %v1348_v22  ;;  %v1276_v20 = vld [vmem:[#allocation6 + $0x4b8] sm:$0xff]  ;;  %v1267_v22 = vld [vmem:[#allocation6 + $0x470] sm:$0xff] }
 0x19a   :  { %1629 = vmatpush.msrb.mxu0 %v1187_v16  ;;  %1646 = vmatpush.msrb.mxu1 %v1339_v19  ;;  %v1268_v16 = vld [vmem:[#allocation6 + $0x478] sm:$0xff]  ;;  %v1259_v19 = vld [vmem:[#allocation6 + $0x430] sm:$0xff] }
 0x19b   :  { %1669 = vmatpush.msrb.mxu2 %v1188_v35  ;;  %1686 = vmatpush.msrb.mxu3 %v1340_v36  ;;  %v1260_v35 = vld [vmem:[#allocation6 + $0x438] sm:$0xff]  ;;  %v1987_v36 = vld [vmem:[#allocation6 + $0x3c0] sm:$0xff] }
 0x19c   :  { %1630 = vmatpush.msrb.mxu0 %v1179_v27  ;;  %1647 = vmatpush.msrb.mxu1 %v1331_v39  ;;  %v1988_v27 = vld [vmem:[#allocation6 + $0x3c8] sm:$0xff]  ;;  %v1979_v39 = vld [vmem:[#allocation6 + $0x380] sm:$0xff] }
 0x19d   :  { %1670 = vmatpush.msrb.mxu2 %v1180_v21  ;;  %1687 = vmatpush.msrb.mxu3 %v1332_v14  ;;  %v1971_v21 = vld [vmem:[#allocation6 + $0x340] sm:$0xff]  ;;  %v1972_v14 = vld [vmem:[#allocation6 + $0x348] sm:$0xff] }
 0x19e   :  { %1631 = vmatpush.msrb.mxu0 %v1171_v42  ;;  %1648 = vmatpush.msrb.mxu1 %v1323_v43  ;;  %v1963_v43 = vld [vmem:[#allocation6 + $0x300] sm:$0xff] }
 0x19f   :  { %1671 = vmatpush.msrb.mxu2 %v1172_v34  ;;  %1688 = vmatpush.msrb.mxu3 %v1324_v47  ;;  %v2115_v34 = vld [vmem:[#allocation6 + $0x7c0] sm:$0xff]  ;;  %v1964_v47 = vld [vmem:[#allocation6 + $0x308] sm:$0xff] }
 0x1a0   :  { %1632 = vmatpush.msrb.mxu0 %v1163_v37  ;;  %1649 = vmatpush.msrb.mxu1 %v1315_v48  ;;  %v1955_v48 = vld [vmem:[#allocation6 + $0x2c0] sm:$0xff] }
 0x1a1   :  { %1672 = vmatpush.msrb.mxu2 %v1164_v50  ;;  %1689 = vmatpush.msrb.mxu3 %v1316_v55  ;;  %v2107_v50 = vld [vmem:[#allocation6 + $0x780] sm:$0xff]  ;;  %v1956_v55 = vld [vmem:[#allocation6 + $0x2c8] sm:$0xff] }
 0x1a2   :  { %1633 = vmatpush.msrb.mxu0 %v1155_v56  ;;  %1650 = vmatpush.msrb.mxu1 %v1307_v57  ;;  %v2108_v56 = vld [vmem:[#allocation6 + $0x788] sm:$0xff]  ;;  %v1947_v57 = vld [vmem:[#allocation6 + $0x280] sm:$0xff] }
 0x1a3   :  { %1673 = vmatpush.msrb.mxu2 %v1156_v60  ;;  %1690 = vmatpush.msrb.mxu3 %v1308_v52  ;;  %v2099_v60 = vld [vmem:[#allocation6 + $0x740] sm:$0xff]  ;;  %v1948_v52 = vld [vmem:[#allocation6 + $0x288] sm:$0xff] }
 0x1a4   :  { %1634 = vmatpush.msrb.mxu0 %v1147_v54  ;;  %1651 = vmatpush.msrb.mxu1 %v1299_v3  ;;  %v2100_v3 = vld [vmem:[#allocation6 + $0x748] sm:$0xff] }
 0x1a5   :  { %1674 = vmatpush.msrb.mxu2 %v1148_v28  ;;  %1691 = vmatpush.msrb.mxu3 %v1300_v29  ;;  %v1939_v28 = vld [vmem:[#allocation6 + $0x240] sm:$0xff] }
 0x1a6   :  { %1635 = vmatpush.msrb.mxu0 %v1139_v2  ;;  %1652 = vmatpush.msrb.mxu1 %v1291_v8  ;;  %v2091_v29 = vld [vmem:[#allocation6 + $0x700] sm:$0xff]  ;;  %v1940_v2 = vld [vmem:[#allocation6 + $0x248] sm:$0xff] }
 0x1a7   :  { %1675 = vmatpush.msrb.mxu2 %v1140_v11  ;;  %1692 = vmatpush.msrb.mxu3 %v1292_v6  ;;  %v2092_v11 = vld [vmem:[#allocation6 + $0x708] sm:$0xff]  ;;  %v1931_v6 = vld [vmem:[#allocation6 + $0x200] sm:$0xff] }
 0x1a8   :  { %1636 = vmatpush.msrb.mxu0 %v1131_v9  ;;  %1653 = vmatpush.msrb.mxu1 %v1283_v10  ;;  %v2083_v9 = vld [vmem:[#allocation6 + $0x6c0] sm:$0xff]  ;;  %v1932_v10 = vld [vmem:[#allocation6 + $0x208] sm:$0xff] }
 0x1a9   :  { %1676 = vmatpush.msrb.mxu2 %v1132_v13  ;;  %1693 = vmatpush.msrb.mxu3 %v1284_v63  ;;  %v2084_v63 = vld [vmem:[#allocation6 + $0x6c8] sm:$0xff] }
 0x1aa   :  { %1637 = vmatmul.f32.vlgmr.msrb.gmra.mxu0 %v9068_v40  ;;  %1677 = vmatmul.f32.vlgmr.msrb.gmra.mxu2 %v9068_v40  ;;  %v1980_v40 = vld [vmem:[#allocation6 + $0x388] sm:$0xff] }
 0x1ab   :  { %1654 = vmatpush.msrb.mxu1 %v1275_v17  ;;  %1694 = vmatpush.msrb.mxu3 %v1276_v20  ;;  %v1923_v17 = vld [vmem:[#allocation6 + $0x1c0] sm:$0xff] }
 0x1ac   :  { %2129 = vmatpush.msra.mxu0 %v1987_v36  ;;  %2169 = vmatpush.msra.mxu2 %v1988_v27  ;;  %v2075_v20 = vld [vmem:[#allocation6 + $0x680] sm:$0xff] }
 0x1ad   :  { %1655 = vmatpush.msrb.mxu1 %v1267_v22  ;;  %1695 = vmatpush.msrb.mxu3 %v1268_v16  ;;  %v1924_v22 = vld [vmem:[#allocation6 + $0x1c8] sm:$0xff]  ;;  %v1915_v27 = vld [vmem:[#allocation6 + $0x180] sm:$0xff] }
 0x1ae   :  { %2130 = vmatpush.msra.mxu0 %v1979_v39  ;;  %2170 = vmatpush.msra.mxu2 %v1980_v40  ;;  %v2076_v16 = vld [vmem:[#allocation6 + $0x688] sm:$0xff]  ;;  %v2067_v39 = vld [vmem:[#allocation6 + $0x640] sm:$0xff] }
 0x1af   :  { %1656 = vmatpush.msrb.mxu1 %v1259_v19  ;;  %1696 = vmatpush.msrb.mxu3 %v1260_v35  ;;  %v1916_v40 = vld [vmem:[#allocation6 + $0x188] sm:$0xff] }
 0x1b0   :  { %1657 = vmatmul.f32.vlgmr.msrb.gmra.mxu1 %v9073_v61  ;;  %1697 = vmatmul.f32.vlgmr.msrb.gmra.mxu3 %v9073_v61  ;;  %v2116_v61 = vld [vmem:[#allocation6 + $0x7c8] sm:$0xff] }
 0x1b1   :  { %2131 = vmatpush.msra.mxu0 %v1971_v21  ;;  %2171 = vmatpush.msra.mxu2 %v1972_v14  ;;  %v2068_v21 = vld [vmem:[#allocation6 + $0x648] sm:$0xff]  ;;  %v1907_v14 = vld [vmem:[#allocation6 + $0x140] sm:$0xff] }
 0x1b2   :  { %2149 = vmatpush.msra.mxu1 %v2115_v34  ;;  %2189 = vmatpush.msra.mxu3 %v2116_v61  ;;  %v1908_v34 = vld [vmem:[#allocation6 + $0x148] sm:$0xff] }
 0x1b3   :  { %2132 = vmatpush.msra.mxu0 %v1963_v43  ;;  %2172 = vmatpush.msra.mxu2 %v1964_v47  ;;  %v2059_v43 = vld [vmem:[#allocation6 + $0x600] sm:$0xff]  ;;  %v2060_v47 = vld [vmem:[#allocation6 + $0x608] sm:$0xff] }
 0x1b4   :  { %2150 = vmatpush.msra.mxu1 %v2107_v50  ;;  %2190 = vmatpush.msra.mxu3 %v2108_v56  ;;  %v1900_v50 = vld [vmem:[#allocation6 + $0x108] sm:$0xff] }
 0x1b5   :  { %2133 = vmatpush.msra.mxu0 %v1955_v48  ;;  %2173 = vmatpush.msra.mxu2 %v1956_v55  ;;  %v2051_v48 = vld [vmem:[#allocation6 + $0x5c0] sm:$0xff]  ;;  %v2052_v56 = vld [vmem:[#allocation6 + $0x5c8] sm:$0xff] }
 0x1b6   :  { %2151 = vmatpush.msra.mxu1 %v2099_v60  ;;  %2191 = vmatpush.msra.mxu3 %v2100_v3  ;;  %v1891_v3 = vld [vmem:[#allocation6 + $0xc0] sm:$0xff] }
 0x1b7   :  { %2134 = vmatpush.msra.mxu0 %v1947_v57  ;;  %2174 = vmatpush.msra.mxu2 %v1948_v52 }
 0x1b8   :  { %2152 = vmatpush.msra.mxu1 %v2091_v29  ;;  %2192 = vmatpush.msra.mxu3 %v2092_v11  ;;  %v1892_v29 = vld [vmem:[#allocation6 + $0xc8] sm:$0xff] }
 0x1b9   :  { %2135 = vmatpush.msra.mxu0 %v1939_v28  ;;  %2175 = vmatpush.msra.mxu2 %v1940_v2  ;;  %v2043_v28 = vld [vmem:[#allocation6 + $0x580] sm:$0xff]  ;;  %v2044_v11 = vld [vmem:[#allocation6 + $0x588] sm:$0xff] }
 0x1ba   :  { %2153 = vmatpush.msra.mxu1 %v2083_v9  ;;  %2193 = vmatpush.msra.mxu3 %v2084_v63  ;;  %v1883_v9 = vld [vmem:[#allocation6 + $0x80] sm:$0xff] }
 0x1bb   :  { %2136 = vmatpush.msra.mxu0 %v1931_v6  ;;  %2176 = vmatpush.msra.mxu2 %v1932_v10 }
 0x1bc   :  { %2154 = vmatpush.msra.mxu1 %v2075_v20  ;;  %2194 = vmatpush.msra.mxu3 %v2076_v16  ;;  %v2027_v20 = vld [vmem:[#allocation6 + $0x500] sm:$0xff] }
 0x1bd   :  { %2137 = vmatpush.msra.mxu0 %v1923_v17  ;;  %2177 = vmatpush.msra.mxu2 %v1924_v22  ;;  %v1875_v17 = vld [vmem:[#allocation6 + $0x40] sm:$0xff]  ;;  %v1876_v22 = vld [vmem:[#allocation6 + $0x48] sm:$0xff] }
 0x1be   :  { %2155 = vmatpush.msra.mxu1 %v2067_v39  ;;  %2195 = vmatpush.msra.mxu3 %v2068_v21  ;;  %v1868_v39 = vld [vmem:[#allocation6 + $0x8] sm:$0xff] }
 0x1bf   :  { %2138 = vmatpush.msra.mxu0 %v1915_v27  ;;  %2178 = vmatpush.msra.mxu2 %v1916_v40  ;;  %v2019_v27 = vld [vmem:[#allocation6 + $0x4c0] sm:$0xff]  ;;  %v2020_v21 = vld [vmem:[#allocation6 + $0x4c8] sm:$0xff] }
 0x1c0   :  { %2156 = vmatpush.msra.mxu1 %v2059_v43  ;;  %2196 = vmatpush.msra.mxu3 %v2060_v47  ;;  %v1990_v43 = vld [vmem:[#allocation6 + $0x3d8] sm:$0xff]  ;;  %v2011_v47 = vld [vmem:[#allocation6 + $0x480] sm:$0xff] }
 0x1c1   :  { %2139 = vmatpush.msra.mxu0 %v1907_v14  ;;  %2179 = vmatpush.msra.mxu2 %v1908_v34  ;;  %v1989_v14 = vld [vmem:[#allocation6 + $0x3d0] sm:$0xff] }
 0x1c2   :  { %2157 = vmatpush.msra.mxu1 %v2051_v48  ;;  %2197 = vmatpush.msra.mxu3 %v2052_v56  ;;  %v2003_v48 = vld [vmem:[#allocation6 + $0x440] sm:$0xff]  ;;  %v1973_v56 = vld [vmem:[#allocation6 + $0x350] sm:$0xff] }
 0x1c3   :  { %2180 = vmatpush.msra.mxu2 %v1900_v50  ;;  %v2004_v50 = vld [vmem:[#allocation6 + $0x448] sm:$0xff] }
 0x1c4   :  { %2158 = vmatpush.msra.mxu1 %v2043_v28  ;;  %2198 = vmatpush.msra.mxu3 %v2044_v11  ;;  %v1965_v28 = vld [vmem:[#allocation6 + $0x310] sm:$0xff]  ;;  %v2118_v11 = vld [vmem:[#allocation6 + $0x7d8] sm:$0xff] }
 0x1c5   :  { %2181 = vmatpush.msra.mxu2 %v1892_v29  ;;  %v2117_v29 = vld [vmem:[#allocation6 + $0x7d0] sm:$0xff] }
 0x1e1   :  { %v1398_v37 = vpop.f32.mrf.mxu0 }
 0x1e7   :  { %v1438_v8 = vpop.f32.mrf.mxu2 }
 0x1e8   :  { %v1418_v42 = vpop.f32.mrf.mxu1 }
 0x1e9   :  { %v1419_v19 = vadd.f32 %v1418_v42, %v1398_v37  ;;  %v1899_v37 = vld [vmem:[#allocation6 + $0x100] sm:$0xff] }
 0x1ea   :  { %2140 = vmatpush.msra.mxu0 %v1899_v37  ;;  %v1982_v37 = vld [vmem:[#allocation6 + $0x398] sm:$0xff] }
 0x1eb   :  { %v1478_v35 = vpop.f32.mrf.mxu0  ;;  %v1709_v61 = vrot.slane %v1419_v19, 6  ;;  %v2028_v19 = vld [vmem:[#allocation6 + $0x508] sm:$0xff] }
 0x1ec   :  { %2141 = vmatpush.msra.mxu0 %v1891_v3  ;;  %v1996_v3 = vld [vmem:[#allocation6 + $0x408] sm:$0xff] }
 0x1ed   :  { %v1725_v2 = vadd.f32 %v1709_v61, %v8939_v38  ;;  %v2012_v61 = vld [vmem:[#allocation6 + $0x488] sm:$0xff] }
 0x1ee   :  { %v1458_v54 = vpop.f32.mrf.mxu3  ;;  %2142 = vmatpush.msra.mxu0 %v1883_v9  ;;  %v1957_v9 = vld [vmem:[#allocation6 + $0x2d0] sm:$0xff] }
 0x1ef   :  { %v1459_v57 = vadd.f32 %v1458_v54, %v1438_v8  ;;  %v2035_v54 = vld [vmem:[#allocation6 + $0x540] sm:$0xff]  ;;  %v1884_v8 = vld [vmem:[#allocation6 + $0x88] sm:$0xff]  ;;  %v8087_v16 = vmul.f32 -1.442695, %v1725_v2  ;;  %v1966_v2 = vld [vmem:[#allocation6 + $0x318] sm:$0xff] }
 0x1f0   :  { %2159 = vmatpush.msra.mxu1 %v2035_v54  ;;  %2182 = vmatpush.msra.mxu2 %v1884_v8  ;;  %v2109_v54 = vld [vmem:[#allocation6 + $0x790] sm:$0xff]  ;;  %v1958_v8 = vld [vmem:[#allocation6 + $0x2d8] sm:$0xff] }
 0x1f1   :  { %v1518_v60 = vpop.f32.mrf.mxu2  ;;  %v1710_v10 = vrot.slane %v1459_v57, 6  ;;  %2143 = vmatpush.msra.mxu0 %v1875_v17  ;;  %8263 = vpow2.f32 %v8087_v16  ;;  %v1974_v57 = vld [vmem:[#allocation6 + $0x358] sm:$0xff]  ;;  %v2101_v17 = vld [vmem:[#allocation6 + $0x750] sm:$0xff] }
 0x1f2   :  { %v1498_v13 = vpop.f32.mrf.mxu1  ;;  %2160 = vmatpush.msra.mxu1 %v2027_v20  ;;  %2183 = vmatpush.msra.mxu2 %v1876_v22  ;;  %v1950_v20 = vld [vmem:[#allocation6 + $0x298] sm:$0xff] }
 0x1f3   :  { %v1499_v36 = vadd.f32 %v1498_v13, %v1478_v35  ;;  %v2036_v13 = vld [vmem:[#allocation6 + $0x548] sm:$0xff]  ;;  %v1726_v40 = vadd.f32 %v1710_v10, %v8953_v0  ;;  %v2102_v16 = vld [vmem:[#allocation6 + $0x758] sm:$0xff] }
 0x1f4   :  { %2199 = vmatpush.msra.mxu3 %v2036_v13  ;;  %2161 = vmatpush.msra.mxu1 %v2019_v27  ;;  %v2110_v13 = vld [vmem:[#allocation6 + $0x798] sm:$0xff] }
 0x1f5   :  { %v1711_v55 = vrot.slane %v1499_v36, 6  ;;  %v1867_v36 = vld [vmem:[#allocation6] sm:$0xff]  ;;  %2184 = vmatpush.msra.mxu2 %v1868_v39  ;;  %v1942_v27 = vld [vmem:[#allocation6 + $0x258] sm:$0xff] }
 0x1f6   :  { %2200 = vmatpush.msra.mxu3 %v2028_v19  ;;  %2144 = vmatpush.msra.mxu0 %v1867_v36  ;;  %v2093_v36 = vld [vmem:[#allocation6 + $0x710] sm:$0xff]  ;;  %v2094_v39 = vld [vmem:[#allocation6 + $0x718] sm:$0xff] }
 0x1f7   :  { %v1727_v6 = vadd.f32 %v1711_v55, %v8944_v44  ;;  %2249 = vmatpush.msrb.mxu2 %v1990_v43  ;;  %2162 = vmatpush.msra.mxu1 %v2011_v47  ;;  %v8088_v55 = vmul.f32 -1.442695, %v1726_v40  ;;  %v1934_v43 = vld [vmem:[#allocation6 + $0x218] sm:$0xff] }
 0x1f8   :  { %v1538_v42 = vpop.f32.mrf.mxu3  ;;  %2201 = vmatpush.msra.mxu3 %v2020_v21  ;;  %2209 = vmatpush.msrb.mxu0 %v1989_v14  ;;  %v1933_v21 = vld [vmem:[#allocation6 + $0x210] sm:$0xff]  ;;  %v2086_v47 = vld [vmem:[#allocation6 + $0x6d8] sm:$0xff] }
 0x1f9   :  { %v1539_v52 = vadd.f32 %v1538_v42, %v1518_v60  ;;  %v8089_v35 = vmul.f32 -1.442695, %v1727_v6  ;;  %v1981_v42 = vld [vmem:[#allocation6 + $0x390] sm:$0xff]  ;;  %2250 = vmatpush.msrb.mxu2 %v1982_v37  ;;  %2163 = vmatpush.msra.mxu1 %v2003_v48  ;;  %v8264_v6 = vpop.eup %8263  ;;  %v1926_v37 = vld [vmem:[#allocation6 + $0x1d8] sm:$0xff] }
 0x1fa   :  { %2202 = vmatpush.msra.mxu3 %v2012_v61  ;;  %2210 = vmatpush.msrb.mxu0 %v1981_v42  ;;  %v9094_v22 = vadd.f32 1.0, %v8264_v6  ;;  %v2085_v14 = vld [vmem:[#allocation6 + $0x6d0] sm:$0xff] }
 0x1fb   :  { %v1712_v63 = vrot.slane %v1539_v52, 6  ;;  %8265 = vpow2.f32 %v8089_v35  ;;  %v1995_v52 = vld [vmem:[#allocation6 + $0x400] sm:$0xff]  ;;  %2251 = vmatpush.msrb.mxu2 %v1974_v57  ;;  %v1941_v35 = vld [vmem:[#allocation6 + $0x250] sm:$0xff] }
 0x1fc   :  { %2203 = vmatpush.msra.mxu3 %v2004_v50  ;;  %2211 = vmatpush.msrb.mxu0 %v1973_v56  ;;  %8267 = vpow2.f32 %v8088_v55  ;;  %v1925_v61 = vld [vmem:[#allocation6 + $0x1d0] sm:$0xff]  ;;  %v2078_v56 = vld [vmem:[#allocation6 + $0x698] sm:$0xff]  ;;  %vm1746_vm12 = vweird.f32 %v9094_v22 }
 0x1fd   :  { %v1728_v34 = vadd.f32 %v1712_v63, %v8958_v5  ;;  %2164 = vmatpush.msra.mxu1 %v1995_v52  ;;  %2252 = vmatpush.msrb.mxu2 %v1966_v2  ;;  %v1949_v63 = vld [vmem:[#allocation6 + $0x290] sm:$0xff] }
 0x1fe   :  { %2204 = vmatpush.msra.mxu3 %v1996_v3  ;;  %2212 = vmatpush.msrb.mxu0 %v1965_v28  ;;  %v2077_v42 = vld [vmem:[#allocation6 + $0x690] sm:$0xff]  ;;  %v1918_v3 = vld [vmem:[#allocation6 + $0x198] sm:$0xff] }
 0x1ff   :  { %v8090_v60 = vmul.f32 -1.442695, %v1728_v34  ;;  %2229 = vmatpush.msrb.mxu1 %v2117_v29  ;;  %2253 = vmatpush.msrb.mxu2 %v1958_v8  ;;  %v2069_v52 = vld [vmem:[#allocation6 + $0x650] sm:$0xff]  ;;  %v2070_v28 = vld [vmem:[#allocation6 + $0x658] sm:$0xff] }
 0x200   :  { %2269 = vmatpush.msrb.mxu3 %v2118_v11  ;;  %2213 = vmatpush.msrb.mxu0 %v1957_v9  ;;  %v1909_v29 = vld [vmem:[#allocation6 + $0x150] sm:$0xff]  ;;  %v1910_v11 = vld [vmem:[#allocation6 + $0x158] sm:$0xff] }
 0x201   :  { %v8266_v10 = vpop.eup %8265  ;;  %8269 = vpow2.f32 %v8090_v60  ;;  %2230 = vmatpush.msrb.mxu1 %v2109_v54  ;;  %2254 = vmatpush.msrb.mxu2 %v1950_v20  ;;  %v1917_v60 = vld [vmem:[#allocation6 + $0x190] sm:$0xff]  ;;  %v2062_v9 = vld [vmem:[#allocation6 + $0x618] sm:$0xff] }
 0x202   :  { %2270 = vmatpush.msrb.mxu3 %v2110_v13  ;;  %v9096_v19 = vadd.f32 1.0, %v8266_v10  ;;  %2214 = vmatpush.msrb.mxu0 %v1949_v63  ;;  %v8268_v40 = vpop.eup %8267  ;;  %8271 = vrcp.f32 %v9094_v22  ;;  %v2061_v2 = vld [vmem:[#allocation6 + $0x610] sm:$0xff]  ;;  %v1902_v13 = vld [vmem:[#allocation6 + $0x118] sm:$0xff] }
 0x203   :  { %2231 = vmatpush.msrb.mxu1 %v2101_v17  ;;  %2255 = vmatpush.msrb.mxu2 %v1942_v27  ;;  %v9100_v48 = vadd.f32 1.0, %v8268_v40  ;;  %v1901_v8 = vld [vmem:[#allocation6 + $0x110] sm:$0xff]  ;;  %v2054_v20 = vld [vmem:[#allocation6 + $0x5d8] sm:$0xff] }
 0x204   :  { %2271 = vmatpush.msrb.mxu3 %v2102_v16  ;;  %2215 = vmatpush.msrb.mxu0 %v1941_v35  ;;  %8273 = vrcp.f32 %v9096_v19  ;;  %v2053_v10 = vld [vmem:[#allocation6 + $0x5d0] sm:$0xff]  ;;  %v1894_v27 = vld [vmem:[#allocation6 + $0xd8] sm:$0xff]  ;;  %vm1784_vm13 = vweird.f32 %v9096_v19 }
 0x205   :  { %2232 = vmatpush.msrb.mxu1 %v2093_v36  ;;  %v1558_v50 = vpop.f32.mrf.mxu0  ;;  %2256 = vmatpush.msrb.mxu2 %v1934_v43  ;;  %8275 = vrcp.f32 %v9100_v48  ;;  %v1893_v35 = vld [vmem:[#allocation6 + $0xd0] sm:$0xff]  ;;  %v2046_v43 = vld [vmem:[#allocation6 + $0x598] sm:$0xff]  ;;  %vm1761_vm1 = vweird.f32 %v9100_v48 }
 0x206   :  { %2272 = vmatpush.msrb.mxu3 %v2094_v39  ;;  %2216 = vmatpush.msrb.mxu0 %v1933_v21  ;;  %v2045_v36 = vld [vmem:[#allocation6 + $0x590] sm:$0xff] }
 0x207   :  { %v8270_v34 = vpop.eup %8269  ;;  %2233 = vmatpush.msrb.mxu1 %v2085_v14  ;;  %2257 = vmatpush.msrb.mxu2 %v1926_v37 }
 0x208   :  { %2273 = vmatpush.msrb.mxu3 %v2086_v47  ;;  %v9102_v57 = vadd.f32 1.0, %v8270_v34  ;;  %2217 = vmatpush.msrb.mxu0 %v1925_v61  ;;  %v9104_v6 = vpop.eup %8271  ;;  %v1885_v47 = vld [vmem:[#allocation6 + $0x90] sm:$0xff] }
 0x209   :  { %2234 = vmatpush.msrb.mxu1 %v2077_v42  ;;  %2258 = vmatpush.msrb.mxu2 %v1918_v3  ;;  %v1742_v39 = vmul.f32 %v9104_v6, %v9094_v22  ;;  %v2037_v61 = vld [vmem:[#allocation6 + $0x550] sm:$0xff]  ;;  %v1886_v42 = vld [vmem:[#allocation6 + $0x98] sm:$0xff]  ;;  %vm1747_vm10 = vweird.f32 %v9104_v6 }
 0x20a   :  { %2274 = vmatpush.msrb.mxu3 %v2078_v56  ;;  %2218 = vmatpush.msrb.mxu0 %v1917_v60  ;;  %v9107_v54 = vpop.eup %8273  ;;  %8277 = vrcp.f32 %v9102_v57  ;;  %v2029_v3 = vld [vmem:[#allocation6 + $0x510] sm:$0xff]  ;;  %vm9141_vm14 = vmor %vm1746_vm12, %vm1747_vm10  ;;  %vm1799_vm5 = vweird.f32 %v9102_v57 }
 0x20b   :  { %2235 = vmatpush.msrb.mxu1 %v2069_v52  ;;  %v1598_v63 = vpop.f32.mrf.mxu2  ;;  %2259 = vmatpush.msrb.mxu2 %v1910_v11  ;;  %v1780_v40 = vmul.f32 %v9107_v54, %v9096_v19  ;;  %v9114_v37 = vpop.eup %8275  ;;  %v1877_v52 = vld [vmem:[#allocation6 + $0x50] sm:$0xff]  ;;  %v2030_v11 = vld [vmem:[#allocation6 + $0x518] sm:$0xff]  ;;  %vm1785_vm11 = vweird.f32 %v9107_v54 }
 0x20c   :  { %v1578_v55 = vpop.f32.mrf.mxu1  ;;  %2275 = vmatpush.msrb.mxu3 %v2070_v28  ;;  %2219 = vmatpush.msrb.mxu0 %v1909_v29  ;;  %v1878_v28 = vld [vmem:[#allocation6 + $0x58] sm:$0xff]  ;;  %v1743_v29 = vsub.f32 1.0, %v1742_v39  ;;  %vm9149_vm15 = vmor %vm1784_vm13, %vm1785_vm11  ;;  %vm1762_vm3 = vweird.f32 %v9114_v37 }
 0x20d   :  { %2236 = vmatpush.msrb.mxu1 %v2061_v2  ;;  %v1579_v16 = vadd.f32 %v1578_v55, %v1558_v50  ;;  %2260 = vmatpush.msrb.mxu2 %v1902_v13  ;;  %v2038_v50 = vld [vmem:[#allocation6 + $0x558] sm:$0xff]  ;;  %v1781_v2 = vsub.f32 1.0, %v1780_v40  ;;  %v2021_v13 = vld [vmem:[#allocation6 + $0x4d0] sm:$0xff]  ;;  %vm9175_vm6 = vmor %vm1761_vm1, %vm1762_vm3 }
 0x20e   :  { %2276 = vmatpush.msrb.mxu3 %v2062_v9  ;;  %2220 = vmatpush.msrb.mxu0 %v1901_v8  ;;  %v2022_v39 = vld [vmem:[#allocation6 + $0x4d8] sm:$0xff] }
 0x20f   :  { %2237 = vmatpush.msrb.mxu1 %v2053_v10  ;;  %2261 = vmatpush.msrb.mxu2 %v1894_v27  ;;  %v1713_v56 = vrot.slane %v1579_v16, 6  ;;  %v1869_v10 = vld [vmem:[#allocation6 + $0x10] sm:$0xff]  ;;  %v1757_v16 = vmul.f32 %v9114_v37, %v9100_v48 }
 0x210   :  { %2277 = vmatpush.msrb.mxu3 %v2054_v20  ;;  %2221 = vmatpush.msrb.mxu0 %v1893_v35  ;;  %v9116_v55 = vpop.eup %8277  ;;  %v1870_v20 = vld [vmem:[#allocation6 + $0x18] sm:$0xff] }
 0x211   :  { %2238 = vmatpush.msrb.mxu1 %v2045_v36  ;;  %2262 = vmatpush.msrb.mxu2 %v1886_v42  ;;  %v1795_v35 = vmul.f32 %v9116_v55, %v9102_v57  ;;  %v1758_v42 = vsub.f32 1.0, %v1757_v16  ;;  %vm1800_vm4 = vweird.f32 %v9116_v55 }
 0x212   :  { %v1618_v17 = vpop.f32.mrf.mxu3  ;;  %2278 = vmatpush.msrb.mxu3 %v2046_v43  ;;  %2222 = vmatpush.msrb.mxu0 %v1885_v47  ;;  %v2013_v43 = vld [vmem:[#allocation6 + $0x490] sm:$0xff]  ;;  %vm1801_vm7 = vmor %vm1799_vm5, %vm1800_vm4 }
 0x213   :  { %2239 = vmatpush.msrb.mxu1 %v2037_v61  ;;  %v1619_v9 = vadd.f32 %v1618_v17, %v1598_v63  ;;  %2263 = vmatpush.msrb.mxu2 %v1878_v28  ;;  %v1729_v63 = vadd.f32 %v1713_v56, %v8996_v15  ;;  %v1750_v56 = vand.u32 2147483647, %v9094_v22 }
 0x214   :  { %2279 = vmatpush.msrb.mxu3 %v2038_v50  ;;  %2223 = vmatpush.msrb.mxu0 %v1877_v52  ;;  %v1796_v50 = vsub.f32 1.0, %v1795_v35  ;;  %v2006_v52 = vld [vmem:[#allocation6 + $0x458] sm:$0xff]  ;;  %v1759_v35 = vmul.f32 %v9114_v37, %v1758_v42 }
 0x215   :  { %2240 = vmatpush.msrb.mxu1 %v2029_v3  ;;  %2264 = vmatpush.msrb.mxu2 %v1870_v20  ;;  %v1714_v47 = vrot.slane %v1619_v9, 6  ;;  %v1752_v3 = vand.u32 2147483648, %v9094_v22  ;;  %v1998_v9 = vld [vmem:[#allocation6 + $0x418] sm:$0xff]  ;;  %vm9153_vm0 = vcmp.eq.f32.partialorder %v1750_v56, 8.507059e+37  ;;  %v1765_v56 = vand.u32 2147483647, %v9100_v48 }
 0x216   :  { %2280 = vmatpush.msrb.mxu3 %v2030_v11  ;;  %2224 = vmatpush.msrb.mxu0 %v1869_v10  ;;  %v1997_v11 = vld [vmem:[#allocation6 + $0x410] sm:$0xff]  ;;  %v1788_v10 = vand.u32 2147483647, %v9096_v19  ;;  %v1797_v16 = vmul.f32 %v9116_v55, %v1796_v50  ;;  %v1992_v50 = vld [vmem:[#allocation6 + $0x3e8] sm:$0xff] }
 0x217   :  { %2241 = vmatpush.msrb.mxu1 %v2021_v13  ;;  %v1730_v13 = vadd.f32 %v1714_v47, %v9011_v58  ;;  %vm1766_vm8 = vcmp.eq.f32.partialorder %v1765_v56, 8.507059e+37 }
 0x218   :  { %2281 = vmatpush.msrb.mxu3 %v2022_v39  ;;  %vm1789_vm2 = vcmp.eq.f32.partialorder %v1788_v10, 8.507059e+37 }
 0x219   :  { %2242 = vmatpush.msrb.mxu1 %v2013_v43  ;;  %v1760_v43 = vadd.f32 %v9114_v37, %v1759_v35 }
 0x227   :  { %v1638_v21 = vpop.f32.mrf.mxu0 }
 0x22d   :  { %v1658_v14 = vpop.f32.mrf.mxu1  ;;  %v1678_v36 = vpop.f32.mrf.mxu2 }
 0x22e   :  { %v1659_v34 = vadd.f32 %v1658_v14, %v1638_v21  ;;  %v1782_v21 = vmul.f32 %v9107_v54, %v1781_v2  ;;  %v1744_v14 = vmul.f32 %v9104_v6, %v1743_v29 }
 0x230   :  { %v1715_v60 = vrot.slane %v1659_v34, 6  ;;  %v2014_v34 = vld [vmem:[#allocation6 + $0x498] sm:$0xff]  ;;  %v1745_v29 = vadd.f32 %v9104_v6, %v1744_v14  ;;  %v1783_v2 = vadd.f32 %v9107_v54, %v1782_v21 }
 0x231   :  { %2282 = vmatpush.msrb.mxu3 %v2014_v34  ;;  %v1798_v34 = vadd.f32 %v9116_v55, %v1797_v16  ;;  %v1852_v16 = vrot.slane %v9065_v12, 6 }
 0x232   :  { %v1731_v8 = vadd.f32 %v1715_v60, %v8989_v1  ;;  %v2005_v60 = vld [vmem:[#allocation6 + $0x450] sm:$0xff] }
 0x233   :  { %v1698_v27 = vpop.f32.mrf.mxu3  ;;  %2243 = vmatpush.msrb.mxu1 %v2005_v60  ;;  %2283 = vmatpush.msrb.mxu3 %v2006_v52  ;;  %v1803_v60 = vand.u32 2147483647, %v9102_v57 }
 0x234   :  { %v8091_v17 = vmul.f32 -1.442695, %v1731_v8  ;;  %v1699_v40 = vadd.f32 %v1698_v27, %v1678_v36  ;;  %v1790_v8 = vand.u32 2147483648, %v9096_v19  ;;  %v1851_v27 = vrot.slane %v9062_v4, 6 }
 0x235   :  { %2244 = vmatpush.msrb.mxu1 %v1997_v11  ;;  %2284 = vmatpush.msrb.mxu3 %v1998_v9  ;;  %v1787_v4 = vsel %vm9149_vm15, %v9107_v54, %v1783_v2  ;;  %vm1804_vm9 = vcmp.eq.f32.partialorder %v1803_v60, 8.507059e+37 }
 0x236   :  { %8279 = vpow2.f32 %v8091_v17  ;;  %v1716_v61 = vrot.slane %v1699_v40, 6  ;;  %v1749_v17 = vsel %vm9141_vm14, %v9104_v6, %v1745_v29  ;;  %v1791_v14 = vor.u32 1.1754944e-38, %v1790_v8 }
 0x237   :  { %8281 = vtanh.f32 %v1729_v63  ;;  %v1753_v63 = vor.u32 1.1754944e-38, %v1752_v3  ;;  %v1805_v6 = vand.u32 2147483648, %v9102_v57  ;;  %v1802_v29 = vsel %vm1801_vm7, %v9116_v55, %v1798_v34 }
 0x238   :  { %v1732_v28 = vadd.f32 %v1716_v61, %v9016_v59  ;;  %v1792_v47 = vsel %vm1789_vm2, %v1791_v14, %v1787_v4  ;;  %v1767_v61 = vand.u32 2147483648, %v9100_v48 }
 0x239   :  { %v1754_v54 = vsel %vm9153_vm0, %v1753_v63, %v1749_v17  ;;  %v1855_v3 = vmul.f32 %v1851_v27, %v1792_v47  ;;  %v1806_v9 = vor.u32 1.1754944e-38, %v1805_v6 }
 0x23a   :  { %v8092_v20 = vmul.f32 -1.442695, %v1732_v28  ;;  %v1764_v28 = vsel %vm9175_vm6, %v9114_v37, %v1760_v43  ;;  %v1768_v8 = vor.u32 1.1754944e-38, %v1767_v61 }
 0x23b   :  { %v1807_v57 = vsel %vm1804_vm9, %v1806_v9, %v1802_v29  ;;  %v1975_v9 = vld [vmem:[#allocation6 + $0x360] sm:$0xff] }
 0x23c   :  { %v8280_v36 = vpop.eup %8279  ;;  %8283 = vpow2.f32 %v8092_v20  ;;  %v1769_v48 = vsel %vm1766_vm8, %v1768_v8, %v1764_v28  ;;  %v1856_v37 = vmul.f32 %v1852_v16, %v1807_v57  ;;  %v1976_v8 = vld [vmem:[#allocation6 + $0x368] sm:$0xff]  ;;  %v1959_v16 = vld [vmem:[#allocation6 + $0x2e0] sm:$0xff] }
 0x23d   :  { %v1817_v40 = vadd.f32 1.0, %v8280_v36  ;;  %v8282_v21 = vpop.eup %8281  ;;  %8285 = vtanh.f32 %v1730_v13  ;;  %v1968_v57 = vld [vmem:[#allocation6 + $0x328] sm:$0xff] }
 0x23e   :  { %v1857_v42 = vmul.f32 %v8282_v21, %v1754_v54 }
 0x23f   :  { %8287 = vrcp.f32 %v1817_v40  ;;  %v1830_v55 = vand.u32 2147483648, %v1817_v40  ;;  %v1828_v27 = vand.u32 2147483647, %v1817_v40  ;;  %vm1824_vm11 = vweird.f32 %v1817_v40 }
 0x240   :  { %v9185_v13 = vadd.f32 %v1857_v42, %v1855_v3  ;;  %v1984_v3 = vld [vmem:[#allocation6 + $0x3a8] sm:$0xff] }
 0x241   :  { %v1831_v4 = vor.u32 1.1754944e-38, %v1830_v55  ;;  %vm1829_vm13 = vcmp.eq.f32.partialorder %v1828_v27, 8.507059e+37  ;;  %v1951_v55 = vld [vmem:[#allocation6 + $0x2a0] sm:$0xff]  ;;  %v1952_v27 = vld [vmem:[#allocation6 + $0x2a8] sm:$0xff] }
 0x242   :  { %v8284_v52 = vpop.eup %8283 }
 0x243   :  { %v1818_v2 = vadd.f32 1.0, %v8284_v52  ;;  %v8286_v11 = vpop.eup %8285  ;;  %v1983_v52 = vld [vmem:[#allocation6 + $0x3a0] sm:$0xff] }
 0x244   :  { %v1858_v22 = vmul.f32 %v8286_v11, %v1769_v48  ;;  %v2119_v48 = vld [vmem:[#allocation6 + $0x7e0] sm:$0xff] }
 0x245   :  { %v8288_v10 = vpop.eup %8287  ;;  %8289 = vrcp.f32 %v1818_v2  ;;  %v1845_v34 = vand.u32 2147483648, %v1818_v2  ;;  %v1843_v47 = vand.u32 2147483647, %v1818_v2  ;;  %vm1839_vm15 = vweird.f32 %v1818_v2 }
 0x246   :  { %v1820_v20 = vmul.f32 %v8288_v10, %v1817_v40  ;;  %8291 = vtanh.f32 %v9185_v13  ;;  %vm1825_vm10 = vweird.f32 %v8288_v10  ;;  %v9189_v19 = vadd.f32 %v1858_v22, %v1856_v37  ;;  %v1991_v40 = vld [vmem:[#allocation6 + $0x3e0] sm:$0xff]  ;;  %v2112_v37 = vld [vmem:[#allocation6 + $0x7a8] sm:$0xff] }
 0x247   :  { %vm1826_vm12 = vmor %vm1824_vm11, %vm1825_vm10  ;;  %v1846_v56 = vor.u32 1.1754944e-38, %v1845_v34  ;;  %vm1844_vm1 = vcmp.eq.f32.partialorder %v1843_v47, 8.507059e+37  ;;  %v2111_v22 = vld [vmem:[#allocation6 + $0x7a0] sm:$0xff]  ;;  %v2088_v34 = vld [vmem:[#allocation6 + $0x6e8] sm:$0xff] }
 0x248   :  { %v1821_v35 = vsub.f32 1.0, %v1820_v20  ;;  %8293 = vtanh.f32 %v9189_v19  ;;  %v2120_v20 = vld [vmem:[#allocation6 + $0x7e8] sm:$0xff] }
 0x249   :  { %v1928_v47 = vld [vmem:[#allocation6 + $0x1e8] sm:$0xff] }
 0x24a   :  { %v1822_v36 = vmul.f32 %v8288_v10, %v1821_v35  ;;  %v1960_v35 = vld [vmem:[#allocation6 + $0x2e8] sm:$0xff] }
 0x24b   :  { %v8290_v39 = vpop.eup %8289 }
 0x24c   :  { %v1823_v63 = vadd.f32 %v8288_v10, %v1822_v36  ;;  %v1835_v17 = vmul.f32 %v8290_v39, %v1818_v2  ;;  %v8292_v14 = vpop.eup %8291  ;;  %vm1840_vm14 = vweird.f32 %v8290_v39  ;;  %v2103_v36 = vld [vmem:[#allocation6 + $0x760] sm:$0xff] }
 0x24d   :  { %vm1841_vm0 = vmor %vm1839_vm15, %vm1840_vm14 }
 0x24e   :  { %v1827_v21 = vsel %vm1826_vm12, %v8288_v10, %v1823_v63  ;;  %v1836_v12 = vsub.f32 1.0, %v1835_v17  ;;  %v8294_v28 = vpop.eup %8293  ;;  %v1967_v10 = vld [vmem:[#allocation6 + $0x320] sm:$0xff] }
 0x24f   :  { %v1832_v43 = vsel %vm1829_vm13, %v1831_v4, %v1827_v21  ;;  %v1943_v63 = vld [vmem:[#allocation6 + $0x260] sm:$0xff]  ;;  %v1944_v4 = vld [vmem:[#allocation6 + $0x268] sm:$0xff] }
 0x250   :  { %v1863_v6 = vmul.f32 %v8292_v14, %v1832_v43  ;;  %v1837_v54 = vmul.f32 %v8290_v39, %v1836_v12  ;;  %v2095_v17 = vld [vmem:[#allocation6 + $0x720] sm:$0xff]  ;;  %v2096_v21 = vld [vmem:[#allocation6 + $0x728] sm:$0xff] }
 0x251   :  { %v1935_v12 = vld [vmem:[#allocation6 + $0x220] sm:$0xff]  ;;  %v1936_v43 = vld [vmem:[#allocation6 + $0x228] sm:$0xff] }
 0x252   :  { %1865 = vst [vmem:[#allocation2 + $0x10] sm:$0xc] %v1863_v6  ;;  %v9192_v61 = vrot.slane %v1863_v6, 2  ;;  %v1838_v42 = vadd.f32 %v8290_v39, %v1837_v54  ;;  %v2087_v14 = vld [vmem:[#allocation6 + $0x6e0] sm:$0xff] }
 0x253   :  { %v1927_v6 = vld [vmem:[#allocation6 + $0x1e0] sm:$0xff] }
 0x254   :  { %v1842_v60 = vsel %vm1841_vm0, %v8290_v39, %v1838_v42  ;;  %2145 = vmatmul.f32.vlgmr.msra.gmra.mxu0 %v9192_v61  ;;  %2185 = vmatmul.f32.vlgmr.msra.gmra.mxu2 %v9192_v61  ;;  %v2104_v39 = vld [vmem:[#allocation6 + $0x768] sm:$0xff]  ;;  %v2079_v54 = vld [vmem:[#allocation6 + $0x6a0] sm:$0xff] }
 0x255   :  { %v1847_v29 = vsel %vm1844_vm1, %v1846_v56, %v1842_v60  ;;  %2289 = vmatpush.msra.mxu0 %v1991_v40  ;;  %2329 = vmatpush.msra.mxu2 %v1992_v50  ;;  %v2080_v42 = vld [vmem:[#allocation6 + $0x6a8] sm:$0xff]  ;;  %v1919_v40 = vld [vmem:[#allocation6 + $0x1a0] sm:$0xff] }
 0x256   :  { %v1864_v11 = vmul.f32 %v8294_v28, %v1847_v29  ;;  %v2071_v50 = vld [vmem:[#allocation6 + $0x660] sm:$0xff]  ;;  %v1920_v56 = vld [vmem:[#allocation6 + $0x1a8] sm:$0xff] }
 0x257   :  { %2290 = vmatpush.msra.mxu0 %v1983_v52  ;;  %2330 = vmatpush.msra.mxu2 %v1984_v3  ;;  %v2072_v60 = vld [vmem:[#allocation6 + $0x668] sm:$0xff]  ;;  %v1911_v52 = vld [vmem:[#allocation6 + $0x160] sm:$0xff] }
 0x258   :  { %1866 = vst [vmem:[#allocation2] sm:$0xc] %v1864_v11  ;;  %v9196_v2 = vrot.slane %v1864_v11, 2  ;;  %v2063_v3 = vld [vmem:[#allocation6 + $0x620] sm:$0xff]  ;;  %v1912_v28 = vld [vmem:[#allocation6 + $0x168] sm:$0xff] }
 0x259   :  { %2291 = vmatpush.msra.mxu0 %v1975_v9  ;;  %2331 = vmatpush.msra.mxu2 %v1976_v8  ;;  %v2064_v29 = vld [vmem:[#allocation6 + $0x628] sm:$0xff]  ;;  %v1903_v11 = vld [vmem:[#allocation6 + $0x120] sm:$0xff] }
 0x25a   :  { %2165 = vmatmul.f32.vlgmr.msra.gmra.mxu1 %v9196_v2  ;;  %2205 = vmatmul.f32.vlgmr.msra.gmra.mxu3 %v9196_v2  ;;  %v2055_v9 = vld [vmem:[#allocation6 + $0x5e0] sm:$0xff]  ;;  %v1904_v8 = vld [vmem:[#allocation6 + $0x128] sm:$0xff] }
 0x25b   :  { %2292 = vmatpush.msra.mxu0 %v1967_v10  ;;  %2309 = vmatpush.msra.mxu1 %v2119_v48  ;;  %v2056_v10 = vld [vmem:[#allocation6 + $0x5e8] sm:$0xff]  ;;  %v1895_v48 = vld [vmem:[#allocation6 + $0xe0] sm:$0xff] }
 0x25c   :  { %2332 = vmatpush.msra.mxu2 %v1968_v57  ;;  %2349 = vmatpush.msra.mxu3 %v2120_v20  ;;  %v2047_v57 = vld [vmem:[#allocation6 + $0x5a0] sm:$0xff]  ;;  %v1896_v20 = vld [vmem:[#allocation6 + $0xe8] sm:$0xff] }
 0x25d   :  { %2225 = vmatmul.f32.vlgmr.msrb.gmra.mxu0 %v9192_v61  ;;  %2265 = vmatmul.f32.vlgmr.msrb.gmra.mxu2 %v9192_v61 }
 0x25e   :  { %2293 = vmatpush.msra.mxu0 %v1959_v16  ;;  %2310 = vmatpush.msra.mxu1 %v2111_v22  ;;  %v2048_v16 = vld [vmem:[#allocation6 + $0x5a8] sm:$0xff]  ;;  %v1887_v22 = vld [vmem:[#allocation6 + $0xa0] sm:$0xff] }
 0x25f   :  { %2333 = vmatpush.msra.mxu2 %v1960_v35  ;;  %2350 = vmatpush.msra.mxu3 %v2112_v37  ;;  %v2039_v35 = vld [vmem:[#allocation6 + $0x560] sm:$0xff]  ;;  %v1888_v37 = vld [vmem:[#allocation6 + $0xa8] sm:$0xff] }
 0x260   :  { %2294 = vmatpush.msra.mxu0 %v1951_v55  ;;  %2311 = vmatpush.msra.mxu1 %v2103_v36  ;;  %v2040_v55 = vld [vmem:[#allocation6 + $0x568] sm:$0xff]  ;;  %v1879_v36 = vld [vmem:[#allocation6 + $0x60] sm:$0xff] }
 0x261   :  { %2334 = vmatpush.msra.mxu2 %v1952_v27  ;;  %2351 = vmatpush.msra.mxu3 %v2104_v39  ;;  %v2031_v27 = vld [vmem:[#allocation6 + $0x520] sm:$0xff]  ;;  %v1880_v39 = vld [vmem:[#allocation6 + $0x68] sm:$0xff] }
 0x262   :  { %2295 = vmatpush.msra.mxu0 %v1943_v63  ;;  %2312 = vmatpush.msra.mxu1 %v2095_v17  ;;  %v2032_v63 = vld [vmem:[#allocation6 + $0x528] sm:$0xff]  ;;  %v1871_v17 = vld [vmem:[#allocation6 + $0x20] sm:$0xff] }
 0x263   :  { %2335 = vmatpush.msra.mxu2 %v1944_v4  ;;  %2352 = vmatpush.msra.mxu3 %v2096_v21  ;;  %v2023_v4 = vld [vmem:[#allocation6 + $0x4e0] sm:$0xff]  ;;  %v1872_v21 = vld [vmem:[#allocation6 + $0x28] sm:$0xff] }
 0x264   :  { %2245 = vmatmul.f32.vlgmr.msrb.gmra.mxu1 %v9196_v2  ;;  %2285 = vmatmul.f32.vlgmr.msrb.gmra.mxu3 %v9196_v2 }
 0x265   :  { %2296 = vmatpush.msra.mxu0 %v1935_v12  ;;  %2313 = vmatpush.msra.mxu1 %v2087_v14  ;;  %v2024_v12 = vld [vmem:[#allocation6 + $0x4e8] sm:$0xff]  ;;  %v1993_v14 = vld [vmem:[#allocation6 + $0x3f0] sm:$0xff] }
 0x266   :  { %2336 = vmatpush.msra.mxu2 %v1936_v43  ;;  %2353 = vmatpush.msra.mxu3 %v2088_v34  ;;  %v1994_v43 = vld [vmem:[#allocation6 + $0x3f8] sm:$0xff]  ;;  %v2015_v34 = vld [vmem:[#allocation6 + $0x4a0] sm:$0xff] }
 0x267   :  { %2297 = vmatpush.msra.mxu0 %v1927_v6  ;;  %2314 = vmatpush.msra.mxu1 %v2079_v54  ;;  %v2016_v6 = vld [vmem:[#allocation6 + $0x4a8] sm:$0xff]  ;;  %v1985_v54 = vld [vmem:[#allocation6 + $0x3b0] sm:$0xff] }
 0x268   :  { %2337 = vmatpush.msra.mxu2 %v1928_v47  ;;  %2354 = vmatpush.msra.mxu3 %v2080_v42  ;;  %v1986_v47 = vld [vmem:[#allocation6 + $0x3b8] sm:$0xff]  ;;  %v2007_v42 = vld [vmem:[#allocation6 + $0x460] sm:$0xff] }
 0x269   :  { %2298 = vmatpush.msra.mxu0 %v1919_v40  ;;  %2315 = vmatpush.msra.mxu1 %v2071_v50  ;;  %v2008_v40 = vld [vmem:[#allocation6 + $0x468] sm:$0xff]  ;;  %v1977_v50 = vld [vmem:[#allocation6 + $0x370] sm:$0xff] }
 0x26a   :  { %2338 = vmatpush.msra.mxu2 %v1920_v56  ;;  %2355 = vmatpush.msra.mxu3 %v2072_v60  ;;  %v1978_v56 = vld [vmem:[#allocation6 + $0x378] sm:$0xff]  ;;  %v1999_v60 = vld [vmem:[#allocation6 + $0x420] sm:$0xff] }
 0x26b   :  { %2299 = vmatpush.msra.mxu0 %v1911_v52  ;;  %2316 = vmatpush.msra.mxu1 %v2063_v3  ;;  %v2000_v52 = vld [vmem:[#allocation6 + $0x428] sm:$0xff]  ;;  %v1969_v3 = vld [vmem:[#allocation6 + $0x330] sm:$0xff] }
 0x26c   :  { %2339 = vmatpush.msra.mxu2 %v1912_v28  ;;  %2356 = vmatpush.msra.mxu3 %v2064_v29  ;;  %v2121_v28 = vld [vmem:[#allocation6 + $0x7f0] sm:$0xff]  ;;  %v1970_v29 = vld [vmem:[#allocation6 + $0x338] sm:$0xff] }
 0x26d   :  { %2300 = vmatpush.msra.mxu0 %v1903_v11  ;;  %2317 = vmatpush.msra.mxu1 %v2055_v9  ;;  %v2122_v11 = vld [vmem:[#allocation6 + $0x7f8] sm:$0xff]  ;;  %v1961_v9 = vld [vmem:[#allocation6 + $0x2f0] sm:$0xff] }
 0x26e   :  { %2340 = vmatpush.msra.mxu2 %v1904_v8  ;;  %2357 = vmatpush.msra.mxu3 %v2056_v10  ;;  %v2113_v8 = vld [vmem:[#allocation6 + $0x7b0] sm:$0xff]  ;;  %v1962_v10 = vld [vmem:[#allocation6 + $0x2f8] sm:$0xff] }
 0x26f   :  { %2301 = vmatpush.msra.mxu0 %v1895_v48  ;;  %2318 = vmatpush.msra.mxu1 %v2047_v57  ;;  %v2114_v48 = vld [vmem:[#allocation6 + $0x7b8] sm:$0xff]  ;;  %v1953_v57 = vld [vmem:[#allocation6 + $0x2b0] sm:$0xff] }
 0x270   :  { %2341 = vmatpush.msra.mxu2 %v1896_v20  ;;  %2358 = vmatpush.msra.mxu3 %v2048_v16  ;;  %v2105_v20 = vld [vmem:[#allocation6 + $0x770] sm:$0xff]  ;;  %v1954_v16 = vld [vmem:[#allocation6 + $0x2b8] sm:$0xff] }
 0x271   :  { %2302 = vmatpush.msra.mxu0 %v1887_v22  ;;  %2319 = vmatpush.msra.mxu1 %v2039_v35  ;;  %v2106_v22 = vld [vmem:[#allocation6 + $0x778] sm:$0xff]  ;;  %v1945_v35 = vld [vmem:[#allocation6 + $0x270] sm:$0xff] }
 0x272   :  { %2342 = vmatpush.msra.mxu2 %v1888_v37  ;;  %2359 = vmatpush.msra.mxu3 %v2040_v55  ;;  %v2097_v37 = vld [vmem:[#allocation6 + $0x730] sm:$0xff]  ;;  %v1946_v55 = vld [vmem:[#allocation6 + $0x278] sm:$0xff] }
 0x273   :  { %2303 = vmatpush.msra.mxu0 %v1879_v36  ;;  %2320 = vmatpush.msra.mxu1 %v2031_v27  ;;  %v2098_v36 = vld [vmem:[#allocation6 + $0x738] sm:$0xff]  ;;  %v1937_v27 = vld [vmem:[#allocation6 + $0x230] sm:$0xff] }
 0x274   :  { %2343 = vmatpush.msra.mxu2 %v1880_v39  ;;  %2360 = vmatpush.msra.mxu3 %v2032_v63  ;;  %v2089_v39 = vld [vmem:[#allocation6 + $0x6f0] sm:$0xff]  ;;  %v1938_v63 = vld [vmem:[#allocation6 + $0x238] sm:$0xff] }
 0x275   :  { %2304 = vmatpush.msra.mxu0 %v1871_v17  ;;  %2321 = vmatpush.msra.mxu1 %v2023_v4  ;;  %v2090_v17 = vld [vmem:[#allocation6 + $0x6f8] sm:$0xff]  ;;  %v1929_v4 = vld [vmem:[#allocation6 + $0x1f0] sm:$0xff] }
 0x276   :  { %2344 = vmatpush.msra.mxu2 %v1872_v21  ;;  %2361 = vmatpush.msra.mxu3 %v2024_v12  ;;  %v2081_v21 = vld [vmem:[#allocation6 + $0x6b0] sm:$0xff]  ;;  %v1930_v12 = vld [vmem:[#allocation6 + $0x1f8] sm:$0xff] }
 0x277   :  { %2305 = vmatmul.f32.vlgmr.msra.gmra.mxu0 %v9192_v61  ;;  %2345 = vmatmul.f32.vlgmr.msra.gmra.mxu2 %v9192_v61 }
 0x278   :  { %2369 = vmatpush.msrb.mxu0 %v1993_v14  ;;  %2409 = vmatpush.msrb.mxu2 %v1994_v43  ;;  %v2082_v14 = vld [vmem:[#allocation6 + $0x6b8] sm:$0xff]  ;;  %v1921_v43 = vld [vmem:[#allocation6 + $0x1b0] sm:$0xff] }
 0x279   :  { %2322 = vmatpush.msra.mxu1 %v2015_v34  ;;  %2362 = vmatpush.msra.mxu3 %v2016_v6  ;;  %v2073_v34 = vld [vmem:[#allocation6 + $0x670] sm:$0xff]  ;;  %v1922_v6 = vld [vmem:[#allocation6 + $0x1b8] sm:$0xff] }
 0x27a   :  { %2370 = vmatpush.msrb.mxu0 %v1985_v54  ;;  %2410 = vmatpush.msrb.mxu2 %v1986_v47  ;;  %v2074_v54 = vld [vmem:[#allocation6 + $0x678] sm:$0xff]  ;;  %v1913_v47 = vld [vmem:[#allocation6 + $0x170] sm:$0xff] }
 0x27b   :  { %2323 = vmatpush.msra.mxu1 %v2007_v42  ;;  %2363 = vmatpush.msra.mxu3 %v2008_v40  ;;  %v2065_v42 = vld [vmem:[#allocation6 + $0x630] sm:$0xff]  ;;  %v1914_v40 = vld [vmem:[#allocation6 + $0x178] sm:$0xff] }
 0x27c   :  { %2371 = vmatpush.msrb.mxu0 %v1977_v50  ;;  %2411 = vmatpush.msrb.mxu2 %v1978_v56  ;;  %v2066_v50 = vld [vmem:[#allocation6 + $0x638] sm:$0xff]  ;;  %v1905_v56 = vld [vmem:[#allocation6 + $0x130] sm:$0xff] }
 0x27d   :  { %2324 = vmatpush.msra.mxu1 %v1999_v60  ;;  %2364 = vmatpush.msra.mxu3 %v2000_v52  ;;  %v2057_v60 = vld [vmem:[#allocation6 + $0x5f0] sm:$0xff]  ;;  %v1906_v52 = vld [vmem:[#allocation6 + $0x138] sm:$0xff] }
 0x27e   :  { %2325 = vmatmul.f32.vlgmr.msra.gmra.mxu1 %v9196_v2  ;;  %2365 = vmatmul.f32.vlgmr.msra.gmra.mxu3 %v9196_v2 }
 0x27f   :  { %2372 = vmatpush.msrb.mxu0 %v1969_v3  ;;  %2389 = vmatpush.msrb.mxu1 %v2121_v28  ;;  %v2058_v3 = vld [vmem:[#allocation6 + $0x5f8] sm:$0xff]  ;;  %v1897_v28 = vld [vmem:[#allocation6 + $0xf0] sm:$0xff] }
 0x280   :  { %2412 = vmatpush.msrb.mxu2 %v1970_v29  ;;  %2429 = vmatpush.msrb.mxu3 %v2122_v11  ;;  %v2049_v29 = vld [vmem:[#allocation6 + $0x5b0] sm:$0xff]  ;;  %v1898_v11 = vld [vmem:[#allocation6 + $0xf8] sm:$0xff] }
 0x281   :  { %2373 = vmatpush.msrb.mxu0 %v1961_v9  ;;  %2390 = vmatpush.msrb.mxu1 %v2113_v8  ;;  %v2050_v9 = vld [vmem:[#allocation6 + $0x5b8] sm:$0xff]  ;;  %v1889_v8 = vld [vmem:[#allocation6 + $0xb0] sm:$0xff] }
 0x282   :  { %2413 = vmatpush.msrb.mxu2 %v1962_v10  ;;  %2430 = vmatpush.msrb.mxu3 %v2114_v48  ;;  %v2041_v10 = vld [vmem:[#allocation6 + $0x570] sm:$0xff]  ;;  %v1890_v48 = vld [vmem:[#allocation6 + $0xb8] sm:$0xff] }
 0x283   :  { %2374 = vmatpush.msrb.mxu0 %v1953_v57  ;;  %2391 = vmatpush.msrb.mxu1 %v2105_v20  ;;  %v2042_v57 = vld [vmem:[#allocation6 + $0x578] sm:$0xff]  ;;  %v1881_v20 = vld [vmem:[#allocation6 + $0x70] sm:$0xff] }
 0x284   :  { %2414 = vmatpush.msrb.mxu2 %v1954_v16  ;;  %2431 = vmatpush.msrb.mxu3 %v2106_v22  ;;  %v2033_v16 = vld [vmem:[#allocation6 + $0x530] sm:$0xff]  ;;  %v1882_v22 = vld [vmem:[#allocation6 + $0x78] sm:$0xff] }
 0x285   :  { %2375 = vmatpush.msrb.mxu0 %v1945_v35  ;;  %2392 = vmatpush.msrb.mxu1 %v2097_v37  ;;  %v2034_v35 = vld [vmem:[#allocation6 + $0x538] sm:$0xff]  ;;  %v1873_v37 = vld [vmem:[#allocation6 + $0x30] sm:$0xff] }
 0x286   :  { %2415 = vmatpush.msrb.mxu2 %v1946_v55  ;;  %2432 = vmatpush.msrb.mxu3 %v2098_v36  ;;  %v2025_v55 = vld [vmem:[#allocation6 + $0x4f0] sm:$0xff]  ;;  %v1874_v36 = vld [vmem:[#allocation6 + $0x38] sm:$0xff] }
 0x287   :  { %2376 = vmatpush.msrb.mxu0 %v1937_v27  ;;  %2393 = vmatpush.msrb.mxu1 %v2089_v39  ;;  %v2026_v27 = vld [vmem:[#allocation6 + $0x4f8] sm:$0xff]  ;;  %v2017_v39 = vld [vmem:[#allocation6 + $0x4b0] sm:$0xff] }
 0x288   :  { %2416 = vmatpush.msrb.mxu2 %v1938_v63  ;;  %2433 = vmatpush.msrb.mxu3 %v2090_v17  ;;  %v2018_v63 = vld [vmem:[#allocation6 + $0x4b8] sm:$0xff]  ;;  %v2009_v17 = vld [vmem:[#allocation6 + $0x470] sm:$0xff] }
 0x289   :  { %2377 = vmatpush.msrb.mxu0 %v1929_v4  ;;  %2394 = vmatpush.msrb.mxu1 %v2081_v21  ;;  %v2010_v4 = vld [vmem:[#allocation6 + $0x478] sm:$0xff]  ;;  %v2001_v21 = vld [vmem:[#allocation6 + $0x430] sm:$0xff] }
 0x28a   :  { %2417 = vmatpush.msrb.mxu2 %v1930_v12  ;;  %2434 = vmatpush.msrb.mxu3 %v2082_v14  ;;  %v2002_v12 = vld [vmem:[#allocation6 + $0x438] sm:$0xff]  ;;  %v2735_v14 = vld [vmem:[#allocation6 + $0x3c0] sm:$0xff] }
 0x28b   :  { %2378 = vmatpush.msrb.mxu0 %v1921_v43  ;;  %2395 = vmatpush.msrb.mxu1 %v2073_v34  ;;  %v2736_v43 = vld [vmem:[#allocation6 + $0x3c8] sm:$0xff]  ;;  %v2727_v34 = vld [vmem:[#allocation6 + $0x380] sm:$0xff] }
 0x28c   :  { %2418 = vmatpush.msrb.mxu2 %v1922_v6  ;;  %2435 = vmatpush.msrb.mxu3 %v2074_v54  ;;  %v2719_v6 = vld [vmem:[#allocation6 + $0x340] sm:$0xff]  ;;  %v2720_v54 = vld [vmem:[#allocation6 + $0x348] sm:$0xff] }
 0x28d   :  { %2379 = vmatpush.msrb.mxu0 %v1913_v47  ;;  %2396 = vmatpush.msrb.mxu1 %v2065_v42  ;;  %v2711_v42 = vld [vmem:[#allocation6 + $0x300] sm:$0xff] }
 0x28e   :  { %2419 = vmatpush.msrb.mxu2 %v1914_v40  ;;  %2436 = vmatpush.msrb.mxu3 %v2066_v50  ;;  %v2863_v40 = vld [vmem:[#allocation6 + $0x7c0] sm:$0xff]  ;;  %v2712_v50 = vld [vmem:[#allocation6 + $0x308] sm:$0xff] }
 0x28f   :  { %2380 = vmatpush.msrb.mxu0 %v1905_v56  ;;  %2397 = vmatpush.msrb.mxu1 %v2057_v60  ;;  %v2703_v60 = vld [vmem:[#allocation6 + $0x2c0] sm:$0xff] }
 0x290   :  { %2420 = vmatpush.msrb.mxu2 %v1906_v52  ;;  %2437 = vmatpush.msrb.mxu3 %v2058_v3  ;;  %v2855_v52 = vld [vmem:[#allocation6 + $0x780] sm:$0xff]  ;;  %v2704_v3 = vld [vmem:[#allocation6 + $0x2c8] sm:$0xff] }
 0x291   :  { %2381 = vmatpush.msrb.mxu0 %v1897_v28  ;;  %2398 = vmatpush.msrb.mxu1 %v2049_v29  ;;  %v2856_v28 = vld [vmem:[#allocation6 + $0x788] sm:$0xff]  ;;  %v2695_v29 = vld [vmem:[#allocation6 + $0x280] sm:$0xff] }
 0x292   :  { %2421 = vmatpush.msrb.mxu2 %v1898_v11  ;;  %2438 = vmatpush.msrb.mxu3 %v2050_v9  ;;  %v2847_v11 = vld [vmem:[#allocation6 + $0x740] sm:$0xff]  ;;  %v2696_v9 = vld [vmem:[#allocation6 + $0x288] sm:$0xff] }
 0x293   :  { %2382 = vmatpush.msrb.mxu0 %v1889_v8  ;;  %2399 = vmatpush.msrb.mxu1 %v2041_v10  ;;  %v2848_v10 = vld [vmem:[#allocation6 + $0x748] sm:$0xff] }
 0x294   :  { %2422 = vmatpush.msrb.mxu2 %v1890_v48  ;;  %2439 = vmatpush.msrb.mxu3 %v2042_v57  ;;  %v2687_v48 = vld [vmem:[#allocation6 + $0x240] sm:$0xff] }
 0x295   :  { %2383 = vmatpush.msrb.mxu0 %v1881_v20  ;;  %2400 = vmatpush.msrb.mxu1 %v2033_v16  ;;  %v2839_v57 = vld [vmem:[#allocation6 + $0x700] sm:$0xff]  ;;  %v2688_v20 = vld [vmem:[#allocation6 + $0x248] sm:$0xff] }
 0x296   :  { %2423 = vmatpush.msrb.mxu2 %v1882_v22  ;;  %2440 = vmatpush.msrb.mxu3 %v2034_v35  ;;  %v2840_v22 = vld [vmem:[#allocation6 + $0x708] sm:$0xff]  ;;  %v2679_v35 = vld [vmem:[#allocation6 + $0x200] sm:$0xff] }
 0x297   :  { %2384 = vmatpush.msrb.mxu0 %v1873_v37  ;;  %2401 = vmatpush.msrb.mxu1 %v2025_v55  ;;  %v2831_v37 = vld [vmem:[#allocation6 + $0x6c0] sm:$0xff]  ;;  %v2680_v55 = vld [vmem:[#allocation6 + $0x208] sm:$0xff] }
 0x298   :  { %2424 = vmatpush.msrb.mxu2 %v1874_v36  ;;  %2441 = vmatpush.msrb.mxu3 %v2026_v27  ;;  %v2832_v27 = vld [vmem:[#allocation6 + $0x6c8] sm:$0xff] }
 0x299   :  { %2385 = vmatmul.f32.vlgmr.msrb.gmra.mxu0 %v9192_v61  ;;  %2425 = vmatmul.f32.vlgmr.msrb.gmra.mxu2 %v9192_v61  ;;  %v2728_v61 = vld [vmem:[#allocation6 + $0x388] sm:$0xff] }
 0x29a   :  { %2402 = vmatpush.msrb.mxu1 %v2017_v39  ;;  %2442 = vmatpush.msrb.mxu3 %v2018_v63  ;;  %v2671_v39 = vld [vmem:[#allocation6 + $0x1c0] sm:$0xff] }
 0x29b   :  { %2877 = vmatpush.msra.mxu0 %v2735_v14  ;;  %2917 = vmatpush.msra.mxu2 %v2736_v43  ;;  %v2823_v63 = vld [vmem:[#allocation6 + $0x680] sm:$0xff] }
 0x29c   :  { %2403 = vmatpush.msrb.mxu1 %v2009_v17  ;;  %2443 = vmatpush.msrb.mxu3 %v2010_v4  ;;  %v2672_v17 = vld [vmem:[#allocation6 + $0x1c8] sm:$0xff]  ;;  %v2663_v43 = vld [vmem:[#allocation6 + $0x180] sm:$0xff] }
 0x29d   :  { %2878 = vmatpush.msra.mxu0 %v2727_v34  ;;  %2918 = vmatpush.msra.mxu2 %v2728_v61  ;;  %v2824_v4 = vld [vmem:[#allocation6 + $0x688] sm:$0xff]  ;;  %v2815_v34 = vld [vmem:[#allocation6 + $0x640] sm:$0xff] }
 0x29e   :  { %2404 = vmatpush.msrb.mxu1 %v2001_v21  ;;  %2444 = vmatpush.msrb.mxu3 %v2002_v12  ;;  %v2664_v61 = vld [vmem:[#allocation6 + $0x188] sm:$0xff] }
 0x29f   :  { %2405 = vmatmul.f32.vlgmr.msrb.gmra.mxu1 %v9196_v2  ;;  %2445 = vmatmul.f32.vlgmr.msrb.gmra.mxu3 %v9196_v2  ;;  %v2864_v2 = vld [vmem:[#allocation6 + $0x7c8] sm:$0xff] }
 0x2a0   :  { %2879 = vmatpush.msra.mxu0 %v2719_v6  ;;  %2919 = vmatpush.msra.mxu2 %v2720_v54  ;;  %v2816_v6 = vld [vmem:[#allocation6 + $0x648] sm:$0xff]  ;;  %v2655_v54 = vld [vmem:[#allocation6 + $0x140] sm:$0xff] }
 0x2a1   :  { %2897 = vmatpush.msra.mxu1 %v2863_v40  ;;  %2937 = vmatpush.msra.mxu3 %v2864_v2  ;;  %v2656_v40 = vld [vmem:[#allocation6 + $0x148] sm:$0xff] }
 0x2a2   :  { %2880 = vmatpush.msra.mxu0 %v2711_v42  ;;  %2920 = vmatpush.msra.mxu2 %v2712_v50  ;;  %v2807_v42 = vld [vmem:[#allocation6 + $0x600] sm:$0xff]  ;;  %v2808_v50 = vld [vmem:[#allocation6 + $0x608] sm:$0xff] }
 0x2a3   :  { %2898 = vmatpush.msra.mxu1 %v2855_v52  ;;  %2938 = vmatpush.msra.mxu3 %v2856_v28  ;;  %v2648_v52 = vld [vmem:[#allocation6 + $0x108] sm:$0xff] }
 0x2a4   :  { %2881 = vmatpush.msra.mxu0 %v2703_v60  ;;  %2921 = vmatpush.msra.mxu2 %v2704_v3  ;;  %v2799_v60 = vld [vmem:[#allocation6 + $0x5c0] sm:$0xff]  ;;  %v2800_v28 = vld [vmem:[#allocation6 + $0x5c8] sm:$0xff] }
 0x2a5   :  { %2899 = vmatpush.msra.mxu1 %v2847_v11  ;;  %2939 = vmatpush.msra.mxu3 %v2848_v10  ;;  %v2639_v10 = vld [vmem:[#allocation6 + $0xc0] sm:$0xff] }
 0x2a6   :  { %2882 = vmatpush.msra.mxu0 %v2695_v29  ;;  %2922 = vmatpush.msra.mxu2 %v2696_v9 }
 0x2a7   :  { %2900 = vmatpush.msra.mxu1 %v2839_v57  ;;  %2940 = vmatpush.msra.mxu3 %v2840_v22  ;;  %v2640_v57 = vld [vmem:[#allocation6 + $0xc8] sm:$0xff] }
 0x2a8   :  { %2883 = vmatpush.msra.mxu0 %v2687_v48  ;;  %2923 = vmatpush.msra.mxu2 %v2688_v20  ;;  %v2791_v48 = vld [vmem:[#allocation6 + $0x580] sm:$0xff]  ;;  %v2792_v22 = vld [vmem:[#allocation6 + $0x588] sm:$0xff] }
 0x2a9   :  { %2901 = vmatpush.msra.mxu1 %v2831_v37  ;;  %2941 = vmatpush.msra.mxu3 %v2832_v27  ;;  %v2631_v37 = vld [vmem:[#allocation6 + $0x80] sm:$0xff] }
 0x2aa   :  { %2884 = vmatpush.msra.mxu0 %v2679_v35  ;;  %2924 = vmatpush.msra.mxu2 %v2680_v55 }
 0x2ab   :  { %2902 = vmatpush.msra.mxu1 %v2823_v63  ;;  %2942 = vmatpush.msra.mxu3 %v2824_v4  ;;  %v2775_v63 = vld [vmem:[#allocation6 + $0x500] sm:$0xff] }
 0x2ac   :  { %2885 = vmatpush.msra.mxu0 %v2671_v39  ;;  %2925 = vmatpush.msra.mxu2 %v2672_v17  ;;  %v2623_v39 = vld [vmem:[#allocation6 + $0x40] sm:$0xff]  ;;  %v2624_v17 = vld [vmem:[#allocation6 + $0x48] sm:$0xff] }
 0x2ad   :  { %2903 = vmatpush.msra.mxu1 %v2815_v34  ;;  %2943 = vmatpush.msra.mxu3 %v2816_v6  ;;  %v2616_v34 = vld [vmem:[#allocation6 + $0x8] sm:$0xff] }
 0x2ae   :  { %2886 = vmatpush.msra.mxu0 %v2663_v43  ;;  %2926 = vmatpush.msra.mxu2 %v2664_v61  ;;  %v2767_v43 = vld [vmem:[#allocation6 + $0x4c0] sm:$0xff]  ;;  %v2768_v6 = vld [vmem:[#allocation6 + $0x4c8] sm:$0xff] }
 0x2af   :  { %2904 = vmatpush.msra.mxu1 %v2807_v42  ;;  %2944 = vmatpush.msra.mxu3 %v2808_v50  ;;  %v2738_v42 = vld [vmem:[#allocation6 + $0x3d8] sm:$0xff]  ;;  %v2759_v50 = vld [vmem:[#allocation6 + $0x480] sm:$0xff] }
 0x2b0   :  { %2887 = vmatpush.msra.mxu0 %v2655_v54  ;;  %2927 = vmatpush.msra.mxu2 %v2656_v40  ;;  %v2737_v54 = vld [vmem:[#allocation6 + $0x3d0] sm:$0xff] }
 0x2b1   :  { %2905 = vmatpush.msra.mxu1 %v2799_v60  ;;  %2945 = vmatpush.msra.mxu3 %v2800_v28  ;;  %v2751_v60 = vld [vmem:[#allocation6 + $0x440] sm:$0xff]  ;;  %v2721_v28 = vld [vmem:[#allocation6 + $0x350] sm:$0xff] }
 0x2b2   :  { %2928 = vmatpush.msra.mxu2 %v2648_v52  ;;  %v2752_v52 = vld [vmem:[#allocation6 + $0x448] sm:$0xff] }
 0x2b3   :  { %2906 = vmatpush.msra.mxu1 %v2791_v48  ;;  %2946 = vmatpush.msra.mxu3 %v2792_v22  ;;  %v2713_v48 = vld [vmem:[#allocation6 + $0x310] sm:$0xff]  ;;  %v2866_v22 = vld [vmem:[#allocation6 + $0x7d8] sm:$0xff] }
 0x2b4   :  { %2929 = vmatpush.msra.mxu2 %v2640_v57  ;;  %v2865_v57 = vld [vmem:[#allocation6 + $0x7d0] sm:$0xff] }
 0x2d1   :  { %v2146_v56 = vpop.f32.mrf.mxu0 }
 0x2d7   :  { %v2166_v47 = vpop.f32.mrf.mxu1  ;;  %v2186_v16 = vpop.f32.mrf.mxu2 }
 0x2d8   :  { %v2167_v21 = vadd.f32 %v2166_v47, %v2146_v56  ;;  %v2647_v56 = vld [vmem:[#allocation6 + $0x100] sm:$0xff] }
 0x2d9   :  { %2888 = vmatpush.msra.mxu0 %v2647_v56  ;;  %v2730_v56 = vld [vmem:[#allocation6 + $0x398] sm:$0xff] }
 0x2da   :  { %v2226_v12 = vpop.f32.mrf.mxu0  ;;  %v2457_v2 = vrot.slane %v2167_v21, 4  ;;  %v2776_v21 = vld [vmem:[#allocation6 + $0x508] sm:$0xff] }
 0x2db   :  { %2889 = vmatpush.msra.mxu0 %v2639_v10  ;;  %v2744_v10 = vld [vmem:[#allocation6 + $0x408] sm:$0xff] }
 0x2dc   :  { %v2473_v20 = vadd.f32 %v2457_v2, %v8939_v38  ;;  %v2760_v2 = vld [vmem:[#allocation6 + $0x488] sm:$0xff] }
 0x2dd   :  { %v2206_v8 = vpop.f32.mrf.mxu3  ;;  %2890 = vmatpush.msra.mxu0 %v2631_v37  ;;  %v2705_v37 = vld [vmem:[#allocation6 + $0x2d0] sm:$0xff] }
 0x2de   :  { %v2207_v29 = vadd.f32 %v2206_v8, %v2186_v16  ;;  %v2783_v8 = vld [vmem:[#allocation6 + $0x540] sm:$0xff]  ;;  %v2632_v16 = vld [vmem:[#allocation6 + $0x88] sm:$0xff]  ;;  %v8093_v4 = vmul.f32 -1.442695, %v2473_v20  ;;  %v2714_v20 = vld [vmem:[#allocation6 + $0x318] sm:$0xff] }
 0x2df   :  { %2907 = vmatpush.msra.mxu1 %v2783_v8  ;;  %2930 = vmatpush.msra.mxu2 %v2632_v16  ;;  %v2857_v8 = vld [vmem:[#allocation6 + $0x790] sm:$0xff]  ;;  %v2706_v16 = vld [vmem:[#allocation6 + $0x2d8] sm:$0xff] }
 0x2e0   :  { %v2266_v11 = vpop.f32.mrf.mxu2  ;;  %v2458_v55 = vrot.slane %v2207_v29, 4  ;;  %2891 = vmatpush.msra.mxu0 %v2623_v39  ;;  %8295 = vpow2.f32 %v8093_v4  ;;  %v2722_v29 = vld [vmem:[#allocation6 + $0x358] sm:$0xff]  ;;  %v2849_v39 = vld [vmem:[#allocation6 + $0x750] sm:$0xff] }
 0x2e1   :  { %v2246_v36 = vpop.f32.mrf.mxu1  ;;  %2908 = vmatpush.msra.mxu1 %v2775_v63  ;;  %2931 = vmatpush.msra.mxu2 %v2624_v17  ;;  %v2698_v63 = vld [vmem:[#allocation6 + $0x298] sm:$0xff] }
 0x2e2   :  { %v2247_v14 = vadd.f32 %v2246_v36, %v2226_v12  ;;  %v2784_v36 = vld [vmem:[#allocation6 + $0x548] sm:$0xff]  ;;  %v2474_v61 = vadd.f32 %v2458_v55, %v8953_v0  ;;  %v2850_v4 = vld [vmem:[#allocation6 + $0x758] sm:$0xff] }
 0x2e3   :  { %2947 = vmatpush.msra.mxu3 %v2784_v36  ;;  %2909 = vmatpush.msra.mxu1 %v2767_v43  ;;  %v2858_v36 = vld [vmem:[#allocation6 + $0x798] sm:$0xff] }
 0x2e4   :  { %v2459_v3 = vrot.slane %v2247_v14, 4  ;;  %v2615_v14 = vld [vmem:[#allocation6] sm:$0xff]  ;;  %2932 = vmatpush.msra.mxu2 %v2616_v34  ;;  %v2690_v43 = vld [vmem:[#allocation6 + $0x258] sm:$0xff] }
 0x2e5   :  { %2948 = vmatpush.msra.mxu3 %v2776_v21  ;;  %2892 = vmatpush.msra.mxu0 %v2615_v14  ;;  %v2841_v14 = vld [vmem:[#allocation6 + $0x710] sm:$0xff]  ;;  %v2842_v34 = vld [vmem:[#allocation6 + $0x718] sm:$0xff] }
 0x2e6   :  { %v2475_v35 = vadd.f32 %v2459_v3, %v8944_v44  ;;  %2997 = vmatpush.msrb.mxu2 %v2738_v42  ;;  %2910 = vmatpush.msra.mxu1 %v2759_v50  ;;  %v8094_v3 = vmul.f32 -1.442695, %v2474_v61  ;;  %v2682_v42 = vld [vmem:[#allocation6 + $0x218] sm:$0xff] }
 0x2e7   :  { %v2286_v47 = vpop.f32.mrf.mxu3  ;;  %2949 = vmatpush.msra.mxu3 %v2768_v6  ;;  %2957 = vmatpush.msrb.mxu0 %v2737_v54  ;;  %v2681_v6 = vld [vmem:[#allocation6 + $0x210] sm:$0xff]  ;;  %v2834_v50 = vld [vmem:[#allocation6 + $0x6d8] sm:$0xff] }
 0x2e8   :  { %v2287_v9 = vadd.f32 %v2286_v47, %v2266_v11  ;;  %v8095_v12 = vmul.f32 -1.442695, %v2475_v35  ;;  %v2729_v47 = vld [vmem:[#allocation6 + $0x390] sm:$0xff]  ;;  %2998 = vmatpush.msrb.mxu2 %v2730_v56  ;;  %2911 = vmatpush.msra.mxu1 %v2751_v60  ;;  %v8296_v35 = vpop.eup %8295  ;;  %v2674_v56 = vld [vmem:[#allocation6 + $0x1d8] sm:$0xff] }
 0x2e9   :  { %2950 = vmatpush.msra.mxu3 %v2760_v2  ;;  %2958 = vmatpush.msrb.mxu0 %v2729_v47  ;;  %v9216_v17 = vadd.f32 1.0, %v8296_v35  ;;  %v2833_v54 = vld [vmem:[#allocation6 + $0x6d0] sm:$0xff] }
 0x2ea   :  { %v2460_v27 = vrot.slane %v2287_v9, 4  ;;  %8297 = vpow2.f32 %v8095_v12  ;;  %v2743_v9 = vld [vmem:[#allocation6 + $0x400] sm:$0xff]  ;;  %2999 = vmatpush.msrb.mxu2 %v2722_v29  ;;  %v2689_v12 = vld [vmem:[#allocation6 + $0x250] sm:$0xff] }
 0x2eb   :  { %2951 = vmatpush.msra.mxu3 %v2752_v52  ;;  %2959 = vmatpush.msrb.mxu0 %v2721_v28  ;;  %8299 = vpow2.f32 %v8094_v3  ;;  %v2673_v2 = vld [vmem:[#allocation6 + $0x1d0] sm:$0xff]  ;;  %v2826_v28 = vld [vmem:[#allocation6 + $0x698] sm:$0xff]  ;;  %vm2494_vm4 = vweird.f32 %v9216_v17 }
 0x2ec   :  { %v2476_v40 = vadd.f32 %v2460_v27, %v8958_v5  ;;  %2912 = vmatpush.msra.mxu1 %v2743_v9  ;;  %3000 = vmatpush.msrb.mxu2 %v2714_v20  ;;  %v2697_v27 = vld [vmem:[#allocation6 + $0x290] sm:$0xff] }
 0x2ed   :  { %2952 = vmatpush.msra.mxu3 %v2744_v10  ;;  %2960 = vmatpush.msrb.mxu0 %v2713_v48  ;;  %v2825_v47 = vld [vmem:[#allocation6 + $0x690] sm:$0xff]  ;;  %v2666_v10 = vld [vmem:[#allocation6 + $0x198] sm:$0xff] }
 0x2ee   :  { %v8096_v11 = vmul.f32 -1.442695, %v2476_v40  ;;  %2977 = vmatpush.msrb.mxu1 %v2865_v57  ;;  %3001 = vmatpush.msrb.mxu2 %v2706_v16  ;;  %v2817_v9 = vld [vmem:[#allocation6 + $0x650] sm:$0xff]  ;;  %v2818_v48 = vld [vmem:[#allocation6 + $0x658] sm:$0xff] }
 0x2ef   :  { %3017 = vmatpush.msrb.mxu3 %v2866_v22  ;;  %2961 = vmatpush.msrb.mxu0 %v2705_v37  ;;  %v2657_v57 = vld [vmem:[#allocation6 + $0x150] sm:$0xff]  ;;  %v2658_v22 = vld [vmem:[#allocation6 + $0x158] sm:$0xff] }
 0x2f0   :  { %v8298_v55 = vpop.eup %8297  ;;  %8301 = vpow2.f32 %v8096_v11  ;;  %2978 = vmatpush.msrb.mxu1 %v2857_v8  ;;  %3002 = vmatpush.msrb.mxu2 %v2698_v63  ;;  %v2665_v11 = vld [vmem:[#allocation6 + $0x190] sm:$0xff]  ;;  %v2810_v37 = vld [vmem:[#allocation6 + $0x618] sm:$0xff] }
 0x2f1   :  { %3018 = vmatpush.msrb.mxu3 %v2858_v36  ;;  %v9218_v21 = vadd.f32 1.0, %v8298_v55  ;;  %2962 = vmatpush.msrb.mxu0 %v2697_v27  ;;  %v8300_v61 = vpop.eup %8299  ;;  %8303 = vrcp.f32 %v9216_v17  ;;  %v2809_v20 = vld [vmem:[#allocation6 + $0x610] sm:$0xff]  ;;  %v2650_v36 = vld [vmem:[#allocation6 + $0x118] sm:$0xff] }
 0x2f2   :  { %2979 = vmatpush.msrb.mxu1 %v2849_v39  ;;  %3003 = vmatpush.msrb.mxu2 %v2690_v43  ;;  %v9222_v60 = vadd.f32 1.0, %v8300_v61  ;;  %v2649_v16 = vld [vmem:[#allocation6 + $0x110] sm:$0xff]  ;;  %v2802_v63 = vld [vmem:[#allocation6 + $0x5d8] sm:$0xff] }
 0x2f3   :  { %3019 = vmatpush.msrb.mxu3 %v2850_v4  ;;  %2963 = vmatpush.msrb.mxu0 %v2689_v12  ;;  %8305 = vrcp.f32 %v9218_v21  ;;  %v2801_v55 = vld [vmem:[#allocation6 + $0x5d0] sm:$0xff]  ;;  %v2642_v43 = vld [vmem:[#allocation6 + $0xd8] sm:$0xff]  ;;  %vm2532_vm5 = vweird.f32 %v9218_v21 }
 0x2f4   :  { %2980 = vmatpush.msrb.mxu1 %v2841_v14  ;;  %v2306_v52 = vpop.f32.mrf.mxu0  ;;  %3004 = vmatpush.msrb.mxu2 %v2682_v42  ;;  %8307 = vrcp.f32 %v9222_v60  ;;  %v2641_v12 = vld [vmem:[#allocation6 + $0xd0] sm:$0xff]  ;;  %v2794_v42 = vld [vmem:[#allocation6 + $0x598] sm:$0xff]  ;;  %vm2509_vm9 = vweird.f32 %v9222_v60 }
 0x2f5   :  { %3020 = vmatpush.msrb.mxu3 %v2842_v34  ;;  %2964 = vmatpush.msrb.mxu0 %v2681_v6  ;;  %v2793_v14 = vld [vmem:[#allocation6 + $0x590] sm:$0xff] }
 0x2f6   :  { %v8302_v40 = vpop.eup %8301  ;;  %2981 = vmatpush.msrb.mxu1 %v2833_v54  ;;  %3005 = vmatpush.msrb.mxu2 %v2674_v56 }
 0x2f7   :  { %3021 = vmatpush.msrb.mxu3 %v2834_v50  ;;  %v9224_v29 = vadd.f32 1.0, %v8302_v40  ;;  %2965 = vmatpush.msrb.mxu0 %v2673_v2  ;;  %v9226_v35 = vpop.eup %8303  ;;  %v2633_v50 = vld [vmem:[#allocation6 + $0x90] sm:$0xff] }
 0x2f8   :  { %2982 = vmatpush.msrb.mxu1 %v2825_v47  ;;  %3006 = vmatpush.msrb.mxu2 %v2666_v10  ;;  %v2490_v34 = vmul.f32 %v9226_v35, %v9216_v17  ;;  %v2785_v2 = vld [vmem:[#allocation6 + $0x550] sm:$0xff]  ;;  %v2634_v47 = vld [vmem:[#allocation6 + $0x98] sm:$0xff]  ;;  %vm2495_vm2 = vweird.f32 %v9226_v35 }
 0x2f9   :  { %3022 = vmatpush.msrb.mxu3 %v2826_v28  ;;  %2966 = vmatpush.msrb.mxu0 %v2665_v11  ;;  %v9229_v8 = vpop.eup %8305  ;;  %8309 = vrcp.f32 %v9224_v29  ;;  %v2777_v10 = vld [vmem:[#allocation6 + $0x510] sm:$0xff]  ;;  %vm9263_vm6 = vmor %vm2494_vm4, %vm2495_vm2  ;;  %vm2547_vm13 = vweird.f32 %v9224_v29 }
 0x2fa   :  { %2983 = vmatpush.msrb.mxu1 %v2817_v9  ;;  %v2346_v27 = vpop.f32.mrf.mxu2  ;;  %3007 = vmatpush.msrb.mxu2 %v2658_v22  ;;  %v2528_v61 = vmul.f32 %v9229_v8, %v9218_v21  ;;  %v9236_v56 = vpop.eup %8307  ;;  %v2625_v9 = vld [vmem:[#allocation6 + $0x50] sm:$0xff]  ;;  %v2778_v22 = vld [vmem:[#allocation6 + $0x518] sm:$0xff]  ;;  %vm2533_vm3 = vweird.f32 %v9229_v8 }
 0x2fb   :  { %v2326_v3 = vpop.f32.mrf.mxu1  ;;  %3023 = vmatpush.msrb.mxu3 %v2818_v48  ;;  %2967 = vmatpush.msrb.mxu0 %v2657_v57  ;;  %v2626_v48 = vld [vmem:[#allocation6 + $0x58] sm:$0xff]  ;;  %v2491_v57 = vsub.f32 1.0, %v2490_v34  ;;  %vm9271_vm7 = vmor %vm2532_vm5, %vm2533_vm3  ;;  %vm2510_vm11 = vweird.f32 %v9236_v56 }
 0x2fc   :  { %2984 = vmatpush.msrb.mxu1 %v2809_v20  ;;  %v2327_v4 = vadd.f32 %v2326_v3, %v2306_v52  ;;  %3008 = vmatpush.msrb.mxu2 %v2650_v36  ;;  %v2786_v52 = vld [vmem:[#allocation6 + $0x558] sm:$0xff]  ;;  %v2529_v20 = vsub.f32 1.0, %v2528_v61  ;;  %v2769_v36 = vld [vmem:[#allocation6 + $0x4d0] sm:$0xff]  ;;  %vm9297_vm14 = vmor %vm2509_vm9, %vm2510_vm11 }
 0x2fd   :  { %3024 = vmatpush.msrb.mxu3 %v2810_v37  ;;  %2968 = vmatpush.msrb.mxu0 %v2649_v16  ;;  %v2770_v34 = vld [vmem:[#allocation6 + $0x4d8] sm:$0xff] }
 0x2fe   :  { %2985 = vmatpush.msrb.mxu1 %v2801_v55  ;;  %3009 = vmatpush.msrb.mxu2 %v2642_v43  ;;  %v2461_v28 = vrot.slane %v2327_v4, 4  ;;  %v2617_v55 = vld [vmem:[#allocation6 + $0x10] sm:$0xff]  ;;  %v2505_v4 = vmul.f32 %v9236_v56, %v9222_v60 }
 0x2ff   :  { %3025 = vmatpush.msrb.mxu3 %v2802_v63  ;;  %2969 = vmatpush.msrb.mxu0 %v2641_v12  ;;  %v9238_v3 = vpop.eup %8309  ;;  %v2618_v63 = vld [vmem:[#allocation6 + $0x18] sm:$0xff] }
 0x300   :  { %2986 = vmatpush.msrb.mxu1 %v2793_v14  ;;  %3010 = vmatpush.msrb.mxu2 %v2634_v47  ;;  %v2543_v12 = vmul.f32 %v9238_v3, %v9224_v29  ;;  %v2506_v47 = vsub.f32 1.0, %v2505_v4  ;;  %vm2548_vm12 = vweird.f32 %v9238_v3 }
 0x301   :  { %v2366_v39 = vpop.f32.mrf.mxu3  ;;  %3026 = vmatpush.msrb.mxu3 %v2794_v42  ;;  %2970 = vmatpush.msrb.mxu0 %v2633_v50  ;;  %v2761_v42 = vld [vmem:[#allocation6 + $0x490] sm:$0xff]  ;;  %vm2549_vm15 = vmor %vm2547_vm13, %vm2548_vm12 }
 0x302   :  { %2987 = vmatpush.msrb.mxu1 %v2785_v2  ;;  %v2367_v37 = vadd.f32 %v2366_v39, %v2346_v27  ;;  %3011 = vmatpush.msrb.mxu2 %v2626_v48  ;;  %v2477_v27 = vadd.f32 %v2461_v28, %v8996_v15  ;;  %v2498_v28 = vand.u32 2147483647, %v9216_v17 }
 0x303   :  { %3027 = vmatpush.msrb.mxu3 %v2786_v52  ;;  %2971 = vmatpush.msrb.mxu0 %v2625_v9  ;;  %v2544_v52 = vsub.f32 1.0, %v2543_v12  ;;  %v2754_v9 = vld [vmem:[#allocation6 + $0x458] sm:$0xff]  ;;  %v2507_v12 = vmul.f32 %v9236_v56, %v2506_v47 }
 0x304   :  { %2988 = vmatpush.msrb.mxu1 %v2777_v10  ;;  %3012 = vmatpush.msrb.mxu2 %v2618_v63  ;;  %v2462_v50 = vrot.slane %v2367_v37, 4  ;;  %v2500_v10 = vand.u32 2147483648, %v9216_v17  ;;  %v2746_v37 = vld [vmem:[#allocation6 + $0x418] sm:$0xff]  ;;  %vm9275_vm8 = vcmp.eq.f32.partialorder %v2498_v28, 8.507059e+37  ;;  %v2513_v28 = vand.u32 2147483647, %v9222_v60 }
 0x305   :  { %3028 = vmatpush.msrb.mxu3 %v2778_v22  ;;  %2972 = vmatpush.msrb.mxu0 %v2617_v55  ;;  %v2745_v22 = vld [vmem:[#allocation6 + $0x410] sm:$0xff]  ;;  %v2536_v55 = vand.u32 2147483647, %v9218_v21  ;;  %v2545_v4 = vmul.f32 %v9238_v3, %v2544_v52  ;;  %v2740_v52 = vld [vmem:[#allocation6 + $0x3e8] sm:$0xff] }
 0x306   :  { %2989 = vmatpush.msrb.mxu1 %v2769_v36  ;;  %v2478_v36 = vadd.f32 %v2462_v50, %v9011_v58  ;;  %vm2514_vm0 = vcmp.eq.f32.partialorder %v2513_v28, 8.507059e+37 }
 0x307   :  { %3029 = vmatpush.msrb.mxu3 %v2770_v34  ;;  %vm2537_vm10 = vcmp.eq.f32.partialorder %v2536_v55, 8.507059e+37 }
 0x308   :  { %2990 = vmatpush.msrb.mxu1 %v2761_v42  ;;  %v2508_v42 = vadd.f32 %v9236_v56, %v2507_v12 }
 0x316   :  { %v2386_v6 = vpop.f32.mrf.mxu0 }
 0x31c   :  { %v2406_v54 = vpop.f32.mrf.mxu1  ;;  %v2426_v14 = vpop.f32.mrf.mxu2 }
 0x31d   :  { %v2407_v40 = vadd.f32 %v2406_v54, %v2386_v6  ;;  %v2530_v6 = vmul.f32 %v9229_v8, %v2529_v20  ;;  %v2492_v54 = vmul.f32 %v9226_v35, %v2491_v57 }
 0x31f   :  { %v2463_v11 = vrot.slane %v2407_v40, 4  ;;  %v2762_v40 = vld [vmem:[#allocation6 + $0x498] sm:$0xff]  ;;  %v2493_v57 = vadd.f32 %v9226_v35, %v2492_v54  ;;  %v2531_v20 = vadd.f32 %v9229_v8, %v2530_v6 }
 0x320   :  { %3030 = vmatpush.msrb.mxu3 %v2762_v40  ;;  %v2546_v40 = vadd.f32 %v9238_v3, %v2545_v4  ;;  %v2600_v4 = vrot.slane %v9189_v19, 6 }
 0x321   :  { %v2479_v16 = vadd.f32 %v2463_v11, %v8989_v1  ;;  %v2753_v11 = vld [vmem:[#allocation6 + $0x450] sm:$0xff] }
 0x322   :  { %v2446_v43 = vpop.f32.mrf.mxu3  ;;  %2991 = vmatpush.msrb.mxu1 %v2753_v11  ;;  %3031 = vmatpush.msrb.mxu3 %v2754_v9  ;;  %v2551_v11 = vand.u32 2147483647, %v9224_v29 }
 0x323   :  { %v8097_v39 = vmul.f32 -1.442695, %v2479_v16  ;;  %v2447_v61 = vadd.f32 %v2446_v43, %v2426_v14  ;;  %v2538_v16 = vand.u32 2147483648, %v9218_v21  ;;  %v2599_v43 = vrot.slane %v9185_v13, 6 }
 0x324   :  { %2992 = vmatpush.msrb.mxu1 %v2745_v22  ;;  %3032 = vmatpush.msrb.mxu3 %v2746_v37  ;;  %v2535_v13 = vsel %vm9271_vm7, %v9229_v8, %v2531_v20  ;;  %vm2552_vm1 = vcmp.eq.f32.partialorder %v2551_v11, 8.507059e+37 }
 0x325   :  { %8311 = vpow2.f32 %v8097_v39  ;;  %v2464_v2 = vrot.slane %v2447_v61, 4  ;;  %v2497_v39 = vsel %vm9263_vm6, %v9226_v35, %v2493_v57  ;;  %v2539_v54 = vor.u32 1.1754944e-38, %v2538_v16 }
 0x326   :  { %8313 = vtanh.f32 %v2477_v27  ;;  %v2501_v27 = vor.u32 1.1754944e-38, %v2500_v10  ;;  %v2553_v35 = vand.u32 2147483648, %v9224_v29  ;;  %v2550_v57 = vsel %vm2549_vm15, %v9238_v3, %v2546_v40 }
 0x327   :  { %v2480_v48 = vadd.f32 %v2464_v2, %v9016_v59  ;;  %v2540_v50 = vsel %vm2537_vm10, %v2539_v54, %v2535_v13  ;;  %v2515_v2 = vand.u32 2147483648, %v9222_v60 }
 0x328   :  { %v2502_v8 = vsel %vm9275_vm8, %v2501_v27, %v2497_v39  ;;  %v2603_v10 = vmul.f32 %v2599_v43, %v2540_v50  ;;  %v2554_v37 = vor.u32 1.1754944e-38, %v2553_v35 }
 0x329   :  { %v8098_v63 = vmul.f32 -1.442695, %v2480_v48  ;;  %v2512_v48 = vsel %vm9297_vm14, %v9236_v56, %v2508_v42  ;;  %v2516_v16 = vor.u32 1.1754944e-38, %v2515_v2 }
 0x32a   :  { %v2555_v29 = vsel %vm2552_vm1, %v2554_v37, %v2550_v57  ;;  %v2723_v37 = vld [vmem:[#allocation6 + $0x360] sm:$0xff] }
 0x32b   :  { %v8312_v14 = vpop.eup %8311  ;;  %8315 = vpow2.f32 %v8098_v63  ;;  %v2517_v60 = vsel %vm2514_vm0, %v2516_v16, %v2512_v48  ;;  %v2604_v56 = vmul.f32 %v2600_v4, %v2555_v29  ;;  %v2724_v16 = vld [vmem:[#allocation6 + $0x368] sm:$0xff]  ;;  %v2707_v4 = vld [vmem:[#allocation6 + $0x2e0] sm:$0xff] }
 0x32c   :  { %v2565_v61 = vadd.f32 1.0, %v8312_v14  ;;  %v8314_v6 = vpop.eup %8313  ;;  %8317 = vtanh.f32 %v2478_v36  ;;  %v2716_v29 = vld [vmem:[#allocation6 + $0x328] sm:$0xff] }
 0x32d   :  { %v2605_v47 = vmul.f32 %v8314_v6, %v2502_v8 }
 0x32e   :  { %8319 = vrcp.f32 %v2565_v61  ;;  %v2578_v3 = vand.u32 2147483648, %v2565_v61  ;;  %v2576_v43 = vand.u32 2147483647, %v2565_v61  ;;  %vm2572_vm3 = vweird.f32 %v2565_v61 }
 0x32f   :  { %v9307_v36 = vadd.f32 %v2605_v47, %v2603_v10  ;;  %v2732_v10 = vld [vmem:[#allocation6 + $0x3a8] sm:$0xff] }
 0x330   :  { %v2579_v13 = vor.u32 1.1754944e-38, %v2578_v3  ;;  %vm2577_vm5 = vcmp.eq.f32.partialorder %v2576_v43, 8.507059e+37  ;;  %v2699_v3 = vld [vmem:[#allocation6 + $0x2a0] sm:$0xff]  ;;  %v2700_v43 = vld [vmem:[#allocation6 + $0x2a8] sm:$0xff] }
 0x331   :  { %v8316_v9 = vpop.eup %8315 }
 0x332   :  { %v2566_v20 = vadd.f32 1.0, %v8316_v9  ;;  %v8318_v22 = vpop.eup %8317  ;;  %v2731_v9 = vld [vmem:[#allocation6 + $0x3a0] sm:$0xff] }
 0x333   :  { %v2606_v17 = vmul.f32 %v8318_v22, %v2517_v60  ;;  %v2867_v60 = vld [vmem:[#allocation6 + $0x7e0] sm:$0xff] }
 0x334   :  { %v8320_v55 = vpop.eup %8319  ;;  %8321 = vrcp.f32 %v2566_v20  ;;  %v2593_v40 = vand.u32 2147483648, %v2566_v20  ;;  %v2591_v50 = vand.u32 2147483647, %v2566_v20  ;;  %vm2587_vm7 = vweird.f32 %v2566_v20 }
 0x335   :  { %v2568_v63 = vmul.f32 %v8320_v55, %v2565_v61  ;;  %8323 = vtanh.f32 %v9307_v36  ;;  %vm2573_vm2 = vweird.f32 %v8320_v55  ;;  %v9311_v21 = vadd.f32 %v2606_v17, %v2604_v56  ;;  %v2739_v61 = vld [vmem:[#allocation6 + $0x3e0] sm:$0xff]  ;;  %v2860_v56 = vld [vmem:[#allocation6 + $0x7a8] sm:$0xff] }
 0x336   :  { %vm2574_vm4 = vmor %vm2572_vm3, %vm2573_vm2  ;;  %v2594_v28 = vor.u32 1.1754944e-38, %v2593_v40  ;;  %vm2592_vm9 = vcmp.eq.f32.partialorder %v2591_v50, 8.507059e+37  ;;  %v2859_v17 = vld [vmem:[#allocation6 + $0x7a0] sm:$0xff]  ;;  %v2836_v40 = vld [vmem:[#allocation6 + $0x6e8] sm:$0xff] }
 0x337   :  { %v2569_v12 = vsub.f32 1.0, %v2568_v63  ;;  %8325 = vtanh.f32 %v9311_v21  ;;  %v2868_v63 = vld [vmem:[#allocation6 + $0x7e8] sm:$0xff] }
 0x338   :  { %v2676_v50 = vld [vmem:[#allocation6 + $0x1e8] sm:$0xff] }
 0x339   :  { %v2570_v14 = vmul.f32 %v8320_v55, %v2569_v12  ;;  %v2708_v12 = vld [vmem:[#allocation6 + $0x2e8] sm:$0xff] }
 0x33a   :  { %v8322_v34 = vpop.eup %8321 }
 0x33b   :  { %v2571_v27 = vadd.f32 %v8320_v55, %v2570_v14  ;;  %v2583_v39 = vmul.f32 %v8322_v34, %v2566_v20  ;;  %v8324_v54 = vpop.eup %8323  ;;  %vm2588_vm6 = vweird.f32 %v8322_v34  ;;  %v2851_v14 = vld [vmem:[#allocation6 + $0x760] sm:$0xff] }
 0x33c   :  { %vm2589_vm8 = vmor %vm2587_vm7, %vm2588_vm6 }
 0x33d   :  { %v2575_v6 = vsel %vm2574_vm4, %v8320_v55, %v2571_v27  ;;  %v2584_v19 = vsub.f32 1.0, %v2583_v39  ;;  %v8326_v48 = vpop.eup %8325  ;;  %v2715_v55 = vld [vmem:[#allocation6 + $0x320] sm:$0xff] }
 0x33e   :  { %v2580_v42 = vsel %vm2577_vm5, %v2579_v13, %v2575_v6  ;;  %v2691_v27 = vld [vmem:[#allocation6 + $0x260] sm:$0xff]  ;;  %v2692_v13 = vld [vmem:[#allocation6 + $0x268] sm:$0xff] }
 0x33f   :  { %v2611_v35 = vmul.f32 %v8324_v54, %v2580_v42  ;;  %v2585_v8 = vmul.f32 %v8322_v34, %v2584_v19  ;;  %v2843_v39 = vld [vmem:[#allocation6 + $0x720] sm:$0xff]  ;;  %v2844_v6 = vld [vmem:[#allocation6 + $0x728] sm:$0xff] }
 0x340   :  { %v2683_v19 = vld [vmem:[#allocation6 + $0x220] sm:$0xff]  ;;  %v2684_v42 = vld [vmem:[#allocation6 + $0x228] sm:$0xff] }
 0x341   :  { %2613 = vst [vmem:[#allocation2 + $0x10] sm:$0x30] %v2611_v35  ;;  %v9314_v2 = vrot.slane %v2611_v35, 4  ;;  %v2586_v47 = vadd.f32 %v8322_v34, %v2585_v8  ;;  %v2835_v54 = vld [vmem:[#allocation6 + $0x6e0] sm:$0xff] }
 0x342   :  { %v2675_v35 = vld [vmem:[#allocation6 + $0x1e0] sm:$0xff] }
 0x343   :  { %v2590_v11 = vsel %vm2589_vm8, %v8322_v34, %v2586_v47  ;;  %2893 = vmatmul.f32.vlgmr.msra.gmra.mxu0 %v9314_v2  ;;  %2933 = vmatmul.f32.vlgmr.msra.gmra.mxu2 %v9314_v2  ;;  %v2852_v34 = vld [vmem:[#allocation6 + $0x768] sm:$0xff]  ;;  %v2827_v8 = vld [vmem:[#allocation6 + $0x6a0] sm:$0xff] }
 0x344   :  { %v2595_v57 = vsel %vm2592_vm9, %v2594_v28, %v2590_v11  ;;  %3037 = vmatpush.msra.mxu0 %v2739_v61  ;;  %3077 = vmatpush.msra.mxu2 %v2740_v52  ;;  %v2828_v47 = vld [vmem:[#allocation6 + $0x6a8] sm:$0xff]  ;;  %v2667_v61 = vld [vmem:[#allocation6 + $0x1a0] sm:$0xff] }
 0x345   :  { %v2612_v22 = vmul.f32 %v8326_v48, %v2595_v57  ;;  %v2819_v52 = vld [vmem:[#allocation6 + $0x660] sm:$0xff]  ;;  %v2668_v28 = vld [vmem:[#allocation6 + $0x1a8] sm:$0xff] }
 0x346   :  { %3038 = vmatpush.msra.mxu0 %v2731_v9  ;;  %3078 = vmatpush.msra.mxu2 %v2732_v10  ;;  %v2820_v11 = vld [vmem:[#allocation6 + $0x668] sm:$0xff]  ;;  %v2659_v9 = vld [vmem:[#allocation6 + $0x160] sm:$0xff] }
 0x347   :  { %2614 = vst [vmem:[#allocation2] sm:$0x30] %v2612_v22  ;;  %v9318_v20 = vrot.slane %v2612_v22, 4  ;;  %v2811_v10 = vld [vmem:[#allocation6 + $0x620] sm:$0xff]  ;;  %v2660_v48 = vld [vmem:[#allocation6 + $0x168] sm:$0xff] }
 0x348   :  { %3039 = vmatpush.msra.mxu0 %v2723_v37  ;;  %3079 = vmatpush.msra.mxu2 %v2724_v16  ;;  %v2812_v57 = vld [vmem:[#allocation6 + $0x628] sm:$0xff]  ;;  %v2651_v22 = vld [vmem:[#allocation6 + $0x120] sm:$0xff] }
 0x349   :  { %2913 = vmatmul.f32.vlgmr.msra.gmra.mxu1 %v9318_v20  ;;  %2953 = vmatmul.f32.vlgmr.msra.gmra.mxu3 %v9318_v20  ;;  %v2803_v37 = vld [vmem:[#allocation6 + $0x5e0] sm:$0xff]  ;;  %v2652_v16 = vld [vmem:[#allocation6 + $0x128] sm:$0xff] }
 0x34a   :  { %3040 = vmatpush.msra.mxu0 %v2715_v55  ;;  %3057 = vmatpush.msra.mxu1 %v2867_v60  ;;  %v2804_v55 = vld [vmem:[#allocation6 + $0x5e8] sm:$0xff]  ;;  %v2643_v60 = vld [vmem:[#allocation6 + $0xe0] sm:$0xff] }
 0x34b   :  { %3080 = vmatpush.msra.mxu2 %v2716_v29  ;;  %3097 = vmatpush.msra.mxu3 %v2868_v63  ;;  %v2795_v29 = vld [vmem:[#allocation6 + $0x5a0] sm:$0xff]  ;;  %v2644_v63 = vld [vmem:[#allocation6 + $0xe8] sm:$0xff] }
 0x34c   :  { %2973 = vmatmul.f32.vlgmr.msrb.gmra.mxu0 %v9314_v2  ;;  %3013 = vmatmul.f32.vlgmr.msrb.gmra.mxu2 %v9314_v2 }
 0x34d   :  { %3041 = vmatpush.msra.mxu0 %v2707_v4  ;;  %3058 = vmatpush.msra.mxu1 %v2859_v17  ;;  %v2796_v4 = vld [vmem:[#allocation6 + $0x5a8] sm:$0xff]  ;;  %v2635_v17 = vld [vmem:[#allocation6 + $0xa0] sm:$0xff] }
 0x34e   :  { %3081 = vmatpush.msra.mxu2 %v2708_v12  ;;  %3098 = vmatpush.msra.mxu3 %v2860_v56  ;;  %v2787_v12 = vld [vmem:[#allocation6 + $0x560] sm:$0xff]  ;;  %v2636_v56 = vld [vmem:[#allocation6 + $0xa8] sm:$0xff] }
 0x34f   :  { %3042 = vmatpush.msra.mxu0 %v2699_v3  ;;  %3059 = vmatpush.msra.mxu1 %v2851_v14  ;;  %v2788_v3 = vld [vmem:[#allocation6 + $0x568] sm:$0xff]  ;;  %v2627_v14 = vld [vmem:[#allocation6 + $0x60] sm:$0xff] }
 0x350   :  { %3082 = vmatpush.msra.mxu2 %v2700_v43  ;;  %3099 = vmatpush.msra.mxu3 %v2852_v34  ;;  %v2779_v43 = vld [vmem:[#allocation6 + $0x520] sm:$0xff]  ;;  %v2628_v34 = vld [vmem:[#allocation6 + $0x68] sm:$0xff] }
 0x351   :  { %3043 = vmatpush.msra.mxu0 %v2691_v27  ;;  %3060 = vmatpush.msra.mxu1 %v2843_v39  ;;  %v2780_v27 = vld [vmem:[#allocation6 + $0x528] sm:$0xff]  ;;  %v2619_v39 = vld [vmem:[#allocation6 + $0x20] sm:$0xff] }
 0x352   :  { %3083 = vmatpush.msra.mxu2 %v2692_v13  ;;  %3100 = vmatpush.msra.mxu3 %v2844_v6  ;;  %v2771_v13 = vld [vmem:[#allocation6 + $0x4e0] sm:$0xff]  ;;  %v2620_v6 = vld [vmem:[#allocation6 + $0x28] sm:$0xff] }
 0x353   :  { %2993 = vmatmul.f32.vlgmr.msrb.gmra.mxu1 %v9318_v20  ;;  %3033 = vmatmul.f32.vlgmr.msrb.gmra.mxu3 %v9318_v20 }
 0x354   :  { %3044 = vmatpush.msra.mxu0 %v2683_v19  ;;  %3061 = vmatpush.msra.mxu1 %v2835_v54  ;;  %v2772_v19 = vld [vmem:[#allocation6 + $0x4e8] sm:$0xff]  ;;  %v2741_v54 = vld [vmem:[#allocation6 + $0x3f0] sm:$0xff] }
 0x355   :  { %3084 = vmatpush.msra.mxu2 %v2684_v42  ;;  %3101 = vmatpush.msra.mxu3 %v2836_v40  ;;  %v2742_v42 = vld [vmem:[#allocation6 + $0x3f8] sm:$0xff]  ;;  %v2763_v40 = vld [vmem:[#allocation6 + $0x4a0] sm:$0xff] }
 0x356   :  { %3045 = vmatpush.msra.mxu0 %v2675_v35  ;;  %3062 = vmatpush.msra.mxu1 %v2827_v8  ;;  %v2764_v35 = vld [vmem:[#allocation6 + $0x4a8] sm:$0xff]  ;;  %v2733_v8 = vld [vmem:[#allocation6 + $0x3b0] sm:$0xff] }
 0x357   :  { %3085 = vmatpush.msra.mxu2 %v2676_v50  ;;  %3102 = vmatpush.msra.mxu3 %v2828_v47  ;;  %v2734_v50 = vld [vmem:[#allocation6 + $0x3b8] sm:$0xff]  ;;  %v2755_v47 = vld [vmem:[#allocation6 + $0x460] sm:$0xff] }
 0x358   :  { %3046 = vmatpush.msra.mxu0 %v2667_v61  ;;  %3063 = vmatpush.msra.mxu1 %v2819_v52  ;;  %v2756_v61 = vld [vmem:[#allocation6 + $0x468] sm:$0xff]  ;;  %v2725_v52 = vld [vmem:[#allocation6 + $0x370] sm:$0xff] }
 0x359   :  { %3086 = vmatpush.msra.mxu2 %v2668_v28  ;;  %3103 = vmatpush.msra.mxu3 %v2820_v11  ;;  %v2726_v28 = vld [vmem:[#allocation6 + $0x378] sm:$0xff]  ;;  %v2747_v11 = vld [vmem:[#allocation6 + $0x420] sm:$0xff] }
 0x35a   :  { %3047 = vmatpush.msra.mxu0 %v2659_v9  ;;  %3064 = vmatpush.msra.mxu1 %v2811_v10  ;;  %v2748_v9 = vld [vmem:[#allocation6 + $0x428] sm:$0xff]  ;;  %v2717_v10 = vld [vmem:[#allocation6 + $0x330] sm:$0xff] }
 0x35b   :  { %3087 = vmatpush.msra.mxu2 %v2660_v48  ;;  %3104 = vmatpush.msra.mxu3 %v2812_v57  ;;  %v2869_v48 = vld [vmem:[#allocation6 + $0x7f0] sm:$0xff]  ;;  %v2718_v57 = vld [vmem:[#allocation6 + $0x338] sm:$0xff] }
 0x35c   :  { %3048 = vmatpush.msra.mxu0 %v2651_v22  ;;  %3065 = vmatpush.msra.mxu1 %v2803_v37  ;;  %v2870_v22 = vld [vmem:[#allocation6 + $0x7f8] sm:$0xff]  ;;  %v2709_v37 = vld [vmem:[#allocation6 + $0x2f0] sm:$0xff] }
 0x35d   :  { %3088 = vmatpush.msra.mxu2 %v2652_v16  ;;  %3105 = vmatpush.msra.mxu3 %v2804_v55  ;;  %v2861_v16 = vld [vmem:[#allocation6 + $0x7b0] sm:$0xff]  ;;  %v2710_v55 = vld [vmem:[#allocation6 + $0x2f8] sm:$0xff] }
 0x35e   :  { %3049 = vmatpush.msra.mxu0 %v2643_v60  ;;  %3066 = vmatpush.msra.mxu1 %v2795_v29  ;;  %v2862_v60 = vld [vmem:[#allocation6 + $0x7b8] sm:$0xff]  ;;  %v2701_v29 = vld [vmem:[#allocation6 + $0x2b0] sm:$0xff] }
 0x35f   :  { %3089 = vmatpush.msra.mxu2 %v2644_v63  ;;  %3106 = vmatpush.msra.mxu3 %v2796_v4  ;;  %v2853_v63 = vld [vmem:[#allocation6 + $0x770] sm:$0xff]  ;;  %v2702_v4 = vld [vmem:[#allocation6 + $0x2b8] sm:$0xff] }
 0x360   :  { %3050 = vmatpush.msra.mxu0 %v2635_v17  ;;  %3067 = vmatpush.msra.mxu1 %v2787_v12  ;;  %v2854_v17 = vld [vmem:[#allocation6 + $0x778] sm:$0xff]  ;;  %v2693_v12 = vld [vmem:[#allocation6 + $0x270] sm:$0xff] }
 0x361   :  { %3090 = vmatpush.msra.mxu2 %v2636_v56  ;;  %3107 = vmatpush.msra.mxu3 %v2788_v3  ;;  %v2845_v56 = vld [vmem:[#allocation6 + $0x730] sm:$0xff]  ;;  %v2694_v3 = vld [vmem:[#allocation6 + $0x278] sm:$0xff] }
 0x362   :  { %3051 = vmatpush.msra.mxu0 %v2627_v14  ;;  %3068 = vmatpush.msra.mxu1 %v2779_v43  ;;  %v2846_v14 = vld [vmem:[#allocation6 + $0x738] sm:$0xff]  ;;  %v2685_v43 = vld [vmem:[#allocation6 + $0x230] sm:$0xff] }
 0x363   :  { %3091 = vmatpush.msra.mxu2 %v2628_v34  ;;  %3108 = vmatpush.msra.mxu3 %v2780_v27  ;;  %v2837_v34 = vld [vmem:[#allocation6 + $0x6f0] sm:$0xff]  ;;  %v2686_v27 = vld [vmem:[#allocation6 + $0x238] sm:$0xff] }
 0x364   :  { %3052 = vmatpush.msra.mxu0 %v2619_v39  ;;  %3069 = vmatpush.msra.mxu1 %v2771_v13  ;;  %v2838_v39 = vld [vmem:[#allocation6 + $0x6f8] sm:$0xff]  ;;  %v2677_v13 = vld [vmem:[#allocation6 + $0x1f0] sm:$0xff] }
 0x365   :  { %3092 = vmatpush.msra.mxu2 %v2620_v6  ;;  %3109 = vmatpush.msra.mxu3 %v2772_v19  ;;  %v2829_v6 = vld [vmem:[#allocation6 + $0x6b0] sm:$0xff]  ;;  %v2678_v19 = vld [vmem:[#allocation6 + $0x1f8] sm:$0xff] }
 0x366   :  { %3053 = vmatmul.f32.vlgmr.msra.gmra.mxu0 %v9314_v2  ;;  %3093 = vmatmul.f32.vlgmr.msra.gmra.mxu2 %v9314_v2 }
 0x367   :  { %3117 = vmatpush.msrb.mxu0 %v2741_v54  ;;  %3157 = vmatpush.msrb.mxu2 %v2742_v42  ;;  %v2830_v54 = vld [vmem:[#allocation6 + $0x6b8] sm:$0xff]  ;;  %v2669_v42 = vld [vmem:[#allocation6 + $0x1b0] sm:$0xff] }
 0x368   :  { %3070 = vmatpush.msra.mxu1 %v2763_v40  ;;  %3110 = vmatpush.msra.mxu3 %v2764_v35  ;;  %v2821_v40 = vld [vmem:[#allocation6 + $0x670] sm:$0xff]  ;;  %v2670_v35 = vld [vmem:[#allocation6 + $0x1b8] sm:$0xff] }
 0x369   :  { %3118 = vmatpush.msrb.mxu0 %v2733_v8  ;;  %3158 = vmatpush.msrb.mxu2 %v2734_v50  ;;  %v2822_v8 = vld [vmem:[#allocation6 + $0x678] sm:$0xff]  ;;  %v2661_v50 = vld [vmem:[#allocation6 + $0x170] sm:$0xff] }
 0x36a   :  { %3071 = vmatpush.msra.mxu1 %v2755_v47  ;;  %3111 = vmatpush.msra.mxu3 %v2756_v61  ;;  %v2813_v47 = vld [vmem:[#allocation6 + $0x630] sm:$0xff]  ;;  %v2662_v61 = vld [vmem:[#allocation6 + $0x178] sm:$0xff] }
 0x36b   :  { %3119 = vmatpush.msrb.mxu0 %v2725_v52  ;;  %3159 = vmatpush.msrb.mxu2 %v2726_v28  ;;  %v2814_v52 = vld [vmem:[#allocation6 + $0x638] sm:$0xff]  ;;  %v2653_v28 = vld [vmem:[#allocation6 + $0x130] sm:$0xff] }
 0x36c   :  { %3072 = vmatpush.msra.mxu1 %v2747_v11  ;;  %3112 = vmatpush.msra.mxu3 %v2748_v9  ;;  %v2805_v11 = vld [vmem:[#allocation6 + $0x5f0] sm:$0xff]  ;;  %v2654_v9 = vld [vmem:[#allocation6 + $0x138] sm:$0xff] }
 0x36d   :  { %3073 = vmatmul.f32.vlgmr.msra.gmra.mxu1 %v9318_v20  ;;  %3113 = vmatmul.f32.vlgmr.msra.gmra.mxu3 %v9318_v20 }
 0x36e   :  { %3120 = vmatpush.msrb.mxu0 %v2717_v10  ;;  %3137 = vmatpush.msrb.mxu1 %v2869_v48  ;;  %v2806_v10 = vld [vmem:[#allocation6 + $0x5f8] sm:$0xff]  ;;  %v2645_v48 = vld [vmem:[#allocation6 + $0xf0] sm:$0xff] }
 0x36f   :  { %3160 = vmatpush.msrb.mxu2 %v2718_v57  ;;  %3177 = vmatpush.msrb.mxu3 %v2870_v22  ;;  %v2797_v57 = vld [vmem:[#allocation6 + $0x5b0] sm:$0xff]  ;;  %v2646_v22 = vld [vmem:[#allocation6 + $0xf8] sm:$0xff] }
 0x370   :  { %3121 = vmatpush.msrb.mxu0 %v2709_v37  ;;  %3138 = vmatpush.msrb.mxu1 %v2861_v16  ;;  %v2798_v37 = vld [vmem:[#allocation6 + $0x5b8] sm:$0xff]  ;;  %v2637_v16 = vld [vmem:[#allocation6 + $0xb0] sm:$0xff] }
 0x371   :  { %3161 = vmatpush.msrb.mxu2 %v2710_v55  ;;  %3178 = vmatpush.msrb.mxu3 %v2862_v60  ;;  %v2789_v55 = vld [vmem:[#allocation6 + $0x570] sm:$0xff]  ;;  %v2638_v60 = vld [vmem:[#allocation6 + $0xb8] sm:$0xff] }
 0x372   :  { %3122 = vmatpush.msrb.mxu0 %v2701_v29  ;;  %3139 = vmatpush.msrb.mxu1 %v2853_v63  ;;  %v2790_v29 = vld [vmem:[#allocation6 + $0x578] sm:$0xff]  ;;  %v2629_v63 = vld [vmem:[#allocation6 + $0x70] sm:$0xff] }
 0x373   :  { %3162 = vmatpush.msrb.mxu2 %v2702_v4  ;;  %3179 = vmatpush.msrb.mxu3 %v2854_v17  ;;  %v2781_v4 = vld [vmem:[#allocation6 + $0x530] sm:$0xff]  ;;  %v2630_v17 = vld [vmem:[#allocation6 + $0x78] sm:$0xff] }
 0x374   :  { %3123 = vmatpush.msrb.mxu0 %v2693_v12  ;;  %3140 = vmatpush.msrb.mxu1 %v2845_v56  ;;  %v2782_v12 = vld [vmem:[#allocation6 + $0x538] sm:$0xff]  ;;  %v2621_v56 = vld [vmem:[#allocation6 + $0x30] sm:$0xff] }
 0x375   :  { %3163 = vmatpush.msrb.mxu2 %v2694_v3  ;;  %3180 = vmatpush.msrb.mxu3 %v2846_v14  ;;  %v2773_v3 = vld [vmem:[#allocation6 + $0x4f0] sm:$0xff]  ;;  %v2622_v14 = vld [vmem:[#allocation6 + $0x38] sm:$0xff] }
 0x376   :  { %3124 = vmatpush.msrb.mxu0 %v2685_v43  ;;  %3141 = vmatpush.msrb.mxu1 %v2837_v34  ;;  %v2774_v43 = vld [vmem:[#allocation6 + $0x4f8] sm:$0xff]  ;;  %v2765_v34 = vld [vmem:[#allocation6 + $0x4b0] sm:$0xff] }
 0x377   :  { %3164 = vmatpush.msrb.mxu2 %v2686_v27  ;;  %3181 = vmatpush.msrb.mxu3 %v2838_v39  ;;  %v2766_v27 = vld [vmem:[#allocation6 + $0x4b8] sm:$0xff]  ;;  %v2757_v39 = vld [vmem:[#allocation6 + $0x470] sm:$0xff] }
 0x378   :  { %3125 = vmatpush.msrb.mxu0 %v2677_v13  ;;  %3142 = vmatpush.msrb.mxu1 %v2829_v6  ;;  %v2758_v13 = vld [vmem:[#allocation6 + $0x478] sm:$0xff]  ;;  %v2749_v6 = vld [vmem:[#allocation6 + $0x430] sm:$0xff] }
 0x379   :  { %3165 = vmatpush.msrb.mxu2 %v2678_v19  ;;  %3182 = vmatpush.msrb.mxu3 %v2830_v54  ;;  %v2750_v19 = vld [vmem:[#allocation6 + $0x438] sm:$0xff]  ;;  %v3483_v54 = vld [vmem:[#allocation6 + $0x3c0] sm:$0xff] }
 0x37a   :  { %3126 = vmatpush.msrb.mxu0 %v2669_v42  ;;  %3143 = vmatpush.msrb.mxu1 %v2821_v40  ;;  %v3484_v42 = vld [vmem:[#allocation6 + $0x3c8] sm:$0xff]  ;;  %v3475_v40 = vld [vmem:[#allocation6 + $0x380] sm:$0xff] }
 0x37b   :  { %3166 = vmatpush.msrb.mxu2 %v2670_v35  ;;  %3183 = vmatpush.msrb.mxu3 %v2822_v8  ;;  %v3467_v35 = vld [vmem:[#allocation6 + $0x340] sm:$0xff]  ;;  %v3468_v8 = vld [vmem:[#allocation6 + $0x348] sm:$0xff] }
 0x37c   :  { %3127 = vmatpush.msrb.mxu0 %v2661_v50  ;;  %3144 = vmatpush.msrb.mxu1 %v2813_v47  ;;  %v3459_v47 = vld [vmem:[#allocation6 + $0x300] sm:$0xff] }
 0x37d   :  { %3167 = vmatpush.msrb.mxu2 %v2662_v61  ;;  %3184 = vmatpush.msrb.mxu3 %v2814_v52  ;;  %v3611_v61 = vld [vmem:[#allocation6 + $0x7c0] sm:$0xff]  ;;  %v3460_v52 = vld [vmem:[#allocation6 + $0x308] sm:$0xff] }
 0x37e   :  { %3128 = vmatpush.msrb.mxu0 %v2653_v28  ;;  %3145 = vmatpush.msrb.mxu1 %v2805_v11  ;;  %v3451_v11 = vld [vmem:[#allocation6 + $0x2c0] sm:$0xff] }
 0x37f   :  { %3168 = vmatpush.msrb.mxu2 %v2654_v9  ;;  %3185 = vmatpush.msrb.mxu3 %v2806_v10  ;;  %v3603_v9 = vld [vmem:[#allocation6 + $0x780] sm:$0xff]  ;;  %v3452_v10 = vld [vmem:[#allocation6 + $0x2c8] sm:$0xff] }
 0x380   :  { %3129 = vmatpush.msrb.mxu0 %v2645_v48  ;;  %3146 = vmatpush.msrb.mxu1 %v2797_v57  ;;  %v3604_v48 = vld [vmem:[#allocation6 + $0x788] sm:$0xff]  ;;  %v3443_v57 = vld [vmem:[#allocation6 + $0x280] sm:$0xff] }
 0x381   :  { %3169 = vmatpush.msrb.mxu2 %v2646_v22  ;;  %3186 = vmatpush.msrb.mxu3 %v2798_v37  ;;  %v3595_v22 = vld [vmem:[#allocation6 + $0x740] sm:$0xff]  ;;  %v3444_v37 = vld [vmem:[#allocation6 + $0x288] sm:$0xff] }
 0x382   :  { %3130 = vmatpush.msrb.mxu0 %v2637_v16  ;;  %3147 = vmatpush.msrb.mxu1 %v2789_v55  ;;  %v3596_v55 = vld [vmem:[#allocation6 + $0x748] sm:$0xff] }
 0x383   :  { %3170 = vmatpush.msrb.mxu2 %v2638_v60  ;;  %3187 = vmatpush.msrb.mxu3 %v2790_v29  ;;  %v3435_v60 = vld [vmem:[#allocation6 + $0x240] sm:$0xff] }
 0x384   :  { %3131 = vmatpush.msrb.mxu0 %v2629_v63  ;;  %3148 = vmatpush.msrb.mxu1 %v2781_v4  ;;  %v3587_v29 = vld [vmem:[#allocation6 + $0x700] sm:$0xff]  ;;  %v3436_v63 = vld [vmem:[#allocation6 + $0x248] sm:$0xff] }
 0x385   :  { %3171 = vmatpush.msrb.mxu2 %v2630_v17  ;;  %3188 = vmatpush.msrb.mxu3 %v2782_v12  ;;  %v3588_v17 = vld [vmem:[#allocation6 + $0x708] sm:$0xff]  ;;  %v3427_v12 = vld [vmem:[#allocation6 + $0x200] sm:$0xff] }
 0x386   :  { %3132 = vmatpush.msrb.mxu0 %v2621_v56  ;;  %3149 = vmatpush.msrb.mxu1 %v2773_v3  ;;  %v3579_v56 = vld [vmem:[#allocation6 + $0x6c0] sm:$0xff]  ;;  %v3428_v3 = vld [vmem:[#allocation6 + $0x208] sm:$0xff] }
 0x387   :  { %3172 = vmatpush.msrb.mxu2 %v2622_v14  ;;  %3189 = vmatpush.msrb.mxu3 %v2774_v43  ;;  %v3580_v43 = vld [vmem:[#allocation6 + $0x6c8] sm:$0xff] }
 0x388   :  { %3133 = vmatmul.f32.vlgmr.msrb.gmra.mxu0 %v9314_v2  ;;  %3173 = vmatmul.f32.vlgmr.msrb.gmra.mxu2 %v9314_v2  ;;  %v3476_v2 = vld [vmem:[#allocation6 + $0x388] sm:$0xff] }
 0x389   :  { %3150 = vmatpush.msrb.mxu1 %v2765_v34  ;;  %3190 = vmatpush.msrb.mxu3 %v2766_v27  ;;  %v3419_v34 = vld [vmem:[#allocation6 + $0x1c0] sm:$0xff] }
 0x38a   :  { %3625 = vmatpush.msra.mxu0 %v3483_v54  ;;  %3665 = vmatpush.msra.mxu2 %v3484_v42  ;;  %v3571_v27 = vld [vmem:[#allocation6 + $0x680] sm:$0xff] }
 0x38b   :  { %3151 = vmatpush.msrb.mxu1 %v2757_v39  ;;  %3191 = vmatpush.msrb.mxu3 %v2758_v13  ;;  %v3420_v39 = vld [vmem:[#allocation6 + $0x1c8] sm:$0xff]  ;;  %v3411_v42 = vld [vmem:[#allocation6 + $0x180] sm:$0xff] }
 0x38c   :  { %3626 = vmatpush.msra.mxu0 %v3475_v40  ;;  %3666 = vmatpush.msra.mxu2 %v3476_v2  ;;  %v3572_v13 = vld [vmem:[#allocation6 + $0x688] sm:$0xff]  ;;  %v3563_v40 = vld [vmem:[#allocation6 + $0x640] sm:$0xff] }
 0x38d   :  { %3152 = vmatpush.msrb.mxu1 %v2749_v6  ;;  %3192 = vmatpush.msrb.mxu3 %v2750_v19  ;;  %v3412_v2 = vld [vmem:[#allocation6 + $0x188] sm:$0xff] }
 0x38e   :  { %3153 = vmatmul.f32.vlgmr.msrb.gmra.mxu1 %v9318_v20  ;;  %3193 = vmatmul.f32.vlgmr.msrb.gmra.mxu3 %v9318_v20  ;;  %v3612_v20 = vld [vmem:[#allocation6 + $0x7c8] sm:$0xff] }
 0x38f   :  { %3627 = vmatpush.msra.mxu0 %v3467_v35  ;;  %3667 = vmatpush.msra.mxu2 %v3468_v8  ;;  %v3564_v35 = vld [vmem:[#allocation6 + $0x648] sm:$0xff]  ;;  %v3403_v8 = vld [vmem:[#allocation6 + $0x140] sm:$0xff] }
 0x390   :  { %3645 = vmatpush.msra.mxu1 %v3611_v61  ;;  %3685 = vmatpush.msra.mxu3 %v3612_v20  ;;  %v3404_v61 = vld [vmem:[#allocation6 + $0x148] sm:$0xff] }
 0x391   :  { %3628 = vmatpush.msra.mxu0 %v3459_v47  ;;  %3668 = vmatpush.msra.mxu2 %v3460_v52  ;;  %v3555_v47 = vld [vmem:[#allocation6 + $0x600] sm:$0xff]  ;;  %v3556_v52 = vld [vmem:[#allocation6 + $0x608] sm:$0xff] }
 0x392   :  { %3646 = vmatpush.msra.mxu1 %v3603_v9  ;;  %3686 = vmatpush.msra.mxu3 %v3604_v48  ;;  %v3396_v9 = vld [vmem:[#allocation6 + $0x108] sm:$0xff] }
 0x393   :  { %3629 = vmatpush.msra.mxu0 %v3451_v11  ;;  %3669 = vmatpush.msra.mxu2 %v3452_v10  ;;  %v3547_v11 = vld [vmem:[#allocation6 + $0x5c0] sm:$0xff]  ;;  %v3548_v48 = vld [vmem:[#allocation6 + $0x5c8] sm:$0xff] }
 0x394   :  { %3647 = vmatpush.msra.mxu1 %v3595_v22  ;;  %3687 = vmatpush.msra.mxu3 %v3596_v55  ;;  %v3387_v55 = vld [vmem:[#allocation6 + $0xc0] sm:$0xff] }
 0x395   :  { %3630 = vmatpush.msra.mxu0 %v3443_v57  ;;  %3670 = vmatpush.msra.mxu2 %v3444_v37 }
 0x396   :  { %3648 = vmatpush.msra.mxu1 %v3587_v29  ;;  %3688 = vmatpush.msra.mxu3 %v3588_v17  ;;  %v3388_v29 = vld [vmem:[#allocation6 + $0xc8] sm:$0xff] }
 0x397   :  { %3631 = vmatpush.msra.mxu0 %v3435_v60  ;;  %3671 = vmatpush.msra.mxu2 %v3436_v63  ;;  %v3539_v60 = vld [vmem:[#allocation6 + $0x580] sm:$0xff]  ;;  %v3540_v17 = vld [vmem:[#allocation6 + $0x588] sm:$0xff] }
 0x398   :  { %3649 = vmatpush.msra.mxu1 %v3579_v56  ;;  %3689 = vmatpush.msra.mxu3 %v3580_v43  ;;  %v3379_v56 = vld [vmem:[#allocation6 + $0x80] sm:$0xff] }
 0x399   :  { %3632 = vmatpush.msra.mxu0 %v3427_v12  ;;  %3672 = vmatpush.msra.mxu2 %v3428_v3 }
 0x39a   :  { %3650 = vmatpush.msra.mxu1 %v3571_v27  ;;  %3690 = vmatpush.msra.mxu3 %v3572_v13  ;;  %v3523_v27 = vld [vmem:[#allocation6 + $0x500] sm:$0xff]  ;;  %v3524_v13 = vld [vmem:[#allocation6 + $0x508] sm:$0xff] }
 0x39b   :  { %3633 = vmatpush.msra.mxu0 %v3419_v34  ;;  %3673 = vmatpush.msra.mxu2 %v3420_v39  ;;  %v3371_v34 = vld [vmem:[#allocation6 + $0x40] sm:$0xff] }
 0x39c   :  { %3651 = vmatpush.msra.mxu1 %v3563_v40  ;;  %3691 = vmatpush.msra.mxu3 %v3564_v35  ;;  %v3516_v40 = vld [vmem:[#allocation6 + $0x4c8] sm:$0xff]  ;;  %v3486_v35 = vld [vmem:[#allocation6 + $0x3d8] sm:$0xff] }
 0x39d   :  { %3634 = vmatpush.msra.mxu0 %v3411_v42  ;;  %3674 = vmatpush.msra.mxu2 %v3412_v2  ;;  %v3485_v2 = vld [vmem:[#allocation6 + $0x3d0] sm:$0xff] }
 0x39e   :  { %3652 = vmatpush.msra.mxu1 %v3555_v47  ;;  %3692 = vmatpush.msra.mxu3 %v3556_v52  ;;  %v3507_v47 = vld [vmem:[#allocation6 + $0x480] sm:$0xff]  ;;  %v3477_v52 = vld [vmem:[#allocation6 + $0x390] sm:$0xff] }
 0x39f   :  { %3635 = vmatpush.msra.mxu0 %v3403_v8  ;;  %3675 = vmatpush.msra.mxu2 %v3404_v61  ;;  %v3508_v61 = vld [vmem:[#allocation6 + $0x488] sm:$0xff] }
 0x3a0   :  { %3653 = vmatpush.msra.mxu1 %v3547_v11  ;;  %3693 = vmatpush.msra.mxu3 %v3548_v48  ;;  %v3469_v11 = vld [vmem:[#allocation6 + $0x350] sm:$0xff]  ;;  %v3492_v48 = vld [vmem:[#allocation6 + $0x408] sm:$0xff] }
 0x3a1   :  { %3676 = vmatpush.msra.mxu2 %v3396_v9  ;;  %v3470_v9 = vld [vmem:[#allocation6 + $0x358] sm:$0xff] }
 0x3a2   :  { %3654 = vmatpush.msra.mxu1 %v3539_v60  ;;  %3694 = vmatpush.msra.mxu3 %v3540_v17  ;;  %v3454_v17 = vld [vmem:[#allocation6 + $0x2d8] sm:$0xff] }
 0x3a3   :  { %3677 = vmatpush.msra.mxu2 %v3388_v29  ;;  %v3453_v29 = vld [vmem:[#allocation6 + $0x2d0] sm:$0xff] }
 0x3c0   :  { %v2894_v28 = vpop.f32.mrf.mxu0 }
 0x3c6   :  { %v2914_v50 = vpop.f32.mrf.mxu1  ;;  %v2934_v4 = vpop.f32.mrf.mxu2 }
 0x3c7   :  { %v2915_v6 = vadd.f32 %v2914_v50, %v2894_v28  ;;  %v3395_v28 = vld [vmem:[#allocation6 + $0x100] sm:$0xff] }
 0x3c8   :  { %3636 = vmatpush.msra.mxu0 %v3395_v28 }
 0x3c9   :  { %v2974_v19 = vpop.f32.mrf.mxu0  ;;  %v3205_v20 = vrot.slane %v2915_v6, 2  ;;  %v3363_v6 = vld [vmem:[#allocation6] sm:$0xff] }
 0x3ca   :  { %3637 = vmatpush.msra.mxu0 %v3387_v55  ;;  %v3614_v55 = vld [vmem:[#allocation6 + $0x7d8] sm:$0xff] }
 0x3cb   :  { %v3221_v63 = vadd.f32 %v3205_v20, %v8939_v38  ;;  %v3372_v38 = vld [vmem:[#allocation6 + $0x48] sm:$0xff]  ;;  %v3478_v20 = vld [vmem:[#allocation6 + $0x398] sm:$0xff] }
 0x3cc   :  { %v2954_v16 = vpop.f32.mrf.mxu3  ;;  %3638 = vmatpush.msra.mxu0 %v3379_v56  ;;  %v3606_v56 = vld [vmem:[#allocation6 + $0x798] sm:$0xff] }
 0x3cd   :  { %v2955_v57 = vadd.f32 %v2954_v16, %v2934_v4  ;;  %v3531_v16 = vld [vmem:[#allocation6 + $0x540] sm:$0xff]  ;;  %v3380_v4 = vld [vmem:[#allocation6 + $0x88] sm:$0xff]  ;;  %v8099_v39 = vmul.f32 -1.442695, %v3221_v63  ;;  %v3605_v63 = vld [vmem:[#allocation6 + $0x790] sm:$0xff] }
 0x3ce   :  { %3655 = vmatpush.msra.mxu1 %v3531_v16  ;;  %3678 = vmatpush.msra.mxu2 %v3380_v4  ;;  %v3445_v16 = vld [vmem:[#allocation6 + $0x290] sm:$0xff] }
 0x3cf   :  { %v3014_v22 = vpop.f32.mrf.mxu2  ;;  %v3206_v3 = vrot.slane %v2955_v57, 2  ;;  %3639 = vmatpush.msra.mxu0 %v3371_v34  ;;  %8327 = vpow2.f32 %v8099_v39  ;;  %v3461_v57 = vld [vmem:[#allocation6 + $0x310] sm:$0xff]  ;;  %v3438_v39 = vld [vmem:[#allocation6 + $0x258] sm:$0xff] }
 0x3d0   :  { %v2994_v14 = vpop.f32.mrf.mxu1  ;;  %3656 = vmatpush.msra.mxu1 %v3523_v27  ;;  %3679 = vmatpush.msra.mxu2 %v3372_v38  ;;  %v3597_v4 = vld [vmem:[#allocation6 + $0x750] sm:$0xff] }
 0x3d1   :  { %v2995_v54 = vadd.f32 %v2994_v14, %v2974_v19  ;;  %v3532_v14 = vld [vmem:[#allocation6 + $0x548] sm:$0xff]  ;;  %v3515_v19 = vld [vmem:[#allocation6 + $0x4c0] sm:$0xff]  ;;  %v3222_v42 = vadd.f32 %v3206_v3, %v8953_v0  ;;  %3640 = vmatpush.msra.mxu0 %v3363_v6  ;;  %v3446_v3 = vld [vmem:[#allocation6 + $0x298] sm:$0xff] }
 0x3d2   :  { %3695 = vmatpush.msra.mxu3 %v3532_v14  ;;  %3657 = vmatpush.msra.mxu1 %v3515_v19  ;;  %v3499_v0 = vld [vmem:[#allocation6 + $0x440] sm:$0xff]  ;;  %v3437_v27 = vld [vmem:[#allocation6 + $0x250] sm:$0xff] }
 0x3d3   :  { %v3207_v10 = vrot.slane %v2995_v54, 2  ;;  %v3364_v54 = vld [vmem:[#allocation6 + $0x8] sm:$0xff]  ;;  %3705 = vmatpush.msrb.mxu0 %v3485_v2  ;;  %v8100_v28 = vmul.f32 -1.442695, %v3222_v42  ;;  %v3589_v38 = vld [vmem:[#allocation6 + $0x710] sm:$0xff] }
 0x3d4   :  { %3696 = vmatpush.msra.mxu3 %v3524_v13  ;;  %3680 = vmatpush.msra.mxu2 %v3364_v54  ;;  %v3590_v13 = vld [vmem:[#allocation6 + $0x718] sm:$0xff]  ;;  %v3429_v6 = vld [vmem:[#allocation6 + $0x210] sm:$0xff] }
 0x3d5   :  { %v3223_v12 = vadd.f32 %v3207_v10, %v8944_v44  ;;  %3658 = vmatpush.msra.mxu1 %v3507_v47  ;;  %3706 = vmatpush.msrb.mxu0 %v3477_v52  ;;  %v3491_v10 = vld [vmem:[#allocation6 + $0x400] sm:$0xff]  ;;  %v8328_v60 = vpop.eup %8327  ;;  %v3581_v19 = vld [vmem:[#allocation6 + $0x6d0] sm:$0xff]  ;;  %v3430_v54 = vld [vmem:[#allocation6 + $0x218] sm:$0xff] }
 0x3d6   :  { %v3034_v50 = vpop.f32.mrf.mxu3  ;;  %3697 = vmatpush.msra.mxu3 %v3516_v40  ;;  %3745 = vmatpush.msrb.mxu2 %v3486_v35  ;;  %v9338_v14 = vadd.f32 1.0, %v8328_v60  ;;  %v3582_v40 = vld [vmem:[#allocation6 + $0x6d8] sm:$0xff]  ;;  %v3421_v2 = vld [vmem:[#allocation6 + $0x1d0] sm:$0xff] }
 0x3d7   :  { %v3035_v37 = vadd.f32 %v3034_v50, %v3014_v22  ;;  %v8101_v44 = vmul.f32 -1.442695, %v3223_v12  ;;  %v3500_v50 = vld [vmem:[#allocation6 + $0x448] sm:$0xff]  ;;  %3659 = vmatpush.msra.mxu1 %v3499_v0  ;;  %3707 = vmatpush.msrb.mxu0 %v3469_v11  ;;  %v3613_v22 = vld [vmem:[#allocation6 + $0x7d0] sm:$0xff]  ;;  %v3414_v11 = vld [vmem:[#allocation6 + $0x198] sm:$0xff] }
 0x3d8   :  { %3698 = vmatpush.msra.mxu3 %v3508_v61  ;;  %3746 = vmatpush.msrb.mxu2 %v3478_v20  ;;  %v3573_v35 = vld [vmem:[#allocation6 + $0x690] sm:$0xff]  ;;  %v3574_v20 = vld [vmem:[#allocation6 + $0x698] sm:$0xff]  ;;  %vm3242_vm12 = vweird.f32 %v9338_v14 }
 0x3d9   :  { %v3208_v43 = vrot.slane %v3035_v37, 2  ;;  %8329 = vpow2.f32 %v8101_v44  ;;  %v3462_v37 = vld [vmem:[#allocation6 + $0x318] sm:$0xff]  ;;  %3660 = vmatpush.msra.mxu1 %v3491_v10  ;;  %3708 = vmatpush.msrb.mxu0 %v3461_v57  ;;  %v3557_v10 = vld [vmem:[#allocation6 + $0x610] sm:$0xff] }
 0x3da   :  { %3699 = vmatpush.msra.mxu3 %v3500_v50  ;;  %3747 = vmatpush.msrb.mxu2 %v3470_v9  ;;  %8331 = vpow2.f32 %v8100_v28  ;;  %v3413_v50 = vld [vmem:[#allocation6 + $0x190] sm:$0xff]  ;;  %v3566_v9 = vld [vmem:[#allocation6 + $0x658] sm:$0xff] }
 0x3db   :  { %v3224_v8 = vadd.f32 %v3208_v43, %v8958_v5  ;;  %3725 = vmatpush.msrb.mxu1 %v3613_v22  ;;  %3709 = vmatpush.msrb.mxu0 %v3453_v29  ;;  %v3598_v43 = vld [vmem:[#allocation6 + $0x758] sm:$0xff]  ;;  %v3565_v28 = vld [vmem:[#allocation6 + $0x650] sm:$0xff] }
 0x3dc   :  { %3700 = vmatpush.msra.mxu3 %v3492_v48  ;;  %3748 = vmatpush.msrb.mxu2 %v3462_v37  ;;  %v3406_v48 = vld [vmem:[#allocation6 + $0x158] sm:$0xff]  ;;  %v3549_v60 = vld [vmem:[#allocation6 + $0x5d0] sm:$0xff] }
 0x3dd   :  { %v8102_v5 = vmul.f32 -1.442695, %v3224_v8  ;;  %3726 = vmatpush.msrb.mxu1 %v3605_v63  ;;  %3710 = vmatpush.msrb.mxu0 %v3445_v16  ;;  %v3422_v8 = vld [vmem:[#allocation6 + $0x1d8] sm:$0xff]  ;;  %v3389_v16 = vld [vmem:[#allocation6 + $0xd0] sm:$0xff] }
 0x3de   :  { %3765 = vmatpush.msrb.mxu3 %v3614_v55  ;;  %3749 = vmatpush.msrb.mxu2 %v3454_v17  ;;  %v3558_v22 = vld [vmem:[#allocation6 + $0x618] sm:$0xff]  ;;  %v3397_v55 = vld [vmem:[#allocation6 + $0x110] sm:$0xff] }
 0x3df   :  { %v8330_v12 = vpop.eup %8329  ;;  %8333 = vpow2.f32 %v8102_v5  ;;  %3727 = vmatpush.msrb.mxu1 %v3597_v4  ;;  %3711 = vmatpush.msrb.mxu0 %v3437_v27  ;;  %v3405_v5 = vld [vmem:[#allocation6 + $0x150] sm:$0xff]  ;;  %v3398_v29 = vld [vmem:[#allocation6 + $0x118] sm:$0xff] }
 0x3e0   :  { %3766 = vmatpush.msrb.mxu3 %v3606_v56  ;;  %v9340_v34 = vadd.f32 1.0, %v8330_v12  ;;  %3750 = vmatpush.msrb.mxu2 %v3446_v3  ;;  %v8332_v44 = vpop.eup %8331  ;;  %8335 = vrcp.f32 %v9338_v14  ;;  %v3550_v12 = vld [vmem:[#allocation6 + $0x5d8] sm:$0xff]  ;;  %v3541_v4 = vld [vmem:[#allocation6 + $0x590] sm:$0xff] }
 0x3e1   :  { %3728 = vmatpush.msrb.mxu1 %v3589_v38  ;;  %3712 = vmatpush.msrb.mxu0 %v3429_v6  ;;  %v9344_v47 = vadd.f32 1.0, %v8332_v44  ;;  %v3390_v3 = vld [vmem:[#allocation6 + $0xd8] sm:$0xff]  ;;  %v3381_v6 = vld [vmem:[#allocation6 + $0x90] sm:$0xff] }
 0x3e2   :  { %3767 = vmatpush.msrb.mxu3 %v3598_v43  ;;  %3751 = vmatpush.msrb.mxu2 %v3438_v39  ;;  %8337 = vrcp.f32 %v9340_v34  ;;  %vm3280_vm13 = vweird.f32 %v9340_v34 }
 0x3e3   :  { %3729 = vmatpush.msrb.mxu1 %v3581_v19  ;;  %v3054_v61 = vpop.f32.mrf.mxu0  ;;  %3713 = vmatpush.msrb.mxu0 %v3421_v2  ;;  %8339 = vrcp.f32 %v9344_v47  ;;  %v3533_v19 = vld [vmem:[#allocation6 + $0x550] sm:$0xff]  ;;  %vm3257_vm1 = vweird.f32 %v9344_v47 }
 0x3e4   :  { %3768 = vmatpush.msrb.mxu3 %v3590_v13  ;;  %3752 = vmatpush.msrb.mxu2 %v3430_v54  ;;  %v3542_v13 = vld [vmem:[#allocation6 + $0x598] sm:$0xff] }
 0x3e5   :  { %v8334_v42 = vpop.eup %8333  ;;  %3730 = vmatpush.msrb.mxu1 %v3573_v35  ;;  %3714 = vmatpush.msrb.mxu0 %v3413_v50  ;;  %v3382_v54 = vld [vmem:[#allocation6 + $0x98] sm:$0xff] }
 0x3e6   :  { %3769 = vmatpush.msrb.mxu3 %v3582_v40  ;;  %v9346_v0 = vadd.f32 1.0, %v8334_v42  ;;  %3753 = vmatpush.msrb.mxu2 %v3422_v8  ;;  %v9348_v57 = vpop.eup %8335  ;;  %v3534_v40 = vld [vmem:[#allocation6 + $0x558] sm:$0xff] }
 0x3e7   :  { %3731 = vmatpush.msrb.mxu1 %v3565_v28  ;;  %3715 = vmatpush.msrb.mxu0 %v3405_v5  ;;  %v3238_v43 = vmul.f32 %v9348_v57, %v9338_v14  ;;  %vm3243_vm10 = vweird.f32 %v9348_v57 }
 0x3e8   :  { %3770 = vmatpush.msrb.mxu3 %v3574_v20  ;;  %3754 = vmatpush.msrb.mxu2 %v3414_v11  ;;  %v9351_v37 = vpop.eup %8337  ;;  %8341 = vrcp.f32 %v9346_v0  ;;  %v3374_v20 = vld [vmem:[#allocation6 + $0x58] sm:$0xff]  ;;  %vm9385_vm14 = vmor %vm3242_vm12, %vm3243_vm10  ;;  %vm3295_vm5 = vweird.f32 %v9346_v0 }
 0x3e9   :  { %3732 = vmatpush.msrb.mxu1 %v3557_v10  ;;  %v3094_v63 = vpop.f32.mrf.mxu2  ;;  %3716 = vmatpush.msrb.mxu0 %v3397_v55  ;;  %v3276_v27 = vmul.f32 %v9351_v37, %v9340_v34  ;;  %v9358_v42 = vpop.eup %8339  ;;  %v3239_v50 = vsub.f32 1.0, %v3238_v43  ;;  %v3526_v11 = vld [vmem:[#allocation6 + $0x518] sm:$0xff]  ;;  %v3365_v10 = vld [vmem:[#allocation6 + $0x10] sm:$0xff]  ;;  %vm3281_vm11 = vweird.f32 %v9351_v37 }
 0x3ea   :  { %v3074_v52 = vpop.f32.mrf.mxu1  ;;  %3771 = vmatpush.msrb.mxu3 %v3566_v9  ;;  %3755 = vmatpush.msrb.mxu2 %v3406_v48  ;;  %v3517_v48 = vld [vmem:[#allocation6 + $0x4d0] sm:$0xff]  ;;  %v3253_v55 = vmul.f32 %v9358_v42, %v9344_v47  ;;  %v3510_v43 = vld [vmem:[#allocation6 + $0x498] sm:$0xff]  ;;  %vm9393_vm15 = vmor %vm3280_vm13, %vm3281_vm11  ;;  %vm3258_vm3 = vweird.f32 %v9358_v42 }
 0x3eb   :  { %v3075_v56 = vadd.f32 %v3074_v52, %v3054_v61  ;;  %3733 = vmatpush.msrb.mxu1 %v3549_v60  ;;  %3717 = vmatpush.msrb.mxu0 %v3389_v16  ;;  %v3373_v61 = vld [vmem:[#allocation6 + $0x50] sm:$0xff]  ;;  %v3277_v28 = vsub.f32 1.0, %v3276_v27  ;;  %vm9419_vm6 = vmor %vm3257_vm1, %vm3258_vm3 }
 0x3ec   :  { %3772 = vmatpush.msrb.mxu3 %v3558_v22  ;;  %3756 = vmatpush.msrb.mxu2 %v3398_v29  ;;  %v3525_v52 = vld [vmem:[#allocation6 + $0x510] sm:$0xff]  ;;  %v3366_v22 = vld [vmem:[#allocation6 + $0x18] sm:$0xff] }
 0x3ed   :  { %3734 = vmatpush.msrb.mxu1 %v3541_v4  ;;  %v3209_v35 = vrot.slane %v3075_v56, 2  ;;  %3718 = vmatpush.msrb.mxu0 %v3381_v6  ;;  %v3518_v56 = vld [vmem:[#allocation6 + $0x4d8] sm:$0xff]  ;;  %v3278_v16 = vmul.f32 %v9351_v37, %v3277_v28  ;;  %v3240_v4 = vmul.f32 %v9348_v57, %v3239_v50 }
 0x3ee   :  { %3773 = vmatpush.msrb.mxu3 %v3550_v12  ;;  %3757 = vmatpush.msrb.mxu2 %v3390_v3  ;;  %v9360_v2 = vpop.eup %8341  ;;  %v3509_v3 = vld [vmem:[#allocation6 + $0x490] sm:$0xff]  ;;  %v3502_v6 = vld [vmem:[#allocation6 + $0x458] sm:$0xff] }
 0x3ef   :  { %3735 = vmatpush.msrb.mxu1 %v3533_v19  ;;  %3719 = vmatpush.msrb.mxu0 %v3373_v61  ;;  %v3291_v60 = vmul.f32 %v9360_v2, %v9346_v0  ;;  %v3248_v19 = vand.u32 2147483648, %v9338_v14  ;;  %v3494_v61 = vld [vmem:[#allocation6 + $0x418] sm:$0xff]  ;;  %vm3296_vm4 = vweird.f32 %v9360_v2 }
 0x3f0   :  { %v3114_v17 = vpop.f32.mrf.mxu3  ;;  %3774 = vmatpush.msrb.mxu3 %v3542_v13  ;;  %3758 = vmatpush.msrb.mxu2 %v3382_v54  ;;  %vm3297_vm7 = vmor %vm3295_vm5, %vm3296_vm4 }
 0x3f1   :  { %v3115_v9 = vadd.f32 %v3114_v17, %v3094_v63  ;;  %3736 = vmatpush.msrb.mxu1 %v3525_v52  ;;  %v3225_v63 = vadd.f32 %v3209_v35, %v8996_v15  ;;  %3720 = vmatpush.msrb.mxu0 %v3365_v10  ;;  %v3292_v13 = vsub.f32 1.0, %v3291_v60  ;;  %v3246_v15 = vand.u32 2147483647, %v9338_v14 }
 0x3f2   :  { %3775 = vmatpush.msrb.mxu3 %v3534_v40  ;;  %3759 = vmatpush.msrb.mxu2 %v3374_v20  ;;  %v3241_v40 = vadd.f32 %v9348_v57, %v3240_v4  ;;  %v3279_v35 = vadd.f32 %v9351_v37, %v3278_v16  ;;  %v3286_v52 = vand.u32 2147483648, %v9340_v34  ;;  %v3284_v20 = vand.u32 2147483647, %v9340_v34 }
 0x3f3   :  { %3737 = vmatpush.msrb.mxu1 %v3517_v48  ;;  %v3210_v27 = vrot.slane %v3115_v9, 2  ;;  %vm9397_vm0 = vcmp.eq.f32.partialorder %v3246_v15, 8.507059e+37  ;;  %v3249_v10 = vor.u32 1.1754944e-38, %v3248_v19  ;;  %v3261_v16 = vand.u32 2147483647, %v9344_v47 }
 0x3f4   :  { %3776 = vmatpush.msrb.mxu3 %v3526_v11  ;;  %3760 = vmatpush.msrb.mxu2 %v3366_v22  ;;  %v3245_v48 = vsel %vm9385_vm14, %v9348_v57, %v3241_v40  ;;  %v3287_v60 = vor.u32 1.1754944e-38, %v3286_v52  ;;  %vm3285_vm2 = vcmp.eq.f32.partialorder %v3284_v20, 8.507059e+37  ;;  %v3301_v57 = vand.u32 2147483648, %v9346_v0 }
 0x3f5   :  { %3738 = vmatpush.msrb.mxu1 %v3509_v3  ;;  %v3226_v50 = vadd.f32 %v3210_v27, %v9011_v58  ;;  %v3299_v4 = vand.u32 2147483647, %v9346_v0  ;;  %vm3262_vm8 = vcmp.eq.f32.partialorder %v3261_v16, 8.507059e+37  ;;  %v3348_v40 = vrot.slane %v9311_v21, 6  ;;  %v3472_v16 = vld [vmem:[#allocation6 + $0x368] sm:$0xff] }
 0x3f6   :  { %3777 = vmatpush.msrb.mxu3 %v3518_v56  ;;  %v3302_v15 = vor.u32 1.1754944e-38, %v3301_v57  ;;  %v3479_v57 = vld [vmem:[#allocation6 + $0x3a0] sm:$0xff] }
 0x3f7   :  { %vm3300_vm9 = vcmp.eq.f32.partialorder %v3299_v4, 8.507059e+37 }
 0x3f8   :  { %3778 = vmatpush.msrb.mxu3 %v3510_v43 }
 0x3fa   :  { %3779 = vmatpush.msrb.mxu3 %v3502_v6 }
 0x3fc   :  { %3780 = vmatpush.msrb.mxu3 %v3494_v61 }
 0x405   :  { %v3134_v38 = vpop.f32.mrf.mxu0 }
 0x40b   :  { %v3154_v39 = vpop.f32.mrf.mxu1  ;;  %v3174_v29 = vpop.f32.mrf.mxu2 }
 0x40c   :  { %v3155_v44 = vadd.f32 %v3154_v39, %v3134_v38  ;;  %v3254_v39 = vsub.f32 1.0, %v3253_v55 }
 0x40e   :  { %v3211_v8 = vrot.slane %v3155_v44, 2  ;;  %v3501_v44 = vld [vmem:[#allocation6 + $0x450] sm:$0xff]  ;;  %v3255_v11 = vmul.f32 %v9358_v42, %v3254_v39 }
 0x40f   :  { %3739 = vmatpush.msrb.mxu1 %v3501_v44 }
 0x410   :  { %v3227_v5 = vadd.f32 %v3211_v8, %v8989_v1  ;;  %v3493_v8 = vld [vmem:[#allocation6 + $0x410] sm:$0xff] }
 0x411   :  { %v3194_v12 = vpop.f32.mrf.mxu3  ;;  %3740 = vmatpush.msrb.mxu1 %v3493_v8 }
 0x412   :  { %v8103_v17 = vmul.f32 -1.442695, %v3227_v5  ;;  %v3195_v1 = vadd.f32 %v3194_v12, %v3174_v29  ;;  %v3347_v5 = vrot.slane %v9307_v36, 6  ;;  %v3283_v36 = vsel %vm9393_vm15, %v9351_v37, %v3279_v35 }
 0x413   :  { %v3256_v29 = vadd.f32 %v9358_v42, %v3255_v11  ;;  %v3250_v37 = vsel %vm9397_vm0, %v3249_v10, %v3245_v48  ;;  %v3288_v56 = vsel %vm3285_vm2, %v3287_v60, %v3283_v36  ;;  %v3488_v60 = vld [vmem:[#allocation6 + $0x3e8] sm:$0xff] }
 0x414   :  { %8343 = vpow2.f32 %v8103_v17  ;;  %v3212_v38 = vrot.slane %v3195_v1, 2  ;;  %v3351_v43 = vmul.f32 %v3347_v5, %v3288_v56  ;;  %v3471_v1 = vld [vmem:[#allocation6 + $0x360] sm:$0xff] }
 0x415   :  { %8345 = vtanh.f32 %v3225_v63  ;;  %v3263_v63 = vand.u32 2147483648, %v9344_v47  ;;  %v3260_v27 = vsel %vm9419_vm6, %v9358_v42, %v3256_v29 }
 0x416   :  { %v3228_v54 = vadd.f32 %v3212_v38, %v9016_v59  ;;  %v3293_v59 = vmul.f32 %v9360_v2, %v3292_v13 }
 0x417   :  { %v3264_v44 = vor.u32 1.1754944e-38, %v3263_v63 }
 0x418   :  { %v8104_v28 = vmul.f32 -1.442695, %v3228_v54  ;;  %v3294_v12 = vadd.f32 %v9360_v2, %v3293_v59 }
 0x419   :  { %v3265_v47 = vsel %vm3262_vm8, %v3264_v44, %v3260_v27  ;;  %v3464_v27 = vld [vmem:[#allocation6 + $0x328] sm:$0xff] }
 0x41a   :  { %v8344_v9 = vpop.eup %8343  ;;  %8347 = vpow2.f32 %v8104_v28  ;;  %v3298_v38 = vsel %vm3297_vm7, %v9360_v2, %v3294_v12  ;;  %v3608_v44 = vld [vmem:[#allocation6 + $0x7a8] sm:$0xff] }
 0x41b   :  { %v3313_v22 = vadd.f32 1.0, %v8344_v9  ;;  %v8346_v55 = vpop.eup %8345  ;;  %8349 = vtanh.f32 %v3226_v50  ;;  %v3303_v0 = vsel %vm3300_vm9, %v3302_v15, %v3298_v38  ;;  %v3616_v38 = vld [vmem:[#allocation6 + $0x7e8] sm:$0xff] }
 0x41c   :  { %v3353_v17 = vmul.f32 %v8346_v55, %v3250_v37  ;;  %v3352_v42 = vmul.f32 %v3348_v40, %v3303_v0  ;;  %v3480_v37 = vld [vmem:[#allocation6 + $0x3a8] sm:$0xff]  ;;  %v3439_v40 = vld [vmem:[#allocation6 + $0x260] sm:$0xff] }
 0x41d   :  { %8351 = vrcp.f32 %v3313_v22  ;;  %v3326_v2 = vand.u32 2147483648, %v3313_v22  ;;  %v3324_v52 = vand.u32 2147483647, %v3313_v22  ;;  %vm3320_vm11 = vweird.f32 %v3313_v22  ;;  %v3456_v15 = vld [vmem:[#allocation6 + $0x2e8] sm:$0xff] }
 0x41e   :  { %v9429_v19 = vadd.f32 %v3353_v17, %v3351_v43  ;;  %v3615_v43 = vld [vmem:[#allocation6 + $0x7e0] sm:$0xff]  ;;  %v3448_v0 = vld [vmem:[#allocation6 + $0x2a8] sm:$0xff] }
 0x41f   :  { %v3327_v14 = vor.u32 1.1754944e-38, %v3326_v2  ;;  %vm3325_vm13 = vcmp.eq.f32.partialorder %v3324_v52, 8.507059e+37  ;;  %v3431_v2 = vld [vmem:[#allocation6 + $0x220] sm:$0xff]  ;;  %v3432_v52 = vld [vmem:[#allocation6 + $0x228] sm:$0xff] }
 0x420   :  { %v8348_v3 = vpop.eup %8347 }
 0x421   :  { %v3314_v39 = vadd.f32 1.0, %v8348_v3  ;;  %v8350_v13 = vpop.eup %8349  ;;  %v3463_v3 = vld [vmem:[#allocation6 + $0x320] sm:$0xff] }
 0x422   :  { %v3354_v35 = vmul.f32 %v8350_v13, %v3265_v47  ;;  %v3607_v13 = vld [vmem:[#allocation6 + $0x7a0] sm:$0xff] }
 0x423   :  { %v8352_v6 = vpop.eup %8351  ;;  %8353 = vrcp.f32 %v3314_v39  ;;  %v3341_v58 = vand.u32 2147483648, %v3314_v39  ;;  %v3339_v48 = vand.u32 2147483647, %v3314_v39  ;;  %vm3335_vm15 = vweird.f32 %v3314_v39  ;;  %v3599_v47 = vld [vmem:[#allocation6 + $0x760] sm:$0xff] }
 0x424   :  { %v3316_v54 = vmul.f32 %v8352_v6, %v3313_v22  ;;  %8355 = vtanh.f32 %v9429_v19  ;;  %vm3321_vm10 = vweird.f32 %v8352_v6  ;;  %v9433_v50 = vadd.f32 %v3354_v35, %v3352_v42  ;;  %v3487_v22 = vld [vmem:[#allocation6 + $0x3e0] sm:$0xff]  ;;  %v3592_v42 = vld [vmem:[#allocation6 + $0x728] sm:$0xff] }
 0x425   :  { %vm3322_vm12 = vmor %vm3320_vm11, %vm3321_vm10  ;;  %v3342_v29 = vor.u32 1.1754944e-38, %v3341_v58  ;;  %vm3340_vm1 = vcmp.eq.f32.partialorder %v3339_v48, 8.507059e+37  ;;  %v3591_v35 = vld [vmem:[#allocation6 + $0x720] sm:$0xff]  ;;  %v3568_v58 = vld [vmem:[#allocation6 + $0x668] sm:$0xff] }
 0x426   :  { %v3317_v8 = vsub.f32 1.0, %v3316_v54  ;;  %8357 = vtanh.f32 %v9433_v50  ;;  %v3600_v54 = vld [vmem:[#allocation6 + $0x768] sm:$0xff] }
 0x427   :  { %v3408_v48 = vld [vmem:[#allocation6 + $0x168] sm:$0xff] }
 0x428   :  { %v3318_v61 = vmul.f32 %v8352_v6, %v3317_v8  ;;  %v3440_v8 = vld [vmem:[#allocation6 + $0x268] sm:$0xff] }
 0x429   :  { %v8354_v20 = vpop.eup %8353 }
 0x42a   :  { %v3319_v28 = vadd.f32 %v8352_v6, %v3318_v61  ;;  %v3331_v59 = vmul.f32 %v8354_v20, %v3314_v39  ;;  %v8356_v9 = vpop.eup %8355  ;;  %vm3336_vm14 = vweird.f32 %v8354_v20  ;;  %v3455_v39 = vld [vmem:[#allocation6 + $0x2e0] sm:$0xff] }
 0x42b   :  { %vm3337_vm0 = vmor %vm3335_vm15, %vm3336_vm14  ;;  %v3583_v61 = vld [vmem:[#allocation6 + $0x6e0] sm:$0xff] }
 0x42c   :  { %v3323_v11 = vsel %vm3322_vm12, %v8352_v6, %v3319_v28  ;;  %v3332_v21 = vsub.f32 1.0, %v3331_v59  ;;  %v8358_v56 = vpop.eup %8357  ;;  %v3447_v6 = vld [vmem:[#allocation6 + $0x2a0] sm:$0xff] }
 0x42d   :  { %v3328_v5 = vsel %vm3325_vm13, %v3327_v14, %v3323_v11  ;;  %v3423_v28 = vld [vmem:[#allocation6 + $0x1e0] sm:$0xff]  ;;  %v3424_v14 = vld [vmem:[#allocation6 + $0x1e8] sm:$0xff] }
 0x42e   :  { %v3359_v34 = vmul.f32 %v8356_v9, %v3328_v5  ;;  %v3333_v10 = vmul.f32 %v8354_v20, %v3332_v21  ;;  %v3575_v59 = vld [vmem:[#allocation6 + $0x6a0] sm:$0xff]  ;;  %v3576_v11 = vld [vmem:[#allocation6 + $0x6a8] sm:$0xff] }
 0x42f   :  { %v3415_v21 = vld [vmem:[#allocation6 + $0x1a0] sm:$0xff]  ;;  %v3416_v5 = vld [vmem:[#allocation6 + $0x1a8] sm:$0xff] }
 0x430   :  { %3361 = vst [vmem:[#allocation2 + $0x10] sm:$0xc0] %v3359_v34  ;;  %v9436_v36 = vrot.slane %v3359_v34, 6  ;;  %v3334_v55 = vadd.f32 %v8354_v20, %v3333_v10  ;;  %v3567_v9 = vld [vmem:[#allocation6 + $0x660] sm:$0xff] }
 0x431   :  { %v3407_v34 = vld [vmem:[#allocation6 + $0x160] sm:$0xff] }
 0x432   :  { %v3338_v12 = vsel %vm3337_vm0, %v8354_v20, %v3334_v55  ;;  %3641 = vmatmul.f32.vlgmr.msra.gmra.mxu0 %v9436_v36  ;;  %3681 = vmatmul.f32.vlgmr.msra.gmra.mxu2 %v9436_v36  ;;  %v3584_v20 = vld [vmem:[#allocation6 + $0x6e8] sm:$0xff]  ;;  %v3559_v10 = vld [vmem:[#allocation6 + $0x620] sm:$0xff] }
 0x433   :  { %v3343_v63 = vsel %vm3340_vm1, %v3342_v29, %v3338_v12  ;;  %3785 = vmatpush.msra.mxu0 %v3487_v22  ;;  %3825 = vmatpush.msra.mxu2 %v3488_v60  ;;  %v3560_v55 = vld [vmem:[#allocation6 + $0x628] sm:$0xff]  ;;  %v3399_v22 = vld [vmem:[#allocation6 + $0x120] sm:$0xff] }
 0x434   :  { %v3360_v17 = vmul.f32 %v8358_v56, %v3343_v63  ;;  %v3551_v60 = vld [vmem:[#allocation6 + $0x5e0] sm:$0xff]  ;;  %v3400_v29 = vld [vmem:[#allocation6 + $0x128] sm:$0xff] }
 0x435   :  { %3786 = vmatpush.msra.mxu0 %v3479_v57  ;;  %3826 = vmatpush.msra.mxu2 %v3480_v37  ;;  %v3552_v12 = vld [vmem:[#allocation6 + $0x5e8] sm:$0xff]  ;;  %v3391_v57 = vld [vmem:[#allocation6 + $0xe0] sm:$0xff] }
 0x436   :  { %3362 = vst [vmem:[#allocation2] sm:$0xc0] %v3360_v17  ;;  %v9440_v4 = vrot.slane %v3360_v17, 6  ;;  %v3543_v37 = vld [vmem:[#allocation6 + $0x5a0] sm:$0xff]  ;;  %v3392_v56 = vld [vmem:[#allocation6 + $0xe8] sm:$0xff] }
 0x437   :  { %3787 = vmatpush.msra.mxu0 %v3471_v1  ;;  %3827 = vmatpush.msra.mxu2 %v3472_v16  ;;  %v3544_v63 = vld [vmem:[#allocation6 + $0x5a8] sm:$0xff]  ;;  %v3383_v17 = vld [vmem:[#allocation6 + $0xa0] sm:$0xff] }
 0x438   :  { %3661 = vmatmul.f32.vlgmr.msra.gmra.mxu1 %v9440_v4  ;;  %3701 = vmatmul.f32.vlgmr.msra.gmra.mxu3 %v9440_v4  ;;  %v3535_v1 = vld [vmem:[#allocation6 + $0x560] sm:$0xff]  ;;  %v3384_v16 = vld [vmem:[#allocation6 + $0xa8] sm:$0xff] }
 0x439   :  { %3788 = vmatpush.msra.mxu0 %v3463_v3  ;;  %3805 = vmatpush.msra.mxu1 %v3615_v43  ;;  %v3536_v3 = vld [vmem:[#allocation6 + $0x568] sm:$0xff]  ;;  %v3375_v43 = vld [vmem:[#allocation6 + $0x60] sm:$0xff] }
 0x43a   :  { %3828 = vmatpush.msra.mxu2 %v3464_v27  ;;  %3845 = vmatpush.msra.mxu3 %v3616_v38  ;;  %v3527_v27 = vld [vmem:[#allocation6 + $0x520] sm:$0xff]  ;;  %v3376_v38 = vld [vmem:[#allocation6 + $0x68] sm:$0xff] }
 0x43b   :  { %3721 = vmatmul.f32.vlgmr.msrb.gmra.mxu0 %v9436_v36  ;;  %3761 = vmatmul.f32.vlgmr.msrb.gmra.mxu2 %v9436_v36 }
 0x43c   :  { %3789 = vmatpush.msra.mxu0 %v3455_v39  ;;  %3806 = vmatpush.msra.mxu1 %v3607_v13  ;;  %v3528_v39 = vld [vmem:[#allocation6 + $0x528] sm:$0xff]  ;;  %v3367_v13 = vld [vmem:[#allocation6 + $0x20] sm:$0xff] }
 0x43d   :  { %3829 = vmatpush.msra.mxu2 %v3456_v15  ;;  %3846 = vmatpush.msra.mxu3 %v3608_v44  ;;  %v3519_v15 = vld [vmem:[#allocation6 + $0x4e0] sm:$0xff]  ;;  %v3368_v44 = vld [vmem:[#allocation6 + $0x28] sm:$0xff] }
 0x43e   :  { %3790 = vmatpush.msra.mxu0 %v3447_v6  ;;  %3807 = vmatpush.msra.mxu1 %v3599_v47  ;;  %v3520_v6 = vld [vmem:[#allocation6 + $0x4e8] sm:$0xff]  ;;  %v3489_v47 = vld [vmem:[#allocation6 + $0x3f0] sm:$0xff] }
 0x43f   :  { %3830 = vmatpush.msra.mxu2 %v3448_v0  ;;  %3847 = vmatpush.msra.mxu3 %v3600_v54  ;;  %v3490_v0 = vld [vmem:[#allocation6 + $0x3f8] sm:$0xff]  ;;  %v3511_v54 = vld [vmem:[#allocation6 + $0x4a0] sm:$0xff] }
 0x440   :  { %3791 = vmatpush.msra.mxu0 %v3439_v40  ;;  %3808 = vmatpush.msra.mxu1 %v3591_v35  ;;  %v3512_v40 = vld [vmem:[#allocation6 + $0x4a8] sm:$0xff]  ;;  %v3481_v35 = vld [vmem:[#allocation6 + $0x3b0] sm:$0xff] }
 0x441   :  { %3831 = vmatpush.msra.mxu2 %v3440_v8  ;;  %3848 = vmatpush.msra.mxu3 %v3592_v42  ;;  %v3482_v8 = vld [vmem:[#allocation6 + $0x3b8] sm:$0xff]  ;;  %v3503_v42 = vld [vmem:[#allocation6 + $0x460] sm:$0xff] }
 0x442   :  { %3741 = vmatmul.f32.vlgmr.msrb.gmra.mxu1 %v9440_v4  ;;  %3781 = vmatmul.f32.vlgmr.msrb.gmra.mxu3 %v9440_v4 }
 0x443   :  { %3792 = vmatpush.msra.mxu0 %v3431_v2  ;;  %3809 = vmatpush.msra.mxu1 %v3583_v61  ;;  %v3504_v2 = vld [vmem:[#allocation6 + $0x468] sm:$0xff]  ;;  %v3473_v61 = vld [vmem:[#allocation6 + $0x370] sm:$0xff] }
 0x444   :  { %3832 = vmatpush.msra.mxu2 %v3432_v52  ;;  %3849 = vmatpush.msra.mxu3 %v3584_v20  ;;  %v3474_v52 = vld [vmem:[#allocation6 + $0x378] sm:$0xff]  ;;  %v3495_v20 = vld [vmem:[#allocation6 + $0x420] sm:$0xff] }
 0x445   :  { %3793 = vmatpush.msra.mxu0 %v3423_v28  ;;  %3810 = vmatpush.msra.mxu1 %v3575_v59  ;;  %v3496_v28 = vld [vmem:[#allocation6 + $0x428] sm:$0xff]  ;;  %v3465_v59 = vld [vmem:[#allocation6 + $0x330] sm:$0xff] }
 0x446   :  { %3833 = vmatpush.msra.mxu2 %v3424_v14  ;;  %3850 = vmatpush.msra.mxu3 %v3576_v11  ;;  %v3617_v14 = vld [vmem:[#allocation6 + $0x7f0] sm:$0xff]  ;;  %v3466_v11 = vld [vmem:[#allocation6 + $0x338] sm:$0xff] }
 0x447   :  { %3794 = vmatpush.msra.mxu0 %v3415_v21  ;;  %3811 = vmatpush.msra.mxu1 %v3567_v9  ;;  %v3618_v21 = vld [vmem:[#allocation6 + $0x7f8] sm:$0xff]  ;;  %v3457_v9 = vld [vmem:[#allocation6 + $0x2f0] sm:$0xff] }
 0x448   :  { %3834 = vmatpush.msra.mxu2 %v3416_v5  ;;  %3851 = vmatpush.msra.mxu3 %v3568_v58  ;;  %v3609_v5 = vld [vmem:[#allocation6 + $0x7b0] sm:$0xff]  ;;  %v3458_v58 = vld [vmem:[#allocation6 + $0x2f8] sm:$0xff] }
 0x449   :  { %3795 = vmatpush.msra.mxu0 %v3407_v34  ;;  %3812 = vmatpush.msra.mxu1 %v3559_v10  ;;  %v3610_v34 = vld [vmem:[#allocation6 + $0x7b8] sm:$0xff]  ;;  %v3449_v10 = vld [vmem:[#allocation6 + $0x2b0] sm:$0xff] }
 0x44a   :  { %3835 = vmatpush.msra.mxu2 %v3408_v48  ;;  %3852 = vmatpush.msra.mxu3 %v3560_v55  ;;  %v3601_v48 = vld [vmem:[#allocation6 + $0x770] sm:$0xff]  ;;  %v3450_v55 = vld [vmem:[#allocation6 + $0x2b8] sm:$0xff] }
 0x44b   :  { %3796 = vmatpush.msra.mxu0 %v3399_v22  ;;  %3813 = vmatpush.msra.mxu1 %v3551_v60  ;;  %v3602_v22 = vld [vmem:[#allocation6 + $0x778] sm:$0xff]  ;;  %v3441_v60 = vld [vmem:[#allocation6 + $0x270] sm:$0xff] }
 0x44c   :  { %3836 = vmatpush.msra.mxu2 %v3400_v29  ;;  %3853 = vmatpush.msra.mxu3 %v3552_v12  ;;  %v3593_v29 = vld [vmem:[#allocation6 + $0x730] sm:$0xff]  ;;  %v3442_v12 = vld [vmem:[#allocation6 + $0x278] sm:$0xff] }
 0x44d   :  { %3797 = vmatpush.msra.mxu0 %v3391_v57  ;;  %3814 = vmatpush.msra.mxu1 %v3543_v37  ;;  %v3594_v57 = vld [vmem:[#allocation6 + $0x738] sm:$0xff]  ;;  %v3433_v37 = vld [vmem:[#allocation6 + $0x230] sm:$0xff] }
 0x44e   :  { %3837 = vmatpush.msra.mxu2 %v3392_v56  ;;  %3854 = vmatpush.msra.mxu3 %v3544_v63  ;;  %v3585_v56 = vld [vmem:[#allocation6 + $0x6f0] sm:$0xff]  ;;  %v3434_v63 = vld [vmem:[#allocation6 + $0x238] sm:$0xff] }
 0x44f   :  { %3798 = vmatpush.msra.mxu0 %v3383_v17  ;;  %3815 = vmatpush.msra.mxu1 %v3535_v1  ;;  %v3586_v17 = vld [vmem:[#allocation6 + $0x6f8] sm:$0xff]  ;;  %v3425_v1 = vld [vmem:[#allocation6 + $0x1f0] sm:$0xff] }
 0x450   :  { %3838 = vmatpush.msra.mxu2 %v3384_v16  ;;  %3855 = vmatpush.msra.mxu3 %v3536_v3  ;;  %v3577_v16 = vld [vmem:[#allocation6 + $0x6b0] sm:$0xff]  ;;  %v3426_v3 = vld [vmem:[#allocation6 + $0x1f8] sm:$0xff] }
 0x451   :  { %3799 = vmatpush.msra.mxu0 %v3375_v43  ;;  %3816 = vmatpush.msra.mxu1 %v3527_v27  ;;  %v3578_v43 = vld [vmem:[#allocation6 + $0x6b8] sm:$0xff]  ;;  %v3417_v27 = vld [vmem:[#allocation6 + $0x1b0] sm:$0xff] }
 0x452   :  { %3839 = vmatpush.msra.mxu2 %v3376_v38  ;;  %3856 = vmatpush.msra.mxu3 %v3528_v39  ;;  %v3569_v38 = vld [vmem:[#allocation6 + $0x670] sm:$0xff]  ;;  %v3418_v39 = vld [vmem:[#allocation6 + $0x1b8] sm:$0xff] }
 0x453   :  { %3800 = vmatpush.msra.mxu0 %v3367_v13  ;;  %3817 = vmatpush.msra.mxu1 %v3519_v15  ;;  %v3570_v13 = vld [vmem:[#allocation6 + $0x678] sm:$0xff]  ;;  %v3409_v15 = vld [vmem:[#allocation6 + $0x170] sm:$0xff] }
 0x454   :  { %3840 = vmatpush.msra.mxu2 %v3368_v44  ;;  %3857 = vmatpush.msra.mxu3 %v3520_v6  ;;  %v3561_v44 = vld [vmem:[#allocation6 + $0x630] sm:$0xff]  ;;  %v3410_v6 = vld [vmem:[#allocation6 + $0x178] sm:$0xff] }
 0x455   :  { %3801 = vmatmul.f32.vlgmr.msra.gmra.mxu0 %v9436_v36  ;;  %3841 = vmatmul.f32.vlgmr.msra.gmra.mxu2 %v9436_v36 }
 0x456   :  { %3865 = vmatpush.msrb.mxu0 %v3489_v47  ;;  %3905 = vmatpush.msrb.mxu2 %v3490_v0  ;;  %v3562_v47 = vld [vmem:[#allocation6 + $0x638] sm:$0xff]  ;;  %v3401_v0 = vld [vmem:[#allocation6 + $0x130] sm:$0xff] }
 0x457   :  { %3818 = vmatpush.msra.mxu1 %v3511_v54  ;;  %3858 = vmatpush.msra.mxu3 %v3512_v40  ;;  %v3553_v54 = vld [vmem:[#allocation6 + $0x5f0] sm:$0xff]  ;;  %v3402_v40 = vld [vmem:[#allocation6 + $0x138] sm:$0xff] }
 0x458   :  { %3866 = vmatpush.msrb.mxu0 %v3481_v35  ;;  %3906 = vmatpush.msrb.mxu2 %v3482_v8  ;;  %v3554_v35 = vld [vmem:[#allocation6 + $0x5f8] sm:$0xff]  ;;  %v3393_v8 = vld [vmem:[#allocation6 + $0xf0] sm:$0xff] }
 0x459   :  { %3819 = vmatpush.msra.mxu1 %v3503_v42  ;;  %3859 = vmatpush.msra.mxu3 %v3504_v2  ;;  %v3545_v42 = vld [vmem:[#allocation6 + $0x5b0] sm:$0xff]  ;;  %v3394_v2 = vld [vmem:[#allocation6 + $0xf8] sm:$0xff] }
 0x45a   :  { %3867 = vmatpush.msrb.mxu0 %v3473_v61  ;;  %3907 = vmatpush.msrb.mxu2 %v3474_v52  ;;  %v3546_v61 = vld [vmem:[#allocation6 + $0x5b8] sm:$0xff]  ;;  %v3385_v52 = vld [vmem:[#allocation6 + $0xb0] sm:$0xff] }
 0x45b   :  { %3820 = vmatpush.msra.mxu1 %v3495_v20  ;;  %3860 = vmatpush.msra.mxu3 %v3496_v28  ;;  %v3537_v20 = vld [vmem:[#allocation6 + $0x570] sm:$0xff]  ;;  %v3386_v28 = vld [vmem:[#allocation6 + $0xb8] sm:$0xff] }
 0x45c   :  { %3821 = vmatmul.f32.vlgmr.msra.gmra.mxu1 %v9440_v4  ;;  %3861 = vmatmul.f32.vlgmr.msra.gmra.mxu3 %v9440_v4 }
 0x45d   :  { %3868 = vmatpush.msrb.mxu0 %v3465_v59  ;;  %3885 = vmatpush.msrb.mxu1 %v3617_v14  ;;  %v3538_v59 = vld [vmem:[#allocation6 + $0x578] sm:$0xff]  ;;  %v3377_v14 = vld [vmem:[#allocation6 + $0x70] sm:$0xff] }
 0x45e   :  { %3908 = vmatpush.msrb.mxu2 %v3466_v11  ;;  %3925 = vmatpush.msrb.mxu3 %v3618_v21  ;;  %v3529_v11 = vld [vmem:[#allocation6 + $0x530] sm:$0xff]  ;;  %v3378_v21 = vld [vmem:[#allocation6 + $0x78] sm:$0xff] }
 0x45f   :  { %3869 = vmatpush.msrb.mxu0 %v3457_v9  ;;  %3886 = vmatpush.msrb.mxu1 %v3609_v5  ;;  %v3530_v9 = vld [vmem:[#allocation6 + $0x538] sm:$0xff]  ;;  %v3369_v5 = vld [vmem:[#allocation6 + $0x30] sm:$0xff] }
 0x460   :  { %3909 = vmatpush.msrb.mxu2 %v3458_v58  ;;  %3926 = vmatpush.msrb.mxu3 %v3610_v34  ;;  %v3521_v58 = vld [vmem:[#allocation6 + $0x4f0] sm:$0xff]  ;;  %v3370_v34 = vld [vmem:[#allocation6 + $0x38] sm:$0xff] }
 0x461   :  { %3870 = vmatpush.msrb.mxu0 %v3449_v10  ;;  %3887 = vmatpush.msrb.mxu1 %v3601_v48  ;;  %v3522_v10 = vld [vmem:[#allocation6 + $0x4f8] sm:$0xff]  ;;  %v3513_v48 = vld [vmem:[#allocation6 + $0x4b0] sm:$0xff] }
 0x462   :  { %3910 = vmatpush.msrb.mxu2 %v3450_v55  ;;  %3927 = vmatpush.msrb.mxu3 %v3602_v22  ;;  %v3514_v55 = vld [vmem:[#allocation6 + $0x4b8] sm:$0xff]  ;;  %v3505_v22 = vld [vmem:[#allocation6 + $0x470] sm:$0xff] }
 0x463   :  { %3871 = vmatpush.msrb.mxu0 %v3441_v60  ;;  %3888 = vmatpush.msrb.mxu1 %v3593_v29  ;;  %v3506_v60 = vld [vmem:[#allocation6 + $0x478] sm:$0xff]  ;;  %v3497_v29 = vld [vmem:[#allocation6 + $0x430] sm:$0xff] }
 0x464   :  { %3911 = vmatpush.msrb.mxu2 %v3442_v12  ;;  %3928 = vmatpush.msrb.mxu3 %v3594_v57  ;;  %v3498_v12 = vld [vmem:[#allocation6 + $0x438] sm:$0xff]  ;;  %v4207_v57 = vld [vmem:[#allocation6 + $0x3c0] sm:$0xff] }
 0x465   :  { %3872 = vmatpush.msrb.mxu0 %v3433_v37  ;;  %3889 = vmatpush.msrb.mxu1 %v3585_v56  ;;  %v4208_v37 = vld [vmem:[#allocation6 + $0x3c8] sm:$0xff]  ;;  %v4199_v56 = vld [vmem:[#allocation6 + $0x380] sm:$0xff] }
 0x466   :  { %3912 = vmatpush.msrb.mxu2 %v3434_v63  ;;  %3929 = vmatpush.msrb.mxu3 %v3586_v17  ;;  %v4191_v63 = vld [vmem:[#allocation6 + $0x340] sm:$0xff]  ;;  %v4192_v17 = vld [vmem:[#allocation6 + $0x348] sm:$0xff] }
 0x467   :  { %3873 = vmatpush.msrb.mxu0 %v3425_v1  ;;  %3890 = vmatpush.msrb.mxu1 %v3577_v16  ;;  %v4183_v1 = vld [vmem:[#allocation6 + $0x300] sm:$0xff] }
 0x468   :  { %3913 = vmatpush.msrb.mxu2 %v3426_v3  ;;  %3930 = vmatpush.msrb.mxu3 %v3578_v43  ;;  %v4335_v16 = vld [vmem:[#allocation6 + $0x7c0] sm:$0xff]  ;;  %v4184_v3 = vld [vmem:[#allocation6 + $0x308] sm:$0xff] }
 0x469   :  { %3874 = vmatpush.msrb.mxu0 %v3417_v27  ;;  %3891 = vmatpush.msrb.mxu1 %v3569_v38  ;;  %v4336_v43 = vld [vmem:[#allocation6 + $0x7c8] sm:$0xff]  ;;  %v4327_v27 = vld [vmem:[#allocation6 + $0x780] sm:$0xff] }
 0x46a   :  { %3914 = vmatpush.msrb.mxu2 %v3418_v39  ;;  %3931 = vmatpush.msrb.mxu3 %v3570_v13  ;;  %v4176_v38 = vld [vmem:[#allocation6 + $0x2c8] sm:$0xff]  ;;  %v4167_v13 = vld [vmem:[#allocation6 + $0x280] sm:$0xff] }
 0x46b   :  { %3875 = vmatpush.msrb.mxu0 %v3409_v15  ;;  %3892 = vmatpush.msrb.mxu1 %v3561_v44  ;;  %v4328_v39 = vld [vmem:[#allocation6 + $0x788] sm:$0xff]  ;;  %v4319_v15 = vld [vmem:[#allocation6 + $0x740] sm:$0xff] }
 0x46c   :  { %3915 = vmatpush.msrb.mxu2 %v3410_v6  ;;  %3932 = vmatpush.msrb.mxu3 %v3562_v47  ;;  %v4168_v44 = vld [vmem:[#allocation6 + $0x288] sm:$0xff] }
 0x46d   :  { %3876 = vmatpush.msrb.mxu0 %v3401_v0  ;;  %3893 = vmatpush.msrb.mxu1 %v3553_v54  ;;  %v4320_v47 = vld [vmem:[#allocation6 + $0x748] sm:$0xff]  ;;  %v4159_v0 = vld [vmem:[#allocation6 + $0x240] sm:$0xff] }
 0x46e   :  { %3916 = vmatpush.msrb.mxu2 %v3402_v40  ;;  %3933 = vmatpush.msrb.mxu3 %v3554_v35  ;;  %v4311_v54 = vld [vmem:[#allocation6 + $0x700] sm:$0xff]  ;;  %v4160_v40 = vld [vmem:[#allocation6 + $0x248] sm:$0xff] }
 0x46f   :  { %3877 = vmatpush.msrb.mxu0 %v3393_v8  ;;  %3894 = vmatpush.msrb.mxu1 %v3545_v42  ;;  %v4312_v8 = vld [vmem:[#allocation6 + $0x708] sm:$0xff]  ;;  %v4151_v42 = vld [vmem:[#allocation6 + $0x200] sm:$0xff] }
 0x470   :  { %3917 = vmatpush.msrb.mxu2 %v3394_v2  ;;  %3934 = vmatpush.msrb.mxu3 %v3546_v61  ;;  %v4303_v2 = vld [vmem:[#allocation6 + $0x6c0] sm:$0xff]  ;;  %v4152_v61 = vld [vmem:[#allocation6 + $0x208] sm:$0xff] }
 0x471   :  { %3878 = vmatpush.msrb.mxu0 %v3385_v52  ;;  %3895 = vmatpush.msrb.mxu1 %v3537_v20  ;;  %v4304_v52 = vld [vmem:[#allocation6 + $0x6c8] sm:$0xff]  ;;  %v4143_v20 = vld [vmem:[#allocation6 + $0x1c0] sm:$0xff] }
 0x472   :  { %3918 = vmatpush.msrb.mxu2 %v3386_v28  ;;  %3935 = vmatpush.msrb.mxu3 %v3538_v59  ;;  %v4295_v28 = vld [vmem:[#allocation6 + $0x680] sm:$0xff]  ;;  %v4144_v59 = vld [vmem:[#allocation6 + $0x1c8] sm:$0xff] }
 0x473   :  { %3879 = vmatpush.msrb.mxu0 %v3377_v14  ;;  %3896 = vmatpush.msrb.mxu1 %v3529_v11  ;;  %v4296_v11 = vld [vmem:[#allocation6 + $0x688] sm:$0xff] }
 0x474   :  { %3919 = vmatpush.msrb.mxu2 %v3378_v21  ;;  %3936 = vmatpush.msrb.mxu3 %v3530_v9  ;;  %v4135_v21 = vld [vmem:[#allocation6 + $0x180] sm:$0xff] }
 0x475   :  { %3880 = vmatpush.msrb.mxu0 %v3369_v5  ;;  %3897 = vmatpush.msrb.mxu1 %v3521_v58  ;;  %v4287_v9 = vld [vmem:[#allocation6 + $0x640] sm:$0xff]  ;;  %v4136_v5 = vld [vmem:[#allocation6 + $0x188] sm:$0xff] }
 0x476   :  { %3920 = vmatpush.msrb.mxu2 %v3370_v34  ;;  %3937 = vmatpush.msrb.mxu3 %v3522_v10  ;;  %v4288_v58 = vld [vmem:[#allocation6 + $0x648] sm:$0xff]  ;;  %v4127_v34 = vld [vmem:[#allocation6 + $0x140] sm:$0xff] }
 0x477   :  { %3881 = vmatmul.f32.vlgmr.msrb.gmra.mxu0 %v9436_v36  ;;  %3921 = vmatmul.f32.vlgmr.msrb.gmra.mxu2 %v9436_v36  ;;  %v4200_v36 = vld [vmem:[#allocation6 + $0x388] sm:$0xff] }
 0x478   :  { %3898 = vmatpush.msrb.mxu1 %v3513_v48  ;;  %3938 = vmatpush.msrb.mxu3 %v3514_v55  ;;  %v4279_v48 = vld [vmem:[#allocation6 + $0x600] sm:$0xff]  ;;  %v4128_v55 = vld [vmem:[#allocation6 + $0x148] sm:$0xff] }
 0x479   :  { %4343 = vmatpush.msra.mxu0 %v4207_v57  ;;  %4383 = vmatpush.msra.mxu2 %v4208_v37  ;;  %v4120_v57 = vld [vmem:[#allocation6 + $0x108] sm:$0xff] }
 0x47a   :  { %3899 = vmatpush.msrb.mxu1 %v3505_v22  ;;  %3939 = vmatpush.msrb.mxu3 %v3506_v60  ;;  %v4280_v22 = vld [vmem:[#allocation6 + $0x608] sm:$0xff] }
 0x47b   :  { %4344 = vmatpush.msra.mxu0 %v4199_v56  ;;  %4384 = vmatpush.msra.mxu2 %v4200_v36  ;;  %v4272_v36 = vld [vmem:[#allocation6 + $0x5c8] sm:$0xff] }
 0x47c   :  { %3900 = vmatpush.msrb.mxu1 %v3497_v29  ;;  %3940 = vmatpush.msrb.mxu3 %v3498_v12  ;;  %v4119_v29 = vld [vmem:[#allocation6 + $0x100] sm:$0xff] }
 0x47d   :  { %3901 = vmatmul.f32.vlgmr.msrb.gmra.mxu1 %v9440_v4  ;;  %3941 = vmatmul.f32.vlgmr.msrb.gmra.mxu3 %v9440_v4  ;;  %v4175_v4 = vld [vmem:[#allocation6 + $0x2c0] sm:$0xff] }
 0x47e   :  { %4345 = vmatpush.msra.mxu0 %v4191_v63  ;;  %4385 = vmatpush.msra.mxu2 %v4192_v17  ;;  %v4271_v12 = vld [vmem:[#allocation6 + $0x5c0] sm:$0xff] }
 0x47f   :  { %4363 = vmatpush.msra.mxu1 %v4335_v16  ;;  %4403 = vmatpush.msra.mxu3 %v4336_v43  ;;  %v4111_v63 = vld [vmem:[#allocation6 + $0xc0] sm:$0xff]  ;;  %v4112_v16 = vld [vmem:[#allocation6 + $0xc8] sm:$0xff] }
 0x480   :  { %4346 = vmatpush.msra.mxu0 %v4183_v1  ;;  %4386 = vmatpush.msra.mxu2 %v4184_v3  ;;  %v4263_v17 = vld [vmem:[#allocation6 + $0x580] sm:$0xff]  ;;  %v4264_v3 = vld [vmem:[#allocation6 + $0x588] sm:$0xff] }
 0x481   :  { %4364 = vmatpush.msra.mxu1 %v4327_v27  ;;  %4404 = vmatpush.msra.mxu3 %v4328_v39  ;;  %v4103_v43 = vld [vmem:[#allocation6 + $0x80] sm:$0xff]  ;;  %v9464_v39 = vadd.f32 %v8909_v25, %v172_v30  ;;  %v4248_v25 = vld [vmem:[#allocation6 + $0x508] sm:$0xff] }
 0x482   :  { %4347 = vmatpush.msra.mxu0 %v4175_v4  ;;  %4387 = vmatpush.msra.mxu2 %v4176_v38  ;;  %v9459_v4 = vadd.f32 %v8905_v23, %v170_v7  ;;  %v4255_v27 = vld [vmem:[#allocation6 + $0x540] sm:$0xff]  ;;  %v4104_v38 = vld [vmem:[#allocation6 + $0x88] sm:$0xff] }
 0x483   :  { %4365 = vmatpush.msra.mxu1 %v4319_v15  ;;  %4405 = vmatpush.msra.mxu3 %v4320_v47  ;;  %v4095_v7 = vld [vmem:[#allocation6 + $0x40] sm:$0xff]  ;;  %v4096_v47 = vld [vmem:[#allocation6 + $0x48] sm:$0xff] }
 0x484   :  { %4348 = vmatpush.msra.mxu0 %v4167_v13  ;;  %4388 = vmatpush.msra.mxu2 %v4168_v44  ;;  %v4256_v13 = vld [vmem:[#allocation6 + $0x548] sm:$0xff] }
 0x485   :  { %4366 = vmatpush.msra.mxu1 %v4311_v54  ;;  %4406 = vmatpush.msra.mxu3 %v4312_v8  ;;  %v4088_v8 = vld [vmem:[#allocation6 + $0x8] sm:$0xff] }
 0x486   :  { %4349 = vmatpush.msra.mxu0 %v4159_v0  ;;  %4389 = vmatpush.msra.mxu2 %v4160_v40  ;;  %v4087_v40 = vld [vmem:[#allocation6] sm:$0xff] }
 0x487   :  { %4367 = vmatpush.msra.mxu1 %v4303_v2  ;;  %4407 = vmatpush.msra.mxu3 %v4304_v52  ;;  %v4209_v52 = vld [vmem:[#allocation6 + $0x3d0] sm:$0xff] }
 0x488   :  { %4350 = vmatpush.msra.mxu0 %v4151_v42  ;;  %4390 = vmatpush.msra.mxu2 %v4152_v61  ;;  %v9471_v42 = vadd.f32 %v8907_v24, %v171_v49  ;;  %v4240_v61 = vld [vmem:[#allocation6 + $0x4c8] sm:$0xff]  ;;  %v4201_v24 = vld [vmem:[#allocation6 + $0x390] sm:$0xff]  ;;  %v4202_v49 = vld [vmem:[#allocation6 + $0x398] sm:$0xff] }
 0x489   :  { %4368 = vmatpush.msra.mxu1 %v4295_v28  ;;  %4408 = vmatpush.msra.mxu3 %v4296_v11  ;;  %v4232_v11 = vld [vmem:[#allocation6 + $0x488] sm:$0xff] }
 0x48a   :  { %4351 = vmatpush.msra.mxu0 %v4143_v20  ;;  %4391 = vmatpush.msra.mxu2 %v4144_v59  ;;  %v9476_v20 = vadd.f32 %v8911_v26, %v173_v53  ;;  %v4210_v59 = vld [vmem:[#allocation6 + $0x3d8] sm:$0xff]  ;;  %v4193_v26 = vld [vmem:[#allocation6 + $0x350] sm:$0xff] }
 0x48b   :  { %4369 = vmatpush.msra.mxu1 %v4287_v9  ;;  %4409 = vmatpush.msra.mxu3 %v4288_v58  ;;  %v4224_v58 = vld [vmem:[#allocation6 + $0x448] sm:$0xff]  ;;  %v4194_v53 = vld [vmem:[#allocation6 + $0x358] sm:$0xff] }
 0x48c   :  { %4352 = vmatpush.msra.mxu0 %v4135_v21  ;;  %4392 = vmatpush.msra.mxu2 %v4136_v5  ;;  %v4223_v5 = vld [vmem:[#allocation6 + $0x440] sm:$0xff] }
 0x48d   :  { %4370 = vmatpush.msra.mxu1 %v4279_v48  ;;  %4410 = vmatpush.msra.mxu3 %v4280_v22  ;;  %v4337_v22 = vld [vmem:[#allocation6 + $0x7d0] sm:$0xff] }
 0x48e   :  { %4353 = vmatpush.msra.mxu0 %v4127_v34  ;;  %4393 = vmatpush.msra.mxu2 %v4128_v55  ;;  %v4215_v34 = vld [vmem:[#allocation6 + $0x400] sm:$0xff]  ;;  %v4185_v55 = vld [vmem:[#allocation6 + $0x310] sm:$0xff] }
 0x48f   :  { %4371 = vmatpush.msra.mxu1 %v4271_v12  ;;  %4411 = vmatpush.msra.mxu3 %v4272_v36  ;;  %v4338_v12 = vld [vmem:[#allocation6 + $0x7d8] sm:$0xff] }
 0x490   :  { %4354 = vmatpush.msra.mxu0 %v4119_v29  ;;  %4394 = vmatpush.msra.mxu2 %v4120_v57  ;;  %v4177_v57 = vld [vmem:[#allocation6 + $0x2d0] sm:$0xff]  ;;  %v4330_v36 = vld [vmem:[#allocation6 + $0x798] sm:$0xff] }
 0x491   :  { %4372 = vmatpush.msra.mxu1 %v4263_v17  ;;  %4412 = vmatpush.msra.mxu3 %v4264_v3  ;;  %v4169_v17 = vld [vmem:[#allocation6 + $0x290] sm:$0xff] }
 0x492   :  { %4355 = vmatpush.msra.mxu0 %v4111_v63  ;;  %4395 = vmatpush.msra.mxu2 %v4112_v16  ;;  %v4170_v16 = vld [vmem:[#allocation6 + $0x298] sm:$0xff] }
 0x493   :  { %4373 = vmatpush.msra.mxu1 %v4255_v27  ;;  %4413 = vmatpush.msra.mxu3 %v4256_v13  ;;  %v4161_v27 = vld [vmem:[#allocation6 + $0x250] sm:$0xff]  ;;  %v4162_v13 = vld [vmem:[#allocation6 + $0x258] sm:$0xff] }
 0x494   :  { %4356 = vmatpush.msra.mxu0 %v4103_v43  ;;  %4396 = vmatpush.msra.mxu2 %v4104_v38  ;;  %v4322_v43 = vld [vmem:[#allocation6 + $0x758] sm:$0xff]  ;;  %v4313_v38 = vld [vmem:[#allocation6 + $0x710] sm:$0xff] }
 0x495   :  { %4414 = vmatpush.msra.mxu3 %v4248_v25  ;;  %v4145_v25 = vld [vmem:[#allocation6 + $0x1d0] sm:$0xff] }
 0x496   :  { %4357 = vmatpush.msra.mxu0 %v4095_v7  ;;  %4397 = vmatpush.msra.mxu2 %v4096_v47  ;;  %v4153_v7 = vld [vmem:[#allocation6 + $0x210] sm:$0xff]  ;;  %v4154_v47 = vld [vmem:[#allocation6 + $0x218] sm:$0xff] }
 0x497   :  { %4415 = vmatpush.msra.mxu3 %v4240_v61  ;;  %v4289_v61 = vld [vmem:[#allocation6 + $0x650] sm:$0xff] }
 0x498   :  { %4358 = vmatpush.msra.mxu0 %v4087_v40  ;;  %4398 = vmatpush.msra.mxu2 %v4088_v8  ;;  %v4146_v40 = vld [vmem:[#allocation6 + $0x1d8] sm:$0xff] }
 0x499   :  { %4416 = vmatpush.msra.mxu3 %v4232_v11  ;;  %v4298_v8 = vld [vmem:[#allocation6 + $0x698] sm:$0xff]  ;;  %v4129_v11 = vld [vmem:[#allocation6 + $0x150] sm:$0xff] }
 0x49a   :  { %4423 = vmatpush.msrb.mxu0 %v4209_v52  ;;  %4463 = vmatpush.msrb.mxu2 %v4210_v59  ;;  %v4138_v52 = vld [vmem:[#allocation6 + $0x198] sm:$0xff] }
 0x49b   :  { %4417 = vmatpush.msra.mxu3 %v4224_v58  ;;  %v4290_v59 = vld [vmem:[#allocation6 + $0x658] sm:$0xff]  ;;  %v4121_v58 = vld [vmem:[#allocation6 + $0x110] sm:$0xff] }
 0x49c   :  { %4424 = vmatpush.msrb.mxu0 %v4201_v24  ;;  %4464 = vmatpush.msrb.mxu2 %v4202_v49  ;;  %v4130_v24 = vld [vmem:[#allocation6 + $0x158] sm:$0xff] }
 0x49e   :  { %4425 = vmatpush.msrb.mxu0 %v4193_v26  ;;  %4465 = vmatpush.msrb.mxu2 %v4194_v53  ;;  %v4273_v26 = vld [vmem:[#allocation6 + $0x5d0] sm:$0xff]  ;;  %v4122_v53 = vld [vmem:[#allocation6 + $0x118] sm:$0xff] }
 0x4a0   :  { %4426 = vmatpush.msrb.mxu0 %v4185_v55  ;;  %v4113_v55 = vld [vmem:[#allocation6 + $0xd0] sm:$0xff] }
 0x4a2   :  { %4427 = vmatpush.msrb.mxu0 %v4177_v57  ;;  %v4257_v57 = vld [vmem:[#allocation6 + $0x550] sm:$0xff] }
 0x4a4   :  { %4428 = vmatpush.msrb.mxu0 %v4169_v17 }
 0x4a6   :  { %4429 = vmatpush.msrb.mxu0 %v4161_v27 }
 0x4a8   :  { %4430 = vmatpush.msrb.mxu0 %v4153_v7 }
 0x4aa   :  { %4431 = vmatpush.msrb.mxu0 %v4145_v25  ;;  %v4241_v25 = vld [vmem:[#allocation6 + $0x4d0] sm:$0xff] }
 0x4af   :  { %v3642_v35 = vpop.f32.mrf.mxu0 }
 0x4b5   :  { %v3662_v6 = vpop.f32.mrf.mxu1  ;;  %v3682_v10 = vpop.f32.mrf.mxu2 }
 0x4b6   :  { %v3663_v37 = vadd.f32 %v3662_v6, %v3642_v35  ;;  %v4247_v6 = vld [vmem:[#allocation6 + $0x500] sm:$0xff] }
 0x4b7   :  { %4374 = vmatpush.msra.mxu1 %v4247_v6  ;;  %v4239_v35 = vld [vmem:[#allocation6 + $0x4c0] sm:$0xff]  ;;  %v4305_v6 = vld [vmem:[#allocation6 + $0x6d0] sm:$0xff] }
 0x4b8   :  { %v3722_v56 = vpop.f32.mrf.mxu0  ;;  %v3945_v15 = vadd.f32 %v3663_v37, %v9459_v4  ;;  %v4329_v37 = vld [vmem:[#allocation6 + $0x790] sm:$0xff] }
 0x4b9   :  { %4375 = vmatpush.msra.mxu1 %v4239_v35 }
 0x4ba   :  { %v8105_v2 = vmul.f32 -1.442695, %v3945_v15 }
 0x4bb   :  { %v3702_v14 = vpop.f32.mrf.mxu3 }
 0x4bc   :  { %v3703_v0 = vadd.f32 %v3702_v14, %v3682_v10  ;;  %v4231_v14 = vld [vmem:[#allocation6 + $0x480] sm:$0xff]  ;;  %8359 = vpow2.f32 %v8105_v2  ;;  %v4216_v10 = vld [vmem:[#allocation6 + $0x408] sm:$0xff]  ;;  %v4137_v2 = vld [vmem:[#allocation6 + $0x190] sm:$0xff] }
 0x4bd   :  { %4376 = vmatpush.msra.mxu1 %v4231_v14  ;;  %4418 = vmatpush.msra.mxu3 %v4216_v10  ;;  %v4274_v10 = vld [vmem:[#allocation6 + $0x5d8] sm:$0xff] }
 0x4be   :  { %v3762_v54 = vpop.f32.mrf.mxu2  ;;  %v3946_v21 = vadd.f32 %v3703_v0, %v9471_v42  ;;  %v4306_v0 = vld [vmem:[#allocation6 + $0x6d8] sm:$0xff]  ;;  %4432 = vmatpush.msrb.mxu0 %v4137_v2  ;;  %v9512_v2 = vadd.f32 %v8921_v32, %v174_v51 }
 0x4bf   :  { %v3742_v60 = vpop.f32.mrf.mxu1  ;;  %4377 = vmatpush.msra.mxu1 %v4223_v5  ;;  %4483 = vmatpush.msrb.mxu3 %v4338_v12  ;;  %v4282_v5 = vld [vmem:[#allocation6 + $0x618] sm:$0xff]  ;;  %v4105_v12 = vld [vmem:[#allocation6 + $0x90] sm:$0xff] }
 0x4c0   :  { %v3743_v1 = vadd.f32 %v3742_v60, %v3722_v56  ;;  %v8106_v48 = vmul.f32 -1.442695, %v3946_v21  ;;  %v4186_v60 = vld [vmem:[#allocation6 + $0x318] sm:$0xff]  ;;  %v4281_v21 = vld [vmem:[#allocation6 + $0x610] sm:$0xff]  ;;  %4433 = vmatpush.msrb.mxu0 %v4129_v11 }
 0x4c1   :  { %4378 = vmatpush.msra.mxu1 %v4215_v34  ;;  %v4178_v56 = vld [vmem:[#allocation6 + $0x2d8] sm:$0xff]  ;;  %4466 = vmatpush.msrb.mxu2 %v4186_v60 }
 0x4c2   :  { %v3947_v23 = vadd.f32 %v3743_v1, %v9464_v39  ;;  %v8360_v63 = vpop.eup %8359  ;;  %v4321_v1 = vld [vmem:[#allocation6 + $0x750] sm:$0xff]  ;;  %4484 = vmatpush.msrb.mxu3 %v4330_v36  ;;  %4434 = vmatpush.msrb.mxu0 %v4121_v58  ;;  %v4114_v60 = vld [vmem:[#allocation6 + $0xd8] sm:$0xff]  ;;  %v9525_v58 = vadd.f32 %v8927_v46, %v177_v31 }
 0x4c3   :  { %4443 = vmatpush.msrb.mxu1 %v4337_v22  ;;  %4467 = vmatpush.msrb.mxu2 %v4178_v56  ;;  %v9480_v15 = vadd.f32 1.0, %v8360_v63  ;;  %v4265_v22 = vld [vmem:[#allocation6 + $0x590] sm:$0xff] }
 0x4c4   :  { %v8107_v28 = vmul.f32 -1.442695, %v3947_v23  ;;  %4485 = vmatpush.msrb.mxu3 %v4322_v43  ;;  %4435 = vmatpush.msrb.mxu0 %v4113_v55  ;;  %v4098_v43 = vld [vmem:[#allocation6 + $0x58] sm:$0xff] }
 0x4c5   :  { %v3782_v44 = vpop.f32.mrf.mxu3  ;;  %4444 = vmatpush.msrb.mxu1 %v4329_v37  ;;  %4468 = vmatpush.msrb.mxu2 %v4170_v16  ;;  %v4106_v37 = vld [vmem:[#allocation6 + $0x98] sm:$0xff]  ;;  %v4097_v16 = vld [vmem:[#allocation6 + $0x50] sm:$0xff]  ;;  %v3972_v46 = vand.u32 2147483648, %v9480_v15  ;;  %vm3966_vm4 = vweird.f32 %v9480_v15 }
 0x4c6   :  { %v3783_v30 = vadd.f32 %v3782_v44, %v3762_v54  ;;  %8361 = vpow2.f32 %v8107_v28  ;;  %v4314_v44 = vld [vmem:[#allocation6 + $0x718] sm:$0xff]  ;;  %4436 = vmatpush.msrb.mxu0 %v4105_v12 }
 0x4c7   :  { %8363 = vpow2.f32 %v8106_v48  ;;  %4445 = vmatpush.msrb.mxu1 %v4321_v1  ;;  %4469 = vmatpush.msrb.mxu2 %v4162_v13  ;;  %v4258_v1 = vld [vmem:[#allocation6 + $0x558] sm:$0xff] }
 0x4c8   :  { %v3948_v9 = vadd.f32 %v3783_v30, %v9476_v20  ;;  %4486 = vmatpush.msrb.mxu3 %v4314_v44  ;;  %v4297_v30 = vld [vmem:[#allocation6 + $0x690] sm:$0xff]  ;;  %v4250_v44 = vld [vmem:[#allocation6 + $0x518] sm:$0xff]  ;;  %4437 = vmatpush.msrb.mxu0 %v4097_v16 }
 0x4c9   :  { %4446 = vmatpush.msrb.mxu1 %v4313_v38  ;;  %4470 = vmatpush.msrb.mxu2 %v4154_v47  ;;  %v4218_v12 = vld [vmem:[#allocation6 + $0x418] sm:$0xff] }
 0x4ca   :  { %v8108_v29 = vmul.f32 -1.442695, %v3948_v9  ;;  %4487 = vmatpush.msrb.mxu3 %v4306_v0 }
 0x4cb   :  { %4447 = vmatpush.msrb.mxu1 %v4305_v6  ;;  %4471 = vmatpush.msrb.mxu2 %v4146_v40  ;;  %v9507_v6 = vadd.f32 %v8925_v45, %v176_v41 }
 0x4cc   :  { %v8362_v3 = vpop.eup %8361  ;;  %8365 = vpow2.f32 %v8108_v29  ;;  %4488 = vmatpush.msrb.mxu3 %v4298_v8  ;;  %v4266_v29 = vld [vmem:[#allocation6 + $0x598] sm:$0xff] }
 0x4cd   :  { %v9482_v23 = vadd.f32 1.0, %v8362_v3  ;;  %v8364_v54 = vpop.eup %8363  ;;  %8367 = vrcp.f32 %v9480_v15  ;;  %4448 = vmatpush.msrb.mxu1 %v4297_v30  ;;  %4472 = vmatpush.msrb.mxu2 %v4138_v52  ;;  %v4249_v3 = vld [vmem:[#allocation6 + $0x510] sm:$0xff]  ;;  %v4090_v30 = vld [vmem:[#allocation6 + $0x18] sm:$0xff] }
 0x4ce   :  { %v9486_v28 = vadd.f32 1.0, %v8364_v54  ;;  %4489 = vmatpush.msrb.mxu3 %v4290_v59  ;;  %v4089_v54 = vld [vmem:[#allocation6 + $0x10] sm:$0xff]  ;;  %v4242_v8 = vld [vmem:[#allocation6 + $0x4d8] sm:$0xff] }
 0x4cf   :  { %8369 = vrcp.f32 %v9482_v23  ;;  %4449 = vmatpush.msrb.mxu1 %v4289_v61  ;;  %4473 = vmatpush.msrb.mxu2 %v4130_v24  ;;  %v4233_v52 = vld [vmem:[#allocation6 + $0x490] sm:$0xff]  ;;  %v4234_v59 = vld [vmem:[#allocation6 + $0x498] sm:$0xff]  ;;  %vm4004_vm5 = vweird.f32 %v9482_v23 }
 0x4d0   :  { %8371 = vrcp.f32 %v9486_v28  ;;  %4490 = vmatpush.msrb.mxu3 %v4282_v5  ;;  %4438 = vmatpush.msrb.mxu0 %v4089_v54  ;;  %v4226_v5 = vld [vmem:[#allocation6 + $0x458] sm:$0xff]  ;;  %vm3981_vm9 = vweird.f32 %v9486_v28 }
 0x4d1   :  { %4450 = vmatpush.msrb.mxu1 %v4281_v21  ;;  %4474 = vmatpush.msrb.mxu2 %v4122_v53 }
 0x4d2   :  { %v8366_v35 = vpop.eup %8365  ;;  %v3802_v49 = vpop.f32.mrf.mxu0  ;;  %4491 = vmatpush.msrb.mxu3 %v4274_v10  ;;  %v9530_v10 = vadd.f32 %v8923_v33, %v175_v18  ;;  %v4010_v18 = vand.u32 2147483648, %v9482_v23 }
 0x4d3   :  { %v9488_v14 = vadd.f32 1.0, %v8366_v35  ;;  %v9490_v34 = vpop.eup %8367  ;;  %4451 = vmatpush.msrb.mxu1 %v4273_v26  ;;  %4475 = vmatpush.msrb.mxu2 %v4114_v60  ;;  %v3970_v60 = vand.u32 2147483647, %v9480_v15 }
 0x4d4   :  { %v3962_v56 = vmul.f32 %v9490_v34, %v9480_v15  ;;  %4492 = vmatpush.msrb.mxu3 %v4266_v29  ;;  %v4217_v29 = vld [vmem:[#allocation6 + $0x410] sm:$0xff]  ;;  %vm3967_vm2 = vweird.f32 %v9490_v34 }
 0x4d5   :  { %v9493_v48 = vpop.eup %8369  ;;  %8373 = vrcp.f32 %v9488_v14  ;;  %4452 = vmatpush.msrb.mxu1 %v4265_v22  ;;  %4476 = vmatpush.msrb.mxu2 %v4106_v37  ;;  %vm9547_vm6 = vmor %vm3966_vm4, %vm3967_vm2  ;;  %vm9559_vm8 = vcmp.eq.f32.partialorder %v3970_v60, 8.507059e+37  ;;  %vm4019_vm13 = vweird.f32 %v9488_v14 }
 0x4d6   :  { %v4000_v36 = vmul.f32 %v9493_v48, %v9482_v23  ;;  %v9500_v27 = vpop.eup %8371  ;;  %4493 = vmatpush.msrb.mxu3 %v4258_v1  ;;  %v3963_v40 = vsub.f32 1.0, %v3962_v56  ;;  %vm4005_vm3 = vweird.f32 %v9493_v48  ;;  %v4071_v1 = vrot.slane %v9429_v19, 6 }
 0x4d7   :  { %4453 = vmatpush.msrb.mxu1 %v4257_v57  ;;  %4477 = vmatpush.msrb.mxu2 %v4098_v43  ;;  %v3977_v41 = vmul.f32 %v9500_v27, %v9486_v28  ;;  %v4008_v57 = vand.u32 2147483647, %v9482_v23  ;;  %vm9555_vm7 = vmor %vm4004_vm5, %vm4005_vm3  ;;  %vm3982_vm11 = vweird.f32 %v9500_v27 }
 0x4d8   :  { %v3842_v63 = vpop.f32.mrf.mxu2  ;;  %v4001_v35 = vsub.f32 1.0, %v4000_v36  ;;  %4494 = vmatpush.msrb.mxu3 %v4250_v44  ;;  %v3964_v51 = vmul.f32 %v9490_v34, %v3963_v40  ;;  %v4011_v44 = vor.u32 1.1754944e-38, %v4010_v18  ;;  %vm9581_vm14 = vmor %vm3981_vm9, %vm3982_vm11  ;;  %v4171_v40 = vld [vmem:[#allocation6 + $0x2a0] sm:$0xff] }
 0x4d9   :  { %v3822_v9 = vpop.f32.mrf.mxu1  ;;  %4454 = vmatpush.msrb.mxu1 %v4249_v3  ;;  %4478 = vmatpush.msrb.mxu2 %v4090_v30  ;;  %v3978_v55 = vsub.f32 1.0, %v3977_v41  ;;  %v3973_v3 = vor.u32 1.1754944e-38, %v3972_v46  ;;  %vm4009_vm10 = vcmp.eq.f32.partialorder %v4008_v57, 8.507059e+37 }
 0x4da   :  { %v3823_v47 = vadd.f32 %v3822_v9, %v3802_v49  ;;  %4495 = vmatpush.msrb.mxu3 %v4242_v8  ;;  %v4002_v32 = vmul.f32 %v9493_v48, %v4001_v35  ;;  %v4225_v9 = vld [vmem:[#allocation6 + $0x450] sm:$0xff]  ;;  %v3965_v33 = vadd.f32 %v9490_v34, %v3964_v51  ;;  %v3985_v35 = vand.u32 2147483647, %v9486_v28 }
 0x4db   :  { %v9502_v7 = vpop.eup %8373  ;;  %4455 = vmatpush.msrb.mxu1 %v4241_v25  ;;  %v3979_v15 = vmul.f32 %v9500_v27, %v3978_v55  ;;  %v3987_v25 = vand.u32 2147483648, %v9486_v28  ;;  %v4023_v8 = vand.u32 2147483647, %v9488_v14 }
 0x4dc   :  { %v4015_v61 = vmul.f32 %v9502_v7, %v9488_v14  ;;  %v3949_v11 = vadd.f32 %v3823_v47, %v9512_v2  ;;  %4496 = vmatpush.msrb.mxu3 %v4234_v59  ;;  %v4003_v62 = vadd.f32 %v9493_v48, %v4002_v32  ;;  %v3969_v43 = vsel %vm9547_vm6, %v9490_v34, %v3965_v33 }
 0x4dd   :  { %4456 = vmatpush.msrb.mxu1 %v4233_v52  ;;  %vm4020_vm12 = vweird.f32 %v9502_v7  ;;  %v3980_v47 = vadd.f32 %v9500_v27, %v3979_v15  ;;  %v4025_v34 = vand.u32 2147483648, %v9488_v14  ;;  %v3988_v32 = vor.u32 1.1754944e-38, %v3987_v25  ;;  %v4180_v25 = vld [vmem:[#allocation6 + $0x2e8] sm:$0xff] }
 0x4de   :  { %v4016_v22 = vsub.f32 1.0, %v4015_v61  ;;  %4497 = vmatpush.msrb.mxu3 %v4226_v5  ;;  %v4007_v19 = vsel %vm9555_vm7, %v9493_v48, %v4003_v62  ;;  %v3974_v48 = vsel %vm9559_vm8, %v3973_v3, %v3969_v43  ;;  %vm4021_vm15 = vmor %vm4019_vm13, %vm4020_vm12  ;;  %vm3986_vm0 = vcmp.eq.f32.partialorder %v3985_v35, 8.507059e+37  ;;  %v4195_v3 = vld [vmem:[#allocation6 + $0x360] sm:$0xff]  ;;  %v4196_v43 = vld [vmem:[#allocation6 + $0x368] sm:$0xff] }
 0x4df   :  { %v3862_v17 = vpop.f32.mrf.mxu3  ;;  %4457 = vmatpush.msrb.mxu1 %v4225_v9  ;;  %v4012_v54 = vsel %vm4009_vm10, %v4011_v44, %v4007_v19  ;;  %v3984_v61 = vsel %vm9581_vm14, %v9500_v27, %v3980_v47  ;;  %vm4024_vm1 = vcmp.eq.f32.partialorder %v4023_v8, 8.507059e+37  ;;  %v4072_v9 = vrot.slane %v9433_v50, 6  ;;  %v4187_v44 = vld [vmem:[#allocation6 + $0x320] sm:$0xff]  ;;  %v4172_v8 = vld [vmem:[#allocation6 + $0x2a8] sm:$0xff] }
 0x4e0   :  { %v3863_v26 = vadd.f32 %v3862_v17, %v3842_v63  ;;  %4498 = vmatpush.msrb.mxu3 %v4218_v12  ;;  %v4017_v36 = vmul.f32 %v9502_v7, %v4016_v22  ;;  %v4075_v41 = vmul.f32 %v4071_v1, %v4012_v54  ;;  %v3989_v28 = vsel %vm3986_vm0, %v3988_v32, %v3984_v61  ;;  %v4212_v63 = vld [vmem:[#allocation6 + $0x3e8] sm:$0xff]  ;;  %v4339_v47 = vld [vmem:[#allocation6 + $0x7e0] sm:$0xff] }
 0x4e1   :  { %4458 = vmatpush.msrb.mxu1 %v4217_v29  ;;  %v4204_v1 = vld [vmem:[#allocation6 + $0x3a8] sm:$0xff]  ;;  %v4331_v54 = vld [vmem:[#allocation6 + $0x7a0] sm:$0xff] }
 0x4e2   :  { %v3950_v37 = vadd.f32 %v3863_v26, %v9530_v10  ;;  %v4323_v35 = vld [vmem:[#allocation6 + $0x760] sm:$0xff]  ;;  %v4156_v32 = vld [vmem:[#allocation6 + $0x228] sm:$0xff] }
 0x4e3   :  { %v4315_v61 = vld [vmem:[#allocation6 + $0x720] sm:$0xff] }
 0x4f4   :  { %v3882_v38 = vpop.f32.mrf.mxu0 }
 0x4fa   :  { %v3902_v13 = vpop.f32.mrf.mxu1  ;;  %v3922_v24 = vpop.f32.mrf.mxu2 }
 0x4fb   :  { %v3903_v0 = vadd.f32 %v3902_v13, %v3882_v38 }
 0x4fd   :  { %v3951_v45 = vadd.f32 %v3903_v0, %v9507_v6  ;;  %v4018_v0 = vadd.f32 %v9502_v7, %v4017_v36  ;;  %v4211_v36 = vld [vmem:[#allocation6 + $0x3e0] sm:$0xff] }
 0x4ff   :  { %v8109_v21 = vmul.f32 -1.442695, %v3951_v45  ;;  %v4022_v52 = vsel %vm4021_vm15, %v9502_v7, %v4018_v0  ;;  %v4188_v0 = vld [vmem:[#allocation6 + $0x328] sm:$0xff] }
 0x500   :  { %v3942_v49 = vpop.f32.mrf.mxu3 }
 0x501   :  { %8375 = vpow2.f32 %v8109_v21  ;;  %v3943_v53 = vadd.f32 %v3942_v49, %v3922_v24  ;;  %v4026_v21 = vor.u32 1.1754944e-38, %v4025_v34  ;;  %v4340_v34 = vld [vmem:[#allocation6 + $0x7e8] sm:$0xff] }
 0x502   :  { %8377 = vtanh.f32 %v3949_v11 }
 0x503   :  { %v3952_v31 = vadd.f32 %v3943_v53, %v9525_v58  ;;  %v4027_v14 = vsel %vm4024_vm1, %v4026_v21, %v4022_v52  ;;  %v4164_v52 = vld [vmem:[#allocation6 + $0x268] sm:$0xff]  ;;  %v4307_v21 = vld [vmem:[#allocation6 + $0x6e0] sm:$0xff] }
 0x504   :  { %v4076_v27 = vmul.f32 %v4072_v9, %v4027_v14  ;;  %v4299_v14 = vld [vmem:[#allocation6 + $0x6a0] sm:$0xff]  ;;  %v4300_v9 = vld [vmem:[#allocation6 + $0x6a8] sm:$0xff] }
 0x505   :  { %v8110_v56 = vmul.f32 -1.442695, %v3952_v31 }
 0x507   :  { %v8376_v17 = vpop.eup %8375  ;;  %8379 = vpow2.f32 %v8110_v56 }
 0x508   :  { %v4037_v38 = vadd.f32 1.0, %v8376_v17  ;;  %v8378_v13 = vpop.eup %8377  ;;  %8381 = vtanh.f32 %v3950_v37  ;;  %v4203_v17 = vld [vmem:[#allocation6 + $0x3a0] sm:$0xff] }
 0x509   :  { %v4077_v30 = vmul.f32 %v8378_v13, %v3974_v48  ;;  %v4179_v48 = vld [vmem:[#allocation6 + $0x2e0] sm:$0xff] }
 0x50a   :  { %8383 = vrcp.f32 %v4037_v38  ;;  %v4050_v7 = vand.u32 2147483648, %v4037_v38  ;;  %v4048_v55 = vand.u32 2147483647, %v4037_v38  ;;  %vm4044_vm3 = vweird.f32 %v4037_v38 }
 0x50b   :  { %v9591_v24 = vadd.f32 %v4077_v30, %v4075_v41  ;;  %v4332_v30 = vld [vmem:[#allocation6 + $0x7a8] sm:$0xff]  ;;  %v4163_v41 = vld [vmem:[#allocation6 + $0x260] sm:$0xff] }
 0x50c   :  { %v4051_v46 = vor.u32 1.1754944e-38, %v4050_v7  ;;  %vm4049_vm5 = vcmp.eq.f32.partialorder %v4048_v55, 8.507059e+37  ;;  %v4292_v7 = vld [vmem:[#allocation6 + $0x668] sm:$0xff]  ;;  %v4283_v55 = vld [vmem:[#allocation6 + $0x620] sm:$0xff] }
 0x50d   :  { %v8380_v45 = vpop.eup %8379 }
 0x50e   :  { %v4038_v59 = vadd.f32 1.0, %v8380_v45  ;;  %v8382_v11 = vpop.eup %8381  ;;  %v4324_v45 = vld [vmem:[#allocation6 + $0x768] sm:$0xff] }
 0x50f   :  { %v4078_v5 = vmul.f32 %v8382_v11, %v3989_v28  ;;  %v4155_v11 = vld [vmem:[#allocation6 + $0x220] sm:$0xff] }
 0x510   :  { %v8384_v51 = vpop.eup %8383  ;;  %8385 = vrcp.f32 %v4038_v59  ;;  %v4065_v18 = vand.u32 2147483648, %v4038_v59  ;;  %v4063_v56 = vand.u32 2147483647, %v4038_v59  ;;  %vm4059_vm7 = vweird.f32 %v4038_v59  ;;  %v4147_v28 = vld [vmem:[#allocation6 + $0x1e0] sm:$0xff] }
 0x511   :  { %v4040_v49 = vmul.f32 %v8384_v51, %v4037_v38  ;;  %8387 = vtanh.f32 %v9591_v24  ;;  %vm4045_vm2 = vweird.f32 %v8384_v51  ;;  %v9595_v60 = vadd.f32 %v4078_v5, %v4076_v27  ;;  %v4139_v5 = vld [vmem:[#allocation6 + $0x1a0] sm:$0xff]  ;;  %v4140_v27 = vld [vmem:[#allocation6 + $0x1a8] sm:$0xff] }
 0x512   :  { %vm4046_vm4 = vmor %vm4044_vm3, %vm4045_vm2  ;;  %v4066_v16 = vor.u32 1.1754944e-38, %v4065_v18  ;;  %vm4064_vm9 = vcmp.eq.f32.partialorder %v4063_v56, 8.507059e+37  ;;  %v4116_v18 = vld [vmem:[#allocation6 + $0xe8] sm:$0xff]  ;;  %v4107_v56 = vld [vmem:[#allocation6 + $0xa0] sm:$0xff] }
 0x513   :  { %v4041_v26 = vsub.f32 1.0, %v4040_v49  ;;  %8389 = vtanh.f32 %v9595_v60  ;;  %v4148_v49 = vld [vmem:[#allocation6 + $0x1e8] sm:$0xff] }
 0x515   :  { %v4042_v53 = vmul.f32 %v8384_v51, %v4041_v26  ;;  %v4291_v26 = vld [vmem:[#allocation6 + $0x660] sm:$0xff] }
 0x516   :  { %v8386_v22 = vpop.eup %8385 }
 0x517   :  { %v4043_v29 = vadd.f32 %v8384_v51, %v4042_v53  ;;  %v4055_v12 = vmul.f32 %v8386_v22, %v4038_v59  ;;  %v8388_v33 = vpop.eup %8387  ;;  %vm4060_vm6 = vweird.f32 %v8386_v22  ;;  %v4316_v59 = vld [vmem:[#allocation6 + $0x728] sm:$0xff]  ;;  %v4131_v53 = vld [vmem:[#allocation6 + $0x160] sm:$0xff] }
 0x518   :  { %vm4061_vm8 = vmor %vm4059_vm7, %vm4060_vm6 }
 0x519   :  { %v4047_v31 = vsel %vm4046_vm4, %v8384_v51, %v4043_v29  ;;  %v4056_v50 = vsub.f32 1.0, %v4055_v12  ;;  %v8390_v19 = vpop.eup %8389  ;;  %v4308_v51 = vld [vmem:[#allocation6 + $0x6e8] sm:$0xff]  ;;  %v4123_v12 = vld [vmem:[#allocation6 + $0x120] sm:$0xff] }
 0x51a   :  { %v4052_v62 = vsel %vm4049_vm5, %v4051_v46, %v4047_v31  ;;  %v4284_v29 = vld [vmem:[#allocation6 + $0x628] sm:$0xff]  ;;  %v4275_v46 = vld [vmem:[#allocation6 + $0x5e0] sm:$0xff] }
 0x51b   :  { %v9598_v57 = vmul.f32 %v8388_v33, %v4052_v62  ;;  %v4057_v37 = vmul.f32 %v8386_v22, %v4056_v50  ;;  %v4124_v31 = vld [vmem:[#allocation6 + $0x128] sm:$0xff]  ;;  %v4115_v33 = vld [vmem:[#allocation6 + $0xe0] sm:$0xff] }
 0x51c   :  { %v4276_v50 = vld [vmem:[#allocation6 + $0x5e8] sm:$0xff]  ;;  %v4267_v62 = vld [vmem:[#allocation6 + $0x5a0] sm:$0xff] }
 0x51d   :  { %4085 = vst [vmem:[#allocation2 + $0x18] sm:$0x3] %v9598_v57  ;;  %v4058_v15 = vadd.f32 %v8386_v22, %v4057_v37  ;;  %4359 = vmatmul.f32.vlgmr.msra.gmra.mxu0 %v9598_v57  ;;  %4399 = vmatmul.f32.vlgmr.msra.gmra.mxu2 %v9598_v57  ;;  %v4268_v37 = vld [vmem:[#allocation6 + $0x5a8] sm:$0xff] }
 0x51e   :  { %4503 = vmatpush.msra.mxu0 %v4211_v36  ;;  %4543 = vmatpush.msra.mxu2 %v4212_v63  ;;  %v4259_v36 = vld [vmem:[#allocation6 + $0x560] sm:$0xff]  ;;  %v4108_v63 = vld [vmem:[#allocation6 + $0xa8] sm:$0xff] }
 0x51f   :  { %v4062_v23 = vsel %vm4061_vm8, %v8386_v22, %v4058_v15  ;;  %v4132_v22 = vld [vmem:[#allocation6 + $0x168] sm:$0xff] }
 0x520   :  { %v4067_v38 = vsel %vm4064_vm9, %v4066_v16, %v4062_v23  ;;  %4504 = vmatpush.msra.mxu0 %v4203_v17  ;;  %4544 = vmatpush.msra.mxu2 %v4204_v1  ;;  %v4260_v15 = vld [vmem:[#allocation6 + $0x568] sm:$0xff]  ;;  %v4099_v17 = vld [vmem:[#allocation6 + $0x60] sm:$0xff] }
 0x521   :  { %v9603_v13 = vmul.f32 %v8390_v19, %v4067_v38  ;;  %v4251_v1 = vld [vmem:[#allocation6 + $0x520] sm:$0xff]  ;;  %v4100_v16 = vld [vmem:[#allocation6 + $0x68] sm:$0xff] }
 0x522   :  { %4505 = vmatpush.msra.mxu0 %v4195_v3  ;;  %4545 = vmatpush.msra.mxu2 %v4196_v43  ;;  %v4252_v23 = vld [vmem:[#allocation6 + $0x528] sm:$0xff]  ;;  %v4091_v3 = vld [vmem:[#allocation6 + $0x20] sm:$0xff] }
 0x523   :  { %4086 = vst [vmem:[#allocation2 + $0x8] sm:$0x3] %v9603_v13  ;;  %4379 = vmatmul.f32.vlgmr.msra.gmra.mxu1 %v9603_v13  ;;  %4419 = vmatmul.f32.vlgmr.msra.gmra.mxu3 %v9603_v13  ;;  %v4243_v43 = vld [vmem:[#allocation6 + $0x4e0] sm:$0xff]  ;;  %v4092_v19 = vld [vmem:[#allocation6 + $0x28] sm:$0xff] }
 0x524   :  { %4506 = vmatpush.msra.mxu0 %v4187_v44  ;;  %4523 = vmatpush.msra.mxu1 %v4339_v47  ;;  %v4244_v38 = vld [vmem:[#allocation6 + $0x4e8] sm:$0xff]  ;;  %v4213_v44 = vld [vmem:[#allocation6 + $0x3f0] sm:$0xff]  ;;  %v4214_v47 = vld [vmem:[#allocation6 + $0x3f8] sm:$0xff] }
 0x525   :  { %4546 = vmatpush.msra.mxu2 %v4188_v0  ;;  %4563 = vmatpush.msra.mxu3 %v4340_v34  ;;  %v4235_v0 = vld [vmem:[#allocation6 + $0x4a0] sm:$0xff]  ;;  %v4236_v34 = vld [vmem:[#allocation6 + $0x4a8] sm:$0xff] }
 0x526   :  { %4439 = vmatmul.f32.vlgmr.msrb.gmra.mxu0 %v9598_v57  ;;  %4479 = vmatmul.f32.vlgmr.msrb.gmra.mxu2 %v9598_v57 }
 0x527   :  { %4507 = vmatpush.msra.mxu0 %v4179_v48  ;;  %4524 = vmatpush.msra.mxu1 %v4331_v54  ;;  %v4205_v48 = vld [vmem:[#allocation6 + $0x3b0] sm:$0xff]  ;;  %v4206_v54 = vld [vmem:[#allocation6 + $0x3b8] sm:$0xff] }
 0x528   :  { %4547 = vmatpush.msra.mxu2 %v4180_v25  ;;  %4564 = vmatpush.msra.mxu3 %v4332_v30  ;;  %v4227_v25 = vld [vmem:[#allocation6 + $0x460] sm:$0xff]  ;;  %v4228_v30 = vld [vmem:[#allocation6 + $0x468] sm:$0xff] }
 0x529   :  { %4508 = vmatpush.msra.mxu0 %v4171_v40  ;;  %4525 = vmatpush.msra.mxu1 %v4323_v35  ;;  %v4197_v40 = vld [vmem:[#allocation6 + $0x370] sm:$0xff]  ;;  %v4198_v35 = vld [vmem:[#allocation6 + $0x378] sm:$0xff] }
 0x52a   :  { %4548 = vmatpush.msra.mxu2 %v4172_v8  ;;  %4565 = vmatpush.msra.mxu3 %v4324_v45  ;;  %v4219_v8 = vld [vmem:[#allocation6 + $0x420] sm:$0xff]  ;;  %v4220_v45 = vld [vmem:[#allocation6 + $0x428] sm:$0xff] }
 0x52b   :  { %4509 = vmatpush.msra.mxu0 %v4163_v41  ;;  %4526 = vmatpush.msra.mxu1 %v4315_v61  ;;  %v4189_v41 = vld [vmem:[#allocation6 + $0x330] sm:$0xff] }
 0x52c   :  { %4549 = vmatpush.msra.mxu2 %v4164_v52  ;;  %4566 = vmatpush.msra.mxu3 %v4316_v59  ;;  %v4341_v61 = vld [vmem:[#allocation6 + $0x7f0] sm:$0xff]  ;;  %v4190_v52 = vld [vmem:[#allocation6 + $0x338] sm:$0xff] }
 0x52d   :  { %4459 = vmatmul.f32.vlgmr.msrb.gmra.mxu1 %v9603_v13  ;;  %4499 = vmatmul.f32.vlgmr.msrb.gmra.mxu3 %v9603_v13  ;;  %v4342_v59 = vld [vmem:[#allocation6 + $0x7f8] sm:$0xff] }
 0x52e   :  { %4510 = vmatpush.msra.mxu0 %v4155_v11  ;;  %4527 = vmatpush.msra.mxu1 %v4307_v21  ;;  %v4181_v11 = vld [vmem:[#allocation6 + $0x2f0] sm:$0xff] }
 0x52f   :  { %4550 = vmatpush.msra.mxu2 %v4156_v32  ;;  %4567 = vmatpush.msra.mxu3 %v4308_v51  ;;  %v4333_v21 = vld [vmem:[#allocation6 + $0x7b0] sm:$0xff]  ;;  %v4182_v32 = vld [vmem:[#allocation6 + $0x2f8] sm:$0xff] }
 0x530   :  { %4511 = vmatpush.msra.mxu0 %v4147_v28  ;;  %4528 = vmatpush.msra.mxu1 %v4299_v14  ;;  %v4334_v51 = vld [vmem:[#allocation6 + $0x7b8] sm:$0xff]  ;;  %v4173_v28 = vld [vmem:[#allocation6 + $0x2b0] sm:$0xff] }
 0x531   :  { %4551 = vmatpush.msra.mxu2 %v4148_v49  ;;  %4568 = vmatpush.msra.mxu3 %v4300_v9  ;;  %v4325_v14 = vld [vmem:[#allocation6 + $0x770] sm:$0xff]  ;;  %v4174_v49 = vld [vmem:[#allocation6 + $0x2b8] sm:$0xff] }
 0x532   :  { %4512 = vmatpush.msra.mxu0 %v4139_v5  ;;  %4529 = vmatpush.msra.mxu1 %v4291_v26  ;;  %v4326_v9 = vld [vmem:[#allocation6 + $0x778] sm:$0xff]  ;;  %v4165_v5 = vld [vmem:[#allocation6 + $0x270] sm:$0xff] }
 0x533   :  { %4552 = vmatpush.msra.mxu2 %v4140_v27  ;;  %4569 = vmatpush.msra.mxu3 %v4292_v7  ;;  %v4317_v26 = vld [vmem:[#allocation6 + $0x730] sm:$0xff]  ;;  %v4166_v27 = vld [vmem:[#allocation6 + $0x278] sm:$0xff] }
 0x534   :  { %4513 = vmatpush.msra.mxu0 %v4131_v53  ;;  %4530 = vmatpush.msra.mxu1 %v4283_v55  ;;  %v4318_v7 = vld [vmem:[#allocation6 + $0x738] sm:$0xff]  ;;  %v4157_v53 = vld [vmem:[#allocation6 + $0x230] sm:$0xff] }
 0x535   :  { %4553 = vmatpush.msra.mxu2 %v4132_v22  ;;  %4570 = vmatpush.msra.mxu3 %v4284_v29  ;;  %v4309_v55 = vld [vmem:[#allocation6 + $0x6f0] sm:$0xff]  ;;  %v4158_v22 = vld [vmem:[#allocation6 + $0x238] sm:$0xff] }
 0x536   :  { %4514 = vmatpush.msra.mxu0 %v4123_v12  ;;  %4531 = vmatpush.msra.mxu1 %v4275_v46  ;;  %v4310_v29 = vld [vmem:[#allocation6 + $0x6f8] sm:$0xff]  ;;  %v4149_v12 = vld [vmem:[#allocation6 + $0x1f0] sm:$0xff] }
 0x537   :  { %4554 = vmatpush.msra.mxu2 %v4124_v31  ;;  %4571 = vmatpush.msra.mxu3 %v4276_v50  ;;  %v4301_v46 = vld [vmem:[#allocation6 + $0x6b0] sm:$0xff]  ;;  %v4150_v31 = vld [vmem:[#allocation6 + $0x1f8] sm:$0xff] }
 0x538   :  { %4515 = vmatpush.msra.mxu0 %v4115_v33  ;;  %4532 = vmatpush.msra.mxu1 %v4267_v62  ;;  %v4302_v50 = vld [vmem:[#allocation6 + $0x6b8] sm:$0xff]  ;;  %v4141_v33 = vld [vmem:[#allocation6 + $0x1b0] sm:$0xff] }
 0x539   :  { %4555 = vmatpush.msra.mxu2 %v4116_v18  ;;  %4572 = vmatpush.msra.mxu3 %v4268_v37  ;;  %v4293_v62 = vld [vmem:[#allocation6 + $0x670] sm:$0xff]  ;;  %v4142_v18 = vld [vmem:[#allocation6 + $0x1b8] sm:$0xff] }
 0x53a   :  { %4516 = vmatpush.msra.mxu0 %v4107_v56  ;;  %4533 = vmatpush.msra.mxu1 %v4259_v36  ;;  %v4294_v37 = vld [vmem:[#allocation6 + $0x678] sm:$0xff]  ;;  %v4133_v56 = vld [vmem:[#allocation6 + $0x170] sm:$0xff] }
 0x53b   :  { %4556 = vmatpush.msra.mxu2 %v4108_v63  ;;  %4573 = vmatpush.msra.mxu3 %v4260_v15  ;;  %v4285_v36 = vld [vmem:[#allocation6 + $0x630] sm:$0xff]  ;;  %v4134_v63 = vld [vmem:[#allocation6 + $0x178] sm:$0xff] }
 0x53c   :  { %4517 = vmatpush.msra.mxu0 %v4099_v17  ;;  %4534 = vmatpush.msra.mxu1 %v4251_v1  ;;  %v4286_v15 = vld [vmem:[#allocation6 + $0x638] sm:$0xff]  ;;  %v4125_v17 = vld [vmem:[#allocation6 + $0x130] sm:$0xff] }
 0x53d   :  { %4557 = vmatpush.msra.mxu2 %v4100_v16  ;;  %4574 = vmatpush.msra.mxu3 %v4252_v23  ;;  %v4277_v1 = vld [vmem:[#allocation6 + $0x5f0] sm:$0xff]  ;;  %v4126_v16 = vld [vmem:[#allocation6 + $0x138] sm:$0xff] }
 0x53e   :  { %4518 = vmatpush.msra.mxu0 %v4091_v3  ;;  %4535 = vmatpush.msra.mxu1 %v4243_v43  ;;  %v4278_v23 = vld [vmem:[#allocation6 + $0x5f8] sm:$0xff]  ;;  %v4117_v3 = vld [vmem:[#allocation6 + $0xf0] sm:$0xff] }
 0x53f   :  { %4558 = vmatpush.msra.mxu2 %v4092_v19  ;;  %4575 = vmatpush.msra.mxu3 %v4244_v38  ;;  %v4269_v43 = vld [vmem:[#allocation6 + $0x5b0] sm:$0xff]  ;;  %v4118_v19 = vld [vmem:[#allocation6 + $0xf8] sm:$0xff] }
 0x540   :  { %4519 = vmatmul.f32.vlgmr.msra.gmra.mxu0 %v9598_v57  ;;  %4559 = vmatmul.f32.vlgmr.msra.gmra.mxu2 %v9598_v57  ;;  %v4270_v38 = vld [vmem:[#allocation6 + $0x5b8] sm:$0xff] }
 0x541   :  { %4583 = vmatpush.msrb.mxu0 %v4213_v44  ;;  %4623 = vmatpush.msrb.mxu2 %v4214_v47  ;;  %v4109_v44 = vld [vmem:[#allocation6 + $0xb0] sm:$0xff] }
 0x542   :  { %4536 = vmatpush.msra.mxu1 %v4235_v0  ;;  %4576 = vmatpush.msra.mxu3 %v4236_v34  ;;  %v4261_v47 = vld [vmem:[#allocation6 + $0x570] sm:$0xff]  ;;  %v4110_v0 = vld [vmem:[#allocation6 + $0xb8] sm:$0xff] }
 0x543   :  { %4584 = vmatpush.msrb.mxu0 %v4205_v48  ;;  %4624 = vmatpush.msrb.mxu2 %v4206_v54  ;;  %v4262_v34 = vld [vmem:[#allocation6 + $0x578] sm:$0xff]  ;;  %v4101_v48 = vld [vmem:[#allocation6 + $0x70] sm:$0xff] }
 0x544   :  { %4537 = vmatpush.msra.mxu1 %v4227_v25  ;;  %4577 = vmatpush.msra.mxu3 %v4228_v30  ;;  %v4253_v54 = vld [vmem:[#allocation6 + $0x530] sm:$0xff]  ;;  %v4102_v25 = vld [vmem:[#allocation6 + $0x78] sm:$0xff] }
 0x545   :  { %4585 = vmatpush.msrb.mxu0 %v4197_v40  ;;  %4625 = vmatpush.msrb.mxu2 %v4198_v35  ;;  %v4254_v30 = vld [vmem:[#allocation6 + $0x538] sm:$0xff]  ;;  %v4093_v40 = vld [vmem:[#allocation6 + $0x30] sm:$0xff] }
 0x546   :  { %4538 = vmatpush.msra.mxu1 %v4219_v8  ;;  %4578 = vmatpush.msra.mxu3 %v4220_v45  ;;  %v4245_v35 = vld [vmem:[#allocation6 + $0x4f0] sm:$0xff]  ;;  %v4094_v8 = vld [vmem:[#allocation6 + $0x38] sm:$0xff] }
 0x547   :  { %4539 = vmatmul.f32.vlgmr.msra.gmra.mxu1 %v9603_v13  ;;  %4579 = vmatmul.f32.vlgmr.msra.gmra.mxu3 %v9603_v13  ;;  %v4246_v45 = vld [vmem:[#allocation6 + $0x4f8] sm:$0xff] }
 0x548   :  { %4586 = vmatpush.msrb.mxu0 %v4189_v41  ;;  %4603 = vmatpush.msrb.mxu1 %v4341_v61  ;;  %v4237_v41 = vld [vmem:[#allocation6 + $0x4b0] sm:$0xff]  ;;  %v4238_v61 = vld [vmem:[#allocation6 + $0x4b8] sm:$0xff] }
 0x549   :  { %4626 = vmatpush.msrb.mxu2 %v4190_v52  ;;  %4643 = vmatpush.msrb.mxu3 %v4342_v59  ;;  %v4229_v52 = vld [vmem:[#allocation6 + $0x470] sm:$0xff]  ;;  %v4230_v59 = vld [vmem:[#allocation6 + $0x478] sm:$0xff] }
 0x54a   :  { %4587 = vmatpush.msrb.mxu0 %v4181_v11  ;;  %4604 = vmatpush.msrb.mxu1 %v4333_v21  ;;  %v4221_v11 = vld [vmem:[#allocation6 + $0x430] sm:$0xff]  ;;  %v4222_v21 = vld [vmem:[#allocation6 + $0x438] sm:$0xff] }
 0x54b   :  { %4627 = vmatpush.msrb.mxu2 %v4182_v32  ;;  %4644 = vmatpush.msrb.mxu3 %v4334_v51  ;;  %v4949_v32 = vld [vmem:[#allocation6 + $0x3c0] sm:$0xff]  ;;  %v4950_v51 = vld [vmem:[#allocation6 + $0x3c8] sm:$0xff] }
 0x54c   :  { %4588 = vmatpush.msrb.mxu0 %v4173_v28  ;;  %4605 = vmatpush.msrb.mxu1 %v4325_v14  ;;  %v4941_v28 = vld [vmem:[#allocation6 + $0x380] sm:$0xff] }
 0x54d   :  { %4628 = vmatpush.msrb.mxu2 %v4174_v49  ;;  %4645 = vmatpush.msrb.mxu3 %v4326_v9  ;;  %v4933_v14 = vld [vmem:[#allocation6 + $0x340] sm:$0xff]  ;;  %v4934_v49 = vld [vmem:[#allocation6 + $0x348] sm:$0xff] }
 0x54e   :  { %4589 = vmatpush.msrb.mxu0 %v4165_v5  ;;  %4606 = vmatpush.msrb.mxu1 %v4317_v26  ;;  %v4925_v5 = vld [vmem:[#allocation6 + $0x300] sm:$0xff] }
 0x54f   :  { %4629 = vmatpush.msrb.mxu2 %v4166_v27  ;;  %4646 = vmatpush.msrb.mxu3 %v4318_v7  ;;  %v5077_v26 = vld [vmem:[#allocation6 + $0x7c0] sm:$0xff]  ;;  %v4926_v27 = vld [vmem:[#allocation6 + $0x308] sm:$0xff] }
 0x550   :  { %4590 = vmatpush.msrb.mxu0 %v4157_v53  ;;  %4607 = vmatpush.msrb.mxu1 %v4309_v55  ;;  %v4917_v53 = vld [vmem:[#allocation6 + $0x2c0] sm:$0xff] }
 0x551   :  { %4630 = vmatpush.msrb.mxu2 %v4158_v22  ;;  %4647 = vmatpush.msrb.mxu3 %v4310_v29  ;;  %v5069_v55 = vld [vmem:[#allocation6 + $0x780] sm:$0xff]  ;;  %v4918_v22 = vld [vmem:[#allocation6 + $0x2c8] sm:$0xff] }
 0x552   :  { %4591 = vmatpush.msrb.mxu0 %v4149_v12  ;;  %4608 = vmatpush.msrb.mxu1 %v4301_v46  ;;  %v5070_v29 = vld [vmem:[#allocation6 + $0x788] sm:$0xff]  ;;  %v4909_v12 = vld [vmem:[#allocation6 + $0x280] sm:$0xff] }
 0x553   :  { %4631 = vmatpush.msrb.mxu2 %v4150_v31  ;;  %4648 = vmatpush.msrb.mxu3 %v4302_v50  ;;  %v5061_v46 = vld [vmem:[#allocation6 + $0x740] sm:$0xff]  ;;  %v4910_v31 = vld [vmem:[#allocation6 + $0x288] sm:$0xff] }
 0x554   :  { %4592 = vmatpush.msrb.mxu0 %v4141_v33  ;;  %4609 = vmatpush.msrb.mxu1 %v4293_v62  ;;  %v5062_v33 = vld [vmem:[#allocation6 + $0x748] sm:$0xff]  ;;  %v4901_v62 = vld [vmem:[#allocation6 + $0x240] sm:$0xff] }
 0x555   :  { %4632 = vmatpush.msrb.mxu2 %v4142_v18  ;;  %4649 = vmatpush.msrb.mxu3 %v4294_v37  ;;  %v5053_v18 = vld [vmem:[#allocation6 + $0x700] sm:$0xff]  ;;  %v4902_v37 = vld [vmem:[#allocation6 + $0x248] sm:$0xff] }
 0x556   :  { %4593 = vmatpush.msrb.mxu0 %v4133_v56  ;;  %4610 = vmatpush.msrb.mxu1 %v4285_v36  ;;  %v5054_v36 = vld [vmem:[#allocation6 + $0x708] sm:$0xff] }
 0x557   :  { %4633 = vmatpush.msrb.mxu2 %v4134_v63  ;;  %4650 = vmatpush.msrb.mxu3 %v4286_v15  ;;  %v4893_v63 = vld [vmem:[#allocation6 + $0x200] sm:$0xff] }
 0x558   :  { %4594 = vmatpush.msrb.mxu0 %v4125_v17  ;;  %4611 = vmatpush.msrb.mxu1 %v4277_v1  ;;  %v5045_v15 = vld [vmem:[#allocation6 + $0x6c0] sm:$0xff]  ;;  %v4894_v17 = vld [vmem:[#allocation6 + $0x208] sm:$0xff] }
 0x559   :  { %4634 = vmatpush.msrb.mxu2 %v4126_v16  ;;  %4651 = vmatpush.msrb.mxu3 %v4278_v23  ;;  %v5046_v16 = vld [vmem:[#allocation6 + $0x6c8] sm:$0xff]  ;;  %v4885_v23 = vld [vmem:[#allocation6 + $0x1c0] sm:$0xff] }
 0x55a   :  { %4595 = vmatpush.msrb.mxu0 %v4117_v3  ;;  %4612 = vmatpush.msrb.mxu1 %v4269_v43  ;;  %v5037_v3 = vld [vmem:[#allocation6 + $0x680] sm:$0xff]  ;;  %v4886_v43 = vld [vmem:[#allocation6 + $0x1c8] sm:$0xff] }
 0x55b   :  { %4635 = vmatpush.msrb.mxu2 %v4118_v19  ;;  %4652 = vmatpush.msrb.mxu3 %v4270_v38  ;;  %v5038_v19 = vld [vmem:[#allocation6 + $0x688] sm:$0xff] }
 0x55c   :  { %4596 = vmatpush.msrb.mxu0 %v4109_v44  ;;  %4613 = vmatpush.msrb.mxu1 %v4261_v47 }
 0x55d   :  { %4636 = vmatpush.msrb.mxu2 %v4110_v0  ;;  %4653 = vmatpush.msrb.mxu3 %v4262_v34  ;;  %v4877_v0 = vld [vmem:[#allocation6 + $0x180] sm:$0xff] }
 0x55e   :  { %4597 = vmatpush.msrb.mxu0 %v4101_v48  ;;  %4614 = vmatpush.msrb.mxu1 %v4253_v54  ;;  %v5029_v34 = vld [vmem:[#allocation6 + $0x640] sm:$0xff]  ;;  %v4878_v48 = vld [vmem:[#allocation6 + $0x188] sm:$0xff] }
 0x55f   :  { %4637 = vmatpush.msrb.mxu2 %v4102_v25  ;;  %4654 = vmatpush.msrb.mxu3 %v4254_v30  ;;  %v5030_v54 = vld [vmem:[#allocation6 + $0x648] sm:$0xff]  ;;  %v4869_v25 = vld [vmem:[#allocation6 + $0x140] sm:$0xff] }
 0x560   :  { %4598 = vmatpush.msrb.mxu0 %v4093_v40  ;;  %4615 = vmatpush.msrb.mxu1 %v4245_v35  ;;  %v5021_v30 = vld [vmem:[#allocation6 + $0x600] sm:$0xff]  ;;  %v4870_v40 = vld [vmem:[#allocation6 + $0x148] sm:$0xff] }
 0x561   :  { %4638 = vmatpush.msrb.mxu2 %v4094_v8  ;;  %4655 = vmatpush.msrb.mxu3 %v4246_v45  ;;  %v5022_v35 = vld [vmem:[#allocation6 + $0x608] sm:$0xff] }
 0x562   :  { %4599 = vmatmul.f32.vlgmr.msrb.gmra.mxu0 %v9598_v57  ;;  %4639 = vmatmul.f32.vlgmr.msrb.gmra.mxu2 %v9598_v57  ;;  %v4942_v57 = vld [vmem:[#allocation6 + $0x388] sm:$0xff] }
 0x563   :  { %4616 = vmatpush.msrb.mxu1 %v4237_v41  ;;  %4656 = vmatpush.msrb.mxu3 %v4238_v61  ;;  %v4861_v41 = vld [vmem:[#allocation6 + $0x100] sm:$0xff] }
 0x564   :  { %5091 = vmatpush.msra.mxu0 %v4949_v32  ;;  %5131 = vmatpush.msra.mxu2 %v4950_v51  ;;  %v5013_v61 = vld [vmem:[#allocation6 + $0x5c0] sm:$0xff] }
 0x565   :  { %4617 = vmatpush.msrb.mxu1 %v4229_v52  ;;  %4657 = vmatpush.msrb.mxu3 %v4230_v59  ;;  %v4862_v52 = vld [vmem:[#allocation6 + $0x108] sm:$0xff] }
 0x566   :  { %5092 = vmatpush.msra.mxu0 %v4941_v28  ;;  %5132 = vmatpush.msra.mxu2 %v4942_v57  ;;  %v4853_v28 = vld [vmem:[#allocation6 + $0xc0] sm:$0xff] }
 0x567   :  { %4618 = vmatpush.msrb.mxu1 %v4221_v11  ;;  %4658 = vmatpush.msrb.mxu3 %v4222_v21  ;;  %v5014_v11 = vld [vmem:[#allocation6 + $0x5c8] sm:$0xff]  ;;  %v5005_v57 = vld [vmem:[#allocation6 + $0x580] sm:$0xff] }
 0x568   :  { %4619 = vmatmul.f32.vlgmr.msrb.gmra.mxu1 %v9603_v13  ;;  %4659 = vmatmul.f32.vlgmr.msrb.gmra.mxu3 %v9603_v13  ;;  %v5078_v13 = vld [vmem:[#allocation6 + $0x7c8] sm:$0xff] }
 0x569   :  { %5093 = vmatpush.msra.mxu0 %v4933_v14  ;;  %5133 = vmatpush.msra.mxu2 %v4934_v49  ;;  %v4854_v14 = vld [vmem:[#allocation6 + $0xc8] sm:$0xff] }
 0x56a   :  { %5111 = vmatpush.msra.mxu1 %v5077_v26  ;;  %5151 = vmatpush.msra.mxu3 %v5078_v13  ;;  %v4845_v26 = vld [vmem:[#allocation6 + $0x80] sm:$0xff] }
 0x56b   :  { %5094 = vmatpush.msra.mxu0 %v4925_v5  ;;  %5134 = vmatpush.msra.mxu2 %v4926_v27  ;;  %v4997_v27 = vld [vmem:[#allocation6 + $0x540] sm:$0xff] }
 0x56c   :  { %5112 = vmatpush.msra.mxu1 %v5069_v55  ;;  %5152 = vmatpush.msra.mxu3 %v5070_v29  ;;  %v4989_v29 = vld [vmem:[#allocation6 + $0x500] sm:$0xff] }
 0x56d   :  { %5095 = vmatpush.msra.mxu0 %v4917_v53  ;;  %5135 = vmatpush.msra.mxu2 %v4918_v22  ;;  %v4998_v53 = vld [vmem:[#allocation6 + $0x548] sm:$0xff]  ;;  %v4837_v22 = vld [vmem:[#allocation6 + $0x40] sm:$0xff] }
 0x56e   :  { %5113 = vmatpush.msra.mxu1 %v5061_v46  ;;  %5153 = vmatpush.msra.mxu3 %v5062_v33  ;;  %v4829_v33 = vld [vmem:[#allocation6] sm:$0xff] }
 0x56f   :  { %5096 = vmatpush.msra.mxu0 %v4909_v12  ;;  %5136 = vmatpush.msra.mxu2 %v4910_v31  ;;  %v4838_v12 = vld [vmem:[#allocation6 + $0x48] sm:$0xff] }
 0x570   :  { %5114 = vmatpush.msra.mxu1 %v5053_v18  ;;  %5154 = vmatpush.msra.mxu3 %v5054_v36  ;;  %v4990_v31 = vld [vmem:[#allocation6 + $0x508] sm:$0xff]  ;;  %v4951_v36 = vld [vmem:[#allocation6 + $0x3d0] sm:$0xff] }
 0x571   :  { %5097 = vmatpush.msra.mxu0 %v4901_v62  ;;  %5137 = vmatpush.msra.mxu2 %v4902_v37  ;;  %v4981_v62 = vld [vmem:[#allocation6 + $0x4c0] sm:$0xff]  ;;  %v4830_v18 = vld [vmem:[#allocation6 + $0x8] sm:$0xff] }
 0x572   :  { %5115 = vmatpush.msra.mxu1 %v5045_v15  ;;  %5155 = vmatpush.msra.mxu3 %v5046_v16  ;;  %v4943_v16 = vld [vmem:[#allocation6 + $0x390] sm:$0xff] }
 0x573   :  { %5098 = vmatpush.msra.mxu0 %v4893_v63  ;;  %5138 = vmatpush.msra.mxu2 %v4894_v17  ;;  %v4952_v63 = vld [vmem:[#allocation6 + $0x3d8] sm:$0xff]  ;;  %v4973_v17 = vld [vmem:[#allocation6 + $0x480] sm:$0xff] }
 0x574   :  { %5116 = vmatpush.msra.mxu1 %v5037_v3  ;;  %5156 = vmatpush.msra.mxu3 %v5038_v19  ;;  %v4965_v3 = vld [vmem:[#allocation6 + $0x440] sm:$0xff] }
 0x575   :  { %5099 = vmatpush.msra.mxu0 %v4885_v23  ;;  %5139 = vmatpush.msra.mxu2 %v4886_v43  ;;  %v4944_v23 = vld [vmem:[#allocation6 + $0x398] sm:$0xff]  ;;  %v4966_v43 = vld [vmem:[#allocation6 + $0x448] sm:$0xff] }
 0x576   :  { %5117 = vmatpush.msra.mxu1 %v5029_v34  ;;  %5157 = vmatpush.msra.mxu3 %v5030_v54  ;;  %v4958_v34 = vld [vmem:[#allocation6 + $0x408] sm:$0xff]  ;;  %v5079_v54 = vld [vmem:[#allocation6 + $0x7d0] sm:$0xff] }
 0x577   :  { %5100 = vmatpush.msra.mxu0 %v4877_v0  ;;  %5140 = vmatpush.msra.mxu2 %v4878_v48  ;;  %v4957_v0 = vld [vmem:[#allocation6 + $0x400] sm:$0xff]  ;;  %v4927_v48 = vld [vmem:[#allocation6 + $0x310] sm:$0xff] }
 0x578   :  { %5118 = vmatpush.msra.mxu1 %v5021_v30  ;;  %5158 = vmatpush.msra.mxu3 %v5022_v35  ;;  %v5080_v30 = vld [vmem:[#allocation6 + $0x7d8] sm:$0xff]  ;;  %v4919_v35 = vld [vmem:[#allocation6 + $0x2d0] sm:$0xff] }
 0x579   :  { %5101 = vmatpush.msra.mxu0 %v4869_v25  ;;  %5141 = vmatpush.msra.mxu2 %v4870_v40  ;;  %v4928_v25 = vld [vmem:[#allocation6 + $0x318] sm:$0xff] }
 0x57a   :  { %5119 = vmatpush.msra.mxu1 %v5013_v61  ;;  %5159 = vmatpush.msra.mxu3 %v5014_v11  ;;  %v5072_v61 = vld [vmem:[#allocation6 + $0x798] sm:$0xff] }
 0x57b   :  { %5102 = vmatpush.msra.mxu0 %v4861_v41  ;;  %5142 = vmatpush.msra.mxu2 %v4862_v52  ;;  %v4911_v52 = vld [vmem:[#allocation6 + $0x290] sm:$0xff]  ;;  %v4912_v11 = vld [vmem:[#allocation6 + $0x298] sm:$0xff] }
 0x57c   :  { %5120 = vmatpush.msra.mxu1 %v5005_v57  ;;  %v5055_v57 = vld [vmem:[#allocation6 + $0x710] sm:$0xff] }
 0x57d   :  { %5103 = vmatpush.msra.mxu0 %v4853_v28  ;;  %5143 = vmatpush.msra.mxu2 %v4854_v14  ;;  %v4903_v28 = vld [vmem:[#allocation6 + $0x250] sm:$0xff]  ;;  %v4904_v14 = vld [vmem:[#allocation6 + $0x258] sm:$0xff] }
 0x57e   :  { %5121 = vmatpush.msra.mxu1 %v4997_v27  ;;  %v4896_v27 = vld [vmem:[#allocation6 + $0x218] sm:$0xff] }
 0x57f   :  { %5104 = vmatpush.msra.mxu0 %v4845_v26  ;;  %v5047_v26 = vld [vmem:[#allocation6 + $0x6d0] sm:$0xff] }
 0x580   :  { %5122 = vmatpush.msra.mxu1 %v4989_v29 }
 0x581   :  { %5105 = vmatpush.msra.mxu0 %v4837_v22  ;;  %v4888_v22 = vld [vmem:[#allocation6 + $0x1d8] sm:$0xff] }
 0x582   :  { %5123 = vmatpush.msra.mxu1 %v4981_v62  ;;  %v5031_v62 = vld [vmem:[#allocation6 + $0x650] sm:$0xff] }
 0x583   :  { %5106 = vmatpush.msra.mxu0 %v4829_v33  ;;  %v4879_v33 = vld [vmem:[#allocation6 + $0x190] sm:$0xff] }
 0x584   :  { %5124 = vmatpush.msra.mxu1 %v4973_v17  ;;  %v5024_v17 = vld [vmem:[#allocation6 + $0x618] sm:$0xff] }
 0x585   :  { %5171 = vmatpush.msrb.mxu0 %v4951_v36  ;;  %v5023_v36 = vld [vmem:[#allocation6 + $0x610] sm:$0xff] }
 0x586   :  { %5125 = vmatpush.msra.mxu1 %v4965_v3  ;;  %v4864_v3 = vld [vmem:[#allocation6 + $0x118] sm:$0xff] }
 0x587   :  { %5172 = vmatpush.msrb.mxu0 %v4943_v16  ;;  %v4863_v16 = vld [vmem:[#allocation6 + $0x110] sm:$0xff] }
 0x588   :  { %5126 = vmatpush.msra.mxu1 %v4957_v0  ;;  %v5007_v0 = vld [vmem:[#allocation6 + $0x590] sm:$0xff] }
 0x58a   :  { %5191 = vmatpush.msrb.mxu1 %v5079_v54 }
 0x59a   :  { %v4360_v7 = vpop.f32.mrf.mxu0 }
 0x5a0   :  { %v4380_v9 = vpop.f32.mrf.mxu1  ;;  %v4400_v56 = vpop.f32.mrf.mxu2 }
 0x5a1   :  { %v4381_v38 = vadd.f32 %v4380_v9, %v4360_v7  ;;  %v5006_v9 = vld [vmem:[#allocation6 + $0x588] sm:$0xff] }
 0x5a2   :  { %5160 = vmatpush.msra.mxu3 %v5006_v9  ;;  %v4846_v7 = vld [vmem:[#allocation6 + $0x88] sm:$0xff] }
 0x5a3   :  { %v4440_v44 = vpop.f32.mrf.mxu0  ;;  %v4671_v8 = vrot.slane %v4381_v38, 6  ;;  %5144 = vmatpush.msra.mxu2 %v4846_v7  ;;  %v4935_v38 = vld [vmem:[#allocation6 + $0x350] sm:$0xff] }
 0x5a4   :  { %5161 = vmatpush.msra.mxu3 %v4998_v53  ;;  %5173 = vmatpush.msrb.mxu0 %v4935_v38  ;;  %v4887_v53 = vld [vmem:[#allocation6 + $0x1d0] sm:$0xff]  ;;  %v5016_v38 = vld [vmem:[#allocation6 + $0x5d8] sm:$0xff] }
 0x5a5   :  { %v4687_v49 = vadd.f32 %v4671_v8, %v9459_v4  ;;  %5145 = vmatpush.msra.mxu2 %v4838_v12  ;;  %v5071_v8 = vld [vmem:[#allocation6 + $0x790] sm:$0xff] }
 0x5a6   :  { %v4420_v50 = vpop.f32.mrf.mxu3  ;;  %5162 = vmatpush.msra.mxu3 %v4990_v31  ;;  %5174 = vmatpush.msrb.mxu0 %v4927_v48  ;;  %v5040_v31 = vld [vmem:[#allocation6 + $0x698] sm:$0xff] }
 0x5a7   :  { %v4421_v21 = vadd.f32 %v4420_v50, %v4400_v56  ;;  %v8111_v46 = vmul.f32 -1.442695, %v4687_v49  ;;  %v4982_v56 = vld [vmem:[#allocation6 + $0x4c8] sm:$0xff]  ;;  %5146 = vmatpush.msra.mxu2 %v4830_v18  ;;  %5192 = vmatpush.msrb.mxu1 %v5071_v8  ;;  %v5056_v49 = vld [vmem:[#allocation6 + $0x718] sm:$0xff]  ;;  %v4847_v8 = vld [vmem:[#allocation6 + $0x90] sm:$0xff] }
 0x5a8   :  { %5163 = vmatpush.msra.mxu3 %v4982_v56  ;;  %5175 = vmatpush.msrb.mxu0 %v4919_v35  ;;  %v4880_v18 = vld [vmem:[#allocation6 + $0x198] sm:$0xff]  ;;  %v4871_v56 = vld [vmem:[#allocation6 + $0x150] sm:$0xff] }
 0x5a9   :  { %v4480_v32 = vpop.f32.mrf.mxu2  ;;  %v4672_v13 = vrot.slane %v4421_v21, 6  ;;  %8391 = vpow2.f32 %v8111_v46  ;;  %5211 = vmatpush.msrb.mxu2 %v4952_v63  ;;  %v4872_v63 = vld [vmem:[#allocation6 + $0x158] sm:$0xff] }
 0x5aa   :  { %v4460_v1 = vpop.f32.mrf.mxu1  ;;  %5176 = vmatpush.msrb.mxu0 %v4911_v52  ;;  %v5000_v52 = vld [vmem:[#allocation6 + $0x558] sm:$0xff] }
 0x5ab   :  { %v4461_v47 = vadd.f32 %v4460_v1, %v4440_v44  ;;  %v4688_v37 = vadd.f32 %v4672_v13, %v9471_v42  ;;  %v4974_v1 = vld [vmem:[#allocation6 + $0x488] sm:$0xff]  ;;  %5212 = vmatpush.msrb.mxu2 %v4944_v23  ;;  %v4936_v44 = vld [vmem:[#allocation6 + $0x358] sm:$0xff]  ;;  %v5015_v23 = vld [vmem:[#allocation6 + $0x5d0] sm:$0xff] }
 0x5ac   :  { %5164 = vmatpush.msra.mxu3 %v4974_v1  ;;  %5177 = vmatpush.msrb.mxu0 %v4903_v28  ;;  %v5048_v13 = vld [vmem:[#allocation6 + $0x6d8] sm:$0xff]  ;;  %v4839_v28 = vld [vmem:[#allocation6 + $0x50] sm:$0xff] }
 0x5ad   :  { %v4673_v59 = vrot.slane %v4461_v47, 6  ;;  %v8112_v19 = vmul.f32 -1.442695, %v4688_v37  ;;  %5213 = vmatpush.msrb.mxu2 %v4936_v44  ;;  %v5032_v37 = vld [vmem:[#allocation6 + $0x658] sm:$0xff] }
 0x5ae   :  { %5165 = vmatpush.msra.mxu3 %v4966_v43 }
 0x5af   :  { %v4689_v5 = vadd.f32 %v4673_v59, %v9464_v39  ;;  %v8392_v40 = vpop.eup %8391  ;;  %5214 = vmatpush.msrb.mxu2 %v4928_v25  ;;  %v5063_v59 = vld [vmem:[#allocation6 + $0x750] sm:$0xff] }
 0x5b0   :  { %v4500_v45 = vpop.f32.mrf.mxu3  ;;  %5166 = vmatpush.msra.mxu3 %v4958_v34  ;;  %v9624_v21 = vadd.f32 1.0, %v8392_v40  ;;  %5193 = vmatpush.msrb.mxu1 %v5063_v59  ;;  %v4856_v34 = vld [vmem:[#allocation6 + $0xd8] sm:$0xff] }
 0x5b1   :  { %v4501_v51 = vadd.f32 %v4500_v45, %v4480_v32  ;;  %v8113_v50 = vmul.f32 -1.442695, %v4689_v5  ;;  %v4920_v45 = vld [vmem:[#allocation6 + $0x2d8] sm:$0xff]  ;;  %v4895_v5 = vld [vmem:[#allocation6 + $0x210] sm:$0xff] }
 0x5b2   :  { %5231 = vmatpush.msrb.mxu3 %v5080_v30  ;;  %5215 = vmatpush.msrb.mxu2 %v4920_v45  ;;  %v5064_v32 = vld [vmem:[#allocation6 + $0x758] sm:$0xff]  ;;  %v4999_v45 = vld [vmem:[#allocation6 + $0x550] sm:$0xff]  ;;  %vm4708_vm12 = vweird.f32 %v9624_v21 }
 0x5b3   :  { %v4674_v55 = vrot.slane %v4501_v51, 6  ;;  %8393 = vpow2.f32 %v8113_v50  ;;  %5194 = vmatpush.msrb.mxu1 %v5055_v57  ;;  %5178 = vmatpush.msrb.mxu0 %v4895_v5  ;;  %v5008_v40 = vld [vmem:[#allocation6 + $0x598] sm:$0xff]  ;;  %v4991_v57 = vld [vmem:[#allocation6 + $0x510] sm:$0xff] }
 0x5b4   :  { %8395 = vpow2.f32 %v8112_v19  ;;  %5232 = vmatpush.msrb.mxu3 %v5072_v61  ;;  %5216 = vmatpush.msrb.mxu2 %v4912_v11  ;;  %v4992_v5 = vld [vmem:[#allocation6 + $0x518] sm:$0xff] }
 0x5b5   :  { %v4690_v15 = vadd.f32 %v4674_v55, %v9476_v20  ;;  %5195 = vmatpush.msrb.mxu1 %v5047_v26  ;;  %v5039_v55 = vld [vmem:[#allocation6 + $0x690] sm:$0xff]  ;;  %5179 = vmatpush.msrb.mxu0 %v4887_v53  ;;  %v4832_v53 = vld [vmem:[#allocation6 + $0x18] sm:$0xff] }
 0x5b6   :  { %5233 = vmatpush.msrb.mxu3 %v5064_v32  ;;  %5217 = vmatpush.msrb.mxu2 %v4904_v14  ;;  %v4840_v14 = vld [vmem:[#allocation6 + $0x58] sm:$0xff] }
 0x5b7   :  { %v8114_v47 = vmul.f32 -1.442695, %v4690_v15  ;;  %5196 = vmatpush.msrb.mxu1 %v5039_v55  ;;  %5180 = vmatpush.msrb.mxu0 %v4879_v33 }
 0x5b8   :  { %5234 = vmatpush.msrb.mxu3 %v5056_v49  ;;  %5218 = vmatpush.msrb.mxu2 %v4896_v27 }
 0x5b9   :  { %v8394_v41 = vpop.eup %8393  ;;  %8397 = vpow2.f32 %v8114_v47  ;;  %5197 = vmatpush.msrb.mxu1 %v5031_v62  ;;  %5181 = vmatpush.msrb.mxu0 %v4871_v56  ;;  %v4855_v47 = vld [vmem:[#allocation6 + $0xd0] sm:$0xff] }
 0x5ba   :  { %v9626_v51 = vadd.f32 1.0, %v8394_v41  ;;  %v8396_v9 = vpop.eup %8395  ;;  %8399 = vrcp.f32 %v9624_v21  ;;  %5235 = vmatpush.msrb.mxu3 %v5048_v13  ;;  %5219 = vmatpush.msrb.mxu2 %v4888_v22  ;;  %v4848_v41 = vld [vmem:[#allocation6 + $0x98] sm:$0xff]  ;;  %v4983_v13 = vld [vmem:[#allocation6 + $0x4d0] sm:$0xff] }
 0x5bb   :  { %v9630_v29 = vadd.f32 1.0, %v8396_v9  ;;  %5198 = vmatpush.msrb.mxu1 %v5023_v36  ;;  %5182 = vmatpush.msrb.mxu0 %v4863_v16  ;;  %v4975_v36 = vld [vmem:[#allocation6 + $0x490] sm:$0xff] }
 0x5bc   :  { %8401 = vrcp.f32 %v9626_v51  ;;  %5236 = vmatpush.msrb.mxu3 %v5040_v31  ;;  %5220 = vmatpush.msrb.mxu2 %v4880_v18  ;;  %v4984_v31 = vld [vmem:[#allocation6 + $0x4d8] sm:$0xff]  ;;  %vm4746_vm13 = vweird.f32 %v9626_v51 }
 0x5bd   :  { %v4520_v12 = vpop.f32.mrf.mxu0  ;;  %8403 = vrcp.f32 %v9630_v29  ;;  %5199 = vmatpush.msrb.mxu1 %v5015_v23  ;;  %5183 = vmatpush.msrb.mxu0 %v4855_v47  ;;  %vm4723_vm1 = vweird.f32 %v9630_v29 }
 0x5be   :  { %5237 = vmatpush.msrb.mxu3 %v5032_v37  ;;  %5221 = vmatpush.msrb.mxu2 %v4872_v63  ;;  %v4976_v63 = vld [vmem:[#allocation6 + $0x498] sm:$0xff] }
 0x5bf   :  { %v8398_v7 = vpop.eup %8397  ;;  %5200 = vmatpush.msrb.mxu1 %v5007_v0  ;;  %5184 = vmatpush.msrb.mxu0 %v4847_v8 }
 0x5c0   :  { %v9632_v50 = vadd.f32 1.0, %v8398_v7  ;;  %v9634_v15 = vpop.eup %8399  ;;  %5238 = vmatpush.msrb.mxu3 %v5024_v17  ;;  %5222 = vmatpush.msrb.mxu2 %v4864_v3  ;;  %v4831_v7 = vld [vmem:[#allocation6 + $0x10] sm:$0xff] }
 0x5c1   :  { %v4704_v48 = vmul.f32 %v9634_v15, %v9624_v21  ;;  %5201 = vmatpush.msrb.mxu1 %v4999_v45  ;;  %5185 = vmatpush.msrb.mxu0 %v4839_v28  ;;  %vm4709_vm10 = vweird.f32 %v9634_v15 }
 0x5c2   :  { %v9637_v1 = vpop.eup %8401  ;;  %8405 = vrcp.f32 %v9632_v50  ;;  %5239 = vmatpush.msrb.mxu3 %v5016_v38  ;;  %5223 = vmatpush.msrb.mxu2 %v4856_v34  ;;  %v4968_v38 = vld [vmem:[#allocation6 + $0x458] sm:$0xff]  ;;  %vm9671_vm14 = vmor %vm4708_vm12, %vm4709_vm10  ;;  %vm4761_vm5 = vweird.f32 %v9632_v50 }
 0x5c3   :  { %v4560_v43 = vpop.f32.mrf.mxu2  ;;  %v4742_v54 = vmul.f32 %v9637_v1, %v9626_v51  ;;  %v9644_v61 = vpop.eup %8403  ;;  %v4705_v49 = vsub.f32 1.0, %v4704_v48  ;;  %5202 = vmatpush.msrb.mxu1 %v4991_v57  ;;  %5186 = vmatpush.msrb.mxu0 %v4831_v7  ;;  %vm4747_vm11 = vweird.f32 %v9637_v1  ;;  %v4959_v48 = vld [vmem:[#allocation6 + $0x410] sm:$0xff] }
 0x5c4   :  { %v4540_v46 = vpop.f32.mrf.mxu1  ;;  %5240 = vmatpush.msrb.mxu3 %v5008_v40  ;;  %5224 = vmatpush.msrb.mxu2 %v4848_v41  ;;  %v4719_v55 = vmul.f32 %v9644_v61, %v9630_v29  ;;  %vm9679_vm15 = vmor %vm4746_vm13, %vm4747_vm11  ;;  %vm4724_vm3 = vweird.f32 %v9644_v61 }
 0x5c5   :  { %v4541_v44 = vadd.f32 %v4540_v46, %v4520_v12  ;;  %v4743_v9 = vsub.f32 1.0, %v4742_v54  ;;  %5203 = vmatpush.msrb.mxu1 %v4983_v13  ;;  %v4706_v56 = vmul.f32 %v9634_v15, %v4705_v49  ;;  %v4960_v54 = vld [vmem:[#allocation6 + $0x418] sm:$0xff]  ;;  %vm9705_vm6 = vmor %vm4723_vm1, %vm4724_vm3  ;;  %v4922_v13 = vld [vmem:[#allocation6 + $0x2e8] sm:$0xff] }
 0x5c6   :  { %5241 = vmatpush.msrb.mxu3 %v5000_v52  ;;  %5225 = vmatpush.msrb.mxu2 %v4840_v14  ;;  %v4720_v23 = vsub.f32 1.0, %v4719_v55  ;;  %v4813_v52 = vrot.slane %v9591_v24, 6  ;;  %v4765_v55 = vand.u32 2147483647, %v9632_v50 }
 0x5c7   :  { %v4675_v11 = vrot.slane %v4541_v44, 6  ;;  %v4744_v37 = vmul.f32 %v9637_v1, %v4743_v9  ;;  %5204 = vmatpush.msrb.mxu1 %v4975_v36  ;;  %v4714_v44 = vand.u32 2147483648, %v9624_v21  ;;  %v4707_v0 = vadd.f32 %v9634_v15, %v4706_v56 }
 0x5c8   :  { %v9646_v59 = vpop.eup %8405  ;;  %5242 = vmatpush.msrb.mxu3 %v4992_v5  ;;  %5226 = vmatpush.msrb.mxu2 %v4832_v53  ;;  %v4721_v45 = vmul.f32 %v9644_v61, %v4720_v23  ;;  %v4727_v53 = vand.u32 2147483647, %v9630_v29  ;;  %vm4766_vm9 = vcmp.eq.f32.partialorder %v4765_v55, 8.507059e+37  ;;  %v4913_v55 = vld [vmem:[#allocation6 + $0x2a0] sm:$0xff] }
 0x5c9   :  { %v4757_v22 = vmul.f32 %v9646_v59, %v9632_v50  ;;  %v4691_v33 = vadd.f32 %v4675_v11, %v9512_v2  ;;  %v4745_v34 = vadd.f32 %v9637_v1, %v4744_v37  ;;  %v4711_v28 = vsel %vm9671_vm14, %v9634_v15, %v4707_v0 }
 0x5ca   :  { %v4580_v19 = vpop.f32.mrf.mxu3  ;;  %5243 = vmatpush.msrb.mxu3 %v4984_v31  ;;  %vm4762_vm4 = vweird.f32 %v9646_v59  ;;  %v4722_v9 = vadd.f32 %v9644_v61, %v4721_v45  ;;  %v4767_v15 = vand.u32 2147483648, %v9632_v50  ;;  %vm4728_vm8 = vcmp.eq.f32.partialorder %v4727_v53, 8.507059e+37  ;;  %v4953_v45 = vld [vmem:[#allocation6 + $0x3e0] sm:$0xff]  ;;  %v5074_v53 = vld [vmem:[#allocation6 + $0x7a8] sm:$0xff] }
 0x5cb   :  { %v4581_v26 = vadd.f32 %v4580_v19, %v4560_v43  ;;  %v4758_v3 = vsub.f32 1.0, %v4757_v22  ;;  %v4712_v43 = vand.u32 2147483647, %v9624_v21  ;;  %v4967_v19 = vld [vmem:[#allocation6 + $0x450] sm:$0xff]  ;;  %v4749_v24 = vsel %vm9679_vm15, %v9637_v1, %v4745_v34  ;;  %vm4763_vm7 = vmor %vm4761_vm5, %vm4762_vm4 }
 0x5cc   :  { %5244 = vmatpush.msrb.mxu3 %v4976_v63  ;;  %5205 = vmatpush.msrb.mxu1 %v4967_v19 }
 0x5cd   :  { %v4676_v17 = vrot.slane %v4581_v26, 6  ;;  %v4759_v8 = vmul.f32 %v9646_v59, %v4758_v3  ;;  %vm9683_vm0 = vcmp.eq.f32.partialorder %v4712_v43, 8.507059e+37 }
 0x5ce   :  { %5245 = vmatpush.msrb.mxu3 %v4968_v38  ;;  %5206 = vmatpush.msrb.mxu1 %v4959_v48 }
 0x5cf   :  { %v4692_v40 = vadd.f32 %v4676_v17, %v9530_v10  ;;  %v4760_v5 = vadd.f32 %v9646_v59, %v4759_v8  ;;  %v4814_v17 = vrot.slane %v9595_v60, 6 }
 0x5d0   :  { %5246 = vmatpush.msrb.mxu3 %v4960_v54 }
 0x5d1   :  { %v4764_v31 = vsel %vm4763_vm7, %v9646_v59, %v4760_v5  ;;  %v4929_v5 = vld [vmem:[#allocation6 + $0x320] sm:$0xff] }
 0x5df   :  { %v4600_v25 = vpop.f32.mrf.mxu0 }
 0x5e5   :  { %v4620_v30 = vpop.f32.mrf.mxu1  ;;  %v4640_v12 = vpop.f32.mrf.mxu2 }
 0x5e6   :  { %v4621_v35 = vadd.f32 %v4620_v30, %v4600_v25  ;;  %v4752_v25 = vand.u32 2147483648, %v9626_v51  ;;  %v4750_v30 = vand.u32 2147483647, %v9626_v51  ;;  %v4945_v51 = vld [vmem:[#allocation6 + $0x3a0] sm:$0xff] }
 0x5e8   :  { %v4677_v32 = vrot.slane %v4621_v35, 6  ;;  %v4753_v49 = vor.u32 1.1754944e-38, %v4752_v25  ;;  %vm4751_vm2 = vcmp.eq.f32.partialorder %v4750_v30, 8.507059e+37 }
 0x5ea   :  { %v4693_v27 = vadd.f32 %v4677_v32, %v9507_v6  ;;  %v4715_v32 = vor.u32 1.1754944e-38, %v4714_v44  ;;  %v4754_v26 = vsel %vm4751_vm2, %v4753_v49, %v4749_v24  ;;  %v4938_v49 = vld [vmem:[#allocation6 + $0x368] sm:$0xff] }
 0x5eb   :  { %v4660_v46 = vpop.f32.mrf.mxu3 }
 0x5ec   :  { %v8115_v62 = vmul.f32 -1.442695, %v4693_v27  ;;  %v4661_v18 = vadd.f32 %v4660_v46, %v4640_v12  ;;  %v4716_v1 = vsel %vm9683_vm0, %v4715_v32, %v4711_v28  ;;  %v4729_v27 = vand.u32 2147483648, %v9630_v29  ;;  %v4946_v32 = vld [vmem:[#allocation6 + $0x3a8] sm:$0xff] }
 0x5ed   :  { %v4817_v12 = vmul.f32 %v4813_v52, %v4754_v26  ;;  %v4726_v46 = vsel %vm9705_vm6, %v9644_v61, %v4722_v9  ;;  %v5082_v26 = vld [vmem:[#allocation6 + $0x7e8] sm:$0xff] }
 0x5ee   :  { %8407 = vpow2.f32 %v8115_v62  ;;  %v4678_v16 = vrot.slane %v4661_v18, 6  ;;  %v4768_v18 = vor.u32 1.1754944e-38, %v4767_v15  ;;  %v4730_v37 = vor.u32 1.1754944e-38, %v4729_v27  ;;  %v5081_v15 = vld [vmem:[#allocation6 + $0x7e0] sm:$0xff] }
 0x5ef   :  { %8409 = vtanh.f32 %v4691_v33  ;;  %v4921_v27 = vld [vmem:[#allocation6 + $0x2e0] sm:$0xff] }
 0x5f0   :  { %v4694_v47 = vadd.f32 %v4678_v16, %v9525_v58  ;;  %v4731_v29 = vsel %vm4728_vm8, %v4730_v37, %v4726_v46  ;;  %v4769_v50 = vsel %vm4766_vm9, %v4768_v18, %v4764_v31  ;;  %v5066_v46 = vld [vmem:[#allocation6 + $0x768] sm:$0xff]  ;;  %v4905_v31 = vld [vmem:[#allocation6 + $0x260] sm:$0xff] }
 0x5f1   :  { %v4818_v61 = vmul.f32 %v4814_v17, %v4769_v50  ;;  %v5058_v18 = vld [vmem:[#allocation6 + $0x728] sm:$0xff]  ;;  %v4897_v37 = vld [vmem:[#allocation6 + $0x220] sm:$0xff] }
 0x5f2   :  { %v8116_v35 = vmul.f32 -1.442695, %v4694_v47  ;;  %v5050_v50 = vld [vmem:[#allocation6 + $0x6e8] sm:$0xff]  ;;  %v5041_v17 = vld [vmem:[#allocation6 + $0x6a0] sm:$0xff] }
 0x5f4   :  { %v8408_v41 = vpop.eup %8407  ;;  %8411 = vpow2.f32 %v8116_v35 }
 0x5f5   :  { %v4779_v57 = vadd.f32 1.0, %v8408_v41  ;;  %v8410_v14 = vpop.eup %8409  ;;  %8413 = vtanh.f32 %v4692_v40  ;;  %v4954_v41 = vld [vmem:[#allocation6 + $0x3e8] sm:$0xff] }
 0x5f6   :  { %v4819_v7 = vmul.f32 %v8410_v14, %v4716_v1  ;;  %v4937_v14 = vld [vmem:[#allocation6 + $0x360] sm:$0xff]  ;;  %v4930_v1 = vld [vmem:[#allocation6 + $0x328] sm:$0xff] }
 0x5f7   :  { %8415 = vrcp.f32 %v4779_v57  ;;  %v4792_v59 = vand.u32 2147483648, %v4779_v57  ;;  %v4790_v43 = vand.u32 2147483647, %v4779_v57  ;;  %vm4786_vm11 = vweird.f32 %v4779_v57 }
 0x5f8   :  { %v9715_v36 = vadd.f32 %v4819_v7, %v4817_v12  ;;  %v5073_v7 = vld [vmem:[#allocation6 + $0x7a0] sm:$0xff]  ;;  %v4914_v12 = vld [vmem:[#allocation6 + $0x2a8] sm:$0xff] }
 0x5f9   :  { %v4793_v0 = vor.u32 1.1754944e-38, %v4792_v59  ;;  %vm4791_vm13 = vcmp.eq.f32.partialorder %v4790_v43, 8.507059e+37  ;;  %v5033_v59 = vld [vmem:[#allocation6 + $0x660] sm:$0xff]  ;;  %v5034_v43 = vld [vmem:[#allocation6 + $0x668] sm:$0xff] }
 0x5fa   :  { %v8412_v22 = vpop.eup %8411 }
 0x5fb   :  { %v4780_v33 = vadd.f32 1.0, %v8412_v22  ;;  %v8414_v62 = vpop.eup %8413  ;;  %v5065_v22 = vld [vmem:[#allocation6 + $0x760] sm:$0xff] }
 0x5fc   :  { %v4820_v16 = vmul.f32 %v8414_v62, %v4731_v29  ;;  %v4906_v62 = vld [vmem:[#allocation6 + $0x268] sm:$0xff] }
 0x5fd   :  { %v8416_v56 = vpop.eup %8415  ;;  %8417 = vrcp.f32 %v4780_v33  ;;  %v4807_v25 = vand.u32 2147483648, %v4780_v33  ;;  %v4805_v35 = vand.u32 2147483647, %v4780_v33  ;;  %vm4801_vm15 = vweird.f32 %v4780_v33  ;;  %v4898_v29 = vld [vmem:[#allocation6 + $0x228] sm:$0xff] }
 0x5fe   :  { %v4782_v63 = vmul.f32 %v8416_v56, %v4779_v57  ;;  %8419 = vtanh.f32 %v9715_v36  ;;  %vm4787_vm10 = vweird.f32 %v8416_v56  ;;  %v9719_v38 = vadd.f32 %v4820_v16, %v4818_v61  ;;  %v4890_v16 = vld [vmem:[#allocation6 + $0x1e8] sm:$0xff]  ;;  %v4881_v61 = vld [vmem:[#allocation6 + $0x1a0] sm:$0xff] }
 0x5ff   :  { %vm4788_vm12 = vmor %vm4786_vm11, %vm4787_vm10  ;;  %v4808_v52 = vor.u32 1.1754944e-38, %v4807_v25  ;;  %vm4806_vm1 = vcmp.eq.f32.partialorder %v4805_v35, 8.507059e+37  ;;  %v4857_v25 = vld [vmem:[#allocation6 + $0xe0] sm:$0xff]  ;;  %v5010_v35 = vld [vmem:[#allocation6 + $0x5a8] sm:$0xff] }
 0x600   :  { %v4783_v23 = vsub.f32 1.0, %v4782_v63  ;;  %8421 = vtanh.f32 %v9719_v38  ;;  %v4889_v63 = vld [vmem:[#allocation6 + $0x1e0] sm:$0xff] }
 0x602   :  { %v4784_v3 = vmul.f32 %v8416_v56, %v4783_v23  ;;  %v5042_v23 = vld [vmem:[#allocation6 + $0x6a8] sm:$0xff] }
 0x603   :  { %v8418_v19 = vpop.eup %8417 }
 0x604   :  { %v4785_v44 = vadd.f32 %v8416_v56, %v4784_v3  ;;  %v4797_v47 = vmul.f32 %v8418_v19, %v4780_v33  ;;  %v8420_v48 = vpop.eup %8419  ;;  %vm4802_vm14 = vweird.f32 %v8418_v19  ;;  %v5057_v33 = vld [vmem:[#allocation6 + $0x720] sm:$0xff]  ;;  %v4882_v3 = vld [vmem:[#allocation6 + $0x1a8] sm:$0xff] }
 0x605   :  { %vm4803_vm0 = vmor %vm4801_vm15, %vm4802_vm14 }
 0x606   :  { %v4789_v34 = vsel %vm4788_vm12, %v8416_v56, %v4785_v44  ;;  %v4798_v60 = vsub.f32 1.0, %v4797_v47  ;;  %v8422_v28 = vpop.eup %8421  ;;  %v5049_v56 = vld [vmem:[#allocation6 + $0x6e0] sm:$0xff]  ;;  %v4874_v47 = vld [vmem:[#allocation6 + $0x168] sm:$0xff] }
 0x607   :  { %v4794_v54 = vsel %vm4791_vm13, %v4793_v0, %v4789_v34  ;;  %v5025_v44 = vld [vmem:[#allocation6 + $0x620] sm:$0xff]  ;;  %v5026_v0 = vld [vmem:[#allocation6 + $0x628] sm:$0xff] }
 0x608   :  { %v4825_v30 = vmul.f32 %v8420_v48, %v4794_v54  ;;  %v4799_v40 = vmul.f32 %v8418_v19, %v4798_v60  ;;  %v4865_v34 = vld [vmem:[#allocation6 + $0x120] sm:$0xff]  ;;  %v4866_v48 = vld [vmem:[#allocation6 + $0x128] sm:$0xff] }
 0x609   :  { %v5017_v60 = vld [vmem:[#allocation6 + $0x5e0] sm:$0xff]  ;;  %v5018_v54 = vld [vmem:[#allocation6 + $0x5e8] sm:$0xff] }
 0x60a   :  { %4827 = vst [vmem:[#allocation2 + $0x18] sm:$0xc] %v4825_v30  ;;  %v9722_v8 = vrot.slane %v4825_v30, 2  ;;  %v4800_v21 = vadd.f32 %v8418_v19, %v4799_v40  ;;  %v5009_v30 = vld [vmem:[#allocation6 + $0x5a0] sm:$0xff]  ;;  %v4858_v40 = vld [vmem:[#allocation6 + $0xe8] sm:$0xff] }
 0x60c   :  { %v4804_v11 = vsel %vm4803_vm0, %v8418_v19, %v4800_v21  ;;  %5107 = vmatmul.f32.vlgmr.msra.gmra.mxu0 %v9722_v8  ;;  %5147 = vmatmul.f32.vlgmr.msra.gmra.mxu2 %v9722_v8  ;;  %v4873_v19 = vld [vmem:[#allocation6 + $0x160] sm:$0xff] }
 0x60d   :  { %v4809_v24 = vsel %vm4806_vm1, %v4808_v52, %v4804_v11  ;;  %5251 = vmatpush.msra.mxu0 %v4953_v45  ;;  %5291 = vmatpush.msra.mxu2 %v4954_v41  ;;  %v4849_v21 = vld [vmem:[#allocation6 + $0xa0] sm:$0xff]  ;;  %v4850_v41 = vld [vmem:[#allocation6 + $0xa8] sm:$0xff] }
 0x60e   :  { %v4826_v57 = vmul.f32 %v8422_v28, %v4809_v24  ;;  %v5001_v45 = vld [vmem:[#allocation6 + $0x560] sm:$0xff]  ;;  %v5002_v52 = vld [vmem:[#allocation6 + $0x568] sm:$0xff] }
 0x60f   :  { %5252 = vmatpush.msra.mxu0 %v4945_v51  ;;  %5292 = vmatpush.msra.mxu2 %v4946_v32  ;;  %v4841_v11 = vld [vmem:[#allocation6 + $0x60] sm:$0xff]  ;;  %v4842_v32 = vld [vmem:[#allocation6 + $0x68] sm:$0xff] }
 0x610   :  { %4828 = vst [vmem:[#allocation2 + $0x8] sm:$0xc] %v4826_v57  ;;  %v9726_v9 = vrot.slane %v4826_v57, 2  ;;  %v4993_v51 = vld [vmem:[#allocation6 + $0x520] sm:$0xff]  ;;  %v4994_v28 = vld [vmem:[#allocation6 + $0x528] sm:$0xff] }
 0x611   :  { %5253 = vmatpush.msra.mxu0 %v4937_v14  ;;  %5293 = vmatpush.msra.mxu2 %v4938_v49  ;;  %v4833_v24 = vld [vmem:[#allocation6 + $0x20] sm:$0xff]  ;;  %v4834_v14 = vld [vmem:[#allocation6 + $0x28] sm:$0xff] }
 0x612   :  { %5127 = vmatmul.f32.vlgmr.msra.gmra.mxu1 %v9726_v9  ;;  %5167 = vmatmul.f32.vlgmr.msra.gmra.mxu3 %v9726_v9  ;;  %v4985_v57 = vld [vmem:[#allocation6 + $0x4e0] sm:$0xff]  ;;  %v4986_v49 = vld [vmem:[#allocation6 + $0x4e8] sm:$0xff] }
 0x613   :  { %5254 = vmatpush.msra.mxu0 %v4929_v5  ;;  %5271 = vmatpush.msra.mxu1 %v5081_v15  ;;  %v4955_v5 = vld [vmem:[#allocation6 + $0x3f0] sm:$0xff]  ;;  %v4956_v15 = vld [vmem:[#allocation6 + $0x3f8] sm:$0xff] }
 0x614   :  { %5294 = vmatpush.msra.mxu2 %v4930_v1  ;;  %5311 = vmatpush.msra.mxu3 %v5082_v26  ;;  %v4977_v1 = vld [vmem:[#allocation6 + $0x4a0] sm:$0xff]  ;;  %v4978_v26 = vld [vmem:[#allocation6 + $0x4a8] sm:$0xff] }
 0x615   :  { %5187 = vmatmul.f32.vlgmr.msrb.gmra.mxu0 %v9722_v8  ;;  %5227 = vmatmul.f32.vlgmr.msrb.gmra.mxu2 %v9722_v8 }
 0x616   :  { %5255 = vmatpush.msra.mxu0 %v4921_v27  ;;  %5272 = vmatpush.msra.mxu1 %v5073_v7  ;;  %v4947_v27 = vld [vmem:[#allocation6 + $0x3b0] sm:$0xff]  ;;  %v4948_v7 = vld [vmem:[#allocation6 + $0x3b8] sm:$0xff] }
 0x617   :  { %5295 = vmatpush.msra.mxu2 %v4922_v13  ;;  %5312 = vmatpush.msra.mxu3 %v5074_v53  ;;  %v4969_v13 = vld [vmem:[#allocation6 + $0x460] sm:$0xff]  ;;  %v4970_v53 = vld [vmem:[#allocation6 + $0x468] sm:$0xff] }
 0x618   :  { %5256 = vmatpush.msra.mxu0 %v4913_v55  ;;  %5273 = vmatpush.msra.mxu1 %v5065_v22  ;;  %v4939_v55 = vld [vmem:[#allocation6 + $0x370] sm:$0xff]  ;;  %v4940_v22 = vld [vmem:[#allocation6 + $0x378] sm:$0xff] }
 0x619   :  { %5296 = vmatpush.msra.mxu2 %v4914_v12  ;;  %5313 = vmatpush.msra.mxu3 %v5066_v46  ;;  %v4961_v12 = vld [vmem:[#allocation6 + $0x420] sm:$0xff]  ;;  %v4962_v46 = vld [vmem:[#allocation6 + $0x428] sm:$0xff] }
 0x61a   :  { %5257 = vmatpush.msra.mxu0 %v4905_v31  ;;  %5274 = vmatpush.msra.mxu1 %v5057_v33  ;;  %v4931_v31 = vld [vmem:[#allocation6 + $0x330] sm:$0xff] }
 0x61b   :  { %5297 = vmatpush.msra.mxu2 %v4906_v62  ;;  %5314 = vmatpush.msra.mxu3 %v5058_v18  ;;  %v5083_v33 = vld [vmem:[#allocation6 + $0x7f0] sm:$0xff]  ;;  %v4932_v62 = vld [vmem:[#allocation6 + $0x338] sm:$0xff] }
 0x61c   :  { %5207 = vmatmul.f32.vlgmr.msrb.gmra.mxu1 %v9726_v9  ;;  %5247 = vmatmul.f32.vlgmr.msrb.gmra.mxu3 %v9726_v9  ;;  %v5084_v18 = vld [vmem:[#allocation6 + $0x7f8] sm:$0xff] }
 0x61d   :  { %5258 = vmatpush.msra.mxu0 %v4897_v37  ;;  %5275 = vmatpush.msra.mxu1 %v5049_v56  ;;  %v4923_v37 = vld [vmem:[#allocation6 + $0x2f0] sm:$0xff] }
 0x61e   :  { %5298 = vmatpush.msra.mxu2 %v4898_v29  ;;  %5315 = vmatpush.msra.mxu3 %v5050_v50  ;;  %v5075_v56 = vld [vmem:[#allocation6 + $0x7b0] sm:$0xff]  ;;  %v4924_v29 = vld [vmem:[#allocation6 + $0x2f8] sm:$0xff] }
 0x61f   :  { %5259 = vmatpush.msra.mxu0 %v4889_v63  ;;  %5276 = vmatpush.msra.mxu1 %v5041_v17  ;;  %v5076_v50 = vld [vmem:[#allocation6 + $0x7b8] sm:$0xff]  ;;  %v4915_v63 = vld [vmem:[#allocation6 + $0x2b0] sm:$0xff] }
 0x620   :  { %5299 = vmatpush.msra.mxu2 %v4890_v16  ;;  %5316 = vmatpush.msra.mxu3 %v5042_v23  ;;  %v5067_v17 = vld [vmem:[#allocation6 + $0x770] sm:$0xff]  ;;  %v4916_v16 = vld [vmem:[#allocation6 + $0x2b8] sm:$0xff] }
 0x621   :  { %5260 = vmatpush.msra.mxu0 %v4881_v61  ;;  %5277 = vmatpush.msra.mxu1 %v5033_v59  ;;  %v5068_v23 = vld [vmem:[#allocation6 + $0x778] sm:$0xff]  ;;  %v4907_v61 = vld [vmem:[#allocation6 + $0x270] sm:$0xff] }
 0x622   :  { %5300 = vmatpush.msra.mxu2 %v4882_v3  ;;  %5317 = vmatpush.msra.mxu3 %v5034_v43  ;;  %v5059_v59 = vld [vmem:[#allocation6 + $0x730] sm:$0xff]  ;;  %v4908_v3 = vld [vmem:[#allocation6 + $0x278] sm:$0xff] }
 0x623   :  { %5261 = vmatpush.msra.mxu0 %v4873_v19  ;;  %5278 = vmatpush.msra.mxu1 %v5025_v44  ;;  %v5060_v43 = vld [vmem:[#allocation6 + $0x738] sm:$0xff]  ;;  %v4899_v19 = vld [vmem:[#allocation6 + $0x230] sm:$0xff] }
 0x624   :  { %5301 = vmatpush.msra.mxu2 %v4874_v47  ;;  %5318 = vmatpush.msra.mxu3 %v5026_v0  ;;  %v5051_v44 = vld [vmem:[#allocation6 + $0x6f0] sm:$0xff]  ;;  %v4900_v47 = vld [vmem:[#allocation6 + $0x238] sm:$0xff] }
 0x625   :  { %5262 = vmatpush.msra.mxu0 %v4865_v34  ;;  %5279 = vmatpush.msra.mxu1 %v5017_v60  ;;  %v5052_v0 = vld [vmem:[#allocation6 + $0x6f8] sm:$0xff]  ;;  %v4891_v34 = vld [vmem:[#allocation6 + $0x1f0] sm:$0xff] }
 0x626   :  { %5302 = vmatpush.msra.mxu2 %v4866_v48  ;;  %5319 = vmatpush.msra.mxu3 %v5018_v54  ;;  %v5043_v60 = vld [vmem:[#allocation6 + $0x6b0] sm:$0xff]  ;;  %v4892_v48 = vld [vmem:[#allocation6 + $0x1f8] sm:$0xff] }
 0x627   :  { %5263 = vmatpush.msra.mxu0 %v4857_v25  ;;  %5280 = vmatpush.msra.mxu1 %v5009_v30  ;;  %v5044_v54 = vld [vmem:[#allocation6 + $0x6b8] sm:$0xff]  ;;  %v4883_v25 = vld [vmem:[#allocation6 + $0x1b0] sm:$0xff] }
 0x628   :  { %5303 = vmatpush.msra.mxu2 %v4858_v40  ;;  %5320 = vmatpush.msra.mxu3 %v5010_v35  ;;  %v5035_v30 = vld [vmem:[#allocation6 + $0x670] sm:$0xff]  ;;  %v4884_v40 = vld [vmem:[#allocation6 + $0x1b8] sm:$0xff] }
 0x629   :  { %5264 = vmatpush.msra.mxu0 %v4849_v21  ;;  %5281 = vmatpush.msra.mxu1 %v5001_v45  ;;  %v5036_v35 = vld [vmem:[#allocation6 + $0x678] sm:$0xff]  ;;  %v4875_v21 = vld [vmem:[#allocation6 + $0x170] sm:$0xff] }
 0x62a   :  { %5304 = vmatpush.msra.mxu2 %v4850_v41  ;;  %5321 = vmatpush.msra.mxu3 %v5002_v52  ;;  %v5027_v45 = vld [vmem:[#allocation6 + $0x630] sm:$0xff]  ;;  %v4876_v41 = vld [vmem:[#allocation6 + $0x178] sm:$0xff] }
 0x62b   :  { %5265 = vmatpush.msra.mxu0 %v4841_v11  ;;  %5282 = vmatpush.msra.mxu1 %v4993_v51  ;;  %v5028_v52 = vld [vmem:[#allocation6 + $0x638] sm:$0xff]  ;;  %v4867_v11 = vld [vmem:[#allocation6 + $0x130] sm:$0xff] }
 0x62c   :  { %5305 = vmatpush.msra.mxu2 %v4842_v32  ;;  %5322 = vmatpush.msra.mxu3 %v4994_v28  ;;  %v5019_v51 = vld [vmem:[#allocation6 + $0x5f0] sm:$0xff]  ;;  %v4868_v32 = vld [vmem:[#allocation6 + $0x138] sm:$0xff] }
 0x62d   :  { %5266 = vmatpush.msra.mxu0 %v4833_v24  ;;  %5283 = vmatpush.msra.mxu1 %v4985_v57  ;;  %v5020_v28 = vld [vmem:[#allocation6 + $0x5f8] sm:$0xff]  ;;  %v4859_v24 = vld [vmem:[#allocation6 + $0xf0] sm:$0xff] }
 0x62e   :  { %5306 = vmatpush.msra.mxu2 %v4834_v14  ;;  %5323 = vmatpush.msra.mxu3 %v4986_v49  ;;  %v5011_v57 = vld [vmem:[#allocation6 + $0x5b0] sm:$0xff]  ;;  %v4860_v14 = vld [vmem:[#allocation6 + $0xf8] sm:$0xff] }
 0x62f   :  { %5267 = vmatmul.f32.vlgmr.msra.gmra.mxu0 %v9722_v8  ;;  %5307 = vmatmul.f32.vlgmr.msra.gmra.mxu2 %v9722_v8  ;;  %v5012_v49 = vld [vmem:[#allocation6 + $0x5b8] sm:$0xff] }
 0x630   :  { %5331 = vmatpush.msrb.mxu0 %v4955_v5  ;;  %5371 = vmatpush.msrb.mxu2 %v4956_v15  ;;  %v4851_v5 = vld [vmem:[#allocation6 + $0xb0] sm:$0xff] }
 0x631   :  { %5284 = vmatpush.msra.mxu1 %v4977_v1  ;;  %5324 = vmatpush.msra.mxu3 %v4978_v26  ;;  %v5003_v15 = vld [vmem:[#allocation6 + $0x570] sm:$0xff]  ;;  %v4852_v1 = vld [vmem:[#allocation6 + $0xb8] sm:$0xff] }
 0x632   :  { %5332 = vmatpush.msrb.mxu0 %v4947_v27  ;;  %5372 = vmatpush.msrb.mxu2 %v4948_v7  ;;  %v5004_v26 = vld [vmem:[#allocation6 + $0x578] sm:$0xff]  ;;  %v4843_v27 = vld [vmem:[#allocation6 + $0x70] sm:$0xff] }
 0x633   :  { %5285 = vmatpush.msra.mxu1 %v4969_v13  ;;  %5325 = vmatpush.msra.mxu3 %v4970_v53  ;;  %v4995_v7 = vld [vmem:[#allocation6 + $0x530] sm:$0xff]  ;;  %v4844_v13 = vld [vmem:[#allocation6 + $0x78] sm:$0xff] }
 0x634   :  { %5333 = vmatpush.msrb.mxu0 %v4939_v55  ;;  %5373 = vmatpush.msrb.mxu2 %v4940_v22  ;;  %v4996_v53 = vld [vmem:[#allocation6 + $0x538] sm:$0xff]  ;;  %v4835_v55 = vld [vmem:[#allocation6 + $0x30] sm:$0xff] }
 0x635   :  { %5286 = vmatpush.msra.mxu1 %v4961_v12  ;;  %5326 = vmatpush.msra.mxu3 %v4962_v46  ;;  %v4987_v22 = vld [vmem:[#allocation6 + $0x4f0] sm:$0xff]  ;;  %v4836_v12 = vld [vmem:[#allocation6 + $0x38] sm:$0xff] }
 0x636   :  { %5287 = vmatmul.f32.vlgmr.msra.gmra.mxu1 %v9726_v9  ;;  %5327 = vmatmul.f32.vlgmr.msra.gmra.mxu3 %v9726_v9  ;;  %v4988_v46 = vld [vmem:[#allocation6 + $0x4f8] sm:$0xff] }
 0x637   :  { %5334 = vmatpush.msrb.mxu0 %v4931_v31  ;;  %5351 = vmatpush.msrb.mxu1 %v5083_v33  ;;  %v4979_v31 = vld [vmem:[#allocation6 + $0x4b0] sm:$0xff]  ;;  %v4980_v33 = vld [vmem:[#allocation6 + $0x4b8] sm:$0xff] }
 0x638   :  { %5374 = vmatpush.msrb.mxu2 %v4932_v62  ;;  %5391 = vmatpush.msrb.mxu3 %v5084_v18  ;;  %v4971_v62 = vld [vmem:[#allocation6 + $0x470] sm:$0xff]  ;;  %v4972_v18 = vld [vmem:[#allocation6 + $0x478] sm:$0xff] }
 0x639   :  { %5335 = vmatpush.msrb.mxu0 %v4923_v37  ;;  %5352 = vmatpush.msrb.mxu1 %v5075_v56  ;;  %v4963_v37 = vld [vmem:[#allocation6 + $0x430] sm:$0xff]  ;;  %v4964_v56 = vld [vmem:[#allocation6 + $0x438] sm:$0xff] }
 0x63a   :  { %5375 = vmatpush.msrb.mxu2 %v4924_v29  ;;  %5392 = vmatpush.msrb.mxu3 %v5076_v50  ;;  %v5697_v29 = vld [vmem:[#allocation6 + $0x3c0] sm:$0xff]  ;;  %v5698_v50 = vld [vmem:[#allocation6 + $0x3c8] sm:$0xff] }
 0x63b   :  { %5336 = vmatpush.msrb.mxu0 %v4915_v63  ;;  %5353 = vmatpush.msrb.mxu1 %v5067_v17  ;;  %v5689_v63 = vld [vmem:[#allocation6 + $0x380] sm:$0xff] }
 0x63c   :  { %5376 = vmatpush.msrb.mxu2 %v4916_v16  ;;  %5393 = vmatpush.msrb.mxu3 %v5068_v23  ;;  %v5681_v17 = vld [vmem:[#allocation6 + $0x340] sm:$0xff]  ;;  %v5682_v16 = vld [vmem:[#allocation6 + $0x348] sm:$0xff] }
 0x63d   :  { %5337 = vmatpush.msrb.mxu0 %v4907_v61  ;;  %5354 = vmatpush.msrb.mxu1 %v5059_v59  ;;  %v5673_v61 = vld [vmem:[#allocation6 + $0x300] sm:$0xff] }
 0x63e   :  { %5377 = vmatpush.msrb.mxu2 %v4908_v3  ;;  %5394 = vmatpush.msrb.mxu3 %v5060_v43  ;;  %v5825_v59 = vld [vmem:[#allocation6 + $0x7c0] sm:$0xff]  ;;  %v5674_v3 = vld [vmem:[#allocation6 + $0x308] sm:$0xff] }
 0x63f   :  { %5338 = vmatpush.msrb.mxu0 %v4899_v19  ;;  %5355 = vmatpush.msrb.mxu1 %v5051_v44  ;;  %v5665_v19 = vld [vmem:[#allocation6 + $0x2c0] sm:$0xff] }
 0x640   :  { %5378 = vmatpush.msrb.mxu2 %v4900_v47  ;;  %5395 = vmatpush.msrb.mxu3 %v5052_v0  ;;  %v5817_v44 = vld [vmem:[#allocation6 + $0x780] sm:$0xff]  ;;  %v5666_v47 = vld [vmem:[#allocation6 + $0x2c8] sm:$0xff] }
 0x641   :  { %5339 = vmatpush.msrb.mxu0 %v4891_v34  ;;  %5356 = vmatpush.msrb.mxu1 %v5043_v60  ;;  %v5818_v0 = vld [vmem:[#allocation6 + $0x788] sm:$0xff]  ;;  %v5657_v34 = vld [vmem:[#allocation6 + $0x280] sm:$0xff] }
 0x642   :  { %5379 = vmatpush.msrb.mxu2 %v4892_v48  ;;  %5396 = vmatpush.msrb.mxu3 %v5044_v54  ;;  %v5809_v60 = vld [vmem:[#allocation6 + $0x740] sm:$0xff]  ;;  %v5658_v48 = vld [vmem:[#allocation6 + $0x288] sm:$0xff] }
 0x643   :  { %5340 = vmatpush.msrb.mxu0 %v4883_v25  ;;  %5357 = vmatpush.msrb.mxu1 %v5035_v30  ;;  %v5810_v25 = vld [vmem:[#allocation6 + $0x748] sm:$0xff]  ;;  %v5649_v30 = vld [vmem:[#allocation6 + $0x240] sm:$0xff] }
 0x644   :  { %5380 = vmatpush.msrb.mxu2 %v4884_v40  ;;  %5397 = vmatpush.msrb.mxu3 %v5036_v35  ;;  %v5801_v40 = vld [vmem:[#allocation6 + $0x700] sm:$0xff]  ;;  %v5650_v35 = vld [vmem:[#allocation6 + $0x248] sm:$0xff] }
 0x645   :  { %5341 = vmatpush.msrb.mxu0 %v4875_v21  ;;  %5358 = vmatpush.msrb.mxu1 %v5027_v45  ;;  %v5802_v45 = vld [vmem:[#allocation6 + $0x708] sm:$0xff] }
 0x646   :  { %5381 = vmatpush.msrb.mxu2 %v4876_v41  ;;  %5398 = vmatpush.msrb.mxu3 %v5028_v52  ;;  %v5641_v41 = vld [vmem:[#allocation6 + $0x200] sm:$0xff] }
 0x647   :  { %5342 = vmatpush.msrb.mxu0 %v4867_v11  ;;  %5359 = vmatpush.msrb.mxu1 %v5019_v51  ;;  %v5793_v52 = vld [vmem:[#allocation6 + $0x6c0] sm:$0xff]  ;;  %v5642_v11 = vld [vmem:[#allocation6 + $0x208] sm:$0xff] }
 0x648   :  { %5382 = vmatpush.msrb.mxu2 %v4868_v32  ;;  %5399 = vmatpush.msrb.mxu3 %v5020_v28  ;;  %v5794_v32 = vld [vmem:[#allocation6 + $0x6c8] sm:$0xff]  ;;  %v5633_v28 = vld [vmem:[#allocation6 + $0x1c0] sm:$0xff] }
 0x649   :  { %5343 = vmatpush.msrb.mxu0 %v4859_v24  ;;  %5360 = vmatpush.msrb.mxu1 %v5011_v57  ;;  %v5785_v24 = vld [vmem:[#allocation6 + $0x680] sm:$0xff]  ;;  %v5634_v57 = vld [vmem:[#allocation6 + $0x1c8] sm:$0xff] }
 0x64a   :  { %5383 = vmatpush.msrb.mxu2 %v4860_v14  ;;  %5400 = vmatpush.msrb.mxu3 %v5012_v49  ;;  %v5786_v14 = vld [vmem:[#allocation6 + $0x688] sm:$0xff] }
 0x64b   :  { %5344 = vmatpush.msrb.mxu0 %v4851_v5  ;;  %5361 = vmatpush.msrb.mxu1 %v5003_v15 }
 0x64c   :  { %5384 = vmatpush.msrb.mxu2 %v4852_v1  ;;  %5401 = vmatpush.msrb.mxu3 %v5004_v26  ;;  %v5625_v1 = vld [vmem:[#allocation6 + $0x180] sm:$0xff] }
 0x64d   :  { %5345 = vmatpush.msrb.mxu0 %v4843_v27  ;;  %5362 = vmatpush.msrb.mxu1 %v4995_v7  ;;  %v5777_v26 = vld [vmem:[#allocation6 + $0x640] sm:$0xff]  ;;  %v5626_v27 = vld [vmem:[#allocation6 + $0x188] sm:$0xff] }
 0x64e   :  { %5385 = vmatpush.msrb.mxu2 %v4844_v13  ;;  %5402 = vmatpush.msrb.mxu3 %v4996_v53  ;;  %v5778_v7 = vld [vmem:[#allocation6 + $0x648] sm:$0xff]  ;;  %v5617_v13 = vld [vmem:[#allocation6 + $0x140] sm:$0xff] }
 0x64f   :  { %5346 = vmatpush.msrb.mxu0 %v4835_v55  ;;  %5363 = vmatpush.msrb.mxu1 %v4987_v22  ;;  %v5769_v53 = vld [vmem:[#allocation6 + $0x600] sm:$0xff]  ;;  %v5618_v55 = vld [vmem:[#allocation6 + $0x148] sm:$0xff] }
 0x650   :  { %5386 = vmatpush.msrb.mxu2 %v4836_v12  ;;  %5403 = vmatpush.msrb.mxu3 %v4988_v46  ;;  %v5770_v22 = vld [vmem:[#allocation6 + $0x608] sm:$0xff] }
 0x651   :  { %5347 = vmatmul.f32.vlgmr.msrb.gmra.mxu0 %v9722_v8  ;;  %5387 = vmatmul.f32.vlgmr.msrb.gmra.mxu2 %v9722_v8  ;;  %v5690_v8 = vld [vmem:[#allocation6 + $0x388] sm:$0xff] }
 0x652   :  { %5364 = vmatpush.msrb.mxu1 %v4979_v31  ;;  %5404 = vmatpush.msrb.mxu3 %v4980_v33  ;;  %v5609_v31 = vld [vmem:[#allocation6 + $0x100] sm:$0xff] }
 0x653   :  { %5839 = vmatpush.msra.mxu0 %v5697_v29  ;;  %5879 = vmatpush.msra.mxu2 %v5698_v50  ;;  %v5761_v33 = vld [vmem:[#allocation6 + $0x5c0] sm:$0xff] }
 0x654   :  { %5365 = vmatpush.msrb.mxu1 %v4971_v62  ;;  %5405 = vmatpush.msrb.mxu3 %v4972_v18  ;;  %v5610_v62 = vld [vmem:[#allocation6 + $0x108] sm:$0xff] }
 0x655   :  { %5840 = vmatpush.msra.mxu0 %v5689_v63  ;;  %5880 = vmatpush.msra.mxu2 %v5690_v8  ;;  %v5601_v63 = vld [vmem:[#allocation6 + $0xc0] sm:$0xff] }
 0x656   :  { %5366 = vmatpush.msrb.mxu1 %v4963_v37  ;;  %5406 = vmatpush.msrb.mxu3 %v4964_v56  ;;  %v5762_v37 = vld [vmem:[#allocation6 + $0x5c8] sm:$0xff]  ;;  %v5753_v8 = vld [vmem:[#allocation6 + $0x580] sm:$0xff] }
 0x657   :  { %5367 = vmatmul.f32.vlgmr.msrb.gmra.mxu1 %v9726_v9  ;;  %5407 = vmatmul.f32.vlgmr.msrb.gmra.mxu3 %v9726_v9  ;;  %v5826_v9 = vld [vmem:[#allocation6 + $0x7c8] sm:$0xff] }
 0x658   :  { %5841 = vmatpush.msra.mxu0 %v5681_v17  ;;  %5881 = vmatpush.msra.mxu2 %v5682_v16  ;;  %v5602_v17 = vld [vmem:[#allocation6 + $0xc8] sm:$0xff] }
 0x659   :  { %5859 = vmatpush.msra.mxu1 %v5825_v59  ;;  %5899 = vmatpush.msra.mxu3 %v5826_v9  ;;  %v5593_v59 = vld [vmem:[#allocation6 + $0x80] sm:$0xff] }
 0x65a   :  { %5842 = vmatpush.msra.mxu0 %v5673_v61  ;;  %5882 = vmatpush.msra.mxu2 %v5674_v3  ;;  %v5745_v3 = vld [vmem:[#allocation6 + $0x540] sm:$0xff] }
 0x65b   :  { %5860 = vmatpush.msra.mxu1 %v5817_v44  ;;  %5900 = vmatpush.msra.mxu3 %v5818_v0  ;;  %v5737_v0 = vld [vmem:[#allocation6 + $0x500] sm:$0xff] }
 0x65c   :  { %5843 = vmatpush.msra.mxu0 %v5665_v19  ;;  %5883 = vmatpush.msra.mxu2 %v5666_v47  ;;  %v5746_v19 = vld [vmem:[#allocation6 + $0x548] sm:$0xff]  ;;  %v5585_v47 = vld [vmem:[#allocation6 + $0x40] sm:$0xff] }
 0x65d   :  { %5861 = vmatpush.msra.mxu1 %v5809_v60  ;;  %5901 = vmatpush.msra.mxu3 %v5810_v25  ;;  %v5577_v25 = vld [vmem:[#allocation6] sm:$0xff] }
 0x65e   :  { %5844 = vmatpush.msra.mxu0 %v5657_v34  ;;  %5884 = vmatpush.msra.mxu2 %v5658_v48  ;;  %v5586_v34 = vld [vmem:[#allocation6 + $0x48] sm:$0xff] }
 0x65f   :  { %5862 = vmatpush.msra.mxu1 %v5801_v40  ;;  %5902 = vmatpush.msra.mxu3 %v5802_v45  ;;  %v5738_v48 = vld [vmem:[#allocation6 + $0x508] sm:$0xff]  ;;  %v5699_v45 = vld [vmem:[#allocation6 + $0x3d0] sm:$0xff] }
 0x660   :  { %5845 = vmatpush.msra.mxu0 %v5649_v30  ;;  %5885 = vmatpush.msra.mxu2 %v5650_v35  ;;  %v5729_v30 = vld [vmem:[#allocation6 + $0x4c0] sm:$0xff]  ;;  %v5578_v40 = vld [vmem:[#allocation6 + $0x8] sm:$0xff] }
 0x661   :  { %5863 = vmatpush.msra.mxu1 %v5793_v52  ;;  %5903 = vmatpush.msra.mxu3 %v5794_v32  ;;  %v5691_v32 = vld [vmem:[#allocation6 + $0x390] sm:$0xff] }
 0x662   :  { %5846 = vmatpush.msra.mxu0 %v5641_v41  ;;  %5886 = vmatpush.msra.mxu2 %v5642_v11  ;;  %v5700_v41 = vld [vmem:[#allocation6 + $0x3d8] sm:$0xff]  ;;  %v5721_v11 = vld [vmem:[#allocation6 + $0x480] sm:$0xff] }
 0x663   :  { %5864 = vmatpush.msra.mxu1 %v5785_v24  ;;  %5904 = vmatpush.msra.mxu3 %v5786_v14  ;;  %v5713_v24 = vld [vmem:[#allocation6 + $0x440] sm:$0xff] }
 0x664   :  { %5847 = vmatpush.msra.mxu0 %v5633_v28  ;;  %5887 = vmatpush.msra.mxu2 %v5634_v57  ;;  %v5692_v28 = vld [vmem:[#allocation6 + $0x398] sm:$0xff]  ;;  %v5714_v57 = vld [vmem:[#allocation6 + $0x448] sm:$0xff] }
 0x665   :  { %5865 = vmatpush.msra.mxu1 %v5777_v26  ;;  %5905 = vmatpush.msra.mxu3 %v5778_v7  ;;  %v5706_v26 = vld [vmem:[#allocation6 + $0x408] sm:$0xff]  ;;  %v5827_v7 = vld [vmem:[#allocation6 + $0x7d0] sm:$0xff] }
 0x666   :  { %5848 = vmatpush.msra.mxu0 %v5625_v1  ;;  %5888 = vmatpush.msra.mxu2 %v5626_v27  ;;  %v5705_v1 = vld [vmem:[#allocation6 + $0x400] sm:$0xff]  ;;  %v5675_v27 = vld [vmem:[#allocation6 + $0x310] sm:$0xff] }
 0x667   :  { %5866 = vmatpush.msra.mxu1 %v5769_v53  ;;  %5906 = vmatpush.msra.mxu3 %v5770_v22  ;;  %v5828_v53 = vld [vmem:[#allocation6 + $0x7d8] sm:$0xff]  ;;  %v5667_v22 = vld [vmem:[#allocation6 + $0x2d0] sm:$0xff] }
 0x668   :  { %5849 = vmatpush.msra.mxu0 %v5617_v13  ;;  %5889 = vmatpush.msra.mxu2 %v5618_v55  ;;  %v5676_v13 = vld [vmem:[#allocation6 + $0x318] sm:$0xff] }
 0x669   :  { %5867 = vmatpush.msra.mxu1 %v5761_v33  ;;  %5907 = vmatpush.msra.mxu3 %v5762_v37  ;;  %v5820_v33 = vld [vmem:[#allocation6 + $0x798] sm:$0xff] }
 0x66a   :  { %5850 = vmatpush.msra.mxu0 %v5609_v31  ;;  %5890 = vmatpush.msra.mxu2 %v5610_v62  ;;  %v5659_v62 = vld [vmem:[#allocation6 + $0x290] sm:$0xff]  ;;  %v5660_v37 = vld [vmem:[#allocation6 + $0x298] sm:$0xff] }
 0x66b   :  { %5868 = vmatpush.msra.mxu1 %v5753_v8  ;;  %v5803_v8 = vld [vmem:[#allocation6 + $0x710] sm:$0xff] }
 0x66c   :  { %5851 = vmatpush.msra.mxu0 %v5601_v63  ;;  %5891 = vmatpush.msra.mxu2 %v5602_v17  ;;  %v5651_v63 = vld [vmem:[#allocation6 + $0x250] sm:$0xff]  ;;  %v5652_v17 = vld [vmem:[#allocation6 + $0x258] sm:$0xff] }
 0x66d   :  { %5869 = vmatpush.msra.mxu1 %v5745_v3  ;;  %v5644_v3 = vld [vmem:[#allocation6 + $0x218] sm:$0xff] }
 0x66e   :  { %5852 = vmatpush.msra.mxu0 %v5593_v59  ;;  %v5795_v59 = vld [vmem:[#allocation6 + $0x6d0] sm:$0xff] }
 0x66f   :  { %5870 = vmatpush.msra.mxu1 %v5737_v0 }
 0x670   :  { %5853 = vmatpush.msra.mxu0 %v5585_v47  ;;  %v5636_v47 = vld [vmem:[#allocation6 + $0x1d8] sm:$0xff] }
 0x671   :  { %5871 = vmatpush.msra.mxu1 %v5729_v30  ;;  %v5779_v30 = vld [vmem:[#allocation6 + $0x650] sm:$0xff] }
 0x672   :  { %5854 = vmatpush.msra.mxu0 %v5577_v25  ;;  %v5627_v25 = vld [vmem:[#allocation6 + $0x190] sm:$0xff] }
 0x673   :  { %5872 = vmatpush.msra.mxu1 %v5721_v11  ;;  %v5772_v11 = vld [vmem:[#allocation6 + $0x618] sm:$0xff] }
 0x674   :  { %5919 = vmatpush.msrb.mxu0 %v5699_v45  ;;  %v5771_v45 = vld [vmem:[#allocation6 + $0x610] sm:$0xff] }
 0x675   :  { %5873 = vmatpush.msra.mxu1 %v5713_v24  ;;  %v5612_v24 = vld [vmem:[#allocation6 + $0x118] sm:$0xff] }
 0x676   :  { %5920 = vmatpush.msrb.mxu0 %v5691_v32  ;;  %v5611_v32 = vld [vmem:[#allocation6 + $0x110] sm:$0xff] }
 0x677   :  { %5874 = vmatpush.msra.mxu1 %v5705_v1  ;;  %v5755_v1 = vld [vmem:[#allocation6 + $0x590] sm:$0xff] }
 0x679   :  { %5939 = vmatpush.msrb.mxu1 %v5827_v7 }
 0x689   :  { %v5108_v43 = vpop.f32.mrf.mxu0 }
 0x68f   :  { %v5128_v23 = vpop.f32.mrf.mxu1  ;;  %v5148_v21 = vpop.f32.mrf.mxu2 }
 0x690   :  { %v5129_v49 = vadd.f32 %v5128_v23, %v5108_v43  ;;  %v5754_v23 = vld [vmem:[#allocation6 + $0x588] sm:$0xff] }
 0x691   :  { %5908 = vmatpush.msra.mxu3 %v5754_v23  ;;  %v5594_v43 = vld [vmem:[#allocation6 + $0x88] sm:$0xff] }
 0x692   :  { %v5188_v5 = vpop.f32.mrf.mxu0  ;;  %v5419_v12 = vrot.slane %v5129_v49, 4  ;;  %5892 = vmatpush.msra.mxu2 %v5594_v43  ;;  %v5683_v49 = vld [vmem:[#allocation6 + $0x350] sm:$0xff] }
 0x693   :  { %5909 = vmatpush.msra.mxu3 %v5746_v19  ;;  %5921 = vmatpush.msrb.mxu0 %v5683_v49  ;;  %v5635_v19 = vld [vmem:[#allocation6 + $0x1d0] sm:$0xff]  ;;  %v5764_v49 = vld [vmem:[#allocation6 + $0x5d8] sm:$0xff] }
 0x694   :  { %v5435_v16 = vadd.f32 %v5419_v12, %v9459_v4  ;;  %5893 = vmatpush.msra.mxu2 %v5586_v34  ;;  %v5819_v12 = vld [vmem:[#allocation6 + $0x790] sm:$0xff] }
 0x695   :  { %v5168_v54 = vpop.f32.mrf.mxu3  ;;  %5910 = vmatpush.msra.mxu3 %v5738_v48  ;;  %5922 = vmatpush.msrb.mxu0 %v5675_v27  ;;  %v5788_v48 = vld [vmem:[#allocation6 + $0x698] sm:$0xff] }
 0x696   :  { %v5169_v56 = vadd.f32 %v5168_v54, %v5148_v21  ;;  %v8117_v60 = vmul.f32 -1.442695, %v5435_v16  ;;  %v5730_v21 = vld [vmem:[#allocation6 + $0x4c8] sm:$0xff]  ;;  %5894 = vmatpush.msra.mxu2 %v5578_v40  ;;  %5940 = vmatpush.msrb.mxu1 %v5819_v12  ;;  %v5804_v16 = vld [vmem:[#allocation6 + $0x718] sm:$0xff]  ;;  %v5595_v12 = vld [vmem:[#allocation6 + $0x90] sm:$0xff] }
 0x697   :  { %5911 = vmatpush.msra.mxu3 %v5730_v21  ;;  %5923 = vmatpush.msrb.mxu0 %v5667_v22  ;;  %v5628_v40 = vld [vmem:[#allocation6 + $0x198] sm:$0xff]  ;;  %v5619_v21 = vld [vmem:[#allocation6 + $0x150] sm:$0xff] }
 0x698   :  { %v5228_v29 = vpop.f32.mrf.mxu2  ;;  %v5420_v9 = vrot.slane %v5169_v56, 4  ;;  %8423 = vpow2.f32 %v8117_v60  ;;  %5959 = vmatpush.msrb.mxu2 %v5700_v41  ;;  %v5620_v41 = vld [vmem:[#allocation6 + $0x158] sm:$0xff] }
 0x699   :  { %v5208_v51 = vpop.f32.mrf.mxu1  ;;  %5924 = vmatpush.msrb.mxu0 %v5659_v62  ;;  %v5748_v62 = vld [vmem:[#allocation6 + $0x558] sm:$0xff] }
 0x69a   :  { %v5209_v15 = vadd.f32 %v5208_v51, %v5188_v5  ;;  %v5436_v35 = vadd.f32 %v5420_v9, %v9471_v42  ;;  %v5722_v51 = vld [vmem:[#allocation6 + $0x488] sm:$0xff]  ;;  %5960 = vmatpush.msrb.mxu2 %v5692_v28  ;;  %v5684_v5 = vld [vmem:[#allocation6 + $0x358] sm:$0xff]  ;;  %v5763_v28 = vld [vmem:[#allocation6 + $0x5d0] sm:$0xff] }
 0x69b   :  { %5912 = vmatpush.msra.mxu3 %v5722_v51  ;;  %5925 = vmatpush.msrb.mxu0 %v5651_v63  ;;  %v5796_v9 = vld [vmem:[#allocation6 + $0x6d8] sm:$0xff]  ;;  %v5587_v63 = vld [vmem:[#allocation6 + $0x50] sm:$0xff] }
 0x69c   :  { %v5421_v18 = vrot.slane %v5209_v15, 4  ;;  %v8118_v14 = vmul.f32 -1.442695, %v5436_v35  ;;  %5961 = vmatpush.msrb.mxu2 %v5684_v5  ;;  %v5780_v35 = vld [vmem:[#allocation6 + $0x658] sm:$0xff] }
 0x69d   :  { %5913 = vmatpush.msra.mxu3 %v5714_v57 }
 0x69e   :  { %v5437_v61 = vadd.f32 %v5421_v18, %v9464_v39  ;;  %v8424_v55 = vpop.eup %8423  ;;  %5962 = vmatpush.msrb.mxu2 %v5676_v13  ;;  %v5811_v18 = vld [vmem:[#allocation6 + $0x750] sm:$0xff] }
 0x69f   :  { %v5248_v46 = vpop.f32.mrf.mxu3  ;;  %5914 = vmatpush.msra.mxu3 %v5706_v26  ;;  %v9746_v56 = vadd.f32 1.0, %v8424_v55  ;;  %5941 = vmatpush.msrb.mxu1 %v5811_v18  ;;  %v5604_v26 = vld [vmem:[#allocation6 + $0xd8] sm:$0xff] }
 0x6a0   :  { %v5249_v50 = vadd.f32 %v5248_v46, %v5228_v29  ;;  %v8119_v54 = vmul.f32 -1.442695, %v5437_v61  ;;  %v5668_v46 = vld [vmem:[#allocation6 + $0x2d8] sm:$0xff]  ;;  %v5643_v61 = vld [vmem:[#allocation6 + $0x210] sm:$0xff] }
 0x6a1   :  { %5979 = vmatpush.msrb.mxu3 %v5828_v53  ;;  %5963 = vmatpush.msrb.mxu2 %v5668_v46  ;;  %v5812_v29 = vld [vmem:[#allocation6 + $0x758] sm:$0xff]  ;;  %v5747_v46 = vld [vmem:[#allocation6 + $0x550] sm:$0xff]  ;;  %vm5456_vm4 = vweird.f32 %v9746_v56 }
 0x6a2   :  { %v5422_v44 = vrot.slane %v5249_v50, 4  ;;  %8425 = vpow2.f32 %v8119_v54  ;;  %5942 = vmatpush.msrb.mxu1 %v5803_v8  ;;  %5926 = vmatpush.msrb.mxu0 %v5643_v61  ;;  %v5756_v55 = vld [vmem:[#allocation6 + $0x598] sm:$0xff]  ;;  %v5739_v8 = vld [vmem:[#allocation6 + $0x510] sm:$0xff] }
 0x6a3   :  { %8427 = vpow2.f32 %v8118_v14  ;;  %5980 = vmatpush.msrb.mxu3 %v5820_v33  ;;  %5964 = vmatpush.msrb.mxu2 %v5660_v37  ;;  %v5740_v61 = vld [vmem:[#allocation6 + $0x518] sm:$0xff] }
 0x6a4   :  { %v5438_v52 = vadd.f32 %v5422_v44, %v9476_v20  ;;  %5943 = vmatpush.msrb.mxu1 %v5795_v59  ;;  %v5787_v44 = vld [vmem:[#allocation6 + $0x690] sm:$0xff]  ;;  %5927 = vmatpush.msrb.mxu0 %v5635_v19  ;;  %v5580_v19 = vld [vmem:[#allocation6 + $0x18] sm:$0xff] }
 0x6a5   :  { %5981 = vmatpush.msrb.mxu3 %v5812_v29  ;;  %5965 = vmatpush.msrb.mxu2 %v5652_v17  ;;  %v5588_v17 = vld [vmem:[#allocation6 + $0x58] sm:$0xff] }
 0x6a6   :  { %v8120_v15 = vmul.f32 -1.442695, %v5438_v52  ;;  %5944 = vmatpush.msrb.mxu1 %v5787_v44  ;;  %5928 = vmatpush.msrb.mxu0 %v5627_v25 }
 0x6a7   :  { %5982 = vmatpush.msrb.mxu3 %v5804_v16  ;;  %5966 = vmatpush.msrb.mxu2 %v5644_v3 }
 0x6a8   :  { %v8426_v31 = vpop.eup %8425  ;;  %8429 = vpow2.f32 %v8120_v15  ;;  %5945 = vmatpush.msrb.mxu1 %v5779_v30  ;;  %5929 = vmatpush.msrb.mxu0 %v5619_v21  ;;  %v5603_v15 = vld [vmem:[#allocation6 + $0xd0] sm:$0xff] }
 0x6a9   :  { %v9748_v50 = vadd.f32 1.0, %v8426_v31  ;;  %v8428_v23 = vpop.eup %8427  ;;  %8431 = vrcp.f32 %v9746_v56  ;;  %5983 = vmatpush.msrb.mxu3 %v5796_v9  ;;  %5967 = vmatpush.msrb.mxu2 %v5636_v47  ;;  %v5596_v31 = vld [vmem:[#allocation6 + $0x98] sm:$0xff]  ;;  %v5731_v9 = vld [vmem:[#allocation6 + $0x4d0] sm:$0xff] }
 0x6aa   :  { %v9752_v0 = vadd.f32 1.0, %v8428_v23  ;;  %5946 = vmatpush.msrb.mxu1 %v5771_v45  ;;  %5930 = vmatpush.msrb.mxu0 %v5611_v32  ;;  %v5723_v45 = vld [vmem:[#allocation6 + $0x490] sm:$0xff] }
 0x6ab   :  { %8433 = vrcp.f32 %v9748_v50  ;;  %5984 = vmatpush.msrb.mxu3 %v5788_v48  ;;  %5968 = vmatpush.msrb.mxu2 %v5628_v40  ;;  %v5732_v48 = vld [vmem:[#allocation6 + $0x4d8] sm:$0xff]  ;;  %vm5494_vm5 = vweird.f32 %v9748_v50 }
 0x6ac   :  { %v5268_v34 = vpop.f32.mrf.mxu0  ;;  %8435 = vrcp.f32 %v9752_v0  ;;  %5947 = vmatpush.msrb.mxu1 %v5763_v28  ;;  %5931 = vmatpush.msrb.mxu0 %v5603_v15  ;;  %vm5471_vm9 = vweird.f32 %v9752_v0 }
 0x6ad   :  { %5985 = vmatpush.msrb.mxu3 %v5780_v35  ;;  %5969 = vmatpush.msrb.mxu2 %v5620_v41  ;;  %v5724_v41 = vld [vmem:[#allocation6 + $0x498] sm:$0xff] }
 0x6ae   :  { %v8430_v43 = vpop.eup %8429  ;;  %5948 = vmatpush.msrb.mxu1 %v5755_v1  ;;  %5932 = vmatpush.msrb.mxu0 %v5595_v12 }
 0x6af   :  { %v9754_v54 = vadd.f32 1.0, %v8430_v43  ;;  %v9756_v52 = vpop.eup %8431  ;;  %5986 = vmatpush.msrb.mxu3 %v5772_v11  ;;  %5970 = vmatpush.msrb.mxu2 %v5612_v24  ;;  %v5579_v43 = vld [vmem:[#allocation6 + $0x10] sm:$0xff] }
 0x6b0   :  { %v5452_v27 = vmul.f32 %v9756_v52, %v9746_v56  ;;  %5949 = vmatpush.msrb.mxu1 %v5747_v46  ;;  %5933 = vmatpush.msrb.mxu0 %v5587_v63  ;;  %vm5457_vm2 = vweird.f32 %v9756_v52 }
 0x6b1   :  { %v9759_v51 = vpop.eup %8433  ;;  %8437 = vrcp.f32 %v9754_v54  ;;  %5987 = vmatpush.msrb.mxu3 %v5764_v49  ;;  %5971 = vmatpush.msrb.mxu2 %v5604_v26  ;;  %v5716_v49 = vld [vmem:[#allocation6 + $0x458] sm:$0xff]  ;;  %vm9793_vm6 = vmor %vm5456_vm4, %vm5457_vm2  ;;  %vm5509_vm13 = vweird.f32 %v9754_v54 }
 0x6b2   :  { %v5308_v57 = vpop.f32.mrf.mxu2  ;;  %v5490_v7 = vmul.f32 %v9759_v51, %v9748_v50  ;;  %v9766_v33 = vpop.eup %8435  ;;  %v5453_v16 = vsub.f32 1.0, %v5452_v27  ;;  %5950 = vmatpush.msrb.mxu1 %v5739_v8  ;;  %5934 = vmatpush.msrb.mxu0 %v5579_v43  ;;  %vm5495_vm3 = vweird.f32 %v9759_v51  ;;  %v5707_v27 = vld [vmem:[#allocation6 + $0x410] sm:$0xff] }
 0x6b3   :  { %v5288_v60 = vpop.f32.mrf.mxu1  ;;  %5988 = vmatpush.msrb.mxu3 %v5756_v55  ;;  %5972 = vmatpush.msrb.mxu2 %v5596_v31  ;;  %v5467_v44 = vmul.f32 %v9766_v33, %v9752_v0  ;;  %vm9801_vm7 = vmor %vm5494_vm5, %vm5495_vm3  ;;  %vm5472_vm11 = vweird.f32 %v9766_v33 }
 0x6b4   :  { %v5289_v5 = vadd.f32 %v5288_v60, %v5268_v34  ;;  %v5491_v23 = vsub.f32 1.0, %v5490_v7  ;;  %5951 = vmatpush.msrb.mxu1 %v5731_v9  ;;  %v5454_v21 = vmul.f32 %v9756_v52, %v5453_v16  ;;  %v5708_v7 = vld [vmem:[#allocation6 + $0x418] sm:$0xff]  ;;  %vm9827_vm14 = vmor %vm5471_vm9, %vm5472_vm11  ;;  %v5670_v9 = vld [vmem:[#allocation6 + $0x2e8] sm:$0xff] }
 0x6b5   :  { %5989 = vmatpush.msrb.mxu3 %v5748_v62  ;;  %5973 = vmatpush.msrb.mxu2 %v5588_v17  ;;  %v5468_v28 = vsub.f32 1.0, %v5467_v44  ;;  %v5561_v62 = vrot.slane %v9715_v36, 6  ;;  %v5513_v44 = vand.u32 2147483647, %v9754_v54 }
 0x6b6   :  { %v5423_v37 = vrot.slane %v5289_v5, 4  ;;  %v5492_v35 = vmul.f32 %v9759_v51, %v5491_v23  ;;  %5952 = vmatpush.msrb.mxu1 %v5723_v45  ;;  %v5462_v5 = vand.u32 2147483648, %v9746_v56  ;;  %v5455_v1 = vadd.f32 %v9756_v52, %v5454_v21 }
 0x6b7   :  { %v9768_v18 = vpop.eup %8437  ;;  %5990 = vmatpush.msrb.mxu3 %v5740_v61  ;;  %5974 = vmatpush.msrb.mxu2 %v5580_v19  ;;  %v5469_v46 = vmul.f32 %v9766_v33, %v5468_v28  ;;  %v5475_v19 = vand.u32 2147483647, %v9752_v0  ;;  %vm5514_vm1 = vcmp.eq.f32.partialorder %v5513_v44, 8.507059e+37  ;;  %v5661_v44 = vld [vmem:[#allocation6 + $0x2a0] sm:$0xff] }
 0x6b8   :  { %v5505_v47 = vmul.f32 %v9768_v18, %v9754_v54  ;;  %v5439_v25 = vadd.f32 %v5423_v37, %v9512_v2  ;;  %v5493_v26 = vadd.f32 %v9759_v51, %v5492_v35  ;;  %v5459_v63 = vsel %vm9793_vm6, %v9756_v52, %v5455_v1 }
 0x6b9   :  { %v5328_v14 = vpop.f32.mrf.mxu3  ;;  %5991 = vmatpush.msrb.mxu3 %v5732_v48  ;;  %vm5510_vm12 = vweird.f32 %v9768_v18  ;;  %v5470_v23 = vadd.f32 %v9766_v33, %v5469_v46  ;;  %v5515_v52 = vand.u32 2147483648, %v9754_v54  ;;  %vm5476_vm0 = vcmp.eq.f32.partialorder %v5475_v19, 8.507059e+37  ;;  %v5701_v46 = vld [vmem:[#allocation6 + $0x3e0] sm:$0xff]  ;;  %v5822_v19 = vld [vmem:[#allocation6 + $0x7a8] sm:$0xff] }
 0x6ba   :  { %v5329_v59 = vadd.f32 %v5328_v14, %v5308_v57  ;;  %v5506_v24 = vsub.f32 1.0, %v5505_v47  ;;  %v5460_v57 = vand.u32 2147483647, %v9746_v56  ;;  %v5715_v14 = vld [vmem:[#allocation6 + $0x450] sm:$0xff]  ;;  %v5497_v36 = vsel %vm9801_vm7, %v9759_v51, %v5493_v26  ;;  %vm5511_vm15 = vmor %vm5509_vm13, %vm5510_vm12 }
 0x6bb   :  { %5992 = vmatpush.msrb.mxu3 %v5724_v41  ;;  %5953 = vmatpush.msrb.mxu1 %v5715_v14 }
 0x6bc   :  { %v5424_v11 = vrot.slane %v5329_v59, 4  ;;  %v5507_v12 = vmul.f32 %v9768_v18, %v5506_v24  ;;  %vm9805_vm8 = vcmp.eq.f32.partialorder %v5460_v57, 8.507059e+37 }
 0x6bd   :  { %5993 = vmatpush.msrb.mxu3 %v5716_v49  ;;  %5954 = vmatpush.msrb.mxu1 %v5707_v27 }
 0x6be   :  { %v5440_v55 = vadd.f32 %v5424_v11, %v9530_v10  ;;  %v5508_v61 = vadd.f32 %v9768_v18, %v5507_v12  ;;  %v5562_v11 = vrot.slane %v9719_v38, 6 }
 0x6bf   :  { %5994 = vmatpush.msrb.mxu3 %v5708_v7 }
 0x6c0   :  { %v5512_v48 = vsel %vm5511_vm15, %v9768_v18, %v5508_v61  ;;  %v5677_v61 = vld [vmem:[#allocation6 + $0x320] sm:$0xff] }
 0x6ce   :  { %v5348_v13 = vpop.f32.mrf.mxu0 }
 0x6d4   :  { %v5368_v53 = vpop.f32.mrf.mxu1  ;;  %v5388_v34 = vpop.f32.mrf.mxu2 }
 0x6d5   :  { %v5369_v22 = vadd.f32 %v5368_v53, %v5348_v13  ;;  %v5500_v13 = vand.u32 2147483648, %v9748_v50  ;;  %v5498_v53 = vand.u32 2147483647, %v9748_v50  ;;  %v5693_v50 = vld [vmem:[#allocation6 + $0x3a0] sm:$0xff] }
 0x6d7   :  { %v5425_v29 = vrot.slane %v5369_v22, 4  ;;  %v5501_v16 = vor.u32 1.1754944e-38, %v5500_v13  ;;  %vm5499_vm10 = vcmp.eq.f32.partialorder %v5498_v53, 8.507059e+37 }
 0x6d9   :  { %v5441_v3 = vadd.f32 %v5425_v29, %v9507_v6  ;;  %v5463_v29 = vor.u32 1.1754944e-38, %v5462_v5  ;;  %v5502_v59 = vsel %vm5499_vm10, %v5501_v16, %v5497_v36  ;;  %v5686_v16 = vld [vmem:[#allocation6 + $0x368] sm:$0xff] }
 0x6da   :  { %v5408_v60 = vpop.f32.mrf.mxu3 }
 0x6db   :  { %v8121_v30 = vmul.f32 -1.442695, %v5441_v3  ;;  %v5409_v40 = vadd.f32 %v5408_v60, %v5388_v34  ;;  %v5464_v51 = vsel %vm9805_vm8, %v5463_v29, %v5459_v63  ;;  %v5477_v3 = vand.u32 2147483648, %v9752_v0  ;;  %v5694_v29 = vld [vmem:[#allocation6 + $0x3a8] sm:$0xff] }
 0x6dc   :  { %v5565_v34 = vmul.f32 %v5561_v62, %v5502_v59  ;;  %v5474_v60 = vsel %vm9827_vm14, %v9766_v33, %v5470_v23  ;;  %v5830_v59 = vld [vmem:[#allocation6 + $0x7e8] sm:$0xff] }
 0x6dd   :  { %8439 = vpow2.f32 %v8121_v30  ;;  %v5426_v32 = vrot.slane %v5409_v40, 4  ;;  %v5516_v40 = vor.u32 1.1754944e-38, %v5515_v52  ;;  %v5478_v35 = vor.u32 1.1754944e-38, %v5477_v3  ;;  %v5829_v52 = vld [vmem:[#allocation6 + $0x7e0] sm:$0xff] }
 0x6de   :  { %8441 = vtanh.f32 %v5439_v25  ;;  %v5669_v3 = vld [vmem:[#allocation6 + $0x2e0] sm:$0xff] }
 0x6df   :  { %v5442_v15 = vadd.f32 %v5426_v32, %v9525_v58  ;;  %v5479_v0 = vsel %vm5476_vm0, %v5478_v35, %v5474_v60  ;;  %v5517_v54 = vsel %vm5514_vm1, %v5516_v40, %v5512_v48  ;;  %v5814_v60 = vld [vmem:[#allocation6 + $0x768] sm:$0xff]  ;;  %v5653_v48 = vld [vmem:[#allocation6 + $0x260] sm:$0xff] }
 0x6e0   :  { %v5566_v33 = vmul.f32 %v5562_v11, %v5517_v54  ;;  %v5806_v40 = vld [vmem:[#allocation6 + $0x728] sm:$0xff]  ;;  %v5645_v35 = vld [vmem:[#allocation6 + $0x220] sm:$0xff] }
 0x6e1   :  { %v8122_v22 = vmul.f32 -1.442695, %v5442_v15  ;;  %v5798_v54 = vld [vmem:[#allocation6 + $0x6e8] sm:$0xff]  ;;  %v5789_v11 = vld [vmem:[#allocation6 + $0x6a0] sm:$0xff] }
 0x6e3   :  { %v8440_v31 = vpop.eup %8439  ;;  %8443 = vpow2.f32 %v8122_v22 }
 0x6e4   :  { %v5527_v8 = vadd.f32 1.0, %v8440_v31  ;;  %v8442_v17 = vpop.eup %8441  ;;  %8445 = vtanh.f32 %v5440_v55  ;;  %v5702_v31 = vld [vmem:[#allocation6 + $0x3e8] sm:$0xff] }
 0x6e5   :  { %v5567_v43 = vmul.f32 %v8442_v17, %v5464_v51  ;;  %v5685_v17 = vld [vmem:[#allocation6 + $0x360] sm:$0xff]  ;;  %v5678_v51 = vld [vmem:[#allocation6 + $0x328] sm:$0xff] }
 0x6e6   :  { %8447 = vrcp.f32 %v5527_v8  ;;  %v5540_v18 = vand.u32 2147483648, %v5527_v8  ;;  %v5538_v57 = vand.u32 2147483647, %v5527_v8  ;;  %vm5534_vm3 = vweird.f32 %v5527_v8 }
 0x6e7   :  { %v9837_v45 = vadd.f32 %v5567_v43, %v5565_v34  ;;  %v5821_v43 = vld [vmem:[#allocation6 + $0x7a0] sm:$0xff]  ;;  %v5662_v34 = vld [vmem:[#allocation6 + $0x2a8] sm:$0xff] }
 0x6e8   :  { %v5541_v1 = vor.u32 1.1754944e-38, %v5540_v18  ;;  %vm5539_vm5 = vcmp.eq.f32.partialorder %v5538_v57, 8.507059e+37  ;;  %v5781_v18 = vld [vmem:[#allocation6 + $0x660] sm:$0xff]  ;;  %v5782_v57 = vld [vmem:[#allocation6 + $0x668] sm:$0xff] }
 0x6e9   :  { %v8444_v47 = vpop.eup %8443 }
 0x6ea   :  { %v5528_v25 = vadd.f32 1.0, %v8444_v47  ;;  %v8446_v30 = vpop.eup %8445  ;;  %v5813_v47 = vld [vmem:[#allocation6 + $0x760] sm:$0xff] }
 0x6eb   :  { %v5568_v32 = vmul.f32 %v8446_v30, %v5479_v0  ;;  %v5654_v30 = vld [vmem:[#allocation6 + $0x268] sm:$0xff] }
 0x6ec   :  { %v8448_v21 = vpop.eup %8447  ;;  %8449 = vrcp.f32 %v5528_v25  ;;  %v5555_v13 = vand.u32 2147483648, %v5528_v25  ;;  %v5553_v22 = vand.u32 2147483647, %v5528_v25  ;;  %vm5549_vm7 = vweird.f32 %v5528_v25  ;;  %v5646_v0 = vld [vmem:[#allocation6 + $0x228] sm:$0xff] }
 0x6ed   :  { %v5530_v41 = vmul.f32 %v8448_v21, %v5527_v8  ;;  %8451 = vtanh.f32 %v9837_v45  ;;  %vm5535_vm2 = vweird.f32 %v8448_v21  ;;  %v9841_v49 = vadd.f32 %v5568_v32, %v5566_v33  ;;  %v5638_v32 = vld [vmem:[#allocation6 + $0x1e8] sm:$0xff]  ;;  %v5629_v33 = vld [vmem:[#allocation6 + $0x1a0] sm:$0xff] }
 0x6ee   :  { %vm5536_vm4 = vmor %vm5534_vm3, %vm5535_vm2  ;;  %v5556_v62 = vor.u32 1.1754944e-38, %v5555_v13  ;;  %vm5554_vm9 = vcmp.eq.f32.partialorder %v5553_v22, 8.507059e+37  ;;  %v5605_v13 = vld [vmem:[#allocation6 + $0xe0] sm:$0xff]  ;;  %v5758_v22 = vld [vmem:[#allocation6 + $0x5a8] sm:$0xff] }
 0x6ef   :  { %v5531_v28 = vsub.f32 1.0, %v5530_v41  ;;  %8453 = vtanh.f32 %v9841_v49  ;;  %v5637_v41 = vld [vmem:[#allocation6 + $0x1e0] sm:$0xff] }
 0x6f1   :  { %v5532_v24 = vmul.f32 %v8448_v21, %v5531_v28  ;;  %v5790_v28 = vld [vmem:[#allocation6 + $0x6a8] sm:$0xff] }
 0x6f2   :  { %v8450_v14 = vpop.eup %8449 }
 0x6f3   :  { %v5533_v5 = vadd.f32 %v8448_v21, %v5532_v24  ;;  %v5545_v15 = vmul.f32 %v8450_v14, %v5528_v25  ;;  %v8452_v27 = vpop.eup %8451  ;;  %vm5550_vm6 = vweird.f32 %v8450_v14  ;;  %v5805_v25 = vld [vmem:[#allocation6 + $0x720] sm:$0xff]  ;;  %v5630_v24 = vld [vmem:[#allocation6 + $0x1a8] sm:$0xff] }
 0x6f4   :  { %vm5551_vm8 = vmor %vm5549_vm7, %vm5550_vm6 }
 0x6f5   :  { %v5537_v26 = vsel %vm5536_vm4, %v8448_v21, %v5533_v5  ;;  %v5546_v38 = vsub.f32 1.0, %v5545_v15  ;;  %v8454_v63 = vpop.eup %8453  ;;  %v5797_v21 = vld [vmem:[#allocation6 + $0x6e0] sm:$0xff]  ;;  %v5622_v15 = vld [vmem:[#allocation6 + $0x168] sm:$0xff] }
 0x6f6   :  { %v5542_v7 = vsel %vm5539_vm5, %v5541_v1, %v5537_v26  ;;  %v5773_v5 = vld [vmem:[#allocation6 + $0x620] sm:$0xff]  ;;  %v5774_v1 = vld [vmem:[#allocation6 + $0x628] sm:$0xff] }
 0x6f7   :  { %v5573_v53 = vmul.f32 %v8452_v27, %v5542_v7  ;;  %v5547_v55 = vmul.f32 %v8450_v14, %v5546_v38  ;;  %v5613_v26 = vld [vmem:[#allocation6 + $0x120] sm:$0xff]  ;;  %v5614_v27 = vld [vmem:[#allocation6 + $0x128] sm:$0xff] }
 0x6f8   :  { %v5765_v38 = vld [vmem:[#allocation6 + $0x5e0] sm:$0xff]  ;;  %v5766_v7 = vld [vmem:[#allocation6 + $0x5e8] sm:$0xff] }
 0x6f9   :  { %5575 = vst [vmem:[#allocation2 + $0x18] sm:$0x30] %v5573_v53  ;;  %v9844_v12 = vrot.slane %v5573_v53, 4  ;;  %v5548_v56 = vadd.f32 %v8450_v14, %v5547_v55  ;;  %v5757_v53 = vld [vmem:[#allocation6 + $0x5a0] sm:$0xff]  ;;  %v5606_v55 = vld [vmem:[#allocation6 + $0xe8] sm:$0xff] }
 0x6fb   :  { %v5552_v37 = vsel %vm5551_vm8, %v8450_v14, %v5548_v56  ;;  %5855 = vmatmul.f32.vlgmr.msra.gmra.mxu0 %v9844_v12  ;;  %5895 = vmatmul.f32.vlgmr.msra.gmra.mxu2 %v9844_v12  ;;  %v5621_v14 = vld [vmem:[#allocation6 + $0x160] sm:$0xff] }
 0x6fc   :  { %v5557_v36 = vsel %vm5554_vm9, %v5556_v62, %v5552_v37  ;;  %5999 = vmatpush.msra.mxu0 %v5701_v46  ;;  %6039 = vmatpush.msra.mxu2 %v5702_v31  ;;  %v5597_v56 = vld [vmem:[#allocation6 + $0xa0] sm:$0xff]  ;;  %v5598_v31 = vld [vmem:[#allocation6 + $0xa8] sm:$0xff] }
 0x6fd   :  { %v5574_v8 = vmul.f32 %v8454_v63, %v5557_v36  ;;  %v5749_v46 = vld [vmem:[#allocation6 + $0x560] sm:$0xff]  ;;  %v5750_v62 = vld [vmem:[#allocation6 + $0x568] sm:$0xff] }
 0x6fe   :  { %6000 = vmatpush.msra.mxu0 %v5693_v50  ;;  %6040 = vmatpush.msra.mxu2 %v5694_v29  ;;  %v5589_v37 = vld [vmem:[#allocation6 + $0x60] sm:$0xff]  ;;  %v5590_v29 = vld [vmem:[#allocation6 + $0x68] sm:$0xff] }
 0x6ff   :  { %5576 = vst [vmem:[#allocation2 + $0x8] sm:$0x30] %v5574_v8  ;;  %v9848_v23 = vrot.slane %v5574_v8, 4  ;;  %v5741_v50 = vld [vmem:[#allocation6 + $0x520] sm:$0xff]  ;;  %v5742_v63 = vld [vmem:[#allocation6 + $0x528] sm:$0xff] }
 0x700   :  { %6001 = vmatpush.msra.mxu0 %v5685_v17  ;;  %6041 = vmatpush.msra.mxu2 %v5686_v16  ;;  %v5581_v36 = vld [vmem:[#allocation6 + $0x20] sm:$0xff]  ;;  %v5582_v17 = vld [vmem:[#allocation6 + $0x28] sm:$0xff] }
 0x701   :  { %5875 = vmatmul.f32.vlgmr.msra.gmra.mxu1 %v9848_v23  ;;  %5915 = vmatmul.f32.vlgmr.msra.gmra.mxu3 %v9848_v23  ;;  %v5733_v8 = vld [vmem:[#allocation6 + $0x4e0] sm:$0xff]  ;;  %v5734_v16 = vld [vmem:[#allocation6 + $0x4e8] sm:$0xff] }
 0x702   :  { %6002 = vmatpush.msra.mxu0 %v5677_v61  ;;  %6019 = vmatpush.msra.mxu1 %v5829_v52  ;;  %v5703_v61 = vld [vmem:[#allocation6 + $0x3f0] sm:$0xff]  ;;  %v5704_v52 = vld [vmem:[#allocation6 + $0x3f8] sm:$0xff] }
 0x703   :  { %6042 = vmatpush.msra.mxu2 %v5678_v51  ;;  %6059 = vmatpush.msra.mxu3 %v5830_v59  ;;  %v5725_v51 = vld [vmem:[#allocation6 + $0x4a0] sm:$0xff]  ;;  %v5726_v59 = vld [vmem:[#allocation6 + $0x4a8] sm:$0xff] }
 0x704   :  { %5935 = vmatmul.f32.vlgmr.msrb.gmra.mxu0 %v9844_v12  ;;  %5975 = vmatmul.f32.vlgmr.msrb.gmra.mxu2 %v9844_v12 }
 0x705   :  { %6003 = vmatpush.msra.mxu0 %v5669_v3  ;;  %6020 = vmatpush.msra.mxu1 %v5821_v43  ;;  %v5695_v3 = vld [vmem:[#allocation6 + $0x3b0] sm:$0xff]  ;;  %v5696_v43 = vld [vmem:[#allocation6 + $0x3b8] sm:$0xff] }
 0x706   :  { %6043 = vmatpush.msra.mxu2 %v5670_v9  ;;  %6060 = vmatpush.msra.mxu3 %v5822_v19  ;;  %v5717_v9 = vld [vmem:[#allocation6 + $0x460] sm:$0xff]  ;;  %v5718_v19 = vld [vmem:[#allocation6 + $0x468] sm:$0xff] }
 0x707   :  { %6004 = vmatpush.msra.mxu0 %v5661_v44  ;;  %6021 = vmatpush.msra.mxu1 %v5813_v47  ;;  %v5687_v44 = vld [vmem:[#allocation6 + $0x370] sm:$0xff]  ;;  %v5688_v47 = vld [vmem:[#allocation6 + $0x378] sm:$0xff] }
 0x708   :  { %6044 = vmatpush.msra.mxu2 %v5662_v34  ;;  %6061 = vmatpush.msra.mxu3 %v5814_v60  ;;  %v5709_v34 = vld [vmem:[#allocation6 + $0x420] sm:$0xff]  ;;  %v5710_v60 = vld [vmem:[#allocation6 + $0x428] sm:$0xff] }
 0x709   :  { %6005 = vmatpush.msra.mxu0 %v5653_v48  ;;  %6022 = vmatpush.msra.mxu1 %v5805_v25  ;;  %v5679_v48 = vld [vmem:[#allocation6 + $0x330] sm:$0xff] }
 0x70a   :  { %6045 = vmatpush.msra.mxu2 %v5654_v30  ;;  %6062 = vmatpush.msra.mxu3 %v5806_v40  ;;  %v5831_v25 = vld [vmem:[#allocation6 + $0x7f0] sm:$0xff]  ;;  %v5680_v30 = vld [vmem:[#allocation6 + $0x338] sm:$0xff] }
 0x70b   :  { %5955 = vmatmul.f32.vlgmr.msrb.gmra.mxu1 %v9848_v23  ;;  %5995 = vmatmul.f32.vlgmr.msrb.gmra.mxu3 %v9848_v23  ;;  %v5832_v40 = vld [vmem:[#allocation6 + $0x7f8] sm:$0xff] }
 0x70c   :  { %6006 = vmatpush.msra.mxu0 %v5645_v35  ;;  %6023 = vmatpush.msra.mxu1 %v5797_v21  ;;  %v5671_v35 = vld [vmem:[#allocation6 + $0x2f0] sm:$0xff] }
 0x70d   :  { %6046 = vmatpush.msra.mxu2 %v5646_v0  ;;  %6063 = vmatpush.msra.mxu3 %v5798_v54  ;;  %v5823_v21 = vld [vmem:[#allocation6 + $0x7b0] sm:$0xff]  ;;  %v5672_v0 = vld [vmem:[#allocation6 + $0x2f8] sm:$0xff] }
 0x70e   :  { %6007 = vmatpush.msra.mxu0 %v5637_v41  ;;  %6024 = vmatpush.msra.mxu1 %v5789_v11  ;;  %v5824_v54 = vld [vmem:[#allocation6 + $0x7b8] sm:$0xff]  ;;  %v5663_v41 = vld [vmem:[#allocation6 + $0x2b0] sm:$0xff] }
 0x70f   :  { %6047 = vmatpush.msra.mxu2 %v5638_v32  ;;  %6064 = vmatpush.msra.mxu3 %v5790_v28  ;;  %v5815_v11 = vld [vmem:[#allocation6 + $0x770] sm:$0xff]  ;;  %v5664_v32 = vld [vmem:[#allocation6 + $0x2b8] sm:$0xff] }
 0x710   :  { %6008 = vmatpush.msra.mxu0 %v5629_v33  ;;  %6025 = vmatpush.msra.mxu1 %v5781_v18  ;;  %v5816_v28 = vld [vmem:[#allocation6 + $0x778] sm:$0xff]  ;;  %v5655_v33 = vld [vmem:[#allocation6 + $0x270] sm:$0xff] }
 0x711   :  { %6048 = vmatpush.msra.mxu2 %v5630_v24  ;;  %6065 = vmatpush.msra.mxu3 %v5782_v57  ;;  %v5807_v18 = vld [vmem:[#allocation6 + $0x730] sm:$0xff]  ;;  %v5656_v24 = vld [vmem:[#allocation6 + $0x278] sm:$0xff] }
 0x712   :  { %6009 = vmatpush.msra.mxu0 %v5621_v14  ;;  %6026 = vmatpush.msra.mxu1 %v5773_v5  ;;  %v5808_v57 = vld [vmem:[#allocation6 + $0x738] sm:$0xff]  ;;  %v5647_v14 = vld [vmem:[#allocation6 + $0x230] sm:$0xff] }
 0x713   :  { %6049 = vmatpush.msra.mxu2 %v5622_v15  ;;  %6066 = vmatpush.msra.mxu3 %v5774_v1  ;;  %v5799_v5 = vld [vmem:[#allocation6 + $0x6f0] sm:$0xff]  ;;  %v5648_v15 = vld [vmem:[#allocation6 + $0x238] sm:$0xff] }
 0x714   :  { %6010 = vmatpush.msra.mxu0 %v5613_v26  ;;  %6027 = vmatpush.msra.mxu1 %v5765_v38  ;;  %v5800_v1 = vld [vmem:[#allocation6 + $0x6f8] sm:$0xff]  ;;  %v5639_v26 = vld [vmem:[#allocation6 + $0x1f0] sm:$0xff] }
 0x715   :  { %6050 = vmatpush.msra.mxu2 %v5614_v27  ;;  %6067 = vmatpush.msra.mxu3 %v5766_v7  ;;  %v5791_v38 = vld [vmem:[#allocation6 + $0x6b0] sm:$0xff]  ;;  %v5640_v27 = vld [vmem:[#allocation6 + $0x1f8] sm:$0xff] }
 0x716   :  { %6011 = vmatpush.msra.mxu0 %v5605_v13  ;;  %6028 = vmatpush.msra.mxu1 %v5757_v53  ;;  %v5792_v7 = vld [vmem:[#allocation6 + $0x6b8] sm:$0xff]  ;;  %v5631_v13 = vld [vmem:[#allocation6 + $0x1b0] sm:$0xff] }
 0x717   :  { %6051 = vmatpush.msra.mxu2 %v5606_v55  ;;  %6068 = vmatpush.msra.mxu3 %v5758_v22  ;;  %v5783_v53 = vld [vmem:[#allocation6 + $0x670] sm:$0xff]  ;;  %v5632_v55 = vld [vmem:[#allocation6 + $0x1b8] sm:$0xff] }
 0x718   :  { %6012 = vmatpush.msra.mxu0 %v5597_v56  ;;  %6029 = vmatpush.msra.mxu1 %v5749_v46  ;;  %v5784_v22 = vld [vmem:[#allocation6 + $0x678] sm:$0xff]  ;;  %v5623_v56 = vld [vmem:[#allocation6 + $0x170] sm:$0xff] }
 0x719   :  { %6052 = vmatpush.msra.mxu2 %v5598_v31  ;;  %6069 = vmatpush.msra.mxu3 %v5750_v62  ;;  %v5775_v46 = vld [vmem:[#allocation6 + $0x630] sm:$0xff]  ;;  %v5624_v31 = vld [vmem:[#allocation6 + $0x178] sm:$0xff] }
 0x71a   :  { %6013 = vmatpush.msra.mxu0 %v5589_v37  ;;  %6030 = vmatpush.msra.mxu1 %v5741_v50  ;;  %v5776_v62 = vld [vmem:[#allocation6 + $0x638] sm:$0xff]  ;;  %v5615_v37 = vld [vmem:[#allocation6 + $0x130] sm:$0xff] }
 0x71b   :  { %6053 = vmatpush.msra.mxu2 %v5590_v29  ;;  %6070 = vmatpush.msra.mxu3 %v5742_v63  ;;  %v5767_v50 = vld [vmem:[#allocation6 + $0x5f0] sm:$0xff]  ;;  %v5616_v29 = vld [vmem:[#allocation6 + $0x138] sm:$0xff] }
 0x71c   :  { %6014 = vmatpush.msra.mxu0 %v5581_v36  ;;  %6031 = vmatpush.msra.mxu1 %v5733_v8  ;;  %v5768_v63 = vld [vmem:[#allocation6 + $0x5f8] sm:$0xff]  ;;  %v5607_v36 = vld [vmem:[#allocation6 + $0xf0] sm:$0xff] }
 0x71d   :  { %6054 = vmatpush.msra.mxu2 %v5582_v17  ;;  %6071 = vmatpush.msra.mxu3 %v5734_v16  ;;  %v5759_v8 = vld [vmem:[#allocation6 + $0x5b0] sm:$0xff]  ;;  %v5608_v17 = vld [vmem:[#allocation6 + $0xf8] sm:$0xff] }
 0x71e   :  { %6015 = vmatmul.f32.vlgmr.msra.gmra.mxu0 %v9844_v12  ;;  %6055 = vmatmul.f32.vlgmr.msra.gmra.mxu2 %v9844_v12  ;;  %v5760_v16 = vld [vmem:[#allocation6 + $0x5b8] sm:$0xff] }
 0x71f   :  { %6079 = vmatpush.msrb.mxu0 %v5703_v61  ;;  %6119 = vmatpush.msrb.mxu2 %v5704_v52  ;;  %v5599_v61 = vld [vmem:[#allocation6 + $0xb0] sm:$0xff] }
 0x720   :  { %6032 = vmatpush.msra.mxu1 %v5725_v51  ;;  %6072 = vmatpush.msra.mxu3 %v5726_v59  ;;  %v5751_v52 = vld [vmem:[#allocation6 + $0x570] sm:$0xff]  ;;  %v5600_v51 = vld [vmem:[#allocation6 + $0xb8] sm:$0xff] }
 0x721   :  { %6080 = vmatpush.msrb.mxu0 %v5695_v3  ;;  %6120 = vmatpush.msrb.mxu2 %v5696_v43  ;;  %v5752_v59 = vld [vmem:[#allocation6 + $0x578] sm:$0xff]  ;;  %v5591_v3 = vld [vmem:[#allocation6 + $0x70] sm:$0xff] }
 0x722   :  { %6033 = vmatpush.msra.mxu1 %v5717_v9  ;;  %6073 = vmatpush.msra.mxu3 %v5718_v19  ;;  %v5743_v43 = vld [vmem:[#allocation6 + $0x530] sm:$0xff]  ;;  %v5592_v9 = vld [vmem:[#allocation6 + $0x78] sm:$0xff] }
 0x723   :  { %6081 = vmatpush.msrb.mxu0 %v5687_v44  ;;  %6121 = vmatpush.msrb.mxu2 %v5688_v47  ;;  %v5744_v19 = vld [vmem:[#allocation6 + $0x538] sm:$0xff]  ;;  %v5583_v44 = vld [vmem:[#allocation6 + $0x30] sm:$0xff] }
 0x724   :  { %6034 = vmatpush.msra.mxu1 %v5709_v34  ;;  %6074 = vmatpush.msra.mxu3 %v5710_v60  ;;  %v5735_v47 = vld [vmem:[#allocation6 + $0x4f0] sm:$0xff]  ;;  %v5584_v34 = vld [vmem:[#allocation6 + $0x38] sm:$0xff] }
 0x725   :  { %6035 = vmatmul.f32.vlgmr.msra.gmra.mxu1 %v9848_v23  ;;  %6075 = vmatmul.f32.vlgmr.msra.gmra.mxu3 %v9848_v23  ;;  %v5736_v60 = vld [vmem:[#allocation6 + $0x4f8] sm:$0xff] }
 0x726   :  { %6082 = vmatpush.msrb.mxu0 %v5679_v48  ;;  %6099 = vmatpush.msrb.mxu1 %v5831_v25  ;;  %v6419_v48 = vld [vmem:[#allocation8 + $0x2d0] sm:$0xff]  ;;  %v6420_v25 = vld [vmem:[#allocation8 + $0x2d8] sm:$0xff] }
 0x727   :  { %6122 = vmatpush.msrb.mxu2 %v5680_v30  ;;  %6139 = vmatpush.msrb.mxu3 %v5832_v40  ;;  %v5727_v30 = vld [vmem:[#allocation6 + $0x4b0] sm:$0xff]  ;;  %v5728_v40 = vld [vmem:[#allocation6 + $0x4b8] sm:$0xff] }
 0x728   :  { %6083 = vmatpush.msrb.mxu0 %v5671_v35  ;;  %6100 = vmatpush.msrb.mxu1 %v5823_v21  ;;  %v6413_v35 = vld [vmem:[#allocation8 + $0x2a0] sm:$0xff]  ;;  %v6414_v21 = vld [vmem:[#allocation8 + $0x2a8] sm:$0xff] }
 0x729   :  { %6123 = vmatpush.msrb.mxu2 %v5672_v0  ;;  %6140 = vmatpush.msrb.mxu3 %v5824_v54  ;;  %v5719_v0 = vld [vmem:[#allocation6 + $0x470] sm:$0xff]  ;;  %v5720_v54 = vld [vmem:[#allocation6 + $0x478] sm:$0xff] }
 0x72a   :  { %6084 = vmatpush.msrb.mxu0 %v5663_v41  ;;  %6101 = vmatpush.msrb.mxu1 %v5815_v11  ;;  %v6407_v41 = vld [vmem:[#allocation8 + $0x270] sm:$0xff]  ;;  %v6408_v11 = vld [vmem:[#allocation8 + $0x278] sm:$0xff] }
 0x72b   :  { %6124 = vmatpush.msrb.mxu2 %v5664_v32  ;;  %6141 = vmatpush.msrb.mxu3 %v5816_v28  ;;  %v5711_v32 = vld [vmem:[#allocation6 + $0x430] sm:$0xff]  ;;  %v5712_v28 = vld [vmem:[#allocation6 + $0x438] sm:$0xff] }
 0x72c   :  { %6085 = vmatpush.msrb.mxu0 %v5655_v33  ;;  %6102 = vmatpush.msrb.mxu1 %v5807_v18  ;;  %v6401_v33 = vld [vmem:[#allocation8 + $0x240] sm:$0xff]  ;;  %v6402_v18 = vld [vmem:[#allocation8 + $0x248] sm:$0xff] }
 0x72d   :  { %6125 = vmatpush.msrb.mxu2 %v5656_v24  ;;  %6142 = vmatpush.msrb.mxu3 %v5808_v57  ;;  %v6516_v24 = vld [vmem:[#allocation8 + $0x5d8] sm:$0xff]  ;;  %v6395_v57 = vld [vmem:[#allocation8 + $0x210] sm:$0xff] }
 0x72e   :  { %6086 = vmatpush.msrb.mxu0 %v5647_v14  ;;  %6103 = vmatpush.msrb.mxu1 %v5799_v5  ;;  %v6509_v14 = vld [vmem:[#allocation8 + $0x5a0] sm:$0xff]  ;;  %v6396_v5 = vld [vmem:[#allocation8 + $0x218] sm:$0xff] }
 0x72f   :  { %6126 = vmatpush.msrb.mxu2 %v5648_v15  ;;  %6143 = vmatpush.msrb.mxu3 %v5800_v1  ;;  %v6510_v15 = vld [vmem:[#allocation8 + $0x5a8] sm:$0xff]  ;;  %v6389_v1 = vld [vmem:[#allocation8 + $0x1e0] sm:$0xff] }
 0x730   :  { %6087 = vmatpush.msrb.mxu0 %v5639_v26  ;;  %6104 = vmatpush.msrb.mxu1 %v5791_v38  ;;  %v6503_v26 = vld [vmem:[#allocation8 + $0x570] sm:$0xff]  ;;  %v6390_v38 = vld [vmem:[#allocation8 + $0x1e8] sm:$0xff] }
 0x731   :  { %6127 = vmatpush.msrb.mxu2 %v5640_v27  ;;  %6144 = vmatpush.msrb.mxu3 %v5792_v7  ;;  %v6504_v27 = vld [vmem:[#allocation8 + $0x578] sm:$0xff]  ;;  %v6383_v7 = vld [vmem:[#allocation8 + $0x1b0] sm:$0xff] }
 0x732   :  { %6088 = vmatpush.msrb.mxu0 %v5631_v13  ;;  %6105 = vmatpush.msrb.mxu1 %v5783_v53  ;;  %v6497_v13 = vld [vmem:[#allocation8 + $0x540] sm:$0xff]  ;;  %v6498_v53 = vld [vmem:[#allocation8 + $0x548] sm:$0xff] }
 0x733   :  { %6128 = vmatpush.msrb.mxu2 %v5632_v55  ;;  %6145 = vmatpush.msrb.mxu3 %v5784_v22  ;;  %v6377_v55 = vld [vmem:[#allocation8 + $0x180] sm:$0xff]  ;;  %v6491_v22 = vld [vmem:[#allocation8 + $0x510] sm:$0xff] }
 0x734   :  { %6089 = vmatpush.msrb.mxu0 %v5623_v56  ;;  %6106 = vmatpush.msrb.mxu1 %v5775_v46  ;;  %v6378_v56 = vld [vmem:[#allocation8 + $0x188] sm:$0xff]  ;;  %v6492_v46 = vld [vmem:[#allocation8 + $0x518] sm:$0xff] }
 0x735   :  { %6129 = vmatpush.msrb.mxu2 %v5624_v31  ;;  %6146 = vmatpush.msrb.mxu3 %v5776_v62  ;;  %v6371_v31 = vld [vmem:[#allocation8 + $0x150] sm:$0xff]  ;;  %v6485_v62 = vld [vmem:[#allocation8 + $0x4e0] sm:$0xff] }
 0x736   :  { %6090 = vmatpush.msrb.mxu0 %v5615_v37  ;;  %6107 = vmatpush.msrb.mxu1 %v5767_v50  ;;  %v6372_v37 = vld [vmem:[#allocation8 + $0x158] sm:$0xff]  ;;  %v6486_v50 = vld [vmem:[#allocation8 + $0x4e8] sm:$0xff] }
 0x737   :  { %6130 = vmatpush.msrb.mxu2 %v5616_v29  ;;  %6147 = vmatpush.msrb.mxu3 %v5768_v63  ;;  %v6365_v29 = vld [vmem:[#allocation8 + $0x120] sm:$0xff]  ;;  %v6479_v63 = vld [vmem:[#allocation8 + $0x4b0] sm:$0xff] }
 0x738   :  { %6091 = vmatpush.msrb.mxu0 %v5607_v36  ;;  %6108 = vmatpush.msrb.mxu1 %v5759_v8  ;;  %v6366_v36 = vld [vmem:[#allocation8 + $0x128] sm:$0xff]  ;;  %v6480_v8 = vld [vmem:[#allocation8 + $0x4b8] sm:$0xff] }
 0x739   :  { %6131 = vmatpush.msrb.mxu2 %v5608_v17  ;;  %6148 = vmatpush.msrb.mxu3 %v5760_v16  ;;  %v6359_v17 = vld [vmem:[#allocation8 + $0xf0] sm:$0xff]  ;;  %v6473_v16 = vld [vmem:[#allocation8 + $0x480] sm:$0xff] }
 0x73a   :  { %6092 = vmatpush.msrb.mxu0 %v5599_v61  ;;  %6109 = vmatpush.msrb.mxu1 %v5751_v52  ;;  %v6360_v61 = vld [vmem:[#allocation8 + $0xf8] sm:$0xff]  ;;  %v6474_v52 = vld [vmem:[#allocation8 + $0x488] sm:$0xff] }
 0x73b   :  { %6132 = vmatpush.msrb.mxu2 %v5600_v51  ;;  %6149 = vmatpush.msrb.mxu3 %v5752_v59  ;;  %v6353_v51 = vld [vmem:[#allocation8 + $0xc0] sm:$0xff]  ;;  %v6467_v59 = vld [vmem:[#allocation8 + $0x450] sm:$0xff] }
 0x73c   :  { %6093 = vmatpush.msrb.mxu0 %v5591_v3  ;;  %6110 = vmatpush.msrb.mxu1 %v5743_v43  ;;  %v6354_v3 = vld [vmem:[#allocation8 + $0xc8] sm:$0xff]  ;;  %v6468_v43 = vld [vmem:[#allocation8 + $0x458] sm:$0xff] }
 0x73d   :  { %6133 = vmatpush.msrb.mxu2 %v5592_v9  ;;  %6150 = vmatpush.msrb.mxu3 %v5744_v19  ;;  %v6347_v9 = vld [vmem:[#allocation8 + $0x90] sm:$0xff]  ;;  %v6461_v19 = vld [vmem:[#allocation8 + $0x420] sm:$0xff] }
 0x73e   :  { %6094 = vmatpush.msrb.mxu0 %v5583_v44  ;;  %6111 = vmatpush.msrb.mxu1 %v5735_v47  ;;  %v6348_v44 = vld [vmem:[#allocation8 + $0x98] sm:$0xff]  ;;  %v6462_v47 = vld [vmem:[#allocation8 + $0x428] sm:$0xff] }
 0x73f   :  { %6134 = vmatpush.msrb.mxu2 %v5584_v34  ;;  %6151 = vmatpush.msrb.mxu3 %v5736_v60  ;;  %v6341_v34 = vld [vmem:[#allocation8 + $0x60] sm:$0xff]  ;;  %v6455_v60 = vld [vmem:[#allocation8 + $0x3f0] sm:$0xff] }
 0x740   :  { %6095 = vmatmul.f32.vlgmr.msrb.gmra.mxu0 %v9844_v12  ;;  %6135 = vmatmul.f32.vlgmr.msrb.gmra.mxu2 %v9844_v12  ;;  %v6515_v12 = vld [vmem:[#allocation8 + $0x5d0] sm:$0xff] }
 0x741   :  { %6535 = vmatpush.msra.mxu0 %v6419_v48  ;;  %6579 = vmatpush.msra.mxu2 %v6420_v25  ;;  %v6342_v48 = vld [vmem:[#allocation8 + $0x68] sm:$0xff]  ;;  %v6456_v25 = vld [vmem:[#allocation8 + $0x3f8] sm:$0xff] }
 0x742   :  { %6112 = vmatpush.msrb.mxu1 %v5727_v30  ;;  %6152 = vmatpush.msrb.mxu3 %v5728_v40  ;;  %v6335_v30 = vld [vmem:[#allocation8 + $0x30] sm:$0xff]  ;;  %v6449_v40 = vld [vmem:[#allocation8 + $0x3c0] sm:$0xff] }
 0x743   :  { %6536 = vmatpush.msra.mxu0 %v6413_v35  ;;  %6580 = vmatpush.msra.mxu2 %v6414_v21  ;;  %v6336_v35 = vld [vmem:[#allocation8 + $0x38] sm:$0xff]  ;;  %v6450_v21 = vld [vmem:[#allocation8 + $0x3c8] sm:$0xff] }
 0x744   :  { %6113 = vmatpush.msrb.mxu1 %v5719_v0  ;;  %6153 = vmatpush.msrb.mxu3 %v5720_v54  ;;  %v6329_v0 = vld [vmem:[#allocation8] sm:$0xff]  ;;  %v6443_v54 = vld [vmem:[#allocation8 + $0x390] sm:$0xff] }
 0x745   :  { %6537 = vmatpush.msra.mxu0 %v6407_v41  ;;  %6581 = vmatpush.msra.mxu2 %v6408_v11  ;;  %v6330_v41 = vld [vmem:[#allocation8 + $0x8] sm:$0xff]  ;;  %v6444_v11 = vld [vmem:[#allocation8 + $0x398] sm:$0xff] }
 0x746   :  { %6114 = vmatpush.msrb.mxu1 %v5711_v32  ;;  %6154 = vmatpush.msrb.mxu3 %v5712_v28  ;;  %v6437_v32 = vld [vmem:[#allocation8 + $0x360] sm:$0xff]  ;;  %v6438_v28 = vld [vmem:[#allocation8 + $0x368] sm:$0xff] }
 0x747   :  { %6115 = vmatmul.f32.vlgmr.msrb.gmra.mxu1 %v9848_v23  ;;  %6155 = vmatmul.f32.vlgmr.msrb.gmra.mxu3 %v9848_v23  ;;  %v6384_v23 = vld [vmem:[#allocation8 + $0x1b8] sm:$0xff] }
 0x748   :  { %6538 = vmatpush.msra.mxu0 %v6401_v33  ;;  %6557 = vmatpush.msra.mxu1 %v6515_v12  ;;  %v9864_v33 = vld [vmem:[#allocation2 + $0x10] sm:$0xff] }
 0x749   :  { %6582 = vmatpush.msra.mxu2 %v6402_v18  ;;  %6601 = vmatpush.msra.mxu3 %v6516_v24  ;;  %v6431_v12 = vld [vmem:[#allocation8 + $0x330] sm:$0xff]  ;;  %v6432_v18 = vld [vmem:[#allocation8 + $0x338] sm:$0xff]  ;;  %v6425_v24 = vld [vmem:[#allocation8 + $0x300] sm:$0xff] }
 0x74a   :  { %6539 = vmatpush.msra.mxu0 %v6395_v57  ;;  %6558 = vmatpush.msra.mxu1 %v6509_v14  ;;  %v6426_v57 = vld [vmem:[#allocation8 + $0x308] sm:$0xff]  ;;  %v9868_v14 = vld [vmem:[#allocation2] sm:$0xff] }
 0x74b   :  { %6583 = vmatpush.msra.mxu2 %v6396_v5  ;;  %6602 = vmatpush.msra.mxu3 %v6510_v15 }
 0x74c   :  { %6540 = vmatpush.msra.mxu0 %v6389_v1  ;;  %6559 = vmatpush.msra.mxu1 %v6503_v26 }
 0x74d   :  { %6584 = vmatpush.msra.mxu2 %v6390_v38  ;;  %6603 = vmatpush.msra.mxu3 %v6504_v27 }
 0x74e   :  { %6541 = vmatpush.msra.mxu0 %v6383_v7  ;;  %6560 = vmatpush.msra.mxu1 %v6497_v13 }
 0x74f   :  { %6585 = vmatpush.msra.mxu2 %v6384_v23  ;;  %6604 = vmatpush.msra.mxu3 %v6498_v53 }
 0x750   :  { %6542 = vmatpush.msra.mxu0 %v6377_v55  ;;  %6561 = vmatpush.msra.mxu1 %v6491_v22 }
 0x751   :  { %6586 = vmatpush.msra.mxu2 %v6378_v56  ;;  %6605 = vmatpush.msra.mxu3 %v6492_v46 }
 0x752   :  { %6543 = vmatpush.msra.mxu0 %v6371_v31  ;;  %6562 = vmatpush.msra.mxu1 %v6485_v62 }
 0x753   :  { %6587 = vmatpush.msra.mxu2 %v6372_v37  ;;  %6606 = vmatpush.msra.mxu3 %v6486_v50 }
 0x754   :  { %6544 = vmatpush.msra.mxu0 %v6365_v29  ;;  %6563 = vmatpush.msra.mxu1 %v6479_v63 }
 0x755   :  { %6588 = vmatpush.msra.mxu2 %v6366_v36  ;;  %6607 = vmatpush.msra.mxu3 %v6480_v8 }
 0x756   :  { %6545 = vmatpush.msra.mxu0 %v6359_v17  ;;  %6564 = vmatpush.msra.mxu1 %v6473_v16  ;;  %v6421_v17 = vld [vmem:[#allocation8 + $0x2e0] sm:$0xff]  ;;  %v6422_v16 = vld [vmem:[#allocation8 + $0x2e8] sm:$0xff] }
 0x757   :  { %6589 = vmatpush.msra.mxu2 %v6360_v61  ;;  %6608 = vmatpush.msra.mxu3 %v6474_v52  ;;  %v6415_v61 = vld [vmem:[#allocation8 + $0x2b0] sm:$0xff]  ;;  %v6416_v52 = vld [vmem:[#allocation8 + $0x2b8] sm:$0xff] }
 0x758   :  { %6546 = vmatpush.msra.mxu0 %v6353_v51  ;;  %6565 = vmatpush.msra.mxu1 %v6467_v59  ;;  %v6410_v59 = vld [vmem:[#allocation8 + $0x288] sm:$0xff] }
 0x759   :  { %6590 = vmatpush.msra.mxu2 %v6354_v3  ;;  %6609 = vmatpush.msra.mxu3 %v6468_v43  ;;  %v6403_v3 = vld [vmem:[#allocation8 + $0x250] sm:$0xff]  ;;  %v6404_v43 = vld [vmem:[#allocation8 + $0x258] sm:$0xff] }
 0x75a   :  { %6547 = vmatpush.msra.mxu0 %v6347_v9  ;;  %6566 = vmatpush.msra.mxu1 %v6461_v19  ;;  %v6518_v9 = vld [vmem:[#allocation8 + $0x5e8] sm:$0xff] }
 0x75b   :  { %6591 = vmatpush.msra.mxu2 %v6348_v44  ;;  %6610 = vmatpush.msra.mxu3 %v6462_v47  ;;  %v6397_v44 = vld [vmem:[#allocation8 + $0x220] sm:$0xff]  ;;  %v6511_v47 = vld [vmem:[#allocation8 + $0x5b0] sm:$0xff] }
 0x75c   :  { %6548 = vmatpush.msra.mxu0 %v6341_v34  ;;  %6567 = vmatpush.msra.mxu1 %v6455_v60  ;;  %v6398_v34 = vld [vmem:[#allocation8 + $0x228] sm:$0xff]  ;;  %v6512_v60 = vld [vmem:[#allocation8 + $0x5b8] sm:$0xff] }
 0x75d   :  { %6592 = vmatpush.msra.mxu2 %v6342_v48  ;;  %6611 = vmatpush.msra.mxu3 %v6456_v25  ;;  %v6391_v25 = vld [vmem:[#allocation8 + $0x1f0] sm:$0xff] }
 0x75e   :  { %6549 = vmatpush.msra.mxu0 %v6335_v30  ;;  %6568 = vmatpush.msra.mxu1 %v6449_v40  ;;  %v6505_v30 = vld [vmem:[#allocation8 + $0x580] sm:$0xff]  ;;  %v6392_v40 = vld [vmem:[#allocation8 + $0x1f8] sm:$0xff] }
 0x75f   :  { %6593 = vmatpush.msra.mxu2 %v6336_v35  ;;  %6612 = vmatpush.msra.mxu3 %v6450_v21  ;;  %v6506_v21 = vld [vmem:[#allocation8 + $0x588] sm:$0xff] }
 0x760   :  { %6550 = vmatpush.msra.mxu0 %v6329_v0  ;;  %6569 = vmatpush.msra.mxu1 %v6443_v54  ;;  %v6385_v0 = vld [vmem:[#allocation8 + $0x1c0] sm:$0xff]  ;;  %v6499_v54 = vld [vmem:[#allocation8 + $0x550] sm:$0xff] }
 0x761   :  { %6594 = vmatpush.msra.mxu2 %v6330_v41  ;;  %6613 = vmatpush.msra.mxu3 %v6444_v11  ;;  %v6386_v41 = vld [vmem:[#allocation8 + $0x1c8] sm:$0xff] }
 0x762   :  { %6551 = vmatmul.f32.vlgmr.msra.gmra.mxu0 %v9864_v33  ;;  %6595 = vmatmul.f32.vlgmr.msra.gmra.mxu2 %v9864_v33 }
 0x763   :  { %6570 = vmatpush.msra.mxu1 %v6437_v32  ;;  %6614 = vmatpush.msra.mxu3 %v6438_v28  ;;  %v6500_v32 = vld [vmem:[#allocation8 + $0x558] sm:$0xff] }
 0x764   :  { %6623 = vmatpush.msrb.mxu0 %v6421_v17  ;;  %6669 = vmatpush.msrb.mxu2 %v6422_v16  ;;  %v6356_v17 = vld [vmem:[#allocation8 + $0xd8] sm:$0xff] }
 0x765   :  { %6571 = vmatpush.msra.mxu1 %v6431_v12  ;;  %6615 = vmatpush.msra.mxu3 %v6432_v18  ;;  %v6379_v12 = vld [vmem:[#allocation8 + $0x190] sm:$0xff]  ;;  %v6493_v18 = vld [vmem:[#allocation8 + $0x520] sm:$0xff] }
 0x766   :  { %6624 = vmatpush.msrb.mxu0 %v6415_v61  ;;  %6670 = vmatpush.msrb.mxu2 %v6416_v52  ;;  %v6470_v61 = vld [vmem:[#allocation8 + $0x468] sm:$0xff] }
 0x767   :  { %6572 = vmatpush.msra.mxu1 %v6425_v24  ;;  %6616 = vmatpush.msra.mxu3 %v6426_v57  ;;  %v6380_v24 = vld [vmem:[#allocation8 + $0x198] sm:$0xff]  ;;  %v6494_v57 = vld [vmem:[#allocation8 + $0x528] sm:$0xff] }
 0x768   :  { %6573 = vmatmul.f32.vlgmr.msra.gmra.mxu1 %v9868_v14  ;;  %6617 = vmatmul.f32.vlgmr.msra.gmra.mxu3 %v9868_v14 }
 0x769   :  { %6671 = vmatpush.msrb.mxu2 %v6410_v59  ;;  %6692 = vmatpush.msrb.mxu3 %v6518_v9  ;;  %v6349_v59 = vld [vmem:[#allocation8 + $0xa0] sm:$0xff] }
 0x76b   :  { %6672 = vmatpush.msrb.mxu2 %v6404_v43  ;;  %6693 = vmatpush.msrb.mxu3 %v6512_v60 }
 0x76d   :  { %6673 = vmatpush.msrb.mxu2 %v6398_v34  ;;  %6694 = vmatpush.msrb.mxu3 %v6506_v21 }
 0x76f   :  { %6674 = vmatpush.msrb.mxu2 %v6392_v40  ;;  %6695 = vmatpush.msrb.mxu3 %v6500_v32 }
 0x771   :  { %6675 = vmatpush.msrb.mxu2 %v6386_v41  ;;  %6696 = vmatpush.msrb.mxu3 %v6494_v57  ;;  %v6338_v41 = vld [vmem:[#allocation8 + $0x48] sm:$0xff] }
 0x773   :  { %6676 = vmatpush.msrb.mxu2 %v6380_v24 }
 0x778   :  { %v5856_v15 = vpop.f32.mrf.mxu0 }
 0x77e   :  { %v5876_v5 = vpop.f32.mrf.mxu1  ;;  %v5896_v26 = vpop.f32.mrf.mxu2 }
 0x77f   :  { %v5877_v27 = vadd.f32 %v5876_v5, %v5856_v15 }
 0x781   :  { %v5936_v7 = vpop.f32.mrf.mxu0  ;;  %v6167_v23 = vrot.slane %v5877_v27, 2  ;;  %v6374_v27 = vld [vmem:[#allocation8 + $0x168] sm:$0xff] }
 0x782   :  { %6677 = vmatpush.msrb.mxu2 %v6374_v27 }
 0x783   :  { %v6183_v31 = vadd.f32 %v6167_v23, %v9459_v4  ;;  %v6367_v23 = vld [vmem:[#allocation8 + $0x130] sm:$0xff] }
 0x784   :  { %v5916_v1 = vpop.f32.mrf.mxu3 }
 0x785   :  { %v5917_v22 = vadd.f32 %v5916_v1, %v5896_v26  ;;  %v8123_v29 = vmul.f32 -1.442695, %v6183_v31  ;;  %v6373_v26 = vld [vmem:[#allocation8 + $0x160] sm:$0xff]  ;;  %v6475_v31 = vld [vmem:[#allocation8 + $0x490] sm:$0xff] }
 0x787   :  { %v5976_v56 = vpop.f32.mrf.mxu2  ;;  %v6168_v37 = vrot.slane %v5917_v22, 2  ;;  %8455 = vpow2.f32 %v8123_v29  ;;  %v6482_v22 = vld [vmem:[#allocation8 + $0x4c8] sm:$0xff] }
 0x788   :  { %v5956_v38 = vpop.f32.mrf.mxu1 }
 0x789   :  { %v5957_v13 = vadd.f32 %v5956_v38, %v5936_v7  ;;  %v6184_v36 = vadd.f32 %v6168_v37, %v9471_v42  ;;  %v6517_v42 = vld [vmem:[#allocation8 + $0x5e0] sm:$0xff]  ;;  %v6487_v38 = vld [vmem:[#allocation8 + $0x4f0] sm:$0xff] }
 0x78a   :  { %6646 = vmatpush.msrb.mxu1 %v6517_v42  ;;  %v6350_v42 = vld [vmem:[#allocation8 + $0xa8] sm:$0xff] }
 0x78b   :  { %v6169_v55 = vrot.slane %v5957_v13, 2  ;;  %v8124_v51 = vmul.f32 -1.442695, %v6184_v36  ;;  %v6488_v13 = vld [vmem:[#allocation8 + $0x4f8] sm:$0xff]  ;;  %v6355_v36 = vld [vmem:[#allocation8 + $0xd0] sm:$0xff] }
 0x78c   :  { %6647 = vmatpush.msrb.mxu1 %v6511_v47  ;;  %6697 = vmatpush.msrb.mxu3 %v6488_v13  ;;  %v6344_v47 = vld [vmem:[#allocation8 + $0x78] sm:$0xff]  ;;  %v6446_v13 = vld [vmem:[#allocation8 + $0x3a8] sm:$0xff] }
 0x78d   :  { %v6185_v62 = vadd.f32 %v6169_v55, %v9464_v39  ;;  %v6409_v39 = vld [vmem:[#allocation8 + $0x280] sm:$0xff]  ;;  %v6368_v55 = vld [vmem:[#allocation8 + $0x138] sm:$0xff] }
 0x78e   :  { %v5996_v53 = vpop.f32.mrf.mxu3  ;;  %6625 = vmatpush.msrb.mxu0 %v6409_v39  ;;  %6648 = vmatpush.msrb.mxu1 %v6505_v30  ;;  %v6458_v30 = vld [vmem:[#allocation8 + $0x408] sm:$0xff] }
 0x78f   :  { %v5997_v46 = vadd.f32 %v5996_v53, %v5976_v56  ;;  %v8125_v63 = vmul.f32 -1.442695, %v6185_v62  ;;  %v6481_v53 = vld [vmem:[#allocation8 + $0x4c0] sm:$0xff]  ;;  %6678 = vmatpush.msrb.mxu2 %v6368_v55  ;;  %6698 = vmatpush.msrb.mxu3 %v6482_v22  ;;  %v6362_v62 = vld [vmem:[#allocation8 + $0x108] sm:$0xff] }
 0x790   :  { %6626 = vmatpush.msrb.mxu0 %v6403_v3  ;;  %6649 = vmatpush.msrb.mxu1 %v6499_v54  ;;  %v6463_v3 = vld [vmem:[#allocation8 + $0x430] sm:$0xff] }
 0x791   :  { %v6170_v50 = vrot.slane %v5997_v46, 2  ;;  %8457 = vpow2.f32 %v8125_v63  ;;  %v6361_v46 = vld [vmem:[#allocation8 + $0x100] sm:$0xff]  ;;  %6679 = vmatpush.msrb.mxu2 %v6362_v62  ;;  %v6451_v54 = vld [vmem:[#allocation8 + $0x3d0] sm:$0xff] }
 0x792   :  { %8459 = vpow2.f32 %v8124_v51  ;;  %6627 = vmatpush.msrb.mxu0 %v6397_v44  ;;  %6650 = vmatpush.msrb.mxu1 %v6493_v18  ;;  %v6457_v44 = vld [vmem:[#allocation8 + $0x400] sm:$0xff] }
 0x793   :  { %v6186_v8 = vadd.f32 %v6170_v50, %v9476_v20  ;;  %v8456_v20 = vpop.eup %8455  ;;  %v6476_v50 = vld [vmem:[#allocation8 + $0x498] sm:$0xff]  ;;  %6680 = vmatpush.msrb.mxu2 %v6356_v17  ;;  %v6433_v17 = vld [vmem:[#allocation8 + $0x340] sm:$0xff] }
 0x794   :  { %v9876_v48 = vadd.f32 1.0, %v8456_v20  ;;  %6628 = vmatpush.msrb.mxu0 %v6391_v25  ;;  %6651 = vmatpush.msrb.mxu1 %v6487_v38  ;;  %v6464_v20 = vld [vmem:[#allocation8 + $0x438] sm:$0xff] }
 0x795   :  { %v8126_v4 = vmul.f32 -1.442695, %v6186_v8  ;;  %6699 = vmatpush.msrb.mxu3 %v6476_v50  ;;  %v6469_v8 = vld [vmem:[#allocation8 + $0x460] sm:$0xff]  ;;  %6681 = vmatpush.msrb.mxu2 %v6350_v42 }
 0x796   :  { %6629 = vmatpush.msrb.mxu0 %v6385_v0  ;;  %6652 = vmatpush.msrb.mxu1 %v6481_v53  ;;  %v6337_v0 = vld [vmem:[#allocation8 + $0x40] sm:$0xff]  ;;  %v6424_v53 = vld [vmem:[#allocation8 + $0x2f8] sm:$0xff]  ;;  %vm6204_vm12 = vweird.f32 %v9876_v48 }
 0x797   :  { %v8458_v19 = vpop.eup %8457  ;;  %8461 = vpow2.f32 %v8126_v4  ;;  %6700 = vmatpush.msrb.mxu3 %v6470_v61  ;;  %6682 = vmatpush.msrb.mxu2 %v6344_v47  ;;  %v6210_v61 = vand.u32 2147483648, %v9876_v48 }
 0x798   :  { %v9878_v35 = vadd.f32 1.0, %v8458_v19  ;;  %v8460_v11 = vpop.eup %8459  ;;  %8463 = vrcp.f32 %v9876_v48  ;;  %6630 = vmatpush.msrb.mxu0 %v6379_v12  ;;  %6653 = vmatpush.msrb.mxu1 %v6475_v31  ;;  %v6343_v19 = vld [vmem:[#allocation8 + $0x70] sm:$0xff]  ;;  %v6440_v31 = vld [vmem:[#allocation8 + $0x378] sm:$0xff] }
 0x799   :  { %v9882_v5 = vadd.f32 1.0, %v8460_v11  ;;  %6701 = vmatpush.msrb.mxu3 %v6464_v20  ;;  %6683 = vmatpush.msrb.mxu2 %v6338_v41  ;;  %v6405_v20 = vld [vmem:[#allocation8 + $0x260] sm:$0xff]  ;;  %v6478_v41 = vld [vmem:[#allocation8 + $0x4a8] sm:$0xff] }
 0x79a   :  { %8465 = vrcp.f32 %v9878_v35  ;;  %6631 = vmatpush.msrb.mxu0 %v6373_v26  ;;  %6654 = vmatpush.msrb.mxu1 %v6469_v8  ;;  %v6332_v26 = vld [vmem:[#allocation8 + $0x18] sm:$0xff]  ;;  %v6208_v8 = vand.u32 2147483647, %v9876_v48  ;;  %vm6242_vm13 = vweird.f32 %v9878_v35 }
 0x79b   :  { %v6016_v15 = vpop.f32.mrf.mxu0  ;;  %8467 = vrcp.f32 %v9882_v5  ;;  %6702 = vmatpush.msrb.mxu3 %v6458_v30  ;;  %6684 = vmatpush.msrb.mxu2 %v6332_v26  ;;  %vm6219_vm1 = vweird.f32 %v9882_v5  ;;  %v6351_v26 = vld [vmem:[#allocation8 + $0xb0] sm:$0xff] }
 0x79c   :  { %6632 = vmatpush.msrb.mxu0 %v6367_v23  ;;  %6655 = vmatpush.msrb.mxu1 %v6463_v3  ;;  %v6423_v23 = vld [vmem:[#allocation8 + $0x2f0] sm:$0xff]  ;;  %vm9944_vm0 = vcmp.eq.f32.partialorder %v6208_v8, 8.507059e+37 }
 0x79d   :  { %v8462_v28 = vpop.eup %8461  ;;  %6761 = vmatpush.msra.mxu2 %v6424_v53 }
 0x79e   :  { %v9884_v7 = vadd.f32 1.0, %v8462_v28  ;;  %v9886_v56 = vpop.eup %8463  ;;  %6633 = vmatpush.msrb.mxu0 %v6361_v46  ;;  %6656 = vmatpush.msrb.mxu1 %v6457_v44  ;;  %v6452_v28 = vld [vmem:[#allocation8 + $0x3d8] sm:$0xff]  ;;  %v6439_v46 = vld [vmem:[#allocation8 + $0x370] sm:$0xff] }
 0x79f   :  { %v6200_v52 = vmul.f32 %v9886_v56, %v9876_v48  ;;  %6703 = vmatpush.msrb.mxu3 %v6452_v28  ;;  %vm6205_vm10 = vweird.f32 %v9886_v56  ;;  %v6514_v28 = vld [vmem:[#allocation8 + $0x5c8] sm:$0xff] }
 0x7a0   :  { %v9889_v37 = vpop.eup %8465  ;;  %8469 = vrcp.f32 %v9884_v7  ;;  %6634 = vmatpush.msrb.mxu0 %v6355_v36  ;;  %6657 = vmatpush.msrb.mxu1 %v6451_v54  ;;  %vm9932_vm14 = vmor %vm6204_vm12, %vm6205_vm10  ;;  %v6309_v54 = vrot.slane %v9837_v45, 6  ;;  %vm6257_vm5 = vweird.f32 %v9884_v7 }
 0x7a1   :  { %v6056_v29 = vpop.f32.mrf.mxu2  ;;  %v6238_v51 = vmul.f32 %v9889_v37, %v9878_v35  ;;  %v9896_v9 = vpop.eup %8467  ;;  %v6201_v40 = vsub.f32 1.0, %v6200_v52  ;;  %6704 = vmatpush.msrb.mxu3 %v6446_v13  ;;  %vm6243_vm11 = vweird.f32 %v9889_v37  ;;  %v6501_v13 = vld [vmem:[#allocation8 + $0x560] sm:$0xff] }
 0x7a2   :  { %v6036_v1 = vpop.f32.mrf.mxu1  ;;  %6635 = vmatpush.msrb.mxu0 %v6349_v59  ;;  %v9905_v12 = vmul.f32 %v9896_v9, %v9882_v5  ;;  %v6248_v59 = vand.u32 2147483648, %v9878_v35  ;;  %vm9940_vm15 = vmor %vm6242_vm13, %vm6243_vm11  ;;  %vm6220_vm3 = vweird.f32 %v9896_v9 }
 0x7a3   :  { %v6037_v16 = vadd.f32 %v6036_v1, %v6016_v15  ;;  %v6239_v21 = vsub.f32 1.0, %v6238_v51  ;;  %v6331_v15 = vld [vmem:[#allocation8 + $0x10] sm:$0xff]  ;;  %v6445_v1 = vld [vmem:[#allocation8 + $0x3a0] sm:$0xff]  ;;  %v6202_v22 = vmul.f32 %v9886_v56, %v6201_v40  ;;  %6705 = vmatpush.msrb.mxu3 %v6440_v31  ;;  %v6502_v31 = vld [vmem:[#allocation8 + $0x568] sm:$0xff]  ;;  %v6310_v40 = vrot.slane %v9841_v49, 6 }
 0x7a4   :  { %6636 = vmatpush.msrb.mxu0 %v6343_v19  ;;  %6658 = vmatpush.msrb.mxu1 %v6445_v1  ;;  %v6411_v51 = vld [vmem:[#allocation8 + $0x290] sm:$0xff]  ;;  %v6249_v1 = vor.u32 1.1754944e-38, %v6248_v59  ;;  %vm9977_vm6 = vmor %vm6219_vm1, %vm6220_vm3 }
 0x7a5   :  { %v6171_v60 = vrot.slane %v6037_v16, 2  ;;  %v6240_v55 = vmul.f32 %v9889_v37, %v6239_v21  ;;  %v6434_v16 = vld [vmem:[#allocation8 + $0x348] sm:$0xff]  ;;  %v6203_v3 = vadd.f32 %v9886_v56, %v6202_v22  ;;  %v6519_v19 = vld [vmem:[#allocation8 + $0x5f0] sm:$0xff]  ;;  %v6513_v21 = vld [vmem:[#allocation8 + $0x5c0] sm:$0xff]  ;;  %v6225_v22 = vand.u32 2147483648, %v9882_v5 }
 0x7a6   :  { %v9898_v34 = vpop.eup %8469  ;;  %6637 = vmatpush.msrb.mxu0 %v6337_v0  ;;  %6659 = vmatpush.msrb.mxu1 %v6439_v46  ;;  %v6388_v46 = vld [vmem:[#allocation8 + $0x1d8] sm:$0xff] }
 0x7a7   :  { %v9909_v18 = vmul.f32 %v9898_v34, %v9884_v7  ;;  %v6241_v42 = vadd.f32 %v9889_v37, %v6240_v55  ;;  %6706 = vmatpush.msrb.mxu3 %v6434_v16  ;;  %v6207_v45 = vsel %vm9932_vm14, %v9886_v56, %v6203_v3  ;;  %v6394_v56 = vld [vmem:[#allocation8 + $0x208] sm:$0xff]  ;;  %vm6258_vm4 = vweird.f32 %v9898_v34 }
 0x7a8   :  { %v6076_v63 = vpop.f32.mrf.mxu3  ;;  %6638 = vmatpush.msrb.mxu0 %v6331_v15  ;;  %6660 = vmatpush.msrb.mxu1 %v6433_v17  ;;  %vm9985_vm7 = vmor %vm6257_vm5, %vm6258_vm4  ;;  %v6382_v16 = vld [vmem:[#allocation8 + $0x1a8] sm:$0xff]  ;;  %vm6858_vm4 = vcmask 123904   ;;  %vm6870_vm5 = vcmask 130048  }
 0x7a9   :  { %v9900_v11 = vadd.f32 %v6076_v63, %v6056_v29  ;;  %v6418_v29 = vld [vmem:[#allocation8 + $0x2c8] sm:$0xff]  ;;  %v6216_v63 = vsub.f32 1.0, %v9905_v12  ;;  %v6254_v36 = vsub.f32 1.0, %v9909_v18  ;;  %v6245_v12 = vsel %vm9940_vm15, %v9889_v37, %v6241_v42  ;;  %v6508_v37 = vld [vmem:[#allocation8 + $0x598] sm:$0xff] }
 0x7aa   :  { %6715 = vmatpush.msra.mxu0 %v6423_v23  ;;  %6762 = vmatpush.msra.mxu2 %v6418_v29  ;;  %v6263_v23 = vand.u32 2147483648, %v9884_v7  ;;  %v6261_v29 = vand.u32 2147483647, %v9884_v7  ;;  %v6226_v42 = vor.u32 1.1754944e-38, %v6225_v22 }
 0x7ab   :  { %v6172_v62 = vrot.slane %v9900_v11, 2  ;;  %v6255_v30 = vmul.f32 %v9898_v34, %v6254_v36  ;;  %v6217_v48 = vmul.f32 %v9896_v9, %v6216_v63  ;;  %v6211_v11 = vor.u32 1.1754944e-38, %v6210_v61  ;;  %v6381_v63 = vld [vmem:[#allocation8 + $0x1a0] sm:$0xff]  ;;  %v6495_v36 = vld [vmem:[#allocation8 + $0x530] sm:$0xff]  ;;  %v6496_v61 = vld [vmem:[#allocation8 + $0x538] sm:$0xff] }
 0x7ac   :  { %v6264_v3 = vor.u32 1.1754944e-38, %v6263_v23  ;;  %vm6262_vm9 = vcmp.eq.f32.partialorder %v6261_v29, 8.507059e+37 }
 0x7ad   :  { %v6188_v44 = vadd.f32 %v6172_v62, %v9530_v10  ;;  %v6399_v10 = vld [vmem:[#allocation8 + $0x230] sm:$0xff]  ;;  %v6212_v53 = vsel %vm9944_vm0, %v6211_v11, %v6207_v45 }
 0x7ae   :  { %v6471_v45 = vld [vmem:[#allocation8 + $0x470] sm:$0xff] }
 0x7bd   :  { %v6096_v4 = vpop.f32.mrf.mxu0 }
 0x7c3   :  { %v6136_v24 = vpop.f32.mrf.mxu2 }
 0x7c4   :  { %v6116_v39 = vpop.f32.mrf.mxu1 }
 0x7c5   :  { %v6117_v43 = vadd.f32 %v6116_v39, %v6096_v4  ;;  %v6412_v4 = vld [vmem:[#allocation8 + $0x298] sm:$0xff]  ;;  %v6427_v39 = vld [vmem:[#allocation8 + $0x310] sm:$0xff] }
 0x7c6   :  { %6763 = vmatpush.msra.mxu2 %v6412_v4  ;;  %6661 = vmatpush.msrb.mxu1 %v6427_v39  ;;  %v6375_v4 = vld [vmem:[#allocation8 + $0x170] sm:$0xff]  ;;  %v6489_v39 = vld [vmem:[#allocation8 + $0x500] sm:$0xff] }
 0x7c7   :  { %v6173_v25 = vrot.slane %v6117_v43, 2  ;;  %v6428_v43 = vld [vmem:[#allocation8 + $0x318] sm:$0xff] }
 0x7c8   :  { %6707 = vmatpush.msrb.mxu3 %v6428_v43  ;;  %6738 = vmatpush.msra.mxu1 %v6519_v19  ;;  %v6376_v43 = vld [vmem:[#allocation8 + $0x178] sm:$0xff] }
 0x7c9   :  { %v6189_v32 = vadd.f32 %v6173_v25, %v9507_v6  ;;  %v6187_v6 = vadd.f32 %v6171_v60, %v9512_v2  ;;  %v6417_v2 = vld [vmem:[#allocation8 + $0x2c0] sm:$0xff]  ;;  %v6406_v60 = vld [vmem:[#allocation8 + $0x268] sm:$0xff]  ;;  %v6520_v25 = vld [vmem:[#allocation8 + $0x5f8] sm:$0xff] }
 0x7ca   :  { %v6156_v57 = vpop.f32.mrf.mxu3  ;;  %6716 = vmatpush.msra.mxu0 %v6417_v2  ;;  %6764 = vmatpush.msra.mxu2 %v6406_v60  ;;  %v6223_v2 = vand.u32 2147483647, %v9882_v5 }
 0x7cb   :  { %v8127_v38 = vmul.f32 -1.442695, %v6189_v32  ;;  %v6157_v27 = vadd.f32 %v6156_v57, %v6136_v24  ;;  %v6400_v32 = vld [vmem:[#allocation8 + $0x238] sm:$0xff]  ;;  %6784 = vmatpush.msra.mxu3 %v6520_v25  ;;  %v6393_v24 = vld [vmem:[#allocation8 + $0x200] sm:$0xff]  ;;  %v6507_v57 = vld [vmem:[#allocation8 + $0x590] sm:$0xff]  ;;  %6739 = vmatpush.msra.mxu1 %v6513_v21 }
 0x7cc   :  { %6717 = vmatpush.msra.mxu0 %v6411_v51  ;;  %6765 = vmatpush.msra.mxu2 %v6400_v32  ;;  %vm6224_vm8 = vcmp.eq.f32.partialorder %v6223_v2, 8.507059e+37  ;;  %v6370_v25 = vld [vmem:[#allocation8 + $0x148] sm:$0xff]  ;;  %v6477_v21 = vld [vmem:[#allocation8 + $0x4a0] sm:$0xff] }
 0x7cd   :  { %8471 = vpow2.f32 %v8127_v38  ;;  %v6174_v50 = vrot.slane %v6157_v27, 2  ;;  %v6256_v38 = vadd.f32 %v9898_v34, %v6255_v30  ;;  %6785 = vmatpush.msra.mxu3 %v6514_v28  ;;  %v6387_v27 = vld [vmem:[#allocation8 + $0x1d0] sm:$0xff]  ;;  %6740 = vmatpush.msra.mxu1 %v6507_v57  ;;  %v6484_v30 = vld [vmem:[#allocation8 + $0x4d8] sm:$0xff]  ;;  %v6357_v28 = vld [vmem:[#allocation8 + $0xe0] sm:$0xff] }
 0x7ce   :  { %8473 = vtanh.f32 %v6187_v6  ;;  %6718 = vmatpush.msra.mxu0 %v6405_v20  ;;  %v6218_v6 = vadd.f32 %v9896_v9, %v6217_v48  ;;  %6766 = vmatpush.msra.mxu2 %v6394_v56  ;;  %v6490_v20 = vld [vmem:[#allocation8 + $0x508] sm:$0xff]  ;;  %v6472_v57 = vld [vmem:[#allocation8 + $0x478] sm:$0xff]  ;;  %v6465_v56 = vld [vmem:[#allocation8 + $0x440] sm:$0xff] }
 0x7cf   :  { %v6190_v52 = vadd.f32 %v6174_v50, %v9525_v58  ;;  %v6246_v58 = vand.u32 2147483647, %v9878_v35  ;;  %6786 = vmatpush.msra.mxu3 %v6508_v37  ;;  %6741 = vmatpush.msra.mxu1 %v6501_v13  ;;  %v6260_v7 = vsel %vm9985_vm7, %v9898_v34, %v6256_v38  ;;  %v6369_v34 = vld [vmem:[#allocation8 + $0x140] sm:$0xff]  ;;  %v6364_v35 = vld [vmem:[#allocation8 + $0x118] sm:$0xff]  ;;  %vm8047_vm7 = vcmask 1024  }
 0x7d0   :  { %6719 = vmatpush.msra.mxu0 %v6399_v10  ;;  %v6222_v5 = vsel %vm9977_vm6, %v9896_v9, %v6218_v6  ;;  %6767 = vmatpush.msra.mxu2 %v6388_v46  ;;  %v6363_v10 = vld [vmem:[#allocation8 + $0x110] sm:$0xff]  ;;  %v6352_v38 = vld [vmem:[#allocation8 + $0xb8] sm:$0xff]  ;;  %vm7961_vm6 = vcmask 523264  }
 0x7d1   :  { %v8128_v47 = vmul.f32 -1.442695, %v6190_v52  ;;  %vm9957_vm2 = vcmp.eq.f32.partialorder %v6246_v58, 8.507059e+37  ;;  %6787 = vmatpush.msra.mxu3 %v6502_v31  ;;  %6742 = vmatpush.msra.mxu1 %v6495_v36  ;;  %v6483_v58 = vld [vmem:[#allocation8 + $0x4d0] sm:$0xff]  ;;  %v6460_v50 = vld [vmem:[#allocation8 + $0x418] sm:$0xff] }
 0x7d2   :  { %v6250_v55 = vsel %vm9957_vm2, %v6249_v1, %v6245_v12  ;;  %6720 = vmatpush.msra.mxu0 %v6393_v24  ;;  %6768 = vmatpush.msra.mxu2 %v6382_v16  ;;  %v6358_v24 = vld [vmem:[#allocation8 + $0xe8] sm:$0xff]  ;;  %v6339_v36 = vld [vmem:[#allocation8 + $0x50] sm:$0xff]  ;;  %vm6828_vm2 = vcmask 261120  }
 0x7d3   :  { %v8472_v0 = vpop.eup %8471  ;;  %8475 = vpow2.f32 %v8128_v47  ;;  %v6313_v52 = vmul.f32 %v6309_v54, %v6250_v55  ;;  %6788 = vmatpush.msra.mxu3 %v6496_v61  ;;  %v6265_v47 = vsel %vm6262_vm9, %v6264_v3, %v6260_v7  ;;  %6743 = vmatpush.msra.mxu1 %v6489_v39  ;;  %v6459_v55 = vld [vmem:[#allocation8 + $0x410] sm:$0xff]  ;;  %v6333_v7 = vld [vmem:[#allocation8 + $0x20] sm:$0xff]  ;;  %v6448_v3 = vld [vmem:[#allocation8 + $0x3b8] sm:$0xff] }
 0x7d4   :  { %v9955_v18 = vadd.f32 1.0, %v8472_v0  ;;  %v8474_v15 = vpop.eup %8473  ;;  %8477 = vtanh.f32 %v6188_v44  ;;  %6721 = vmatpush.msra.mxu0 %v6387_v27  ;;  %v6227_v44 = vsel %vm6224_vm8, %v6226_v42, %v6222_v5  ;;  %6769 = vmatpush.msra.mxu2 %v6376_v43  ;;  %v6314_v11 = vmul.f32 %v6310_v40, %v6265_v47  ;;  %v6466_v27 = vld [vmem:[#allocation8 + $0x448] sm:$0xff]  ;;  %v6441_v43 = vld [vmem:[#allocation8 + $0x380] sm:$0xff]  ;;  %v6436_v47 = vld [vmem:[#allocation8 + $0x358] sm:$0xff] }
 0x7d5   :  { %v6315_v62 = vmul.f32 %v8474_v15, %v6212_v53  ;;  %6789 = vmatpush.msra.mxu3 %v6490_v20  ;;  %6744 = vmatpush.msra.mxu1 %v6483_v58  ;;  %v6345_v53 = vld [vmem:[#allocation8 + $0x80] sm:$0xff]  ;;  %v6454_v5 = vld [vmem:[#allocation8 + $0x3e8] sm:$0xff]  ;;  %v6435_v58 = vld [vmem:[#allocation8 + $0x350] sm:$0xff] }
 0x7d6   :  { %8479 = vrcp.f32 %v9955_v18  ;;  %6722 = vmatpush.msra.mxu0 %v6381_v63  ;;  %v6288_v32 = vand.u32 2147483648, %v9955_v18  ;;  %6770 = vmatpush.msra.mxu2 %v6370_v25  ;;  %v6286_v12 = vand.u32 2147483647, %v9955_v18  ;;  %vm6282_vm11 = vweird.f32 %v9955_v18  ;;  %v6430_v25 = vld [vmem:[#allocation8 + $0x328] sm:$0xff] }
 0x7d7   :  { %v6317_v9 = vadd.f32 %v6315_v62, %v6313_v52  ;;  %6790 = vmatpush.msra.mxu3 %v6484_v30  ;;  %6745 = vmatpush.msra.mxu1 %v6477_v21  ;;  %v6346_v62 = vld [vmem:[#allocation8 + $0x88] sm:$0xff]  ;;  %v6340_v52 = vld [vmem:[#allocation8 + $0x58] sm:$0xff] }
 0x7d8   :  { %6723 = vmatpush.msra.mxu0 %v6375_v4  ;;  %6771 = vmatpush.msra.mxu2 %v6364_v35  ;;  %v6289_v23 = vor.u32 1.1754944e-38, %v6288_v32  ;;  %vm6287_vm13 = vcmp.eq.f32.partialorder %v6286_v12, 8.507059e+37  ;;  %v6447_v4 = vld [vmem:[#allocation8 + $0x3b0] sm:$0xff] }
 0x7d9   :  { %v8476_v8 = vpop.eup %8475  ;;  %6791 = vmatpush.msra.mxu3 %v6478_v41  ;;  %6746 = vmatpush.msra.mxu1 %v6471_v45 }
 0x7da   :  { %v9995_v51 = vadd.f32 1.0, %v8476_v8  ;;  %v8478_v59 = vpop.eup %8477  ;;  %6724 = vmatpush.msra.mxu0 %v6369_v34  ;;  %6772 = vmatpush.msra.mxu2 %v6358_v24  ;;  %v6453_v8 = vld [vmem:[#allocation8 + $0x3e0] sm:$0xff] }
 0x7db   :  { %v6316_v48 = vmul.f32 %v8478_v59, %v6227_v44  ;;  %6792 = vmatpush.msra.mxu3 %v6472_v57  ;;  %6747 = vmatpush.msra.mxu1 %v6465_v56  ;;  %v6334_v59 = vld [vmem:[#allocation8 + $0x28] sm:$0xff] }
 0x7dc   :  { %v9997_v19 = vpop.eup %8479  ;;  %8481 = vrcp.f32 %v9995_v51  ;;  %6725 = vmatpush.msra.mxu0 %v6363_v10  ;;  %v6303_v63 = vand.u32 2147483648, %v9995_v51  ;;  %6773 = vmatpush.msra.mxu2 %v6352_v38  ;;  %v6301_v61 = vand.u32 2147483647, %v9995_v51  ;;  %vm6297_vm15 = vweird.f32 %v9995_v51 }
 0x7dd   :  { %v6278_v60 = vmul.f32 %v9997_v19, %v9955_v18  ;;  %8483 = vtanh.f32 %v6317_v9  ;;  %vm6283_vm10 = vweird.f32 %v9997_v19  ;;  %v6318_v1 = vadd.f32 %v6316_v48, %v6314_v11  ;;  %6793 = vmatpush.msra.mxu3 %v6466_v27  ;;  %6748 = vmatpush.msra.mxu1 %v6459_v55  ;;  %v6442_v9 = vld [vmem:[#allocation8 + $0x388] sm:$0xff]  ;;  %v10039_v48 = vld [vmem:[#allocation9] sm:$0x3f] }
 0x7de   :  { %6726 = vmatpush.msra.mxu0 %v6357_v28  ;;  %vm10015_vm12 = vmor %vm6282_vm11, %vm6283_vm10  ;;  %6774 = vmatpush.msra.mxu2 %v6346_v62  ;;  %v6304_v42 = vor.u32 1.1754944e-38, %v6303_v63  ;;  %vm6302_vm1 = vcmp.eq.f32.partialorder %v6301_v61, 8.507059e+37  ;;  %v6523_v21 = vperm.slane %v10039_v48, 0  ;;  %v6525_v12 = vperm.slane %v10039_v48, 2 }
 0x7df   :  { %v6279_v0 = vsub.f32 1.0, %v6278_v60  ;;  %v6552_v54 = vpop.f32.mrf.mxu0  ;;  %8485 = vtanh.f32 %v6318_v1  ;;  %6794 = vmatpush.msra.mxu3 %v6460_v50  ;;  %6749 = vmatpush.msra.mxu1 %v6453_v8  ;;  %v6429_v60 = vld [vmem:[#allocation8 + $0x320] sm:$0xff]  ;;  %v6528_v13 = vperm.slane %v10039_v48, 5 }
 0x7e0   :  { %6727 = vmatpush.msra.mxu0 %v6351_v26  ;;  %6775 = vmatpush.msra.mxu2 %v6340_v52 }
 0x7e1   :  { %v6280_v49 = vmul.f32 %v9997_v19, %v6279_v0  ;;  %6795 = vmatpush.msra.mxu3 %v6454_v5  ;;  %6750 = vmatpush.msra.mxu1 %v6447_v4 }
 0x7e2   :  { %v10007_v15 = vpop.eup %8481  ;;  %6728 = vmatpush.msra.mxu0 %v6345_v53  ;;  %6776 = vmatpush.msra.mxu2 %v6334_v59  ;;  %v6527_v53 = vperm.slane %v10039_v48, 4  ;;  %v6983_v59 = vld [vmem:[#allocation11 + $0x70] sm:$0xff] }
 0x7e3   :  { %v6281_v37 = vadd.f32 %v9997_v19, %v6280_v49  ;;  %v6293_v6 = vmul.f32 %v10007_v15, %v9995_v51  ;;  %v8484_v2 = vpop.eup %8483  ;;  %vm6298_vm14 = vweird.f32 %v10007_v15  ;;  %6796 = vmatpush.msra.mxu3 %v6448_v3  ;;  %6751 = vmatpush.msra.mxu1 %v6441_v43  ;;  %v6981_v3 = vld [vmem:[#allocation11 + $0x60] sm:$0xff] }
 0x7e4   :  { %6729 = vmatpush.msra.mxu0 %v6339_v36  ;;  %vm6299_vm0 = vmor %vm6297_vm15, %vm6298_vm14  ;;  %v6526_v36 = vperm.slane %v10039_v48, 3  ;;  %v6977_v43 = vld [vmem:[#allocation11 + $0x40] sm:$0xff] }
 0x7e5   :  { %v6285_v18 = vsel %vm10015_vm12, %v9997_v19, %v6281_v37  ;;  %v6294_v22 = vsub.f32 1.0, %v6293_v6  ;;  %v6574_v46 = vpop.f32.mrf.mxu1  ;;  %v6596_v31 = vpop.f32.mrf.mxu2  ;;  %6797 = vmatpush.msra.mxu3 %v6442_v9  ;;  %6752 = vmatpush.msra.mxu1 %v6435_v58  ;;  %v6809_v58 = vlaneseq }
 0x7e6   :  { %v6290_v29 = vsel %vm6287_vm13, %v6289_v23, %v6285_v18  ;;  %6730 = vmatpush.msra.mxu0 %v6333_v7  ;;  %v8486_v34 = vpop.eup %8485 }
 0x7e7   :  { %v6321_v17 = vmul.f32 %v8484_v2, %v6290_v29  ;;  %v6295_v16 = vmul.f32 %v10007_v15, %v6294_v22  ;;  %6798 = vmatpush.msra.mxu3 %v6436_v47  ;;  %6753 = vmatpush.msra.mxu1 %v6429_v60  ;;  %v6810_v47 = vand.u32 127, %v6809_v58 }
 0x7e9   :  { %6323 = vst [vmem:[#allocation2 + $0x18] sm:$0xc0] %v6321_v17  ;;  %v6296_v39 = vadd.f32 %v10007_v15, %v6295_v16  ;;  %6799 = vmatpush.msra.mxu3 %v6430_v25  ;;  %v6524_v16 = vperm.slane %v10039_v48, 1  ;;  %v6815_v60 = vand.u32 1, %v6810_v47  ;;  %v6824_v25 = vshrl.u32 %v6809_v58, 7 }
 0x7eb   :  { %v6300_v20 = vsel %vm6299_vm0, %v10007_v15, %v6296_v39  ;;  %v6618_v19 = vpop.f32.mrf.mxu3  ;;  %vm10094_vm3 = vcmp.eq.s32.totalorder %v6815_v60, %v6824_v25 }
 0x7ec   :  { %v6305_v51 = vsel %vm6302_vm1, %v6304_v42, %v6300_v20  ;;  %v6979_v42 = vld [vmem:[#allocation11 + $0x50] sm:$0xff] }
 0x7ed   :  { %v6322_v44 = vmul.f32 %v8486_v34, %v6305_v51 }
 0x7ef   :  { %6324 = vst [vmem:[#allocation2 + $0x8] sm:$0xc0] %v6322_v44 }
 0x7f0   :  { %v6327_v30 = vld [vmem:[#allocation2 + $0x18] sm:$0xff] }
 0x7f1   :  { %6553 = vmatmul.f32.gmra.mxu0 %v6327_v30  ;;  %6597 = vmatmul.f32.gmra.mxu2 %v6327_v30 }
 0x7f6   :  { %v6328_v40 = vld [vmem:[#allocation2 + $0x8] sm:$0xff] }
 0x7f7   :  { %6575 = vmatmul.f32.gmra.mxu1 %v6328_v40  ;;  %6619 = vmatmul.f32.gmra.mxu3 %v6328_v40 }
 0x7f9   :  { %6639 = vmatmul.f32.vlgmr.msrb.gmra.mxu0 %v9864_v33  ;;  %6685 = vmatmul.f32.vlgmr.msrb.gmra.mxu2 %v9864_v33 }
 0x7ff   :  { %6662 = vmatmul.f32.vlgmr.msrb.gmra.mxu1 %v9868_v14  ;;  %6708 = vmatmul.f32.vlgmr.msrb.gmra.mxu3 %v9868_v14 }
 0x801   :  { %6642 = vmatmul.f32.gmra.mxu0 %v6327_v30  ;;  %6688 = vmatmul.f32.gmra.mxu2 %v6327_v30 }
 0x807   :  { %6665 = vmatmul.f32.gmra.mxu1 %v6328_v40  ;;  %6711 = vmatmul.f32.gmra.mxu3 %v6328_v40 }
 0x809   :  { %6731 = vmatmul.f32.vlgmr.msra.gmra.mxu0 %v9864_v33  ;;  %6777 = vmatmul.f32.vlgmr.msra.gmra.mxu2 %v9864_v33 }
 0x80f   :  { %6754 = vmatmul.f32.vlgmr.msra.gmra.mxu1 %v9868_v14  ;;  %6800 = vmatmul.f32.vlgmr.msra.gmra.mxu3 %v9868_v14 }
 0x811   :  { %6734 = vmatmul.f32.gmra.mxu0 %v6327_v30  ;;  %6780 = vmatmul.f32.gmra.mxu2 %v6327_v30 }
 0x817   :  { %6757 = vmatmul.f32.gmra.mxu1 %v6328_v40  ;;  %6803 = vmatmul.f32.gmra.mxu3 %v6328_v40 }
 0x86e   :  { %v6554_v10 = vpop.f32.mrf.mxu0 }
 0x86f   :  { %v6555_v0 = vadd.f32 %v6554_v10, %v6523_v21 }
 0x874   :  { %v6576_v54 = vpop.f32.mrf.mxu1  ;;  %v6598_v35 = vpop.f32.mrf.mxu2 }
 0x875   :  { %v6577_v41 = vadd.f32 %v6576_v54, %v6555_v0  ;;  %v6599_v61 = vadd.f32 %v6598_v35, %v6524_v16 }
 0x876   :  { %v6640_v11 = vpop.f32.mrf.mxu0 }
 0x877   :  { %v6807_v32 = vmul.f32 0.17677669, %v6577_v41  ;;  %v6641_v37 = vadd.f32 %v6640_v11, %v6525_v12 }
 0x879   :  { %v10042_v33 = vrot.slane %v6807_v32, 6 }
 0x87a   :  { %v6620_v28 = vpop.f32.mrf.mxu3 }
 0x87b   :  { %6902 = vrot.lane.b32.xlu1 %v10042_v33, %s8709_s3  ;;  %v6621_v52 = vadd.f32 %v6620_v28, %v6599_v61 }
 0x87c   :  { %v6663_v14 = vpop.f32.mrf.mxu1  ;;  %v6686_v45 = vpop.f32.mrf.mxu2 }
 0x87d   :  { %v6664_v6 = vadd.f32 %v6663_v14, %v6641_v37  ;;  %v6808_v5 = vmul.f32 0.17677669, %v6621_v52  ;;  %v6687_v4 = vadd.f32 %v6686_v45, %v6526_v36 }
 0x87e   :  { %v6643_v49 = vpop.f32.mrf.mxu0 }
 0x87f   :  { %v6644_v57 = vadd.f32 %v6643_v49, %v6525_v12  ;;  %v10079_v7 = vrot.slane %v6808_v5, 6 }
 0x882   :  { %v6709_v24 = vpop.f32.mrf.mxu3 }
 0x883   :  { %v10083_v39 = vadd.f32 %v6709_v24, %v6687_v4 }
 0x884   :  { %v6666_v15 = vpop.f32.mrf.mxu1  ;;  %v6689_v1 = vpop.f32.mrf.mxu2 }
 0x885   :  { %v10047_v26 = vadd.f32 %v6666_v15, %v6644_v57  ;;  %v6690_v8 = vadd.f32 %v6689_v1, %v6526_v36 }
 0x886   :  { %v6732_v56 = vpop.f32.mrf.mxu0 }
 0x887   :  { %6906 = vrot.lane.b32.xlu0 %v10047_v26, %s8709_s3  ;;  %8129 = vmatpush.xpose.msk.msrb.mxu0 %vm6828_vm2, %v10047_v26  ;;  %v6733_v46 = vadd.f32 %v6732_v56, %v6527_v53 }
 0x88a   :  { %v6712_v38 = vpop.f32.mrf.mxu3 }
 0x88b   :  { %8130 = vmatpush.xpose.msk.msrb.mxu0 %vm6828_vm2, %v6664_v6  ;;  %v10072_v17 = vadd.f32 %v6712_v38, %v6690_v8 }
 0x88c   :  { %v6755_v27 = vpop.f32.mrf.mxu1  ;;  %v6778_v23 = vpop.f32.mrf.mxu2 }
 0x88d   :  { %v6779_v18 = vadd.f32 %v6778_v23, %v6528_v13  ;;  %v6756_v2 = vadd.f32 %v6755_v27, %v6733_v46 }
 0x88e   :  { %8131 = vmatmul.msk.f32.vlgmr.msrb.gmra.mxu0 %vm6828_vm2, %v10042_v33  ;;  %v6735_v55 = vpop.f32.mrf.mxu0 }
 0x88f   :  { %6904 = vrot.lane.b32.xlu0 %v6664_v6, %s8709_s3  ;;  %v6736_v31 = vadd.f32 %v6735_v55, %v6527_v53  ;;  %7000 = vmatpush.msra.mxu0 %v6983_v59 }
 0x891   :  { %7001 = vmatpush.msra.mxu0 %v6981_v3 }
 0x892   :  { %v6801_v22 = vpop.f32.mrf.mxu3 }
 0x893   :  { %v10061_v62 = vadd.f32 %v6801_v22, %v6779_v18  ;;  %7002 = vmatpush.msra.mxu0 %v6979_v42 }
 0x894   :  { %v6758_v50 = vpop.f32.mrf.mxu1  ;;  %v10092_v44 = vpop.f32.mrf.mxu2 }
 0x895   :  { %v6759_v29 = vadd.f32 %v6758_v50, %v6736_v31  ;;  %7003 = vmatpush.msra.mxu0 %v6977_v43 }
 0x897   :  { %6888 = vmatpush.msrb.mxu1 %v6759_v29  ;;  %7075 = vrot.lane.b32.xlu0 %v10047_v26, %s8697_s24  ;;  %v10065_v63 = vpack.i.bf16 %v6756_v2, %v6759_v29 }
 0x899   :  { %6889 = vmatpush.msrb.mxu1 %v6756_v2 }
 0x89a   :  { %v10125_v1 = vpop.f32.mrf.mxu3 }
 0x89f   :  { %7073 = vrot.lane.b32.xlu0 %v6664_v6, %s8697_s24 }
 0x8a7   :  { %7071 = vrot.lane.b32.xlu0 %v10042_v33, %s8697_s24 }
 0x8af   :  { %7199 = vrot.lane.b32.xlu0 %v6664_v6, %s8710_s26 }
 0x8b7   :  { %7445 = vrot.lane.b32.xlu0 %v10072_v17, %s8709_s3 }
 0x8bf   :  { %7573 = vrot.lane.b32.xlu0 %v10072_v17, %s8697_s24 }
 0x8c7   :  { %7569 = vrot.lane.b32.xlu0 %v10079_v7, %s8697_s24 }
 0x8cf   :  { %7697 = vrot.lane.b32.xlu0 %v10083_v39, %s8710_s26 }
 0x8ed   :  { %v6903_v9 = vpop.permute.xlu1 %6902 }
 0x8f9   :  { %v6907_v20 = vpop.permute.xlu0 %6906 }
 0x8fa   :  { %8133 = vmatpush.xpose.msk.msrb.mxu2 %vm6828_vm2, %v6907_v20 }
 0x901   :  { %v6905_v19 = vpop.permute.xlu0 %6904 }
 0x902   :  { %8134 = vmatpush.xpose.msk.msrb.mxu2 %vm6828_vm2, %v6905_v19 }
 0x905   :  { %8135 = vmatmul.msk.f32.vlgmr.msrb.gmra.mxu2 %vm6828_vm2, %v6903_v9 }
 0x909   :  { %v7076_v34 = vpop.permute.xlu0 %7075 }
 0x90a   :  { %8141 = vmatpush.xpose.msk.msrb.mxu0 %vm6828_vm2, %v7076_v34 }
 0x90b   :  { %v6854_v0 = vpop.f32.mrf.mxu0 }
 0x90c   :  { %v10105_v54 = vsel %vm10094_vm3, %v6854_v0, -1e+30  ;;  %v6980_v0 = vld [vmem:[#allocation11 + $0x58] sm:$0xff] }
 0x90d   :  { %v6859_v35 = vsel %vm6858_vm4, %v10105_v54, -inf }
 0x911   :  { %v7074_v51 = vpop.permute.xlu0 %7073 }
 0x912   :  { %8142 = vmatpush.xpose.msk.msrb.mxu0 %vm6828_vm2, %v7074_v51 }
 0x919   :  { %v7072_v15 = vpop.permute.xlu0 %7071 }
 0x921   :  { %v7200_v56 = vpop.permute.xlu0 %7199 }
 0x929   :  { %v7446_v38 = vpop.permute.xlu0 %7445 }
 0x931   :  { %v7574_v23 = vpop.permute.xlu0 %7573 }
 0x939   :  { %v7570_v55 = vpop.permute.xlu0 %7569 }
 0x941   :  { %v7698_v46 = vpop.permute.xlu0 %7697 }
 0x988   :  { %v6931_v40 = vpop.f32.mrf.mxu2 }
 0x989   :  { %v6934_v10 = vsel %vm10094_vm3, %v6931_v40, -1e+30  ;;  %v6984_v40 = vld [vmem:[#allocation11 + $0x78] sm:$0xff] }
 0x98a   :  { %v6935_v21 = vsel %vm6858_vm4, %v6934_v10, -inf  ;;  %7020 = vmatpush.msra.mxu1 %v6984_v40 }
 0x98b   :  { %6936 = vmax.xlane.f32.xlu1 %v6935_v21 }
 0x9a4   :  { %7441 = vrot.lane.b32.xlu1 %v10079_v7, %s8709_s3 }
 0x9ce   :  { %6860 = vmax.xlane.f32.xlu1 %v6859_v35  ;;  %v6978_v35 = vld [vmem:[#allocation11 + $0x48] sm:$0xff] }
 0x9fe   :  { %v6937_v41 = vpop.xlane.xlu1 %6936 }
 0x9ff   :  { %v6938_v11 = vsub.f32 %v6934_v10, %v6937_v41  ;;  %v6982_v10 = vld [vmem:[#allocation11 + $0x68] sm:$0xff] }
 0xa00   :  { %7021 = vmatpush.msra.mxu1 %v6982_v10 }
 0xa01   :  { %v6939_v32 = vmul.f32 1.442695, %v6938_v11 }
 0xa02   :  { %7022 = vmatpush.msra.mxu1 %v6980_v0 }
 0xa03   :  { %8487 = vpow2.f32 %v6939_v32 }
 0xa04   :  { %7023 = vmatpush.msra.mxu1 %v6978_v35 }
 0xa09   :  { %v8488_v28 = vpop.eup %8487 }
 0xa0a   :  { %v6941_v14 = vsel %vm6858_vm4, %v8488_v28, 0.0 }
 0xa0b   :  { %6942 = vadd.xlane.f32.xlu2 %v6941_v14 }
 0xa16   :  { %v7442_v18 = vpop.permute.xlu1 %7441 }
 0xa23   :  { %8197 = vrot.lane.b32.xlu2 %v10065_v63, %s8709_s3 }
 0xa2b   :  { %7201 = vrot.lane.b32.xlu2 %v10047_v26, %s8710_s26 }
 0xa33   :  { %7197 = vrot.lane.b32.xlu2 %v10042_v33, %s8710_s26 }
 0xa3b   :  { %7443 = vrot.lane.b32.xlu2 %v10083_v39, %s8709_s3 }
 0xa41   :  { %v6861_v8 = vpop.xlane.xlu1 %6860 }
 0xa42   :  { %v6862_v16 = vsub.f32 %v10105_v54, %v6861_v8 }
 0xa43   :  { %7571 = vrot.lane.b32.xlu2 %v10083_v39, %s8697_s24 }
 0xa44   :  { %v6863_v5 = vmul.f32 1.442695, %v6862_v16 }
 0xa4b   :  { %7699 = vrot.lane.b32.xlu2 %v10072_v17, %s8710_s26 }
 0xa53   :  { %7695 = vrot.lane.b32.xlu2 %v10079_v7, %s8710_s26 }
 0xa7e   :  { %v6943_v45 = vpop.xlane.xlu2 %6942 }
 0xa7f   :  { %8489 = vrcp.f32 %v6943_v45 }
 0xa80   :  { %8491 = vpow2.f32 %v6863_v5  ;;  %v6901_v5 = vld [vmem:[#allocation11 + $0x38] sm:$0xff] }
 0xa85   :  { %v8490_v12 = vpop.eup %8489 }
 0xa86   :  { %v8198_v49 = vpop.permute.xlu2 %8197  ;;  %v6945_v33 = vmul.f32 %v8490_v12, %v8488_v28  ;;  %v8492_v59 = vpop.eup %8491 }
 0xa87   :  { %v8199_v24 = vunpack.i.l.bf16 %v8198_v49  ;;  %v8200_v57 = vunpack.i.h.bf16 %v8198_v49  ;;  %v6865_v20 = vsel %vm6858_vm4, %v8492_v59, 0.0 }
 0xa89   :  { %6971 = vmatpush.msrb.mxu3 %v8199_v24 }
 0xa8b   :  { %6972 = vmatpush.msrb.mxu3 %v8200_v57  ;;  %v6782_v57 = vadd.f32 %v10092_v44, %v6528_v13 }
 0xa8c   :  { %8136 = vmatmul.msk.f32.vlgmr.msrb.gmra.mxu3 %vm6870_vm5, %v6945_v33 }
 0xa8d   :  { %7063 = vmatpush.msra.mxu3 %v6901_v5 }
 0xa8e   :  { %v7202_v26 = vpop.permute.xlu2 %7201 }
 0xa96   :  { %v7198_v6 = vpop.permute.xlu2 %7197 }
 0xa9e   :  { %v7444_v27 = vpop.permute.xlu2 %7443 }
 0xaa6   :  { %v7572_v53 = vpop.permute.xlu2 %7571 }
 0xaae   :  { %v7700_v22 = vpop.permute.xlu2 %7699 }
 0xab6   :  { %v7696_v31 = vpop.permute.xlu2 %7695 }
 0xb0f   :  { %v10127_v37 = vpop.f32.mrf.mxu3 }
 0xb10   :  { %8137 = vmatmul.msk.f32.vlgmr.msra.gmra.mxu0 %vm6828_vm2, %v10127_v37 }
 0xb11   :  { %8147 = vmatpush.xpose.msk.msra.mxu0 %vm6828_vm2, %v7202_v26  ;;  %v10196_v26 = vadd.f32 %v10125_v1, %v6782_v57 }
 0xb15   :  { %8148 = vmatpush.xpose.msk.msra.mxu0 %vm6828_vm2, %v7200_v56 }
 0xb18   :  { %8143 = vmatmul.msk.f32.vlgmr.msrb.gmra.mxu0 %vm6828_vm2, %v7072_v15 }
 0xb19   :  { %8153 = vmatpush.xpose.msk.msrb.mxu0 %vm6828_vm2, %v10072_v17 }
 0xb1d   :  { %8154 = vmatpush.xpose.msk.msrb.mxu0 %vm6828_vm2, %v10083_v39 }
 0xb20   :  { %8149 = vmatmul.msk.f32.vlgmr.msra.gmra.mxu0 %vm6828_vm2, %v7198_v6 }
 0xb21   :  { %8159 = vmatpush.xpose.msk.msra.mxu0 %vm6828_vm2, %v7446_v38 }
 0xb25   :  { %8160 = vmatpush.xpose.msk.msra.mxu0 %vm6828_vm2, %v7444_v27  ;;  %v8211_v27 = vpack.i.bf16 %v10061_v62, %v10196_v26 }
 0xb28   :  { %8155 = vmatmul.msk.f32.vlgmr.msrb.gmra.mxu0 %vm6828_vm2, %v10079_v7 }
 0xb29   :  { %8165 = vmatpush.xpose.msk.msrb.mxu0 %vm6828_vm2, %v7574_v23 }
 0xb2d   :  { %8166 = vmatpush.xpose.msk.msrb.mxu0 %vm6828_vm2, %v7572_v53 }
 0xb30   :  { %8161 = vmatmul.msk.f32.vlgmr.msra.gmra.mxu0 %vm6828_vm2, %v7442_v18 }
 0xb31   :  { %8171 = vmatpush.xpose.msk.msra.mxu0 %vm6828_vm2, %v7700_v22 }
 0xb35   :  { %8172 = vmatpush.xpose.msk.msra.mxu0 %vm6828_vm2, %v7698_v46 }
 0xb38   :  { %8167 = vmatmul.msk.f32.vlgmr.msrb.gmra.mxu0 %vm6828_vm2, %v7570_v55 }
 0xb40   :  { %8173 = vmatmul.msk.f32.vlgmr.msra.gmra.mxu0 %vm6828_vm2, %v7696_v31 }
 0xb8d   :  { %v10150_v50 = vpop.f32.mrf.mxu0 }
 0xb95   :  { %v7100_v2 = vpop.f32.mrf.mxu0 }
 0xb96   :  { %v7103_v29 = vsel %vm10094_vm3, %v7100_v2, -1e+30 }
 0xb97   :  { %v7104_v36 = vsel %vm6858_vm4, %v7103_v29, -inf }
 0xb98   :  { %7105 = vmax.xlane.f32.xlu0 %v7104_v36 }
 0xb9d   :  { %v7226_v17 = vpop.f32.mrf.mxu0 }
 0xb9e   :  { %v7229_v61 = vsel %vm10094_vm3, %v7226_v17, -1e+30 }
 0xb9f   :  { %v7230_v52 = vsel %vm6858_vm4, %v7229_v61, -inf }
 0xba0   :  { %7231 = vmax.xlane.f32.xlu2 %v7230_v52  ;;  %v6900_v52 = vld [vmem:[#allocation11 + $0x30] sm:$0xff] }
 0xba1   :  { %7043 = vmatpush.msra.mxu2 %v6900_v52  ;;  %v7523_v52 = vld [vmem:[#allocation11 + $0x178] sm:$0xff] }
 0xba5   :  { %v7350_v7 = vpop.f32.mrf.mxu0 }
 0xba6   :  { %v7353_v4 = vsel %vm10094_vm3, %v7350_v7, -1e+30  ;;  %v6898_v7 = vld [vmem:[#allocation11 + $0x20] sm:$0xff] }
 0xba7   :  { %v7354_v39 = vsel %vm6858_vm4, %v7353_v4, -inf  ;;  %7044 = vmatpush.msra.mxu2 %v6898_v7  ;;  %v7520_v7 = vld [vmem:[#allocation11 + $0x160] sm:$0xff] }
 0xba8   :  { %7355 = vmax.xlane.f32.xlu1 %v7354_v39  ;;  %v6896_v39 = vld [vmem:[#allocation11 + $0x10] sm:$0xff] }
 0xba9   :  { %7045 = vmatpush.msra.mxu2 %v6896_v39  ;;  %v7518_v39 = vld [vmem:[#allocation11 + $0x150] sm:$0xff] }
 0xbac   :  { %8207 = vrot.lane.b32.xlu0 %v10065_v63, %s8710_s26 }
 0xbad   :  { %v7470_v3 = vpop.f32.mrf.mxu0 }
 0xbae   :  { %v7473_v42 = vsel %vm10094_vm3, %v7470_v3, -1e+30 }
 0xbaf   :  { %v7474_v43 = vsel %vm6858_vm4, %v7473_v42, -inf }
 0xbb0   :  { %7475 = vmax.xlane.f32.xlu2 %v7474_v43  ;;  %6866 = vadd.xlane.f32.xlu1 %v6865_v20  ;;  %v6895_v43 = vld [vmem:[#allocation11 + $0x8] sm:$0xff] }
 0xbb5   :  { %v7598_v19 = vpop.f32.mrf.mxu0 }
 0xbb6   :  { %v10178_v58 = vsel %vm10094_vm3, %v7598_v19, -1e+30 }
 0xbb7   :  { %v7602_v47 = vsel %vm6858_vm4, %v10178_v58, -inf }
 0xbbd   :  { %v7724_v9 = vpop.f32.mrf.mxu0 }
 0xbbe   :  { %v10170_v34 = vsel %vm10094_vm3, %v7724_v9, -1e+30 }
 0xbbf   :  { %v7728_v51 = vsel %vm6858_vm4, %v10170_v34, -inf }
 0xbc0   :  { %7729 = vmax.xlane.f32.xlu2 %v7728_v51 }
 0xbc9   :  { %8202 = vrot.lane.b32.xlu1 %v10065_v63, %s8697_s24 }
 0xbd6   :  { %7603 = vmax.xlane.f32.xlu0 %v7602_v47 }
 0xc0b   :  { %v7106_v60 = vpop.xlane.xlu0 %7105 }
 0xc0c   :  { %v7107_v25 = vsub.f32 %v7103_v29, %v7106_v60 }
 0xc0e   :  { %v7108_v21 = vmul.f32 1.442695, %v7107_v25 }
 0xc10   :  { %8493 = vpow2.f32 %v7108_v21 }
 0xc13   :  { %v7232_v54 = vpop.xlane.xlu2 %7231 }
 0xc14   :  { %v7233_v63 = vsub.f32 %v7229_v61, %v7232_v54 }
 0xc16   :  { %v10182_v30 = vpop.eup %8493  ;;  %v7234_v41 = vmul.f32 1.442695, %v7233_v63 }
 0xc17   :  { %v7110_v11 = vsel %vm6858_vm4, %v10182_v30, 0.0 }
 0xc18   :  { %8495 = vpow2.f32 %v7234_v41  ;;  %7111 = vadd.xlane.f32.xlu0 %v7110_v11 }
 0xc1b   :  { %v7356_v32 = vpop.xlane.xlu1 %7355 }
 0xc1c   :  { %v7357_v28 = vsub.f32 %v7353_v4, %v7356_v32  ;;  %v6899_v4 = vld [vmem:[#allocation11 + $0x28] sm:$0xff] }
 0xc1d   :  { %7064 = vmatpush.msra.mxu3 %v6899_v4  ;;  %v7521_v4 = vld [vmem:[#allocation11 + $0x168] sm:$0xff] }
 0xc1e   :  { %v10186_v14 = vpop.eup %8495  ;;  %v7358_v45 = vmul.f32 1.442695, %v7357_v28  ;;  %v8208_v23 = vpop.permute.xlu0 %8207  ;;  %v7150_v28 = vld [vmem:[#allocation11 + $0xb0] sm:$0xff] }
 0xc1f   :  { %v7236_v49 = vsel %vm6858_vm4, %v10186_v14, 0.0  ;;  %v8209_v18 = vunpack.i.l.bf16 %v8208_v23  ;;  %v8210_v22 = vunpack.i.h.bf16 %v8208_v23  ;;  %v7272_v23 = vld [vmem:[#allocation11 + $0xd0] sm:$0xff] }
 0xc20   :  { %8497 = vpow2.f32 %v7358_v45  ;;  %7237 = vadd.xlane.f32.xlu2 %v7236_v49  ;;  %v7148_v45 = vld [vmem:[#allocation11 + $0xa0] sm:$0xff]  ;;  %v7149_v49 = vld [vmem:[#allocation11 + $0xa8] sm:$0xff] }
 0xc23   :  { %v7476_v12 = vpop.xlane.xlu2 %7475  ;;  %v6867_v24 = vpop.xlane.xlu1 %6866 }
 0xc24   :  { %v7477_v33 = vsub.f32 %v7473_v42, %v7476_v12  ;;  %8499 = vrcp.f32 %v6867_v24  ;;  %v6894_v42 = vld [vmem:[#allocation11] sm:$0xff]  ;;  %v7146_v12 = vld [vmem:[#allocation11 + $0x90] sm:$0xff]  ;;  %v7147_v24 = vld [vmem:[#allocation11 + $0x98] sm:$0xff] }
 0xc25   :  { %7046 = vmatpush.msra.mxu2 %v6894_v42  ;;  %v7517_v42 = vld [vmem:[#allocation11 + $0x148] sm:$0xff] }
 0xc26   :  { %v10193_v15 = vpop.eup %8497  ;;  %v7478_v56 = vmul.f32 1.442695, %v7477_v33 }
 0xc27   :  { %v7360_v6 = vsel %vm6858_vm4, %v10193_v15, 0.0  ;;  %7167 = vmatpush.msrb.mxu2 %v7150_v28  ;;  %v7845_v28 = vld [vmem:[%s10462_s8 + $0x70] sm:$0xff] }
 0xc28   :  { %8501 = vpow2.f32 %v7478_v56  ;;  %7361 = vadd.xlane.f32.xlu2 %v7360_v6 }
 0xc29   :  { %7168 = vmatpush.msrb.mxu2 %v7148_v45  ;;  %v7844_v45 = vld [vmem:[%s10462_s8 + $0x68] sm:$0xff] }
 0xc2a   :  { %v8500_v38 = vpop.eup %8499 }
 0xc2b   :  { %v6869_v48 = vmul.f32 %v8500_v38, %v8492_v59  ;;  %v6897_v59 = vld [vmem:[#allocation11 + $0x18] sm:$0xff]  ;;  %7169 = vmatpush.msrb.mxu2 %v7146_v12  ;;  %v7144_v38 = vld [vmem:[#allocation11 + $0x80] sm:$0xff] }
 0xc2c   :  { %8212 = vrot.lane.b32.xlu0 %v8211_v27, %s8709_s3  ;;  %7065 = vmatpush.msra.mxu3 %v6897_v59  ;;  %v7519_v59 = vld [vmem:[#allocation11 + $0x158] sm:$0xff] }
 0xc2d   :  { %8132 = vmatmul.msk.f32.vlgmr.msrb.gmra.mxu1 %vm6870_vm5, %v6869_v48  ;;  %7170 = vmatpush.msrb.mxu2 %v7144_v38  ;;  %v7276_v48 = vld [vmem:[#allocation11 + $0xf0] sm:$0xff] }
 0xc2e   :  { %v10204_v13 = vpop.eup %8501  ;;  %7066 = vmatpush.msra.mxu3 %v6895_v43  ;;  %v7648_v43 = vld [vmem:[#allocation11 + $0x1b0] sm:$0xff] }
 0xc2f   :  { %v7480_v44 = vsel %vm6858_vm4, %v10204_v13, 0.0  ;;  %v7843_v12 = vld [vmem:[%s10462_s8 + $0x60] sm:$0xff] }
 0xc30   :  { %7481 = vadd.xlane.f32.xlu2 %v7480_v44  ;;  %v7274_v44 = vld [vmem:[#allocation11 + $0xe0] sm:$0xff]  ;;  %v7839_v38 = vld [vmem:[%s10462_s8 + $0x40] sm:$0xff] }
 0xc33   :  { %v7730_v46 = vpop.xlane.xlu2 %7729 }
 0xc34   :  { %v7731_v31 = vsub.f32 %v10170_v34, %v7730_v46  ;;  %v7394_v46 = vld [vmem:[#allocation11 + $0x130] sm:$0xff] }
 0xc35   :  { %8138 = vmatmul.msk.f32.vlgmr.msra.gmra.mxu1 %vm6828_vm2, %v10127_v37 }
 0xc36   :  { %v7732_v2 = vmul.f32 1.442695, %v7731_v31  ;;  %v7395_v31 = vld [vmem:[#allocation11 + $0x138] sm:$0xff] }
 0xc38   :  { %8503 = vpow2.f32 %v7732_v2 }
 0xc3b   :  { %v8203_v1 = vpop.permute.xlu1 %8202 }
 0xc3c   :  { %v8204_v53 = vunpack.i.l.bf16 %v8203_v1  ;;  %v8205_v55 = vunpack.i.h.bf16 %v8203_v1  ;;  %v7275_v1 = vld [vmem:[#allocation11 + $0xe8] sm:$0xff] }
 0xc3e   :  { %7138 = vmatpush.msrb.mxu1 %v8204_v53  ;;  %v10214_v8 = vpop.eup %8503  ;;  %v7273_v53 = vld [vmem:[#allocation11 + $0xd8] sm:$0xff] }
 0xc3f   :  { %v7734_v16 = vsel %vm6858_vm4, %v10214_v8, 0.0 }
 0xc40   :  { %7139 = vmatpush.msrb.mxu1 %v8205_v55  ;;  %v7270_v55 = vld [vmem:[#allocation11 + $0xc0] sm:$0xff] }
 0xc42   :  { %7264 = vmatpush.msra.mxu1 %v8209_v18  ;;  %v7271_v18 = vld [vmem:[#allocation11 + $0xc8] sm:$0xff] }
 0xc44   :  { %7265 = vmatpush.msra.mxu1 %v8210_v22 }
 0xc48   :  { %8217 = vrot.lane.b32.xlu2 %v8211_v27, %s8697_s24 }
 0xc49   :  { %v7604_v29 = vpop.xlane.xlu0 %7603 }
 0xc4a   :  { %v7605_v36 = vsub.f32 %v10178_v58, %v7604_v29  ;;  %v7392_v29 = vld [vmem:[#allocation11 + $0x120] sm:$0xff] }
 0xc4c   :  { %v7606_v37 = vmul.f32 1.442695, %v7605_v36  ;;  %v7393_v36 = vld [vmem:[#allocation11 + $0x128] sm:$0xff] }
 0xc4e   :  { %8505 = vpow2.f32 %v7606_v37  ;;  %v7390_v37 = vld [vmem:[#allocation11 + $0x110] sm:$0xff] }
 0xc50   :  { %8222 = vrot.lane.b32.xlu2 %v8211_v27, %s8710_s26  ;;  %v7145_v27 = vld [vmem:[#allocation11 + $0x88] sm:$0xff] }
 0xc54   :  { %v10216_v17 = vpop.eup %8505 }
 0xc55   :  { %v7608_v61 = vsel %vm6858_vm4, %v10216_v17, 0.0 }
 0xc56   :  { %7735 = vadd.xlane.f32.xlu0 %v7734_v16  ;;  %7609 = vadd.xlane.f32.xlu1 %v7608_v61  ;;  %v7389_v16 = vld [vmem:[#allocation11 + $0x108] sm:$0xff]  ;;  %v7522_v61 = vld [vmem:[#allocation11 + $0x170] sm:$0xff] }
 0xc8b   :  { %v7112_v3 = vpop.xlane.xlu0 %7111 }
 0xc8c   :  { %8507 = vrcp.f32 %v7112_v3  ;;  %v7516_v3 = vld [vmem:[#allocation11 + $0x140] sm:$0xff] }
 0xc92   :  { %v8508_v20 = vpop.eup %8507 }
 0xc93   :  { %v7114_v19 = vmul.f32 %v8508_v20, %v10182_v30  ;;  %v7238_v9 = vpop.xlane.xlu2 %7237  ;;  %v7649_v20 = vld [vmem:[#allocation11 + $0x1b8] sm:$0xff] }
 0xc94   :  { %8509 = vrcp.f32 %v7238_v9  ;;  %v7646_v9 = vld [vmem:[#allocation11 + $0x1a0] sm:$0xff] }
 0xc95   :  { %8144 = vmatmul.msk.f32.vlgmr.msrb.gmra.mxu1 %vm6870_vm5, %v7114_v19 }
 0xc96   :  { %7382 = vmatpush.msrb.mxu1 %v10196_v26 }
 0xc98   :  { %7383 = vmatpush.msrb.mxu1 %v10061_v62 }
 0xc9a   :  { %v8510_v34 = vpop.eup %8509 }
 0xc9b   :  { %v7240_v51 = vmul.f32 %v8510_v34, %v10186_v14  ;;  %v7362_v58 = vpop.xlane.xlu2 %7361  ;;  %v7151_v14 = vld [vmem:[#allocation11 + $0xb8] sm:$0xff]  ;;  %v7647_v34 = vld [vmem:[#allocation11 + $0x1a8] sm:$0xff] }
 0xc9c   :  { %8511 = vrcp.f32 %v7362_v58  ;;  %7187 = vmatpush.msrb.mxu3 %v7151_v14  ;;  %v7645_v58 = vld [vmem:[#allocation11 + $0x198] sm:$0xff]  ;;  %v7861_v14 = vld [vmem:[%s10462_s8 + $0xf0] sm:$0xff] }
 0xc9d   :  { %8150 = vmatmul.msk.f32.vlgmr.msra.gmra.mxu1 %vm6870_vm5, %v7240_v51  ;;  %v7644_v51 = vld [vmem:[#allocation11 + $0x190] sm:$0xff] }
 0xc9e   :  { %v8213_v47 = vpop.permute.xlu0 %8212  ;;  %7188 = vmatpush.msrb.mxu3 %v7149_v49  ;;  %v7860_v49 = vld [vmem:[%s10462_s8 + $0xe8] sm:$0xff] }
 0xc9f   :  { %v8214_v60 = vunpack.i.l.bf16 %v8213_v47  ;;  %v8215_v25 = vunpack.i.h.bf16 %v8213_v47 }
 0xca0   :  { %7189 = vmatpush.msrb.mxu3 %v7147_v24  ;;  %v7859_v24 = vld [vmem:[%s10462_s8 + $0xe0] sm:$0xff] }
 0xca1   :  { %7510 = vmatpush.msra.mxu1 %v8214_v60  ;;  %v7642_v60 = vld [vmem:[#allocation11 + $0x180] sm:$0xff] }
 0xca2   :  { %v8512_v40 = vpop.eup %8511  ;;  %7190 = vmatpush.msrb.mxu3 %v7145_v27  ;;  %v7855_v27 = vld [vmem:[%s10462_s8 + $0xc0] sm:$0xff] }
 0xca3   :  { %v7364_v10 = vmul.f32 %v8512_v40, %v10193_v15  ;;  %v7482_v21 = vpop.xlane.xlu2 %7481  ;;  %7511 = vmatpush.msra.mxu1 %v8215_v25  ;;  %v7643_v25 = vld [vmem:[#allocation11 + $0x188] sm:$0xff]  ;;  %v7774_v40 = vld [vmem:[#allocation11 + $0x1f0] sm:$0xff] }
 0xca4   :  { %8513 = vrcp.f32 %v7482_v21  ;;  %v7772_v21 = vld [vmem:[#allocation11 + $0x1e0] sm:$0xff] }
 0xca5   :  { %8156 = vmatmul.msk.f32.vlgmr.msrb.gmra.mxu1 %vm6870_vm5, %v7364_v10  ;;  %v7775_v10 = vld [vmem:[#allocation11 + $0x1f8] sm:$0xff] }
 0xcaa   :  { %v8514_v62 = vpop.eup %8513  ;;  %v6891_v0 = vpop.f32.mrf.mxu1 }
 0xcab   :  { %v7484_v54 = vmul.f32 %v8514_v62, %v10204_v13  ;;  %v8218_v63 = vpop.permute.xlu2 %8217  ;;  %8139 = vmatmul.msk.f32.vlgmr.msra.gmra.mxu2 %vm6828_vm2, %v6891_v0  ;;  %8140 = vmatmul.msk.f32.vlgmr.msra.gmra.mxu3 %vm6828_vm2, %v6891_v0  ;;  %v7277_v13 = vld [vmem:[#allocation11 + $0xf8] sm:$0xff]  ;;  %v7773_v62 = vld [vmem:[#allocation11 + $0x1e8] sm:$0xff]  ;;  %v7770_v0 = vld [vmem:[#allocation11 + $0x1d0] sm:$0xff] }
 0xcac   :  { %v8219_v35 = vunpack.i.l.bf16 %v8218_v63  ;;  %v8220_v30 = vunpack.i.h.bf16 %v8218_v63  ;;  %7293 = vmatpush.msra.mxu2 %v7276_v48  ;;  %7313 = vmatpush.msra.mxu3 %v7277_v13  ;;  %v7768_v63 = vld [vmem:[#allocation11 + $0x1c0] sm:$0xff] }
 0xcad   :  { %8162 = vmatmul.msk.f32.vlgmr.msra.gmra.mxu1 %vm6870_vm5, %v7484_v54  ;;  %v7771_v54 = vld [vmem:[#allocation11 + $0x1d8] sm:$0xff] }
 0xcae   :  { %7636 = vmatpush.msrb.mxu1 %v8219_v35  ;;  %7294 = vmatpush.msra.mxu2 %v7274_v44  ;;  %v7769_v35 = vld [vmem:[#allocation11 + $0x1c8] sm:$0xff] }
 0xcaf   :  { %7314 = vmatpush.msra.mxu3 %v7275_v1 }
 0xcb0   :  { %7637 = vmatpush.msrb.mxu1 %v8220_v30  ;;  %7295 = vmatpush.msra.mxu2 %v7272_v23  ;;  %v7838_v23 = vld [vmem:[%s10462_s8 + $0x38] sm:$0xff] }
 0xcb1   :  { %7315 = vmatpush.msra.mxu3 %v7273_v53  ;;  %v7854_v53 = vld [vmem:[%s10462_s8 + $0xb8] sm:$0xff] }
 0xcb2   :  { %7296 = vmatpush.msra.mxu2 %v7270_v55  ;;  %v10238_v22 = vpop.f32.mrf.mxu1  ;;  %v7837_v55 = vld [vmem:[%s10462_s8 + $0x30] sm:$0xff] }
 0xcb3   :  { %v8223_v41 = vpop.permute.xlu2 %8222  ;;  %7316 = vmatpush.msra.mxu3 %v7271_v18  ;;  %v7853_v18 = vld [vmem:[%s10462_s8 + $0xb0] sm:$0xff] }
 0xcb4   :  { %v8224_v11 = vunpack.i.l.bf16 %v8223_v41  ;;  %v8225_v32 = vunpack.i.h.bf16 %v8223_v41 }
 0xcb6   :  { %7762 = vmatpush.msra.mxu1 %v8224_v11  ;;  %v7846_v11 = vld [vmem:[%s10462_s8 + $0x78] sm:$0xff] }
 0xcb7   :  { %7867 = vmatpush.msrb.mxu0 %v7846_v11  ;;  %v7821_v11 = vld [vmem:[%s10461_s7] sm:$0x3] }
 0xcb8   :  { %7763 = vmatpush.msra.mxu1 %v8225_v32  ;;  %v7862_v32 = vld [vmem:[%s10462_s8 + $0xf8] sm:$0xff] }
 0xcb9   :  { %7868 = vmatpush.msrb.mxu0 %v7845_v28 }
 0xcbb   :  { %7869 = vmatpush.msrb.mxu0 %v7844_v45 }
 0xcbd   :  { %7870 = vmatpush.msrb.mxu0 %v7843_v12  ;;  %v7824_v12 = vperm.slane %v7821_v11, 1 }
 0xcc9   :  { %v7610_v57 = vpop.xlane.xlu1 %7609  ;;  %v7736_v33 = vpop.xlane.xlu0 %7735 }
 0xcca   :  { %8515 = vrcp.f32 %v7610_v57  ;;  %v7842_v57 = vld [vmem:[%s10462_s8 + $0x58] sm:$0xff] }
 0xccb   :  { %8517 = vrcp.f32 %v7736_v33  ;;  %v7858_v33 = vld [vmem:[%s10462_s8 + $0xd8] sm:$0xff]  ;;  %7871 = vmatpush.msrb.mxu0 %v7842_v57 }
 0xcd0   :  { %v8516_v15 = vpop.eup %8515 }
 0xcd1   :  { %v7612_v26 = vmul.f32 %v8516_v15, %v10216_v17  ;;  %v8518_v56 = vpop.eup %8517  ;;  %v7388_v17 = vld [vmem:[#allocation11 + $0x100] sm:$0xff] }
 0xcd2   :  { %v7738_v6 = vmul.f32 %v8518_v56, %v10214_v8  ;;  %v7391_v8 = vld [vmem:[#allocation11 + $0x118] sm:$0xff]  ;;  %v7841_v15 = vld [vmem:[%s10462_s8 + $0x50] sm:$0xff] }
 0xcd3   :  { %8168 = vmatmul.msk.f32.vlgmr.msrb.gmra.mxu1 %vm6870_vm5, %v7612_v26  ;;  %v7857_v26 = vld [vmem:[%s10462_s8 + $0xd0] sm:$0xff]  ;;  %v7840_v56 = vld [vmem:[%s10462_s8 + $0x48] sm:$0xff]  ;;  %7872 = vmatpush.msrb.mxu0 %v7841_v15 }
 0xcd4   :  { %7887 = vmatpush.msrb.mxu1 %v7862_v32 }
 0xcd5   :  { %7873 = vmatpush.msrb.mxu0 %v7840_v56 }
 0xcd6   :  { %7888 = vmatpush.msrb.mxu1 %v7861_v14 }
 0xcd7   :  { %7874 = vmatpush.msrb.mxu0 %v7839_v38 }
 0xcd8   :  { %7889 = vmatpush.msrb.mxu1 %v7860_v49  ;;  %v7823_v49 = vperm.slane %v7821_v11, 0 }
 0xcd9   :  { %7875 = vmatpush.msrb.mxu0 %v7838_v23  ;;  %v7955_v23 = vld [vmem:[%s10466_s12 + $0x30] sm:$0xff] }
 0xcda   :  { %7890 = vmatpush.msrb.mxu1 %v7859_v24 }
 0xcdb   :  { %8174 = vmatmul.msk.f32.vlgmr.msra.gmra.mxu1 %vm6870_vm5, %v7738_v6  ;;  %v7856_v6 = vld [vmem:[%s10462_s8 + $0xc8] sm:$0xff]  ;;  %7876 = vmatpush.msrb.mxu0 %v7837_v55  ;;  %v7953_v55 = vld [vmem:[%s10466_s12 + $0x20] sm:$0xff] }
 0xcdc   :  { %7891 = vmatpush.msrb.mxu1 %v7858_v33 }
 0xcde   :  { %7892 = vmatpush.msrb.mxu1 %v7857_v26 }
 0xce0   :  { %7893 = vmatpush.msrb.mxu1 %v7856_v6 }
 0xce2   :  { %7894 = vmatpush.msrb.mxu1 %v7855_v27  ;;  %v7911_v27 = vld [vmem:[%s10464_s10 + $0x18] sm:$0xff] }
 0xce4   :  { %7895 = vmatpush.msrb.mxu1 %v7854_v53  ;;  %v7954_v53 = vld [vmem:[%s10466_s12 + $0x28] sm:$0xff] }
 0xce6   :  { %7896 = vmatpush.msrb.mxu1 %v7853_v18  ;;  %v7952_v18 = vld [vmem:[%s10466_s12 + $0x18] sm:$0xff] }
 0xd12   :  { %v7141_v2 = vpop.f32.mrf.mxu1 }
 0xd13   :  { %8145 = vmatmul.msk.f32.vlgmr.msrb.gmra.mxu2 %vm6828_vm2, %v7141_v2  ;;  %8146 = vmatmul.msk.f32.vlgmr.msrb.gmra.mxu3 %vm6828_vm2, %v7141_v2 }
 0xd14   :  { %7411 = vmatpush.msrb.mxu2 %v7394_v46  ;;  %7431 = vmatpush.msrb.mxu3 %v7395_v31  ;;  %v7836_v46 = vld [vmem:[%s10462_s8 + $0x28] sm:$0xff] }
 0xd15   :  { %v7852_v31 = vld [vmem:[%s10462_s8 + $0xa8] sm:$0xff]  ;;  %7877 = vmatpush.msrb.mxu0 %v7836_v46  ;;  %v8226_v46 = vld [vmem:[%s10463_s9] ss:$0 sm:$0xff] }
 0xd16   :  { %7412 = vmatpush.msrb.mxu2 %v7392_v29  ;;  %7432 = vmatpush.msrb.mxu3 %v7393_v36  ;;  %v7835_v36 = vld [vmem:[%s10462_s8 + $0x20] sm:$0xff] }
 0xd17   :  { %7897 = vmatpush.msrb.mxu1 %v7852_v31  ;;  %7878 = vmatpush.msrb.mxu0 %v7835_v36 }
 0xd18   :  { %7413 = vmatpush.msrb.mxu2 %v7390_v37  ;;  %7433 = vmatpush.msrb.mxu3 %v7391_v8  ;;  %v7851_v37 = vld [vmem:[%s10462_s8 + $0xa0] sm:$0xff]  ;;  %v7834_v8 = vld [vmem:[%s10462_s8 + $0x18] sm:$0xff] }
 0xd19   :  { %7898 = vmatpush.msrb.mxu1 %v7851_v37  ;;  %7879 = vmatpush.msrb.mxu0 %v7834_v8  ;;  %v7951_v8 = vld [vmem:[%s10466_s12 + $0x10] sm:$0xff] }
 0xd1a   :  { %v7267_v5 = vpop.f32.mrf.mxu1  ;;  %7414 = vmatpush.msrb.mxu2 %v7388_v17  ;;  %7434 = vmatpush.msrb.mxu3 %v7389_v16  ;;  %v7850_v17 = vld [vmem:[%s10462_s8 + $0x98] sm:$0xff]  ;;  %v7833_v16 = vld [vmem:[%s10462_s8 + $0x10] sm:$0xff] }
 0xd1b   :  { %8151 = vmatmul.msk.f32.vlgmr.msra.gmra.mxu2 %vm6828_vm2, %v7267_v5  ;;  %8152 = vmatmul.msk.f32.vlgmr.msra.gmra.mxu3 %vm6828_vm2, %v7267_v5  ;;  %v7848_v5 = vld [vmem:[%s10462_s8 + $0x88] sm:$0xff] }
 0xd1c   :  { %7539 = vmatpush.msra.mxu2 %v7522_v61  ;;  %7559 = vmatpush.msra.mxu3 %v7523_v52  ;;  %v7849_v61 = vld [vmem:[%s10462_s8 + $0x90] sm:$0xff]  ;;  %v7832_v52 = vld [vmem:[%s10462_s8 + $0x8] sm:$0xff] }
 0xd1d   :  { %7899 = vmatpush.msrb.mxu1 %v7850_v17  ;;  %7880 = vmatpush.msrb.mxu0 %v7833_v16  ;;  %v7950_v17 = vld [vmem:[%s10466_s12 + $0x8] sm:$0xff]  ;;  %v7949_v16 = vld [vmem:[%s10466_s12] sm:$0xff] }
 0xd1e   :  { %7540 = vmatpush.msra.mxu2 %v7520_v7  ;;  %7560 = vmatpush.msra.mxu3 %v7521_v4  ;;  %v7831_v7 = vld [vmem:[%s10462_s8] sm:$0xff] }
 0xd1f   :  { %7900 = vmatpush.msrb.mxu1 %v7849_v61  ;;  %7881 = vmatpush.msrb.mxu0 %v7832_v52  ;;  %v7847_v4 = vld [vmem:[%s10462_s8 + $0x80] sm:$0xff]  ;;  %v7989_v61 = vld [vmem:[%s10468_s14 + $0x18] sm:$0xff] }
 0xd20   :  { %7541 = vmatpush.msra.mxu2 %v7518_v39  ;;  %7561 = vmatpush.msra.mxu3 %v7519_v59  ;;  %v8227_v52 = vld [vmem:[%s10465_s11] ss:$0 sm:$0xff] }
 0xd21   :  { %7901 = vmatpush.msrb.mxu1 %v7848_v5  ;;  %7882 = vmatpush.msrb.mxu0 %v7831_v7 }
 0xd22   :  { %v7385_v19 = vpop.f32.mrf.mxu1  ;;  %7542 = vmatpush.msra.mxu2 %v7516_v3  ;;  %7562 = vmatpush.msra.mxu3 %v7517_v42  ;;  %v7923_v3 = vld [vmem:[%s10464_s10 + $0x78] sm:$0xff]  ;;  %v7922_v42 = vld [vmem:[%s10464_s10 + $0x70] sm:$0xff] }
 0xd23   :  { %8157 = vmatmul.msk.f32.vlgmr.msrb.gmra.mxu2 %vm6828_vm2, %v7385_v19  ;;  %8158 = vmatmul.msk.f32.vlgmr.msrb.gmra.mxu3 %vm6828_vm2, %v7385_v19  ;;  %v7919_v19 = vld [vmem:[%s10464_s10 + $0x58] sm:$0xff] }
 0xd24   :  { %7665 = vmatpush.msrb.mxu2 %v7648_v43  ;;  %7685 = vmatpush.msrb.mxu3 %v7649_v20  ;;  %v7921_v43 = vld [vmem:[%s10464_s10 + $0x68] sm:$0xff]  ;;  %v7920_v20 = vld [vmem:[%s10464_s10 + $0x60] sm:$0xff] }
 0xd25   :  { %7902 = vmatpush.msrb.mxu1 %v7847_v4 }
 0xd26   :  { %7666 = vmatpush.msrb.mxu2 %v7646_v9  ;;  %7686 = vmatpush.msrb.mxu3 %v7647_v34  ;;  %v7918_v9 = vld [vmem:[%s10464_s10 + $0x50] sm:$0xff] }
 0xd28   :  { %7667 = vmatpush.msrb.mxu2 %v7644_v51  ;;  %7687 = vmatpush.msrb.mxu3 %v7645_v58  ;;  %v7917_v58 = vld [vmem:[%s10464_s10 + $0x48] sm:$0xff] }
 0xd2a   :  { %v7513_v47 = vpop.f32.mrf.mxu1  ;;  %7668 = vmatpush.msrb.mxu2 %v7642_v60  ;;  %7688 = vmatpush.msrb.mxu3 %v7643_v25 }
 0xd2b   :  { %8163 = vmatmul.msk.f32.vlgmr.msra.gmra.mxu2 %vm6828_vm2, %v7513_v47  ;;  %8164 = vmatmul.msk.f32.vlgmr.msra.gmra.mxu3 %vm6828_vm2, %v7513_v47  ;;  %v7916_v47 = vld [vmem:[%s10464_s10 + $0x40] sm:$0xff] }
 0xd2c   :  { %7791 = vmatpush.msra.mxu2 %v7774_v40  ;;  %7811 = vmatpush.msra.mxu3 %v7775_v10  ;;  %v7915_v40 = vld [vmem:[%s10464_s10 + $0x38] sm:$0xff] }
 0xd2e   :  { %7792 = vmatpush.msra.mxu2 %v7772_v21  ;;  %7812 = vmatpush.msra.mxu3 %v7773_v62  ;;  %v7048_v48 = vpop.f32.mrf.mxu2  ;;  %v7068_v13 = vpop.f32.mrf.mxu3  ;;  %v7914_v62 = vld [vmem:[%s10464_s10 + $0x30] sm:$0xff] }
 0xd2f   :  { %v7049_v60 = vadd.f32 %v7048_v48, %v10150_v50  ;;  %v7069_v25 = vadd.f32 %v7068_v13, %v10238_v22  ;;  %v7913_v50 = vld [vmem:[%s10464_s10 + $0x28] sm:$0xff]  ;;  %v7910_v48 = vld [vmem:[%s10464_s10 + $0x10] sm:$0xff] }
 0xd30   :  { %7793 = vmatpush.msra.mxu2 %v7770_v0  ;;  %7813 = vmatpush.msra.mxu3 %v7771_v54  ;;  %v7909_v13 = vld [vmem:[%s10464_s10 + $0x8] sm:$0xff] }
 0xd32   :  { %7794 = vmatpush.msra.mxu2 %v7768_v63  ;;  %7814 = vmatpush.msra.mxu3 %v7769_v35 }
 0xd50   :  { %v7639_v30 = vpop.f32.mrf.mxu1 }
 0xd51   :  { %8169 = vmatmul.msk.f32.vlgmr.msrb.gmra.mxu2 %vm6828_vm2, %v7639_v30  ;;  %8170 = vmatmul.msk.f32.vlgmr.msrb.gmra.mxu3 %vm6828_vm2, %v7639_v30 }
 0xd52   :  { %7928 = vmatpush.msrb.mxu2 %v7923_v3  ;;  %v7986_v3 = vld [vmem:[%s10468_s14] sm:$0xff] }
 0xd54   :  { %7929 = vmatpush.msrb.mxu2 %v7922_v42  ;;  %v8228_v42 = vld [vmem:[#allocation12] ss:$0 sm:$0xff] }
 0xd56   :  { %7930 = vmatpush.msrb.mxu2 %v7921_v43 }
 0xd58   :  { %v7765_v41 = vpop.f32.mrf.mxu1  ;;  %7931 = vmatpush.msrb.mxu2 %v7920_v20 }
 0xd59   :  { %8175 = vmatmul.msk.f32.vlgmr.msra.gmra.mxu2 %vm6828_vm2, %v7765_v41  ;;  %8176 = vmatmul.msk.f32.vlgmr.msra.gmra.mxu3 %vm6828_vm2, %v7765_v41  ;;  %v7912_v41 = vld [vmem:[%s10464_s10 + $0x20] sm:$0xff] }
 0xd5a   :  { %7932 = vmatpush.msrb.mxu2 %v7919_v19 }
 0xd5c   :  { %7933 = vmatpush.msrb.mxu2 %v7918_v9  ;;  %v8019_v9 = vld [vmem:[%s10470_s16 + $0x8] sm:$0xff] }
 0xd5e   :  { %7934 = vmatpush.msrb.mxu2 %v7917_v58 }
 0xd60   :  { %7935 = vmatpush.msrb.mxu2 %v7916_v47 }
 0xd62   :  { %7936 = vmatpush.msrb.mxu2 %v7915_v40 }
 0xd64   :  { %7937 = vmatpush.msrb.mxu2 %v7914_v62 }
 0xd66   :  { %7938 = vmatpush.msrb.mxu2 %v7913_v50 }
 0xd68   :  { %7939 = vmatpush.msrb.mxu2 %v7912_v41 }
 0xd6a   :  { %7940 = vmatpush.msrb.mxu2 %v7911_v27 }
 0xd6c   :  { %7941 = vmatpush.msrb.mxu2 %v7910_v48 }
 0xd6e   :  { %7942 = vmatpush.msrb.mxu2 %v7909_v13 }
 0xd96   :  { %v7172_v44 = vpop.f32.mrf.mxu2  ;;  %v7192_v1 = vpop.f32.mrf.mxu3 }
 0xd97   :  { %v7195_v10 = vadd.f32 %v7172_v44, %v7049_v60  ;;  %v7196_v21 = vadd.f32 %v7192_v1, %v7069_v25  ;;  %v7908_v44 = vld [vmem:[%s10464_s10] sm:$0xff]  ;;  %v7956_v1 = vld [vmem:[%s10466_s12 + $0x38] sm:$0xff]  ;;  %v8230_v25 = vld [vmem:[#allocation3] ss:$0 sm:$0xff] }
 0xd98   :  { %7943 = vmatpush.msrb.mxu2 %v7908_v44  ;;  %7973 = vmatpush.msrb.mxu3 %v7956_v1 }
 0xd9a   :  { %7974 = vmatpush.msrb.mxu3 %v7955_v23 }
 0xd9c   :  { %7975 = vmatpush.msrb.mxu3 %v7954_v53 }
 0xd9e   :  { %v7298_v2 = vpop.f32.mrf.mxu2  ;;  %v7318_v29 = vpop.f32.mrf.mxu3  ;;  %7976 = vmatpush.msrb.mxu3 %v7953_v55 }
 0xd9f   :  { %v7321_v63 = vadd.f32 %v7298_v2, %v7195_v10  ;;  %v7322_v35 = vadd.f32 %v7318_v29, %v7196_v21 }
 0xda0   :  { %7977 = vmatpush.msrb.mxu3 %v7952_v18 }
 0xda2   :  { %7978 = vmatpush.msrb.mxu3 %v7951_v8 }
 0xda4   :  { %7979 = vmatpush.msrb.mxu3 %v7950_v17 }
 0xda6   :  { %v7416_v39 = vpop.f32.mrf.mxu2  ;;  %v7436_v59 = vpop.f32.mrf.mxu3  ;;  %7980 = vmatpush.msrb.mxu3 %v7949_v16 }
 0xda7   :  { %v7439_v22 = vadd.f32 %v7416_v39, %v7321_v63  ;;  %v7440_v30 = vadd.f32 %v7436_v59, %v7322_v35  ;;  %v7988_v39 = vld [vmem:[%s10468_s14 + $0x10] sm:$0xff]  ;;  %v7987_v59 = vld [vmem:[%s10468_s14 + $0x8] sm:$0xff] }
 0xda8   :  { %8009 = vmatpush.msra.mxu3 %v7989_v61 }
 0xdaa   :  { %8010 = vmatpush.msra.mxu3 %v7988_v39 }
 0xdac   :  { %8011 = vmatpush.msra.mxu3 %v7987_v59 }
 0xdae   :  { %v7544_v34 = vpop.f32.mrf.mxu2  ;;  %v7564_v51 = vpop.f32.mrf.mxu3  ;;  %8012 = vmatpush.msra.mxu3 %v7986_v3 }
 0xdaf   :  { %v7567_v32 = vadd.f32 %v7544_v34, %v7439_v22  ;;  %v7568_v28 = vadd.f32 %v7564_v51, %v7440_v30  ;;  %v8018_v34 = vld [vmem:[%s10470_s16] sm:$0xff]  ;;  %v8229_v51 = vld [vmem:[#allocation14] ss:$0 sm:$0xff] }
 0xdd4   :  { %v7670_v0 = vpop.f32.mrf.mxu2  ;;  %v7690_v54 = vpop.f32.mrf.mxu3 }
 0xdd5   :  { %v7693_v14 = vadd.f32 %v7670_v0, %v7567_v32  ;;  %v7694_v45 = vadd.f32 %v7690_v54, %v7568_v28 }
 0xddc   :  { %v7796_v24 = vpop.f32.mrf.mxu2  ;;  %v7816_v57 = vpop.f32.mrf.mxu3 }
 0xddd   :  { %v7819_v33 = vadd.f32 %v7796_v24, %v7693_v14  ;;  %v7820_v15 = vadd.f32 %v7816_v57, %v7694_v45 }
 0xddf   :  { %v7827_v26 = vadd.f32 %v7823_v49, %v7819_v33  ;;  %v7828_v56 = vadd.f32 %v7824_v12, %v7820_v15 }
 0xde1   :  { %v7829_v6 = vmax.f32 %v7827_v26, 0.0  ;;  %v7830_v38 = vmax.f32 %v7828_v56, 0.0 }
 0xde3   :  { %7883 = vmatmul.f32.vlgmr.msrb.gmra.mxu0 %v7829_v6  ;;  %7903 = vmatmul.f32.vlgmr.msrb.gmra.mxu1 %v7830_v38 }
 0xe60   :  { %v7884_v31 = vpop.f32.mrf.mxu0  ;;  %v7904_v29 = vpop.f32.mrf.mxu1 }
 0xe61   :  { %v7885_v2 = vadd.f32 %v8226_v46, %v7884_v31 }
 0xe63   :  { %v7905_v36 = vadd.f32 %v7904_v29, %v7885_v2 }
 0xe65   :  { %v7907_v37 = vmax.f32 %v7905_v36, 0.0 }
 0xe67   :  { %7944 = vmatmul.f32.vlgmr.msrb.gmra.mxu2 %v7907_v37 }
 0xeea   :  { %v7945_v5 = vpop.f32.mrf.mxu2 }
 0xeeb   :  { %v7946_v7 = vadd.f32 %v8227_v52, %v7945_v5 }
 0xeed   :  { %v7948_v4 = vmax.f32 %v7946_v7, 0.0 }
 0xeef   :  { %8177 = vmatmul.msk.f32.vlgmr.msrb.gmra.mxu3 %vm7961_vm6, %v7948_v4 }
 0xef0   :  { %8041 = vmatpush.msrb.mxu3 %v8019_v9 }
 0xef2   :  { %8042 = vmatpush.msrb.mxu3 %v8018_v34 }
 0xf72   :  { %v7982_v43 = vpop.f32.mrf.mxu3 }
 0xf73   :  { %v7983_v20 = vadd.f32 %v8228_v42, %v7982_v43 }
 0xf75   :  { %v7985_v19 = vmax.f32 %v7983_v20, 0.0 }
 0xf77   :  { %8178 = vmatmul.msk.f32.vlgmr.msra.gmra.mxu3 %vm6828_vm2, %v7985_v19 }
 0xffa   :  { %v8014_v58 = vpop.f32.mrf.mxu3 }
 0xffb   :  { %v8015_v47 = vadd.f32 %v8229_v51, %v8014_v58 }
 0xffd   :  { %v8017_v60 = vmax.f32 %v8015_v47, 0.0 }
 0xfff   :  { %8179 = vmatmul.msk.f32.vlgmr.msrb.gmra.mxu3 %vm6870_vm5, %v8017_v60 }
0x1082   :  { %v8044_v40 = vpop.f32.mrf.mxu3 }
0x1083   :  { %v8045_v10 = vadd.f32 %v8230_v25, %v8044_v40 }
0x1085   :  { %8048 = vst.msk [vmem:[%s10472_s18] sm:$0x3] %vm8047_vm7, %v8045_v10 }
0x1086   :  { %8053 = vsyncpa [#allocation5], 1 }
0x1087   :  { %8054 = vsyncpa [#allocation7], 1 }
0x1088   :  { %8055 = vsyncpa [#allocation10], 1 }
0x1089   :  { %8056 = vsyncpa [#allocation13], 1 }

</bundles_post_ra>
